<compile_context>
chip_gen: v7x
topology: tpu7x:2x2x1
jax: 0.10.0
libtpu: 0.0.40
codegen_flags: <defaults>
</compile_context>

<pallas_src>
import functools

import numpy as np
import jax
import jax.numpy as jnp
from jax.experimental import pallas as pl
from jax.experimental.pallas import tpu as pltpu


def _round_up(a, m):
    return (a + m - 1) // m * m


# ----------------------------------------------------------------------------
# Pallas kernel: tiled matmul with fused bias add + activation
# ----------------------------------------------------------------------------
def _matmul_bias_act_kernel(x_ref, w_ref, b_ref, o_ref, acc_ref, *, activation):
    k = pl.program_id(2)

    @pl.when(k == 0)
    def _():
        acc_ref[...] = jnp.zeros_like(acc_ref)

    acc_ref[...] += jnp.dot(x_ref[...], w_ref[...],
                            preferred_element_type=jnp.float32)

    @pl.when(k == pl.num_programs(2) - 1)
    def _():
        out = acc_ref[...] + b_ref[...]
        if activation == "relu":
            out = jnp.maximum(out, 0.0)
        elif activation == "elu":
            out = jnp.where(out > 0, out, jnp.expm1(out))
        o_ref[...] = out.astype(o_ref.dtype)


def matmul_bias_act(x, w, b, activation=None, *, tm=128, tn=None, tk=None):
    """out = act(x @ w + b).

    x: (M, K) activations (only M is padded here, never the weight).
    w: (K, N) weights, used as-is: tn must divide N and tk must divide K so
       there is no per-call copy/pad of the (possibly huge) weight.
    b: (1, N) bias.
    """
    M, K = x.shape
    K2, N = w.shape
    assert K == K2 and b.shape == (1, N)

    if tn is None:                      # full-dim block for small N (no pad)
        tn = N if N <= 128 else 512
    if tk is None:                      # full-dim block for small K (no pad)
        tk = K if K <= 512 else 512

    # BlockSpec legality + "never pad the weight" requirements.
    assert N % tn == 0 and (tn % 128 == 0 or tn == N), (N, tn)
    assert K % tk == 0 and (tk % 128 == 0 or tk == K), (K, tk)
    assert tk % 8 == 0 or tk == K, (K, tk)

    tm = min(tm, _round_up(M, 8))
    Mp = _round_up(M, tm)
    xp = jnp.pad(x, ((0, Mp - M), (0, 0))) if Mp != M else x

    kernel = functools.partial(_matmul_bias_act_kernel, activation=activation)
    out = pl.pallas_call(
        kernel,
        out_shape=jax.ShapeDtypeStruct((Mp, N), jnp.float32),
        grid_spec=pltpu.PrefetchScalarGridSpec(
            num_scalar_prefetch=0,
            grid=(Mp // tm, N // tn, K // tk),
            in_specs=[
                pl.BlockSpec((tm, tk), lambda i, j, k: (i, k)),
                pl.BlockSpec((tk, tn), lambda i, j, k: (k, j)),
                pl.BlockSpec((1, tn), lambda i, j, k: (0, j)),
            ],
            out_specs=pl.BlockSpec((tm, tn), lambda i, j, k: (i, j)),
            scratch_shapes=[pltpu.VMEM((tm, tn), jnp.float32)],
        ),
        compiler_params=pltpu.CompilerParams(
            dimension_semantics=("parallel", "parallel", "arbitrary"),
            vmem_limit_bytes=48 * 1024 * 1024,
        ),
    )(xp, w, b)
    return out[:M] if Mp != M else out


# ----------------------------------------------------------------------------
# Glue: im2col (NHWC) and adaptive max pool (NHWC)
# ----------------------------------------------------------------------------
def im2col_nhwc(x, kh, kw, stride, pad):
    """x: (B, H, W, C) -> patches (B*Ho*Wo, C*kh*kw).

    Feature order is c*kh*kw + (i*kw + j), matching PyTorch conv weight
    (O, C, kh, kw).reshape(O, -1)."""
    if pad:
        x = jnp.pad(x, ((0, 0), (pad, pad), (pad, pad), (0, 0)))
    B, H, W, C = x.shape
    Ho = (H - kh) // stride + 1
    Wo = (W - kw) // stride + 1
    slices = []
    for i in range(kh):
        for j in range(kw):
            slices.append(x[:, i:i + stride * Ho:stride,
                            j:j + stride * Wo:stride, :])      # (B, Ho, Wo, C)
    p = jnp.stack(slices, axis=-1)                              # (B,Ho,Wo,C,kh*kw)
    p = p.reshape(B * Ho * Wo, C * kh * kw)
    return p, Ho, Wo


def adaptive_max_pool2d_nhwc(x, out_size):
    """Matches torch.nn.AdaptiveMaxPool2d(out_size), input/output NHWC."""
    B, H, W, C = x.shape

    def windows(in_size):
        i = np.arange(out_size)
        starts = (i * in_size) // out_size
        ends = ((i + 1) * in_size + out_size - 1) // out_size   # ceil
        kmax = int((ends - starts).max())
        idx = starts[:, None] + np.arange(kmax)[None, :]
        mask = idx < ends[:, None]
        idx = np.minimum(idx, in_size - 1)
        return jnp.asarray(idx), jnp.asarray(mask)

    hi, hm = windows(H)
    wi, wm = windows(W)
    neg = jnp.finfo(x.dtype).min
    g = x[:, hi, :, :]                                          # (B,out,kh,W,C)
    g = jnp.where(hm[None, :, :, None, None], g, neg)
    g = g.max(axis=2)                                           # (B,out,W,C)
    g = g[:, :, wi, :]                                          # (B,out,out,kw,C)
    g = jnp.where(wm[None, None, :, :, None], g, neg)
    return g.max(axis=3)                                        # (B,out,out,C)


# ----------------------------------------------------------------------------
# BleedNet3 forward (expects params from prepare_params)
# ----------------------------------------------------------------------------
def bleednet3_forward(x, params, activation="relu"):
    B = x.shape[0]
    x = jnp.transpose(x, (0, 2, 3, 1))                          # NCHW -> NHWC

    # layer1: Conv2d(1, 32, k=8, s=2, p=0) + activation
    p, ho, wo = im2col_nhwc(x, 8, 8, 2, 0)
    y = matmul_bias_act(p, params["w1"], params["b1"], activation)
    y = y.reshape(B, ho, wo, 32)                                # NHWC

    # layer2: Conv2d(32, 64, k=4, s=2, p=1) + activation + AdaptiveMaxPool2d(50)
    p, ho, wo = im2col_nhwc(y, 4, 4, 2, 1)
    y = matmul_bias_act(p, params["w2"], params["b2"], activation)
    y = y.reshape(B, ho, wo, 64)                                # NHWC
    y = adaptive_max_pool2d_nhwc(y, 50)                         # (B, 50, 50, 64)

    # wrap_up: Linear(64*50*50 -> 1024) + activation.  wl1 rows were permuted
    # once (at prepare time) into NHWC flatten order, so no transpose here.
    y = y.reshape(B, -1)                                        # (B, 160000)
    y = matmul_bias_act(y, params["wl1"], params["bl1"], activation,
                        tm=8, tn=512, tk=3200)                  # grid (1,2,50)

    # final Linear(1024 -> 2): too tiny for a pallas_call (N=2 would pad to a
    # full lane tile); a plain XLA dot is faster and simpler.
    y = y @ params["wl2"] + params["bl2"]
    return y


# ----------------------------------------------------------------------------
# Parameter init (PyTorch layout) and one-time kernel-layout preparation
# ----------------------------------------------------------------------------
def init_params_torch_layout():
    key = jax.random.PRNGKey(42)
    ks = jax.random.split(key, 8)

    def unif(k, shape, fan_in):
        bound = 1.0 / np.sqrt(fan_in)
        return jax.random.uniform(k, shape, jnp.float32, -bound, bound)

    return {
        "w1": unif(ks[0], (32, 1, 8, 8), 1 * 8 * 8),
        "b1": unif(ks[1], (32,), 1 * 8 * 8),
        "w2": unif(ks[2], (64, 32, 4, 4), 32 * 4 * 4),
        "b2": unif(ks[3], (64,), 32 * 4 * 4),
        # torch nn.Linear stores weight as (out_features, in_features)
        "wl1": unif(ks[4], (1024, 64 * 50 * 50), 64 * 50 * 50),
        "bl1": unif(ks[5], (1024,), 64 * 50 * 50),
        "wl2": unif(ks[6], (2, 1024), 1024),
        "bl2": unif(ks[7], (2,), 1024),
    }


def prepare_params(tp):
    """One-time conversion from PyTorch layout to kernel layout.

    All reshapes / transposes / permutations (including the fc1 row
    permutation to NHWC flatten order) happen here exactly once, so the
    steady-state forward pass never copies or pads a weight."""
    # fc1: torch weight (1024, 160000) with in-features in NCHW (c,h,w) order.
    # Kernel wants (160000, 1024) with rows in NHWC (h,w,c) order.
    wl1 = tp["wl1"].reshape(1024, 64, 50, 50)
    wl1 = wl1.transpose(2, 3, 1, 0).reshape(64 * 50 * 50, 1024)
    return {
        "w1": tp["w1"].reshape(32, -1).T,          # (64, 32)
        "b1": tp["b1"].reshape(1, -1),
        "w2": tp["w2"].reshape(64, -1).T,          # (512, 64)
        "b2": tp["b2"].reshape(1, -1),
        "wl1": wl1,                                # (160000, 1024)
        "bl1": tp["bl1"].reshape(1, -1),
        "wl2": tp["wl2"].T,                        # (1024, 2)
        "bl2": tp["bl2"],                          # (2,)
    }


if __name__ == "__main__":
    # Input consistent with the module: batch=2, 1 channel, 64x64 image.
    x = jax.random.normal(jax.random.PRNGKey(0), (2, 1, 64, 64), jnp.float32)

    torch_params = init_params_torch_layout()
    params = jax.tree_util.tree_map(jax.block_until_ready,
                                    prepare_params(torch_params))

    fwd = jax.jit(functools.partial(bleednet3_forward, activation="relu"))
    out = fwd(x, params)
    out = jax.block_until_ready(out)

    assert out.shape == (2, 2), out.shape
    assert out.dtype == jnp.float32
    assert bool(jnp.all(jnp.isfinite(out)))
    print("KERNEL_OK")
</pallas_src>

<mosaic_0001>
module attributes {stable_mosaic.version = 11 : i64} {
  func.func @_matmul_bias_act_kernel(%arg0: i32, %arg1: i32, %arg2: i32, %arg3: memref<128x64xf32, #tpu.memory_space<vmem>>, %arg4: memref<64x32xf32, #tpu.memory_space<vmem>>, %arg5: memref<1x32xf32, #tpu.memory_space<vmem>>, %arg6: memref<128x32xf32, #tpu.memory_space<vmem>>, %arg7: memref<128x32xf32, #tpu.memory_space<vmem>>) attributes {dimension_semantics = [#tpu.dimension_semantics<parallel>, #tpu.dimension_semantics<parallel>, #tpu.dimension_semantics<arbitrary>], iteration_bounds = array<i64: 14, 1, 1>, scalar_prefetch = 0 : i64, scratch_operands = 1 : i64, tpu.core_type = #tpu.core_type<tc>, window_params = [{transform_indices = @transform_0, window_bounds = array<i64: 128, 64>}, {transform_indices = @transform_1, window_bounds = array<i64: 64, 32>}, {transform_indices = @transform_2, window_bounds = array<i64: 1, 32>}, {transform_indices = @transform_3, window_bounds = array<i64: 128, 32>}]} {
    %c0_i32 = arith.constant 0 : i32
    %0 = arith.cmpi eq, %arg2, %c0_i32 : i32
    %1 = arith.extui %0 : i1 to i32
    %c0_i32_0 = arith.constant 0 : i32
    %2 = arith.cmpi ne, %1, %c0_i32_0 : i32
    scf.if %2 {
      %cst_10 = arith.constant 0.000000e+00 : f32
      %12 = vector.broadcast %cst_10 : f32 to vector<128x32xf32>
      %c0_11 = arith.constant 0 : index
      %c0_12 = arith.constant 0 : index
      %13 = vector.load %arg7[%c0_11, %c0_12] : memref<128x32xf32, #tpu.memory_space<vmem>>, vector<128x32xf32>
      tpu.vector_store %arg7[%c0_11, %c0_12], %12 {strides = array<i32>} : memref<128x32xf32, #tpu.memory_space<vmem>>, vector<128x32xf32>,
    } else {
    }
    %c0 = arith.constant 0 : index
    %c0_1 = arith.constant 0 : index
    %3 = vector.load %arg7[%c0, %c0_1] : memref<128x32xf32, #tpu.memory_space<vmem>>, vector<128x32xf32>
    %c0_2 = arith.constant 0 : index
    %c0_3 = arith.constant 0 : index
    %4 = vector.load %arg3[%c0_2, %c0_3] : memref<128x64xf32, #tpu.memory_space<vmem>>, vector<128x64xf32>
    %c0_4 = arith.constant 0 : index
    %c0_5 = arith.constant 0 : index
    %5 = vector.load %arg4[%c0_4, %c0_5] : memref<64x32xf32, #tpu.memory_space<vmem>>, vector<64x32xf32>
    %cst = arith.constant dense<0.000000e+00> : vector<128x32xf32>
    %6 = tpu.matmul %4, %5, %cst {dimension_numbers = #tpu.dot_dimension_numbers<[1], [0], [0], [1], [0, 0, 1, 1], [], []>} : vector<128x64xf32>, vector<64x32xf32>, vector<128x32xf32> -> vector<128x32xf32>
    %7 = arith.addf %3, %6 : vector<128x32xf32>
    %c0_6 = arith.constant 0 : index
    %c0_7 = arith.constant 0 : index
    %8 = vector.load %arg7[%c0_6, %c0_7] : memref<128x32xf32, #tpu.memory_space<vmem>>, vector<128x32xf32>
    tpu.vector_store %arg7[%c0_6, %c0_7], %7 {strides = array<i32>} : memref<128x32xf32, #tpu.memory_space<vmem>>, vector<128x32xf32>,
    %c0_i32_8 = arith.constant 0 : i32
    %9 = arith.cmpi eq, %arg2, %c0_i32_8 : i32
    %10 = arith.extui %9 : i1 to i32
    %c0_i32_9 = arith.constant 0 : i32
    %11 = arith.cmpi ne, %10, %c0_i32_9 : i32
    scf.if %11 {
      %c0_10 = arith.constant 0 : index
      %c0_11 = arith.constant 0 : index
      %12 = vector.load %arg7[%c0_10, %c0_11] : memref<128x32xf32, #tpu.memory_space<vmem>>, vector<128x32xf32>
      %c0_12 = arith.constant 0 : index
      %c0_13 = arith.constant 0 : index
      %13 = vector.load %arg5[%c0_12, %c0_13] : memref<1x32xf32, #tpu.memory_space<vmem>>, vector<1x32xf32>
      %14 = vector.broadcast %13 : vector<1x32xf32> to vector<128x32xf32>
      %15 = arith.addf %12, %14 : vector<128x32xf32>
      %cst_14 = arith.constant 0.000000e+00 : f32
      %16 = vector.broadcast %cst_14 : f32 to vector<128x32xf32>
      %17 = arith.maximumf %15, %16 : vector<128x32xf32>
      %c0_15 = arith.constant 0 : index
      %c0_16 = arith.constant 0 : index
      %18 = vector.load %arg6[%c0_15, %c0_16] : memref<128x32xf32, #tpu.memory_space<vmem>>, vector<128x32xf32>
      tpu.vector_store %arg6[%c0_15, %c0_16], %17 {strides = array<i32>} : memref<128x32xf32, #tpu.memory_space<vmem>>, vector<128x32xf32>,
    } else {
    }
    return
  }
  func.func @transform_0(%arg0: i32, %arg1: i32, %arg2: i32) -> (i32, i32) {
    %c0_i32 = arith.constant 0 : i32
    return %arg0, %arg2 : i32, i32
  }
  func.func @transform_1(%arg0: i32, %arg1: i32, %arg2: i32) -> (i32, i32) {
    %c0_i32 = arith.constant 0 : i32
    return %arg2, %arg1 : i32, i32
  }
  func.func @transform_2(%arg0: i32, %arg1: i32, %arg2: i32) -> (i32, i32) {
    %c0_i32 = arith.constant 0 : i32
    %c0_i32_0 = arith.constant 0 : i32
    return %c0_i32, %arg1 : i32, i32
  }
  func.func @transform_3(%arg0: i32, %arg1: i32, %arg2: i32) -> (i32, i32) {
    %c0_i32 = arith.constant 0 : i32
    return %arg0, %arg1 : i32, i32
  }
}

module attributes {stable_mosaic.version = 11 : i64} {
  func.func @_matmul_bias_act_kernel(%arg0: i32, %arg1: i32, %arg2: i32, %arg3: memref<128x512xf32, #tpu.memory_space<vmem>>, %arg4: memref<512x64xf32, #tpu.memory_space<vmem>>, %arg5: memref<1x64xf32, #tpu.memory_space<vmem>>, %arg6: memref<128x64xf32, #tpu.memory_space<vmem>>, %arg7: memref<128x64xf32, #tpu.memory_space<vmem>>) attributes {dimension_semantics = [#tpu.dimension_semantics<parallel>, #tpu.dimension_semantics<parallel>, #tpu.dimension_semantics<arbitrary>], iteration_bounds = array<i64: 4, 1, 1>, scalar_prefetch = 0 : i64, scratch_operands = 1 : i64, tpu.core_type = #tpu.core_type<tc>, window_params = [{transform_indices = @transform_0, window_bounds = array<i64: 128, 512>}, {transform_indices = @transform_1, window_bounds = array<i64: 512, 64>}, {transform_indices = @transform_2, window_bounds = array<i64: 1, 64>}, {transform_indices = @transform_3, window_bounds = array<i64: 128, 64>}]} {
    %c0_i32 = arith.constant 0 : i32
    %0 = arith.cmpi eq, %arg2, %c0_i32 : i32
    %1 = arith.extui %0 : i1 to i32
    %c0_i32_0 = arith.constant 0 : i32
    %2 = arith.cmpi ne, %1, %c0_i32_0 : i32
    scf.if %2 {
      %cst_10 = arith.constant 0.000000e+00 : f32
      %12 = vector.broadcast %cst_10 : f32 to vector<128x64xf32>
      %c0_11 = arith.constant 0 : index
      %c0_12 = arith.constant 0 : index
      %13 = vector.load %arg7[%c0_11, %c0_12] : memref<128x64xf32, #tpu.memory_space<vmem>>, vector<128x64xf32>
      tpu.vector_store %arg7[%c0_11, %c0_12], %12 {strides = array<i32>} : memref<128x64xf32, #tpu.memory_space<vmem>>, vector<128x64xf32>,
    } else {
    }
    %c0 = arith.constant 0 : index
    %c0_1 = arith.constant 0 : index
    %3 = vector.load %arg7[%c0, %c0_1] : memref<128x64xf32, #tpu.memory_space<vmem>>, vector<128x64xf32>
    %c0_2 = arith.constant 0 : index
    %c0_3 = arith.constant 0 : index
    %4 = vector.load %arg3[%c0_2, %c0_3] : memref<128x512xf32, #tpu.memory_space<vmem>>, vector<128x512xf32>
    %c0_4 = arith.constant 0 : index
    %c0_5 = arith.constant 0 : index
    %5 = vector.load %arg4[%c0_4, %c0_5] : memref<512x64xf32, #tpu.memory_space<vmem>>, vector<512x64xf32>
    %cst = arith.constant dense<0.000000e+00> : vector<128x64xf32>
    %6 = tpu.matmul %4, %5, %cst {dimension_numbers = #tpu.dot_dimension_numbers<[1], [0], [0], [1], [0, 0, 1, 1], [], []>} : vector<128x512xf32>, vector<512x64xf32>, vector<128x64xf32> -> vector<128x64xf32>
    %7 = arith.addf %3, %6 : vector<128x64xf32>
    %c0_6 = arith.constant 0 : index
    %c0_7 = arith.constant 0 : index
    %8 = vector.load %arg7[%c0_6, %c0_7] : memref<128x64xf32, #tpu.memory_space<vmem>>, vector<128x64xf32>
    tpu.vector_store %arg7[%c0_6, %c0_7], %7 {strides = array<i32>} : memref<128x64xf32, #tpu.memory_space<vmem>>, vector<128x64xf32>,
    %c0_i32_8 = arith.constant 0 : i32
    %9 = arith.cmpi eq, %arg2, %c0_i32_8 : i32
    %10 = arith.extui %9 : i1 to i32
    %c0_i32_9 = arith.constant 0 : i32
    %11 = arith.cmpi ne, %10, %c0_i32_9 : i32
    scf.if %11 {
      %c0_10 = arith.constant 0 : index
      %c0_11 = arith.constant 0 : index
      %12 = vector.load %arg7[%c0_10, %c0_11] : memref<128x64xf32, #tpu.memory_space<vmem>>, vector<128x64xf32>
      %c0_12 = arith.constant 0 : index
      %c0_13 = arith.constant 0 : index
      %13 = vector.load %arg5[%c0_12, %c0_13] : memref<1x64xf32, #tpu.memory_space<vmem>>, vector<1x64xf32>
      %14 = vector.broadcast %13 : vector<1x64xf32> to vector<128x64xf32>
      %15 = arith.addf %12, %14 : vector<128x64xf32>
      %cst_14 = arith.constant 0.000000e+00 : f32
      %16 = vector.broadcast %cst_14 : f32 to vector<128x64xf32>
      %17 = arith.maximumf %15, %16 : vector<128x64xf32>
      %c0_15 = arith.constant 0 : index
      %c0_16 = arith.constant 0 : index
      %18 = vector.load %arg6[%c0_15, %c0_16] : memref<128x64xf32, #tpu.memory_space<vmem>>, vector<128x64xf32>
      tpu.vector_store %arg6[%c0_15, %c0_16], %17 {strides = array<i32>} : memref<128x64xf32, #tpu.memory_space<vmem>>, vector<128x64xf32>,
    } else {
    }
    return
  }
  func.func @transform_0(%arg0: i32, %arg1: i32, %arg2: i32) -> (i32, i32) {
    %c0_i32 = arith.constant 0 : i32
    return %arg0, %arg2 : i32, i32
  }
  func.func @transform_1(%arg0: i32, %arg1: i32, %arg2: i32) -> (i32, i32) {
    %c0_i32 = arith.constant 0 : i32
    return %arg2, %arg1 : i32, i32
  }
  func.func @transform_2(%arg0: i32, %arg1: i32, %arg2: i32) -> (i32, i32) {
    %c0_i32 = arith.constant 0 : i32
    %c0_i32_0 = arith.constant 0 : i32
    return %c0_i32, %arg1 : i32, i32
  }
  func.func @transform_3(%arg0: i32, %arg1: i32, %arg2: i32) -> (i32, i32) {
    %c0_i32 = arith.constant 0 : i32
    return %arg0, %arg1 : i32, i32
  }
}

module attributes {stable_mosaic.version = 11 : i64} {
  func.func @_matmul_bias_act_kernel(%arg0: i32, %arg1: i32, %arg2: i32, %arg3: memref<8x3200xf32, #tpu.memory_space<vmem>>, %arg4: memref<3200x512xf32, #tpu.memory_space<vmem>>, %arg5: memref<1x512xf32, #tpu.memory_space<vmem>>, %arg6: memref<8x512xf32, #tpu.memory_space<vmem>>, %arg7: memref<8x512xf32, #tpu.memory_space<vmem>>) attributes {dimension_semantics = [#tpu.dimension_semantics<parallel>, #tpu.dimension_semantics<parallel>, #tpu.dimension_semantics<arbitrary>], iteration_bounds = array<i64: 1, 2, 50>, scalar_prefetch = 0 : i64, scratch_operands = 1 : i64, tpu.core_type = #tpu.core_type<tc>, window_params = [{transform_indices = @transform_0, window_bounds = array<i64: 8, 3200>}, {transform_indices = @transform_1, window_bounds = array<i64: 3200, 512>}, {transform_indices = @transform_2, window_bounds = array<i64: 1, 512>}, {transform_indices = @transform_3, window_bounds = array<i64: 8, 512>}]} {
    %c0_i32 = arith.constant 0 : i32
    %0 = arith.cmpi eq, %arg2, %c0_i32 : i32
    %1 = arith.extui %0 : i1 to i32
    %c0_i32_0 = arith.constant 0 : i32
    %2 = arith.cmpi ne, %1, %c0_i32_0 : i32
    scf.if %2 {
      %cst_9 = arith.constant 0.000000e+00 : f32
      %12 = vector.broadcast %cst_9 : f32 to vector<8x512xf32>
      %c0_10 = arith.constant 0 : index
      %c0_11 = arith.constant 0 : index
      %13 = vector.load %arg7[%c0_10, %c0_11] : memref<8x512xf32, #tpu.memory_space<vmem>>, vector<8x512xf32>
      tpu.vector_store %arg7[%c0_10, %c0_11], %12 {strides = array<i32>} : memref<8x512xf32, #tpu.memory_space<vmem>>, vector<8x512xf32>,
    } else {
    }
    %c0 = arith.constant 0 : index
    %c0_1 = arith.constant 0 : index
    %3 = vector.load %arg7[%c0, %c0_1] : memref<8x512xf32, #tpu.memory_space<vmem>>, vector<8x512xf32>
    %c0_2 = arith.constant 0 : index
    %c0_3 = arith.constant 0 : index
    %4 = vector.load %arg3[%c0_2, %c0_3] : memref<8x3200xf32, #tpu.memory_space<vmem>>, vector<8x3200xf32>
    %c0_4 = arith.constant 0 : index
    %c0_5 = arith.constant 0 : index
    %5 = vector.load %arg4[%c0_4, %c0_5] : memref<3200x512xf32, #tpu.memory_space<vmem>>, vector<3200x512xf32>
    %cst = arith.constant dense<0.000000e+00> : vector<8x512xf32>
    %6 = tpu.matmul %4, %5, %cst {dimension_numbers = #tpu.dot_dimension_numbers<[1], [0], [0], [1], [0, 0, 1, 1], [], []>} : vector<8x3200xf32>, vector<3200x512xf32>, vector<8x512xf32> -> vector<8x512xf32>
    %7 = arith.addf %3, %6 : vector<8x512xf32>
    %c0_6 = arith.constant 0 : index
    %c0_7 = arith.constant 0 : index
    %8 = vector.load %arg7[%c0_6, %c0_7] : memref<8x512xf32, #tpu.memory_space<vmem>>, vector<8x512xf32>
    tpu.vector_store %arg7[%c0_6, %c0_7], %7 {strides = array<i32>} : memref<8x512xf32, #tpu.memory_space<vmem>>, vector<8x512xf32>,
    %c49_i32 = arith.constant 49 : i32
    %9 = arith.cmpi eq, %arg2, %c49_i32 : i32
    %10 = arith.extui %9 : i1 to i32
    %c0_i32_8 = arith.constant 0 : i32
    %11 = arith.cmpi ne, %10, %c0_i32_8 : i32
    scf.if %11 {
      %c0_9 = arith.constant 0 : index
      %c0_10 = arith.constant 0 : index
      %12 = vector.load %arg7[%c0_9, %c0_10] : memref<8x512xf32, #tpu.memory_space<vmem>>, vector<8x512xf32>
      %c0_11 = arith.constant 0 : index
      %c0_12 = arith.constant 0 : index
      %13 = vector.load %arg5[%c0_11, %c0_12] : memref<1x512xf32, #tpu.memory_space<vmem>>, vector<1x512xf32>
      %14 = vector.broadcast %13 : vector<1x512xf32> to vector<8x512xf32>
      %15 = arith.addf %12, %14 : vector<8x512xf32>
      %cst_13 = arith.constant 0.000000e+00 : f32
      %16 = vector.broadcast %cst_13 : f32 to vector<8x512xf32>
      %17 = arith.maximumf %15, %16 : vector<8x512xf32>
      %c0_14 = arith.constant 0 : index
      %c0_15 = arith.constant 0 : index
      %18 = vector.load %arg6[%c0_14, %c0_15] : memref<8x512xf32, #tpu.memory_space<vmem>>, vector<8x512xf32>
      tpu.vector_store %arg6[%c0_14, %c0_15], %17 {strides = array<i32>} : memref<8x512xf32, #tpu.memory_space<vmem>>, vector<8x512xf32>,
    } else {
    }
    return
  }
  func.func @transform_0(%arg0: i32, %arg1: i32, %arg2: i32) -> (i32, i32) {
    %c0_i32 = arith.constant 0 : i32
    return %arg0, %arg2 : i32, i32
  }
  func.func @transform_1(%arg0: i32, %arg1: i32, %arg2: i32) -> (i32, i32) {
    %c0_i32 = arith.constant 0 : i32
    return %arg2, %arg1 : i32, i32
  }
  func.func @transform_2(%arg0: i32, %arg1: i32, %arg2: i32) -> (i32, i32) {
    %c0_i32 = arith.constant 0 : i32
    %c0_i32_0 = arith.constant 0 : i32
    return %c0_i32, %arg1 : i32, i32
  }
  func.func @transform_3(%arg0: i32, %arg1: i32, %arg2: i32) -> (i32, i32) {
    %c0_i32 = arith.constant 0 : i32
    return %arg0, %arg1 : i32, i32
  }
}

</mosaic_0001>

<bundles_post_ra>
// kernel: bleednet3_forward.3
= control target key start
LH: loop header
LB: loop body
LE: loop exit
PB: predicated region body
PF: predicated region fallthrough
CT: control target
= control target key end

     0   :  { %s920_s12 = smov 0   ;;  %s922_s13 = smov 0   ;;  %s1114_s0 = inlined_call_operand.vmem [shape: f32[1792,64], index: 0, kind: input, shape index: {}]   ;;  %s1115_s1 = inlined_call_operand.vmem [shape: f32[64,32], index: 1, kind: input, shape index: {}]   ;;  %s1116_s2 = inlined_call_operand.vmem [shape: f32[1,32], index: 2, kind: input, shape index: {}]   ;;  %s1117_s3 = inlined_call_operand.vmem [shape: f32[1792,32], index: 3, kind: output, shape index: {}]  }
   0x1   :  { %s924_s14 = smov 0  }
   0x2 LB: > { %s32_s15 = sadd.s32 1, %s893_s13  ;;  %p738_p0 = scmp.ge.s32.totalorder %s897_s14, 1  ;;  %s897_s14 = sphi %s924_s14, %s13_s14   ;;  %s893_s13 = sphi %s922_s13, %s1120_s13   ;;  %s889_s12 = sphi %s920_s12, %s1119_s12  }
   0x3   : > { %p34_p1 = scmp.ge.s32.totalorder %s32_s15, 14  ;;  %p188_p2 = scmp.lt.s32.totalorder %s897_s14, 15 }
   0x5   : > { %s1122_s15 = smov (%p34_p1, %s32_s15), 0  ;;  %p189_p3 = pnand %p738_p0, %p188_p2 }
   0x6   : > { %v312_v0 = vld [vmem:[%s1115_s1] sm:$0xff] (!%p189_p3)  ;;  %v313_v1 = vld [vmem:[%s1115_s1 + $0x8] sm:$0xff] (!%p189_p3)  ;;  %v314_v2 = vld [vmem:[%s1115_s1 + $0x10] sm:$0xff] (!%p189_p3)  ;;  %s739_s22 = sshll.u32 (!%p189_p3), %s889_s12, 4  ;;  %vm263_vm0 = vcmask (!%p189_p3), 261120   ;;  %v899_v8 = vmov (!%p189_p3), 0.0  }
   0x7   : > { %192 = sbr.rel (%p189_p3) target bundleno = 268 (0x10c), region = 32  ;;  %v826_v3 = vpack.c.bf16 (!%p189_p3), %v313_v1, %v312_v0  ;;  %v315_v4 = vld [vmem:[%s1115_s1 + $0x18] sm:$0xff] (!%p189_p3)  ;;  %p953_p4 = scmp.lt.s32.totalorder (!%p189_p3), %s739_s22, 223  ;;  %v316_v6 = vld [vmem:[%s1115_s1 + $0x20] sm:$0xff] (!%p189_p3)  ;;  %v317_v7 = vld [vmem:[%s1115_s1 + $0x28] sm:$0xff] (!%p189_p3)  ;;  %265 = vst.msk [vmem:[#allocation2 + $0x8] sm:$0xff] (!%p189_p3), %vm263_vm0, %v899_v8 }
   0x8   : > { %v830_v5 = vpack.c.bf16 (!%p189_p3), %v315_v4, %v314_v2  ;;  %264 = vst.msk [vmem:[#allocation2] sm:$0xff] (!%p189_p3), %vm263_vm0, %v899_v8  ;;  %266 = vst.msk [vmem:[#allocation2 + $0x10] sm:$0xff] (!%p189_p3), %vm263_vm0, %v899_v8  ;;  %v834_v9 = vpack.c.bf16 (!%p189_p3), %v317_v7, %v316_v6  ;;  %v318_v10 = vld [vmem:[%s1115_s1 + $0x30] sm:$0xff] (!%p189_p3)  ;;  %v319_v11 = vld [vmem:[%s1115_s1 + $0x38] sm:$0xff] (!%p189_p3)  ;;  %vm320_vm1 = vcmask (!%p189_p3), 523264  }
   0x9   : > { %267 = vst.msk [vmem:[#allocation2 + $0x18] sm:$0xff] (!%p189_p3), %vm263_vm0, %v899_v8  ;;  %268 = vst.msk [vmem:[#allocation2 + $0x20] sm:$0xff] (!%p189_p3), %vm263_vm0, %v899_v8  ;;  %827 = vmatprep.subr.bf16.mxu0 (!%p189_p3), %v826_v3  ;;  %842 = vmatprep.subr.bf16.mxu1 (!%p189_p3), %v826_v3  ;;  %v838_v14 = vpack.c.bf16 (!%p189_p3), %v319_v11, %v318_v10  ;;  %v1038_v57 = vld [vmem:[%s1116_s2] ss:$0 sm:$0xff] (!%p189_p3) }
   0xa   : > { %269 = vst.msk [vmem:[#allocation2 + $0x28] sm:$0xff] (!%p189_p3), %vm263_vm0, %v899_v8  ;;  %270 = vst.msk [vmem:[#allocation2 + $0x30] sm:$0xff] (!%p189_p3), %vm263_vm0, %v899_v8  ;;  %829 = vmatpush3.bf16.msra.mxu0 (!%p189_p3), %v826_v3  ;;  %846 = vmatpush3.bf16.msra.mxu1 (!%p189_p3), %v826_v3 }
   0xb   : > { %271 = vst.msk [vmem:[#allocation2 + $0x38] sm:$0xff] (!%p189_p3), %vm263_vm0, %v899_v8  ;;  %272 = vst.msk [vmem:[#allocation2 + $0x40] sm:$0xff] (!%p189_p3), %vm263_vm0, %v899_v8  ;;  %831 = vmatprep.subr.bf16.mxu0 (!%p189_p3), %v830_v5  ;;  %843 = vmatprep.subr.bf16.mxu1 (!%p189_p3), %v830_v5 }
   0xc   : > { %273 = vst.msk [vmem:[#allocation2 + $0x48] sm:$0xff] (!%p189_p3), %vm263_vm0, %v899_v8  ;;  %274 = vst.msk [vmem:[#allocation2 + $0x50] sm:$0xff] (!%p189_p3), %vm263_vm0, %v899_v8 }
   0xd   : > { %275 = vst.msk [vmem:[#allocation2 + $0x58] sm:$0xff] (!%p189_p3), %vm263_vm0, %v899_v8  ;;  %276 = vst.msk [vmem:[#allocation2 + $0x60] sm:$0xff] (!%p189_p3), %vm263_vm0, %v899_v8 }
   0xe   : > { %277 = vst.msk [vmem:[#allocation2 + $0x68] sm:$0xff] %vm263_vm0, %v899_v8  ;;  %278 = vst.msk [vmem:[#allocation2 + $0x70] sm:$0xff] %vm263_vm0, %v899_v8  ;;  %s1124_s22 = smov (!%p953_p4, %s739_s22), 223  ;;  %833 = vmatpush3.bf16.msra.mxu0 %v830_v5  ;;  %847 = vmatpush3.bf16.msra.mxu1 %v830_v5  ;;  %v281_v29 = vld [vmem:[#allocation2 + $0x8] sm:$0xff] }
   0xf   : > { %279 = vst.msk [vmem:[#allocation2 + $0x78] sm:$0xff] %vm263_vm0, %v899_v8  ;;  %s740_s30 = sshll.u32 %s1124_s22, 3  ;;  %835 = vmatprep.subr.bf16.mxu0 %v834_v9  ;;  %844 = vmatprep.subr.bf16.mxu1 %v834_v9  ;;  %v280_v31 = vld [vmem:[#allocation2] sm:$0xff]  ;;  %v282_v43 = vld [vmem:[#allocation2 + $0x10] sm:$0xff] }
  0x10   : > { %s995_s10 = scalar_lea.vmem %s1114_s0, %s740_s30  ;;  %v283_v41 = vld [vmem:[#allocation2 + $0x18] sm:$0xff]  ;;  %v284_v55 = vld [vmem:[#allocation2 + $0x20] sm:$0xff]  ;;  %s1051_s18 = scalar_lea.vmem %s1117_s3, %s740_s30 }
  0x11   : > { %v296_v12 = vld [vmem:[%s995_s10] sm:$0xff]  ;;  %v297_v15 = vld [vmem:[%s995_s10 + $0x8] sm:$0xff]  ;;  %v298_v17 = vld [vmem:[%s995_s10 + $0x10] sm:$0xff] }
  0x12   : > { %v304_v13 = vld [vmem:[%s995_s10 + $0x40] sm:$0xff]  ;;  %802 = vmatprep.mubr.msk.f32.mxu0 %vm320_vm1, %v296_v12  ;;  %837 = vmatpush3.bf16.msra.mxu0 %v834_v9  ;;  %v305_v16 = vld [vmem:[%s995_s10 + $0x48] sm:$0xff]  ;;  %v306_v18 = vld [vmem:[%s995_s10 + $0x50] sm:$0xff] }
  0x13   : > { %814 = vmatprep.mubr.msk.f32.mxu1 %vm320_vm1, %v304_v13  ;;  %848 = vmatpush3.bf16.msra.mxu1 %v834_v9  ;;  %v299_v19 = vld [vmem:[%s995_s10 + $0x18] sm:$0xff]  ;;  %v300_v21 = vld [vmem:[%s995_s10 + $0x20] sm:$0xff]  ;;  %v301_v23 = vld [vmem:[%s995_s10 + $0x28] sm:$0xff] }
  0x14   : > { %839 = vmatprep.subr.bf16.mxu0 %v838_v14  ;;  %845 = vmatprep.subr.bf16.mxu1 %v838_v14  ;;  %v307_v20 = vld [vmem:[%s995_s10 + $0x58] sm:$0xff]  ;;  %v308_v22 = vld [vmem:[%s995_s10 + $0x60] sm:$0xff]  ;;  %v309_v24 = vld [vmem:[%s995_s10 + $0x68] sm:$0xff] }
  0x15   : > { %v302_v25 = vld [vmem:[%s995_s10 + $0x30] sm:$0xff]  ;;  %v303_v27 = vld [vmem:[%s995_s10 + $0x38] sm:$0xff]  ;;  %v289_v30 = vld [vmem:[#allocation2 + $0x48] sm:$0xff] }
  0x16   : > { %841 = vmatpush3.bf16.msra.mxu0 %v838_v14  ;;  %v310_v26 = vld [vmem:[%s995_s10 + $0x70] sm:$0xff]  ;;  %v311_v28 = vld [vmem:[%s995_s10 + $0x78] sm:$0xff]  ;;  %v288_v32 = vld [vmem:[#allocation2 + $0x40] sm:$0xff] }
  0x17   : > { %849 = vmatpush3.bf16.msra.mxu1 %v838_v14  ;;  %v291_v42 = vld [vmem:[#allocation2 + $0x58] sm:$0xff]  ;;  %v290_v44 = vld [vmem:[#allocation2 + $0x50] sm:$0xff]  ;;  %v285_v53 = vld [vmem:[#allocation2 + $0x28] sm:$0xff] }
  0x18   : > { %v293_v54 = vld [vmem:[#allocation2 + $0x68] sm:$0xff]  ;;  %v292_v56 = vld [vmem:[#allocation2 + $0x60] sm:$0xff]  ;;  %v287_v0 = vld [vmem:[#allocation2 + $0x38] sm:$0xff] }
  0x19   : > { %803 = vmatmul.mubr.msk.f32.vlgmr.msra.gmra.mrb[0].mxu0 %vm320_vm1, %v297_v15  ;;  %v295_v1 = vld [vmem:[#allocation2 + $0x78] sm:$0xff]  ;;  %v286_v6 = vld [vmem:[#allocation2 + $0x30] sm:$0xff] }
  0x1a   : > { %815 = vmatmul.mubr.msk.f32.vlgmr.msra.gmra.mrb[0].mxu1 %vm320_vm1, %v305_v16  ;;  %805 = vmatprep.mubr.msk.f32.mxu0 %vm320_vm1, %v298_v17  ;;  %v294_v11 = vld [vmem:[#allocation2 + $0x70] sm:$0xff] }
  0x1b   : > { %817 = vmatprep.mubr.msk.f32.mxu1 %vm320_vm1, %v306_v18 }
  0x1d   : > { %806 = vmatmul.mubr.msk.f32.gmra.mrb[2].mxu0 %vm320_vm1, %v299_v19 }
  0x1e   : > { %818 = vmatmul.mubr.msk.f32.gmra.mrb[2].mxu1 %vm320_vm1, %v307_v20  ;;  %808 = vmatprep.mubr.msk.f32.mxu0 %vm320_vm1, %v300_v21 }
  0x1f   : > { %820 = vmatprep.mubr.msk.f32.mxu1 %vm320_vm1, %v308_v22 }
  0x21   : > { %809 = vmatmul.mubr.msk.f32.gmra.mrb[4].mxu0 %vm320_vm1, %v301_v23 }
  0x22   : > { %821 = vmatmul.mubr.msk.f32.gmra.mrb[4].mxu1 %vm320_vm1, %v309_v24  ;;  %811 = vmatprep.mubr.msk.f32.mxu0 %vm320_vm1, %v302_v25 }
  0x23   : > { %823 = vmatprep.mubr.msk.f32.mxu1 %vm320_vm1, %v310_v26 }
  0x25   : > { %812 = vmatmul.mubr.msk.f32.gmra.mrb[6].mxu0 %vm320_vm1, %v303_v27 }
  0x26   : > { %824 = vmatmul.mubr.msk.f32.gmra.mrb[6].mxu1 %vm320_vm1, %v311_v28 }
  0xec   : > { %v804_v33 = vpop.f32.mrb[0].mxu0 }
  0xed   : > { %v816_v34 = vpop.f32.mrb[0].mxu1  ;;  %v515_v35 = vadd.f32 %v804_v33, %v281_v29  ;;  %v435_v37 = vpop.f32.mrb[1].mxu0 }
  0xee   : > { %v523_v36 = vadd.f32 %v816_v34, %v289_v30  ;;  %v475_v38 = vpop.f32.mrb[1].mxu1  ;;  %v514_v39 = vadd.f32 %v435_v37, %v280_v31 }
  0xef   : > { %v522_v40 = vadd.f32 %v475_v38, %v288_v32  ;;  %532 = vst.msk [vmem:[#allocation2 + $0x8] sm:$0xff] %vm263_vm0, %v515_v35 }
  0xf0   : > { %540 = vst.msk [vmem:[#allocation2 + $0x48] sm:$0xff] %vm263_vm0, %v523_v36  ;;  %531 = vst.msk [vmem:[#allocation2] sm:$0xff] %vm263_vm0, %v514_v39  ;;  %v807_v45 = vpop.f32.mrb[2].mxu0 }
  0xf1   : > { %539 = vst.msk [vmem:[#allocation2 + $0x40] sm:$0xff] %vm263_vm0, %v522_v40  ;;  %v819_v46 = vpop.f32.mrb[2].mxu1  ;;  %v517_v47 = vadd.f32 %v807_v45, %v283_v41  ;;  %v445_v49 = vpop.f32.mrb[3].mxu0 }
  0xf2   : > { %v525_v48 = vadd.f32 %v819_v46, %v291_v42  ;;  %v485_v50 = vpop.f32.mrb[3].mxu1  ;;  %v516_v51 = vadd.f32 %v445_v49, %v282_v43 }
  0xf3   : > { %v524_v52 = vadd.f32 %v485_v50, %v290_v44  ;;  %534 = vst.msk [vmem:[#allocation2 + $0x18] sm:$0xff] %vm263_vm0, %v517_v47 }
  0xf4   : > { %542 = vst.msk [vmem:[#allocation2 + $0x58] sm:$0xff] %vm263_vm0, %v525_v48  ;;  %533 = vst.msk [vmem:[#allocation2 + $0x10] sm:$0xff] %vm263_vm0, %v516_v51  ;;  %v810_v58 = vpop.f32.mrb[4].mxu0 }
  0xf5   : > { %541 = vst.msk [vmem:[#allocation2 + $0x50] sm:$0xff] %vm263_vm0, %v524_v52  ;;  %v822_v59 = vpop.f32.mrb[4].mxu1  ;;  %v519_v60 = vadd.f32 %v810_v58, %v285_v53  ;;  %v455_v62 = vpop.f32.mrb[5].mxu0 }
  0xf6   : > { %v527_v61 = vadd.f32 %v822_v59, %v293_v54  ;;  %v495_v63 = vpop.f32.mrb[5].mxu1  ;;  %v551_v2 = vld [vmem:[#allocation2 + $0x8] sm:$0xff]  ;;  %v518_v4 = vadd.f32 %v455_v62, %v284_v55 }
  0xf7   : > { %v559_v3 = vld [vmem:[#allocation2 + $0x48] sm:$0xff]  ;;  %v526_v5 = vadd.f32 %v495_v63, %v292_v56  ;;  %v574_v7 = vadd.f32 %v1038_v57, %v551_v2  ;;  %v550_v9 = vld [vmem:[#allocation2] sm:$0xff]  ;;  %536 = vst.msk [vmem:[#allocation2 + $0x28] sm:$0xff] %vm263_vm0, %v519_v60 }
  0xf8   : > { %v582_v8 = vadd.f32 %v1038_v57, %v559_v3  ;;  %v558_v10 = vld [vmem:[#allocation2 + $0x40] sm:$0xff]  ;;  %544 = vst.msk [vmem:[#allocation2 + $0x68] sm:$0xff] %vm263_vm0, %v527_v61  ;;  %v573_v12 = vadd.f32 %v1038_v57, %v550_v9  ;;  %535 = vst.msk [vmem:[#allocation2 + $0x20] sm:$0xff] %vm263_vm0, %v518_v4  ;;  %v813_v14 = vpop.f32.mrb[6].mxu0 }
  0xf9   : > { %v581_v13 = vadd.f32 %v1038_v57, %v558_v10  ;;  %543 = vst.msk [vmem:[#allocation2 + $0x60] sm:$0xff] %vm263_vm0, %v526_v5  ;;  %v825_v15 = vpop.f32.mrb[6].mxu1  ;;  %v590_v16 = vmax.f32 %v574_v7, 0.0  ;;  %v521_v18 = vadd.f32 %v813_v14, %v287_v0  ;;  %v465_v20 = vpop.f32.mrb[7].mxu0 }
  0xfa   : > { %v598_v17 = vmax.f32 %v582_v8, 0.0  ;;  %v529_v19 = vadd.f32 %v825_v15, %v295_v1  ;;  %v505_v21 = vpop.f32.mrb[7].mxu1  ;;  %v589_v22 = vmax.f32 %v573_v12, 0.0  ;;  %v553_v24 = vld [vmem:[#allocation2 + $0x18] sm:$0xff]  ;;  %v520_v26 = vadd.f32 %v465_v20, %v286_v6 }
  0xfb   : > { %v597_v23 = vmax.f32 %v581_v13, 0.0  ;;  %v561_v25 = vld [vmem:[#allocation2 + $0x58] sm:$0xff]  ;;  %v528_v27 = vadd.f32 %v505_v21, %v294_v11  ;;  %606 = vst.msk [vmem:[%s1051_s18 + $0x8] sm:$0xff] %vm263_vm0, %v590_v16  ;;  %v576_v28 = vadd.f32 %v1038_v57, %v553_v24  ;;  %v552_v30 = vld [vmem:[#allocation2 + $0x10] sm:$0xff]  ;;  %538 = vst.msk [vmem:[#allocation2 + $0x38] sm:$0xff] %vm263_vm0, %v521_v18 }
  0xfc   : > { %614 = vst.msk [vmem:[%s1051_s18 + $0x48] sm:$0xff] %vm263_vm0, %v598_v17  ;;  %v584_v29 = vadd.f32 %v1038_v57, %v561_v25  ;;  %v560_v31 = vld [vmem:[#allocation2 + $0x50] sm:$0xff]  ;;  %546 = vst.msk [vmem:[#allocation2 + $0x78] sm:$0xff] %vm263_vm0, %v529_v19  ;;  %v575_v32 = vadd.f32 %v1038_v57, %v552_v30 }
  0xfd   : > { %605 = vst.msk [vmem:[%s1051_s18] sm:$0xff] %vm263_vm0, %v589_v22  ;;  %613 = vst.msk [vmem:[%s1051_s18 + $0x40] sm:$0xff] %vm263_vm0, %v597_v23  ;;  %v583_v33 = vadd.f32 %v1038_v57, %v560_v31  ;;  %v592_v34 = vmax.f32 %v576_v28, 0.0 }
  0xfe   : > { %537 = vst.msk [vmem:[#allocation2 + $0x30] sm:$0xff] %vm263_vm0, %v520_v26  ;;  %545 = vst.msk [vmem:[#allocation2 + $0x70] sm:$0xff] %vm263_vm0, %v528_v27  ;;  %v600_v35 = vmax.f32 %v584_v29, 0.0  ;;  %v591_v36 = vmax.f32 %v575_v32, 0.0  ;;  %v555_v38 = vld [vmem:[#allocation2 + $0x28] sm:$0xff] }
  0xff   : > { %v599_v37 = vmax.f32 %v583_v33, 0.0  ;;  %v563_v39 = vld [vmem:[#allocation2 + $0x68] sm:$0xff]  ;;  %608 = vst.msk [vmem:[%s1051_s18 + $0x18] sm:$0xff] %vm263_vm0, %v592_v34  ;;  %v578_v40 = vadd.f32 %v1038_v57, %v555_v38  ;;  %v554_v42 = vld [vmem:[#allocation2 + $0x20] sm:$0xff] }
 0x100   : > { %616 = vst.msk [vmem:[%s1051_s18 + $0x58] sm:$0xff] %vm263_vm0, %v600_v35  ;;  %v586_v41 = vadd.f32 %v1038_v57, %v563_v39  ;;  %v562_v43 = vld [vmem:[#allocation2 + $0x60] sm:$0xff]  ;;  %607 = vst.msk [vmem:[%s1051_s18 + $0x10] sm:$0xff] %vm263_vm0, %v591_v36  ;;  %v577_v44 = vadd.f32 %v1038_v57, %v554_v42 }
 0x101   : > { %615 = vst.msk [vmem:[%s1051_s18 + $0x50] sm:$0xff] %vm263_vm0, %v599_v37  ;;  %v585_v45 = vadd.f32 %v1038_v57, %v562_v43  ;;  %v594_v46 = vmax.f32 %v578_v40, 0.0 }
 0x102   : > { %v602_v47 = vmax.f32 %v586_v41, 0.0  ;;  %v593_v48 = vmax.f32 %v577_v44, 0.0  ;;  %v557_v50 = vld [vmem:[#allocation2 + $0x38] sm:$0xff] }
 0x103   : > { %v601_v49 = vmax.f32 %v585_v45, 0.0  ;;  %v565_v51 = vld [vmem:[#allocation2 + $0x78] sm:$0xff]  ;;  %610 = vst.msk [vmem:[%s1051_s18 + $0x28] sm:$0xff] %vm263_vm0, %v594_v46  ;;  %v580_v52 = vadd.f32 %v1038_v57, %v557_v50 }
 0x104   : > { %618 = vst.msk [vmem:[%s1051_s18 + $0x68] sm:$0xff] %vm263_vm0, %v602_v47  ;;  %v588_v53 = vadd.f32 %v1038_v57, %v565_v51  ;;  %609 = vst.msk [vmem:[%s1051_s18 + $0x20] sm:$0xff] %vm263_vm0, %v593_v48 }
 0x105   : > { %v556_v54 = vld [vmem:[#allocation2 + $0x30] sm:$0xff]  ;;  %617 = vst.msk [vmem:[%s1051_s18 + $0x60] sm:$0xff] %vm263_vm0, %v601_v49  ;;  %v596_v59 = vmax.f32 %v580_v52, 0.0 }
 0x106   : > { %v564_v55 = vld [vmem:[#allocation2 + $0x70] sm:$0xff]  ;;  %v579_v56 = vadd.f32 %v1038_v57, %v556_v54  ;;  %v604_v60 = vmax.f32 %v588_v53, 0.0 }
 0x107   : > { %v587_v58 = vadd.f32 %v1038_v57, %v564_v55  ;;  %612 = vst.msk [vmem:[%s1051_s18 + $0x38] sm:$0xff] %vm263_vm0, %v596_v59 }
 0x108   : > { %v595_v61 = vmax.f32 %v579_v56, 0.0  ;;  %620 = vst.msk [vmem:[%s1051_s18 + $0x78] sm:$0xff] %vm263_vm0, %v604_v60 }
 0x109   : > { %v603_v62 = vmax.f32 %v587_v58, 0.0 }
 0x10a   : > { %611 = vst.msk [vmem:[%s1051_s18 + $0x30] sm:$0xff] %vm263_vm0, %v595_v61 }
 0x10b   : > { %619 = vst.msk [vmem:[%s1051_s18 + $0x70] sm:$0xff] %vm263_vm0, %v603_v62 }
 0x10c PF: > { %s13_s14 = sadd.s32 1, %s897_s14   ;;  %s1119_s12 = smov %s893_s13 }
 0x10d   : > { %p10_p5 = scmp.ge.s32.totalorder %s13_s14, 16   ;;  %s1120_s13 = smov %s1122_s15 }
 0x10f   :  { %12 = sbr.rel (!%p10_p5) target bundleno = 2 (0x2), region = 76 }

// kernel: bleednet3_forward.4
= control target key start
LH: loop header
LB: loop body
LE: loop exit
PB: predicated region body
PF: predicated region fallthrough
CT: control target
= control target key end

     0   :  { %s1253_s12 = smov 0   ;;  %s1255_s13 = smov 0   ;;  %s1648_s0 = inlined_call_operand.vmem [shape: f32[512,512], index: 0, kind: input, shape index: {}]   ;;  %s1649_s1 = inlined_call_operand.vmem [shape: f32[512,64], index: 1, kind: input, shape index: {}]   ;;  %s1650_s2 = inlined_call_operand.vmem [shape: f32[1,64], index: 2, kind: input, shape index: {}]   ;;  %s1651_s3 = inlined_call_operand.vmem [shape: f32[512,64], index: 3, kind: output, shape index: {}]  }
   0x1   :  { %s1257_s14 = smov 0  }
   0x2 LB: > { %s32_s15 = sadd.s32 1, %s1226_s13  ;;  %p949_p0 = scmp.ge.s32.totalorder %s1230_s14, 1  ;;  %s1230_s14 = sphi %s1257_s14, %s13_s14   ;;  %s1226_s13 = sphi %s1255_s13, %s1654_s13   ;;  %s1222_s12 = sphi %s1253_s12, %s1653_s12  }
   0x3   : > { %p34_p1 = scmp.ge.s32.totalorder %s32_s15, 4  ;;  %p191_p2 = scmp.lt.s32.totalorder %s1230_s14, 5 }
   0x5   : > { %s1656_s15 = smov (%p34_p1, %s32_s15), 0  ;;  %p192_p3 = pnand %p949_p0, %p191_p2 }
   0x6   : > { %v384_v0 = vld [vmem:[%s1649_s1 + $0x80] sm:$0xff] (!%p192_p3)  ;;  %v385_v1 = vld [vmem:[%s1649_s1 + $0x88] sm:$0xff] (!%p192_p3)  ;;  %v386_v11 = vld [vmem:[%s1649_s1 + $0x90] sm:$0xff] (!%p192_p3)  ;;  %s950_s23 = sshll.u32 (!%p192_p3), %s1222_s12, 4  ;;  %vm271_vm0 = vcmask (!%p192_p3), 523264  }
   0x7   : > { %195 = sbr.rel (%p192_p3) target bundleno = 335 (0x14f), region = 32  ;;  %v416_v2 = vld [vmem:[%s1649_s1 + $0x180] sm:$0xff] (!%p192_p3)  ;;  %v1119_v3 = vpack.c.bf16 (!%p192_p3), %v385_v1, %v384_v0  ;;  %v417_v4 = vld [vmem:[%s1649_s1 + $0x188] sm:$0xff] (!%p192_p3)  ;;  %v387_v13 = vld [vmem:[%s1649_s1 + $0x98] sm:$0xff] (!%p192_p3)  ;;  %p1348_p4 = scmp.lt.s32.totalorder (!%p192_p3), %s950_s23, 63 }
   0x8   : > { %v368_v5 = vld [vmem:[%s1649_s1] sm:$0xff] (!%p192_p3)  ;;  %v369_v6 = vld [vmem:[%s1649_s1 + $0x8] sm:$0xff] (!%p192_p3)  ;;  %v1151_v7 = vpack.c.bf16 (!%p192_p3), %v417_v4, %v416_v2  ;;  %v418_v14 = vld [vmem:[%s1649_s1 + $0x190] sm:$0xff] (!%p192_p3)  ;;  %v1123_v16 = vpack.c.bf16 (!%p192_p3), %v387_v13, %v386_v11 }
   0x9   : > { %v1121_v8 = vpack.c.bf16 (!%p192_p3), %v369_v6, %v368_v5  ;;  %v400_v9 = vld [vmem:[%s1649_s1 + $0x100] sm:$0xff] (!%p192_p3)  ;;  %v401_v10 = vld [vmem:[%s1649_s1 + $0x108] sm:$0xff] (!%p192_p3)  ;;  %1120 = vmatprep.subr.bf16.mxu0 (!%p192_p3), %v1119_v3  ;;  %v419_v15 = vld [vmem:[%s1649_s1 + $0x198] sm:$0xff] (!%p192_p3) }
   0xa   : > { %v1153_v12 = vpack.c.bf16 (!%p192_p3), %v401_v10, %v400_v9  ;;  %1152 = vmatprep.subr.bf16.mxu1 (!%p192_p3), %v1151_v7  ;;  %v1155_v17 = vpack.c.bf16 (!%p192_p3), %v419_v15, %v418_v14  ;;  %v370_v18 = vld [vmem:[%s1649_s1 + $0x10] sm:$0xff] (!%p192_p3)  ;;  %v371_v19 = vld [vmem:[%s1649_s1 + $0x18] sm:$0xff] (!%p192_p3)  ;;  %v388_v23 = vld [vmem:[%s1649_s1 + $0xa0] sm:$0xff] (!%p192_p3) }
   0xb   : > { %1122 = vmatpush3.bf16.msra.mxu0 (!%p192_p3), %v1121_v8  ;;  %v402_v20 = vld [vmem:[%s1649_s1 + $0x110] sm:$0xff] (!%p192_p3)  ;;  %v1125_v21 = vpack.c.bf16 (!%p192_p3), %v371_v19, %v370_v18  ;;  %v403_v22 = vld [vmem:[%s1649_s1 + $0x118] sm:$0xff] (!%p192_p3)  ;;  %v389_v24 = vld [vmem:[%s1649_s1 + $0xa8] sm:$0xff] (!%p192_p3) }
   0xc   : > { %1154 = vmatpush3.bf16.msra.mxu1 (!%p192_p3), %v1153_v12  ;;  %1124 = vmatprep.subr.bf16.mxu0 (!%p192_p3), %v1123_v16  ;;  %v1157_v25 = vpack.c.bf16 (!%p192_p3), %v403_v22, %v402_v20  ;;  %v1127_v26 = vpack.c.bf16 (!%p192_p3), %v389_v24, %v388_v23  ;;  %v420_v27 = vld [vmem:[%s1649_s1 + $0x1a0] sm:$0xff] (!%p192_p3)  ;;  %v421_v28 = vld [vmem:[%s1649_s1 + $0x1a8] sm:$0xff] (!%p192_p3)  ;;  %v390_v35 = vld [vmem:[%s1649_s1 + $0xb0] sm:$0xff] (!%p192_p3) }
   0xd   : > { %1156 = vmatprep.subr.bf16.mxu1 (!%p192_p3), %v1155_v17  ;;  %v372_v29 = vld [vmem:[%s1649_s1 + $0x20] sm:$0xff] (!%p192_p3)  ;;  %v1159_v30 = vpack.c.bf16 (!%p192_p3), %v421_v28, %v420_v27  ;;  %v373_v31 = vld [vmem:[%s1649_s1 + $0x28] sm:$0xff] (!%p192_p3)  ;;  %v391_v36 = vld [vmem:[%s1649_s1 + $0xb8] sm:$0xff] (!%p192_p3) }
   0xe   : > { %v404_v32 = vld [vmem:[%s1649_s1 + $0x120] sm:$0xff]  ;;  %v405_v33 = vld [vmem:[%s1649_s1 + $0x128] sm:$0xff]  ;;  %v1129_v34 = vpack.c.bf16 %v373_v31, %v372_v29  ;;  %v422_v37 = vld [vmem:[%s1649_s1 + $0x1b0] sm:$0xff]  ;;  %v1131_v39 = vpack.c.bf16 %v391_v36, %v390_v35  ;;  %s1658_s23 = smov (!%p1348_p4, %s950_s23), 63 }
   0xf   : > { %1126 = vmatpush3.bf16.msra.mxu0 %v1125_v21  ;;  %v1161_v38 = vpack.c.bf16 %v405_v33, %v404_v32  ;;  %v423_v40 = vld [vmem:[%s1649_s1 + $0x1b8] sm:$0xff]  ;;  %v374_v41 = vld [vmem:[%s1649_s1 + $0x30] sm:$0xff]  ;;  %v392_v46 = vld [vmem:[%s1649_s1 + $0xc0] sm:$0xff]  ;;  %s958_s11 = sshll.u32 %s1658_s23, 5  ;;  %s954_s16 = sshll.u32 %s1658_s23, 3 }
  0x10   : > { %1158 = vmatpush3.bf16.msra.mxu1 %v1157_v25  ;;  %1128 = vmatprep.subr.bf16.mxu0 %v1127_v26  ;;  %v375_v42 = vld [vmem:[%s1649_s1 + $0x38] sm:$0xff]  ;;  %v1163_v43 = vpack.c.bf16 %v423_v40, %v422_v37  ;;  %v406_v44 = vld [vmem:[%s1649_s1 + $0x130] sm:$0xff]  ;;  %v393_v47 = vld [vmem:[%s1649_s1 + $0xc8] sm:$0xff]  ;;  %s1440_s30 = scalar_lea.vmem %s1648_s0, %s958_s11  ;;  %s1577_s18 = scalar_lea.vmem %s1651_s3, %s954_s16 }
  0x11   : > { %1160 = vmatprep.subr.bf16.mxu1 %v1159_v30  ;;  %v407_v45 = vld [vmem:[%s1649_s1 + $0x138] sm:$0xff]  ;;  %v424_v48 = vld [vmem:[%s1649_s1 + $0x1c0] sm:$0xff]  ;;  %v425_v49 = vld [vmem:[%s1649_s1 + $0x1c8] sm:$0xff]  ;;  %v1133_v50 = vpack.c.bf16 %v375_v42, %v374_v41  ;;  %v1135_v52 = vpack.c.bf16 %v393_v47, %v392_v46 }
  0x12   : > { %v1165_v51 = vpack.c.bf16 %v407_v45, %v406_v44  ;;  %v376_v53 = vld [vmem:[%s1649_s1 + $0x40] sm:$0xff]  ;;  %v377_v54 = vld [vmem:[%s1649_s1 + $0x48] sm:$0xff]  ;;  %v1167_v56 = vpack.c.bf16 %v425_v49, %v424_v48  ;;  %v394_v58 = vld [vmem:[%s1649_s1 + $0xd0] sm:$0xff] }
  0x13   : > { %1130 = vmatpush3.bf16.msra.mxu0 %v1129_v34  ;;  %v408_v55 = vld [vmem:[%s1649_s1 + $0x140] sm:$0xff]  ;;  %v409_v57 = vld [vmem:[%s1649_s1 + $0x148] sm:$0xff]  ;;  %v395_v59 = vld [vmem:[%s1649_s1 + $0xd8] sm:$0xff]  ;;  %v1137_v62 = vpack.c.bf16 %v377_v54, %v376_v53 }
  0x14   : > { %1162 = vmatpush3.bf16.msra.mxu1 %v1161_v38  ;;  %1132 = vmatprep.subr.bf16.mxu0 %v1131_v39  ;;  %v426_v60 = vld [vmem:[%s1649_s1 + $0x1d0] sm:$0xff]  ;;  %v427_v61 = vld [vmem:[%s1649_s1 + $0x1d8] sm:$0xff]  ;;  %v1169_v63 = vpack.c.bf16 %v409_v57, %v408_v55  ;;  %v1139_v0 = vpack.c.bf16 %v395_v59, %v394_v58  ;;  %v396_v6 = vld [vmem:[%s1649_s1 + $0xe0] sm:$0xff] }
  0x15   : > { %1164 = vmatprep.subr.bf16.mxu1 %v1163_v43  ;;  %v378_v1 = vld [vmem:[%s1649_s1 + $0x50] sm:$0xff]  ;;  %v379_v2 = vld [vmem:[%s1649_s1 + $0x58] sm:$0xff]  ;;  %v1171_v4 = vpack.c.bf16 %v427_v61, %v426_v60  ;;  %v397_v7 = vld [vmem:[%s1649_s1 + $0xe8] sm:$0xff] }
  0x16   : > { %v410_v3 = vld [vmem:[%s1649_s1 + $0x150] sm:$0xff]  ;;  %v411_v5 = vld [vmem:[%s1649_s1 + $0x158] sm:$0xff]  ;;  %v428_v8 = vld [vmem:[%s1649_s1 + $0x1e0] sm:$0xff]  ;;  %v1141_v10 = vpack.c.bf16 %v379_v2, %v378_v1  ;;  %v1143_v14 = vpack.c.bf16 %v397_v7, %v396_v6 }
  0x17   : > { %1134 = vmatpush3.bf16.msra.mxu0 %v1133_v50  ;;  %v429_v9 = vld [vmem:[%s1649_s1 + $0x1e8] sm:$0xff]  ;;  %v380_v11 = vld [vmem:[%s1649_s1 + $0x60] sm:$0xff]  ;;  %v1173_v13 = vpack.c.bf16 %v411_v5, %v410_v3  ;;  %v307_v17 = vld [vmem:[%s1440_s30 + $0x18] sm:$0xff] }
  0x18   : > { %1166 = vmatpush3.bf16.msra.mxu1 %v1165_v51  ;;  %1136 = vmatprep.subr.bf16.mxu0 %v1135_v52  ;;  %v381_v12 = vld [vmem:[%s1649_s1 + $0x68] sm:$0xff]  ;;  %v412_v15 = vld [vmem:[%s1649_s1 + $0x160] sm:$0xff]  ;;  %v1175_v18 = vpack.c.bf16 %v429_v9, %v428_v8  ;;  %v398_v20 = vld [vmem:[%s1649_s1 + $0xf0] sm:$0xff] }
  0x19   : > { %1168 = vmatprep.subr.bf16.mxu1 %v1167_v56  ;;  %v305_v16 = vld [vmem:[%s1440_s30 + $0x8] sm:$0xff]  ;;  %v399_v21 = vld [vmem:[%s1649_s1 + $0xf8] sm:$0xff]  ;;  %v430_v22 = vld [vmem:[%s1649_s1 + $0x1f0] sm:$0xff]  ;;  %641 = vmatprep.mubr.f32.mxu1 %v307_v17  ;;  %v1145_v24 = vpack.c.bf16 %v381_v12, %v380_v11 }
  0x1a   : > { %v413_v19 = vld [vmem:[%s1649_s1 + $0x168] sm:$0xff]  ;;  %496 = vmatprep.mubr.f32.mxu0 %v305_v16  ;;  %v431_v23 = vld [vmem:[%s1649_s1 + $0x1f8] sm:$0xff]  ;;  %v1147_v26 = vpack.c.bf16 %v399_v21, %v398_v20  ;;  %v382_v27 = vld [vmem:[%s1649_s1 + $0x70] sm:$0xff] }
  0x1b   : > { %1138 = vmatpush3.bf16.msra.mxu0 %v1137_v62  ;;  %v1177_v25 = vpack.c.bf16 %v413_v19, %v412_v15  ;;  %v383_v28 = vld [vmem:[%s1649_s1 + $0x78] sm:$0xff]  ;;  %v1179_v29 = vpack.c.bf16 %v431_v23, %v430_v22  ;;  %v414_v30 = vld [vmem:[%s1649_s1 + $0x170] sm:$0xff]  ;;  %v304_v34 = vld [vmem:[%s1440_s30] sm:$0xff] }
  0x1c   : > { %1170 = vmatpush3.bf16.msra.mxu1 %v1169_v63  ;;  %1140 = vmatprep.subr.bf16.mxu0 %v1139_v0  ;;  %v415_v31 = vld [vmem:[%s1649_s1 + $0x178] sm:$0xff]  ;;  %v1149_v32 = vpack.c.bf16 %v383_v28, %v382_v27  ;;  %v306_v35 = vld [vmem:[%s1440_s30 + $0x10] sm:$0xff]  ;;  %v309_v36 = vld [vmem:[%s1440_s30 + $0x28] sm:$0xff] }
  0x1d   : > { %1172 = vmatprep.subr.bf16.mxu1 %v1171_v4  ;;  %v1181_v33 = vpack.c.bf16 %v415_v31, %v414_v30  ;;  %v311_v37 = vld [vmem:[%s1440_s30 + $0x38] sm:$0xff]  ;;  %v308_v38 = vld [vmem:[%s1440_s30 + $0x20] sm:$0xff]  ;;  %v310_v39 = vld [vmem:[%s1440_s30 + $0x30] sm:$0xff] }
  0x1e   : > { %v313_v40 = vld [vmem:[%s1440_s30 + $0x48] sm:$0xff]  ;;  %v315_v41 = vld [vmem:[%s1440_s30 + $0x58] sm:$0xff]  ;;  %v312_v42 = vld [vmem:[%s1440_s30 + $0x40] sm:$0xff] }
  0x1f   : > { %1142 = vmatpush3.bf16.msra.mxu0 %v1141_v10  ;;  %v314_v43 = vld [vmem:[%s1440_s30 + $0x50] sm:$0xff]  ;;  %v317_v44 = vld [vmem:[%s1440_s30 + $0x68] sm:$0xff]  ;;  %v319_v45 = vld [vmem:[%s1440_s30 + $0x78] sm:$0xff] }
  0x20   : > { %1174 = vmatpush3.bf16.msra.mxu1 %v1173_v13  ;;  %1144 = vmatprep.subr.bf16.mxu0 %v1143_v14  ;;  %v316_v46 = vld [vmem:[%s1440_s30 + $0x60] sm:$0xff]  ;;  %v318_v47 = vld [vmem:[%s1440_s30 + $0x70] sm:$0xff]  ;;  %v321_v48 = vld [vmem:[%s1440_s30 + $0x88] sm:$0xff] }
  0x21   : > { %1176 = vmatprep.subr.bf16.mxu1 %v1175_v18  ;;  %v323_v49 = vld [vmem:[%s1440_s30 + $0x98] sm:$0xff]  ;;  %v320_v50 = vld [vmem:[%s1440_s30 + $0x80] sm:$0xff]  ;;  %v322_v51 = vld [vmem:[%s1440_s30 + $0x90] sm:$0xff] }
  0x22   : > { %v325_v52 = vld [vmem:[%s1440_s30 + $0xa8] sm:$0xff]  ;;  %v327_v53 = vld [vmem:[%s1440_s30 + $0xb8] sm:$0xff]  ;;  %v324_v54 = vld [vmem:[%s1440_s30 + $0xa0] sm:$0xff] }
  0x23   : > { %1146 = vmatpush3.bf16.msra.mxu0 %v1145_v24  ;;  %v326_v55 = vld [vmem:[%s1440_s30 + $0xb0] sm:$0xff]  ;;  %v329_v56 = vld [vmem:[%s1440_s30 + $0xc8] sm:$0xff]  ;;  %v331_v57 = vld [vmem:[%s1440_s30 + $0xd8] sm:$0xff] }
  0x24   : > { %1178 = vmatpush3.bf16.msra.mxu1 %v1177_v25  ;;  %1148 = vmatprep.subr.bf16.mxu0 %v1147_v26  ;;  %v328_v58 = vld [vmem:[%s1440_s30 + $0xc0] sm:$0xff]  ;;  %v330_v59 = vld [vmem:[%s1440_s30 + $0xd0] sm:$0xff]  ;;  %v333_v60 = vld [vmem:[%s1440_s30 + $0xe8] sm:$0xff] }
  0x25   : > { %1180 = vmatprep.subr.bf16.mxu1 %v1179_v29  ;;  %v335_v61 = vld [vmem:[%s1440_s30 + $0xf8] sm:$0xff]  ;;  %v332_v62 = vld [vmem:[%s1440_s30 + $0xe0] sm:$0xff]  ;;  %v334_v63 = vld [vmem:[%s1440_s30 + $0xf0] sm:$0xff] }
  0x26   : > { %v337_v0 = vld [vmem:[%s1440_s30 + $0x108] sm:$0xff]  ;;  %v339_v1 = vld [vmem:[%s1440_s30 + $0x118] sm:$0xff]  ;;  %v336_v2 = vld [vmem:[%s1440_s30 + $0x100] sm:$0xff] }
  0x27   : > { %1150 = vmatpush3.bf16.msra.mxu0 %v1149_v32  ;;  %v338_v3 = vld [vmem:[%s1440_s30 + $0x110] sm:$0xff]  ;;  %v341_v4 = vld [vmem:[%s1440_s30 + $0x128] sm:$0xff]  ;;  %v343_v5 = vld [vmem:[%s1440_s30 + $0x138] sm:$0xff]  ;;  %v1232_v32 = vmov 0.0  }
  0x28   : > { %1182 = vmatpush3.bf16.msra.mxu1 %v1181_v33  ;;  %v340_v6 = vld [vmem:[%s1440_s30 + $0x120] sm:$0xff]  ;;  %v342_v7 = vld [vmem:[%s1440_s30 + $0x130] sm:$0xff]  ;;  %v345_v8 = vld [vmem:[%s1440_s30 + $0x148] sm:$0xff]  ;;  %272 = vst.msk [vmem:[#allocation2] sm:$0xff] %vm271_vm0, %v1232_v32 }
  0x29   : > { %v347_v9 = vld [vmem:[%s1440_s30 + $0x158] sm:$0xff]  ;;  %v344_v10 = vld [vmem:[%s1440_s30 + $0x140] sm:$0xff]  ;;  %v346_v11 = vld [vmem:[%s1440_s30 + $0x150] sm:$0xff]  ;;  %273 = vst.msk [vmem:[#allocation2 + $0x8] sm:$0xff] %vm271_vm0, %v1232_v32 }
  0x2a   : > { %497 = vmatmul.mubr.f32.vlgmr.msra.gmra.mrb[0].mxu0 %v304_v34  ;;  %v349_v12 = vld [vmem:[%s1440_s30 + $0x168] sm:$0xff]  ;;  %v351_v13 = vld [vmem:[%s1440_s30 + $0x178] sm:$0xff]  ;;  %v348_v14 = vld [vmem:[%s1440_s30 + $0x160] sm:$0xff]  ;;  %274 = vst.msk [vmem:[#allocation2 + $0x10] sm:$0xff] %vm271_vm0, %v1232_v32 }
  0x2b   : > { %642 = vmatmul.mubr.f32.vlgmr.msra.gmra.mrb[0].mxu1 %v306_v35  ;;  %501 = vmatprep.mubr.f32.mxu0 %v309_v36  ;;  %v350_v15 = vld [vmem:[%s1440_s30 + $0x170] sm:$0xff]  ;;  %v353_v16 = vld [vmem:[%s1440_s30 + $0x188] sm:$0xff]  ;;  %v355_v17 = vld [vmem:[%s1440_s30 + $0x198] sm:$0xff]  ;;  %275 = vst.msk [vmem:[#allocation2 + $0x18] sm:$0xff] %vm271_vm0, %v1232_v32 }
  0x2c   : > { %646 = vmatprep.mubr.f32.mxu1 %v311_v37  ;;  %v352_v18 = vld [vmem:[%s1440_s30 + $0x180] sm:$0xff]  ;;  %v354_v19 = vld [vmem:[%s1440_s30 + $0x190] sm:$0xff]  ;;  %v357_v20 = vld [vmem:[%s1440_s30 + $0x1a8] sm:$0xff]  ;;  %276 = vst.msk [vmem:[#allocation2 + $0x20] sm:$0xff] %vm271_vm0, %v1232_v32 }
  0x2d   : > { %v359_v21 = vld [vmem:[%s1440_s30 + $0x1b8] sm:$0xff]  ;;  %v356_v22 = vld [vmem:[%s1440_s30 + $0x1a0] sm:$0xff]  ;;  %v358_v23 = vld [vmem:[%s1440_s30 + $0x1b0] sm:$0xff]  ;;  %277 = vst.msk [vmem:[#allocation2 + $0x28] sm:$0xff] %vm271_vm0, %v1232_v32 }
  0x2e   : > { %502 = vmatmul.mubr.f32.gmra.mrb[2].mxu0 %v308_v38  ;;  %v361_v24 = vld [vmem:[%s1440_s30 + $0x1c8] sm:$0xff]  ;;  %v363_v25 = vld [vmem:[%s1440_s30 + $0x1d8] sm:$0xff]  ;;  %v360_v26 = vld [vmem:[%s1440_s30 + $0x1c0] sm:$0xff]  ;;  %278 = vst.msk [vmem:[#allocation2 + $0x30] sm:$0xff] %vm271_vm0, %v1232_v32 }
  0x2f   : > { %647 = vmatmul.mubr.f32.gmra.mrb[2].mxu1 %v310_v39  ;;  %506 = vmatprep.mubr.f32.mxu0 %v313_v40  ;;  %v362_v27 = vld [vmem:[%s1440_s30 + $0x1d0] sm:$0xff]  ;;  %v365_v28 = vld [vmem:[%s1440_s30 + $0x1e8] sm:$0xff]  ;;  %v367_v29 = vld [vmem:[%s1440_s30 + $0x1f8] sm:$0xff]  ;;  %279 = vst.msk [vmem:[#allocation2 + $0x38] sm:$0xff] %vm271_vm0, %v1232_v32 }
  0x30   : > { %651 = vmatprep.mubr.f32.mxu1 %v315_v41  ;;  %v364_v30 = vld [vmem:[%s1440_s30 + $0x1e0] sm:$0xff]  ;;  %v366_v31 = vld [vmem:[%s1440_s30 + $0x1f0] sm:$0xff]  ;;  %280 = vst.msk [vmem:[#allocation2 + $0x40] sm:$0xff] %vm271_vm0, %v1232_v32  ;;  %281 = vst.msk [vmem:[#allocation2 + $0x48] sm:$0xff] %vm271_vm0, %v1232_v32 }
  0x31   : > { %282 = vst.msk [vmem:[#allocation2 + $0x50] sm:$0xff] %vm271_vm0, %v1232_v32  ;;  %283 = vst.msk [vmem:[#allocation2 + $0x58] sm:$0xff] %vm271_vm0, %v1232_v32  ;;  %v288_v39 = vld [vmem:[#allocation2] sm:$0xff] }
  0x32   : > { %507 = vmatmul.mubr.f32.gmra.mrb[4].mxu0 %v312_v42  ;;  %284 = vst.msk [vmem:[#allocation2 + $0x60] sm:$0xff] %vm271_vm0, %v1232_v32  ;;  %285 = vst.msk [vmem:[#allocation2 + $0x68] sm:$0xff] %vm271_vm0, %v1232_v32 }
  0x33   : > { %652 = vmatmul.mubr.f32.gmra.mrb[4].mxu1 %v314_v43  ;;  %511 = vmatprep.mubr.f32.mxu0 %v317_v44  ;;  %286 = vst.msk [vmem:[#allocation2 + $0x70] sm:$0xff] %vm271_vm0, %v1232_v32  ;;  %287 = vst.msk [vmem:[#allocation2 + $0x78] sm:$0xff] %vm271_vm0, %v1232_v32 }
  0x34   : > { %656 = vmatprep.mubr.f32.mxu1 %v319_v45 }
  0x36   : > { %512 = vmatmul.mubr.f32.gmra.mrb[6].mxu0 %v316_v46 }
  0x37   : > { %657 = vmatmul.mubr.f32.gmra.mrb[6].mxu1 %v318_v47  ;;  %516 = vmatprep.mubr.f32.mxu0 %v321_v48  ;;  %v289_v48 = vld [vmem:[#allocation2 + $0x8] sm:$0xff] }
  0x38   : > { %661 = vmatprep.mubr.f32.mxu1 %v323_v49 }
  0x3a   : > { %517 = vmatmul.mubr.f32.gmra.mrb[8].mxu0 %v320_v50 }
  0x3b   : > { %662 = vmatmul.mubr.f32.gmra.mrb[8].mxu1 %v322_v51  ;;  %521 = vmatprep.mubr.f32.mxu0 %v325_v52 }
  0x3c   : > { %666 = vmatprep.mubr.f32.mxu1 %v327_v53 }
  0x3e   : > { %522 = vmatmul.mubr.f32.gmra.mrb[10].mxu0 %v324_v54 }
  0x3f   : > { %667 = vmatmul.mubr.f32.gmra.mrb[10].mxu1 %v326_v55  ;;  %526 = vmatprep.mubr.f32.mxu0 %v329_v56 }
  0x40   : > { %671 = vmatprep.mubr.f32.mxu1 %v331_v57  ;;  %v290_v57 = vld [vmem:[#allocation2 + $0x10] sm:$0xff] }
  0x42   : > { %527 = vmatmul.mubr.f32.gmra.mrb[12].mxu0 %v328_v58 }
  0x43   : > { %672 = vmatmul.mubr.f32.gmra.mrb[12].mxu1 %v330_v59  ;;  %531 = vmatprep.mubr.f32.mxu0 %v333_v60 }
  0x44   : > { %676 = vmatprep.mubr.f32.mxu1 %v335_v61 }
  0x46   : > { %532 = vmatmul.mubr.f32.gmra.mrb[14].mxu0 %v332_v62  ;;  %v1569_v62 = vld [vmem:[%s1650_s2] ss:$0 sm:$0xff] }
  0x47   : > { %677 = vmatmul.mubr.f32.gmra.mrb[14].mxu1 %v334_v63  ;;  %536 = vmatprep.mubr.f32.mxu0 %v337_v0 }
  0x48   : > { %681 = vmatprep.mubr.f32.mxu1 %v339_v1 }
  0x4a   : > { %537 = vmatmul.mubr.f32.gmra.mrb[16].mxu0 %v336_v2 }
  0x4b   : > { %682 = vmatmul.mubr.f32.gmra.mrb[16].mxu1 %v338_v3  ;;  %541 = vmatprep.mubr.f32.mxu0 %v341_v4  ;;  %v291_v4 = vld [vmem:[#allocation2 + $0x18] sm:$0xff] }
  0x4c   : > { %686 = vmatprep.mubr.f32.mxu1 %v343_v5 }
  0x4e   : > { %542 = vmatmul.mubr.f32.gmra.mrb[18].mxu0 %v340_v6 }
  0x4f   : > { %687 = vmatmul.mubr.f32.gmra.mrb[18].mxu1 %v342_v7  ;;  %546 = vmatprep.mubr.f32.mxu0 %v345_v8 }
  0x50   : > { %691 = vmatprep.mubr.f32.mxu1 %v347_v9 }
  0x52   : > { %547 = vmatmul.mubr.f32.gmra.mrb[20].mxu0 %v344_v10 }
  0x53   : > { %692 = vmatmul.mubr.f32.gmra.mrb[20].mxu1 %v346_v11  ;;  %551 = vmatprep.mubr.f32.mxu0 %v349_v12 }
  0x54   : > { %696 = vmatprep.mubr.f32.mxu1 %v351_v13 }
  0x56   : > { %552 = vmatmul.mubr.f32.gmra.mrb[22].mxu0 %v348_v14 }
  0x57   : > { %697 = vmatmul.mubr.f32.gmra.mrb[22].mxu1 %v350_v15  ;;  %556 = vmatprep.mubr.f32.mxu0 %v353_v16  ;;  %v292_v16 = vld [vmem:[#allocation2 + $0x20] sm:$0xff] }
  0x58   : > { %701 = vmatprep.mubr.f32.mxu1 %v355_v17 }
  0x5a   : > { %557 = vmatmul.mubr.f32.gmra.mrb[24].mxu0 %v352_v18 }
  0x5b   : > { %702 = vmatmul.mubr.f32.gmra.mrb[24].mxu1 %v354_v19  ;;  %561 = vmatprep.mubr.f32.mxu0 %v357_v20 }
  0x5c   : > { %706 = vmatprep.mubr.f32.mxu1 %v359_v21 }
  0x5e   : > { %562 = vmatmul.mubr.f32.gmra.mrb[26].mxu0 %v356_v22 }
  0x5f   : > { %707 = vmatmul.mubr.f32.gmra.mrb[26].mxu1 %v358_v23  ;;  %566 = vmatprep.mubr.f32.mxu0 %v361_v24 }
  0x60   : > { %711 = vmatprep.mubr.f32.mxu1 %v363_v25 }
  0x62   : > { %567 = vmatmul.mubr.f32.gmra.mrb[28].mxu0 %v360_v26 }
  0x63   : > { %712 = vmatmul.mubr.f32.gmra.mrb[28].mxu1 %v362_v27  ;;  %571 = vmatprep.mubr.f32.mxu0 %v365_v28  ;;  %v293_v28 = vld [vmem:[#allocation2 + $0x28] sm:$0xff] }
  0x64   : > { %716 = vmatprep.mubr.f32.mxu1 %v367_v29 }
  0x66   : > { %572 = vmatmul.mubr.f32.gmra.mrb[30].mxu0 %v364_v30 }
  0x67   : > { %717 = vmatmul.mubr.f32.gmra.mrb[30].mxu1 %v366_v31 }
  0xfd   : > { %v991_v33 = vpop.f32.mrb[0].mxu0 }
  0xfe   : > { %v1071_v34 = vpop.f32.mrb[0].mxu1  ;;  %v992_v35 = vpop.f32.mrb[1].mxu0 }
  0xff   : > { %v993_v36 = vadd.f32 %v992_v35, %v991_v33  ;;  %v1072_v37 = vpop.f32.mrb[1].mxu1 }
 0x100   : > { %v1073_v38 = vadd.f32 %v1072_v37, %v1071_v34 }
 0x101   : > { %v994_v40 = vpop.f32.mrb[2].mxu0 }
 0x102   : > { %v644_v41 = vadd.f32 %v1073_v38, %v993_v36  ;;  %v1074_v42 = vpop.f32.mrb[2].mxu1  ;;  %v995_v43 = vpop.f32.mrb[3].mxu0 }
 0x103   : > { %v996_v44 = vadd.f32 %v995_v43, %v994_v40  ;;  %v1075_v45 = vpop.f32.mrb[3].mxu1  ;;  %v294_v40 = vld [vmem:[#allocation2 + $0x30] sm:$0xff] }
 0x104   : > { %v722_v46 = vadd.f32 %v644_v41, %v288_v39  ;;  %v1076_v47 = vadd.f32 %v1075_v45, %v1074_v42 }
 0x105   : > { %v997_v49 = vpop.f32.mrb[4].mxu0 }
 0x106   : > { %739 = vst.msk [vmem:[#allocation2] sm:$0xff] %vm271_vm0, %v722_v46  ;;  %v649_v50 = vadd.f32 %v1076_v47, %v996_v44  ;;  %v1077_v51 = vpop.f32.mrb[4].mxu1  ;;  %v998_v52 = vpop.f32.mrb[5].mxu0 }
 0x107   : > { %v999_v53 = vadd.f32 %v998_v52, %v997_v49  ;;  %v1078_v54 = vpop.f32.mrb[5].mxu1  ;;  %v295_v52 = vld [vmem:[#allocation2 + $0x38] sm:$0xff] }
 0x108   : > { %v723_v55 = vadd.f32 %v649_v50, %v289_v48  ;;  %v1079_v56 = vadd.f32 %v1078_v54, %v1077_v51 }
 0x109   : > { %v1000_v58 = vpop.f32.mrb[6].mxu0 }
 0x10a   : > { %740 = vst.msk [vmem:[#allocation2 + $0x8] sm:$0xff] %vm271_vm0, %v723_v55  ;;  %v654_v59 = vadd.f32 %v1079_v56, %v999_v53  ;;  %v1080_v60 = vpop.f32.mrb[6].mxu1  ;;  %v1001_v61 = vpop.f32.mrb[7].mxu0 }
 0x10b   : > { %v1002_v63 = vadd.f32 %v1001_v61, %v1000_v58  ;;  %v1081_v0 = vpop.f32.mrb[7].mxu1 }
 0x10c   : > { %v724_v1 = vadd.f32 %v654_v59, %v290_v57  ;;  %v1082_v2 = vadd.f32 %v1081_v0, %v1080_v60 }
 0x10d   : > { %v758_v3 = vld [vmem:[#allocation2] sm:$0xff]  ;;  %v1003_v5 = vpop.f32.mrb[8].mxu0 }
 0x10e   : > { %v781_v6 = vadd.f32 %v1569_v62, %v758_v3  ;;  %741 = vst.msk [vmem:[#allocation2 + $0x10] sm:$0xff] %vm271_vm0, %v724_v1  ;;  %v659_v7 = vadd.f32 %v1082_v2, %v1002_v63  ;;  %v1083_v8 = vpop.f32.mrb[8].mxu1  ;;  %v1004_v9 = vpop.f32.mrb[9].mxu0  ;;  %v296_v1 = vld [vmem:[#allocation2 + $0x40] sm:$0xff] }
 0x10f   : > { %v1005_v10 = vadd.f32 %v1004_v9, %v1003_v5  ;;  %v1084_v11 = vpop.f32.mrb[9].mxu1 }
 0x110   : > { %v797_v12 = vmax.f32 %v781_v6, 0.0  ;;  %v725_v13 = vadd.f32 %v659_v7, %v291_v4  ;;  %v1085_v14 = vadd.f32 %v1084_v11, %v1083_v8 }
 0x111   : > { %v759_v15 = vld [vmem:[#allocation2 + $0x8] sm:$0xff]  ;;  %v1006_v17 = vpop.f32.mrb[10].mxu0 }
 0x112   : > { %813 = vst.msk [vmem:[%s1577_s18] sm:$0xff] %vm271_vm0, %v797_v12  ;;  %v782_v18 = vadd.f32 %v1569_v62, %v759_v15  ;;  %742 = vst.msk [vmem:[#allocation2 + $0x18] sm:$0xff] %vm271_vm0, %v725_v13  ;;  %v664_v19 = vadd.f32 %v1085_v14, %v1005_v10  ;;  %v1086_v20 = vpop.f32.mrb[10].mxu1  ;;  %v1007_v21 = vpop.f32.mrb[11].mxu0  ;;  %v297_v13 = vld [vmem:[#allocation2 + $0x48] sm:$0xff] }
 0x113   : > { %v1008_v22 = vadd.f32 %v1007_v21, %v1006_v17  ;;  %v1087_v23 = vpop.f32.mrb[11].mxu1 }
 0x114   : > { %v798_v24 = vmax.f32 %v782_v18, 0.0  ;;  %v726_v25 = vadd.f32 %v664_v19, %v292_v16  ;;  %v1088_v26 = vadd.f32 %v1087_v23, %v1086_v20 }
 0x115   : > { %v760_v27 = vld [vmem:[#allocation2 + $0x10] sm:$0xff]  ;;  %v1009_v29 = vpop.f32.mrb[12].mxu0 }
 0x116   : > { %814 = vst.msk [vmem:[%s1577_s18 + $0x8] sm:$0xff] %vm271_vm0, %v798_v24  ;;  %v783_v30 = vadd.f32 %v1569_v62, %v760_v27  ;;  %743 = vst.msk [vmem:[#allocation2 + $0x20] sm:$0xff] %vm271_vm0, %v726_v25  ;;  %v669_v31 = vadd.f32 %v1088_v26, %v1008_v22  ;;  %v1089_v32 = vpop.f32.mrb[12].mxu1  ;;  %v1010_v33 = vpop.f32.mrb[13].mxu0  ;;  %v298_v25 = vld [vmem:[#allocation2 + $0x50] sm:$0xff] }
 0x117   : > { %v1011_v34 = vadd.f32 %v1010_v33, %v1009_v29  ;;  %v1090_v35 = vpop.f32.mrb[13].mxu1 }
 0x118   : > { %v799_v36 = vmax.f32 %v783_v30, 0.0  ;;  %v727_v37 = vadd.f32 %v669_v31, %v293_v28  ;;  %v1091_v38 = vadd.f32 %v1090_v35, %v1089_v32 }
 0x119   : > { %v761_v39 = vld [vmem:[#allocation2 + $0x18] sm:$0xff]  ;;  %v1012_v41 = vpop.f32.mrb[14].mxu0 }
 0x11a   : > { %815 = vst.msk [vmem:[%s1577_s18 + $0x10] sm:$0xff] %vm271_vm0, %v799_v36  ;;  %v784_v42 = vadd.f32 %v1569_v62, %v761_v39  ;;  %744 = vst.msk [vmem:[#allocation2 + $0x28] sm:$0xff] %vm271_vm0, %v727_v37  ;;  %v674_v43 = vadd.f32 %v1091_v38, %v1011_v34  ;;  %v1092_v44 = vpop.f32.mrb[14].mxu1  ;;  %v1013_v45 = vpop.f32.mrb[15].mxu0  ;;  %v299_v37 = vld [vmem:[#allocation2 + $0x58] sm:$0xff] }
 0x11b   : > { %v1014_v46 = vadd.f32 %v1013_v45, %v1012_v41  ;;  %v1093_v47 = vpop.f32.mrb[15].mxu1 }
 0x11c   : > { %v800_v48 = vmax.f32 %v784_v42, 0.0  ;;  %v728_v49 = vadd.f32 %v674_v43, %v294_v40  ;;  %v1094_v50 = vadd.f32 %v1093_v47, %v1092_v44 }
 0x11d   : > { %v762_v51 = vld [vmem:[#allocation2 + $0x20] sm:$0xff]  ;;  %v1015_v53 = vpop.f32.mrb[16].mxu0 }
 0x11e   : > { %816 = vst.msk [vmem:[%s1577_s18 + $0x18] sm:$0xff] %vm271_vm0, %v800_v48  ;;  %v785_v54 = vadd.f32 %v1569_v62, %v762_v51  ;;  %745 = vst.msk [vmem:[#allocation2 + $0x30] sm:$0xff] %vm271_vm0, %v728_v49  ;;  %v679_v55 = vadd.f32 %v1094_v50, %v1014_v46  ;;  %v1095_v56 = vpop.f32.mrb[16].mxu1  ;;  %v1016_v57 = vpop.f32.mrb[17].mxu0  ;;  %v300_v49 = vld [vmem:[#allocation2 + $0x60] sm:$0xff] }
 0x11f   : > { %v1017_v58 = vadd.f32 %v1016_v57, %v1015_v53  ;;  %v1096_v59 = vpop.f32.mrb[17].mxu1 }
 0x120   : > { %v801_v60 = vmax.f32 %v785_v54, 0.0  ;;  %v729_v61 = vadd.f32 %v679_v55, %v295_v52  ;;  %v1097_v63 = vadd.f32 %v1096_v59, %v1095_v56 }
 0x121   : > { %v763_v0 = vld [vmem:[#allocation2 + $0x28] sm:$0xff]  ;;  %v1018_v2 = vpop.f32.mrb[18].mxu0 }
 0x122   : > { %817 = vst.msk [vmem:[%s1577_s18 + $0x20] sm:$0xff] %vm271_vm0, %v801_v60  ;;  %v786_v3 = vadd.f32 %v1569_v62, %v763_v0  ;;  %746 = vst.msk [vmem:[#allocation2 + $0x38] sm:$0xff] %vm271_vm0, %v729_v61  ;;  %v684_v4 = vadd.f32 %v1097_v63, %v1017_v58  ;;  %v1098_v5 = vpop.f32.mrb[18].mxu1  ;;  %v1019_v6 = vpop.f32.mrb[19].mxu0  ;;  %v301_v61 = vld [vmem:[#allocation2 + $0x68] sm:$0xff] }
 0x123   : > { %v1020_v7 = vadd.f32 %v1019_v6, %v1018_v2  ;;  %v1099_v8 = vpop.f32.mrb[19].mxu1 }
 0x124   : > { %v802_v9 = vmax.f32 %v786_v3, 0.0  ;;  %v730_v10 = vadd.f32 %v684_v4, %v296_v1  ;;  %v1100_v11 = vadd.f32 %v1099_v8, %v1098_v5 }
 0x125   : > { %v764_v12 = vld [vmem:[#allocation2 + $0x30] sm:$0xff]  ;;  %v1021_v14 = vpop.f32.mrb[20].mxu0 }
 0x126   : > { %818 = vst.msk [vmem:[%s1577_s18 + $0x28] sm:$0xff] %vm271_vm0, %v802_v9  ;;  %v787_v15 = vadd.f32 %v1569_v62, %v764_v12  ;;  %747 = vst.msk [vmem:[#allocation2 + $0x40] sm:$0xff] %vm271_vm0, %v730_v10  ;;  %v689_v16 = vadd.f32 %v1100_v11, %v1020_v7  ;;  %v1101_v17 = vpop.f32.mrb[20].mxu1  ;;  %v1022_v18 = vpop.f32.mrb[21].mxu0  ;;  %v302_v10 = vld [vmem:[#allocation2 + $0x70] sm:$0xff] }
 0x127   : > { %v1023_v19 = vadd.f32 %v1022_v18, %v1021_v14  ;;  %v1102_v20 = vpop.f32.mrb[21].mxu1 }
 0x128   : > { %v803_v21 = vmax.f32 %v787_v15, 0.0  ;;  %v731_v22 = vadd.f32 %v689_v16, %v297_v13  ;;  %v1103_v23 = vadd.f32 %v1102_v20, %v1101_v17 }
 0x129   : > { %v765_v24 = vld [vmem:[#allocation2 + $0x38] sm:$0xff]  ;;  %v1024_v26 = vpop.f32.mrb[22].mxu0 }
 0x12a   : > { %819 = vst.msk [vmem:[%s1577_s18 + $0x30] sm:$0xff] %vm271_vm0, %v803_v21  ;;  %v788_v27 = vadd.f32 %v1569_v62, %v765_v24  ;;  %748 = vst.msk [vmem:[#allocation2 + $0x48] sm:$0xff] %vm271_vm0, %v731_v22  ;;  %v694_v28 = vadd.f32 %v1103_v23, %v1023_v19  ;;  %v1104_v29 = vpop.f32.mrb[22].mxu1  ;;  %v1025_v30 = vpop.f32.mrb[23].mxu0  ;;  %v303_v22 = vld [vmem:[#allocation2 + $0x78] sm:$0xff] }
 0x12b   : > { %v1026_v31 = vadd.f32 %v1025_v30, %v1024_v26  ;;  %v1105_v32 = vpop.f32.mrb[23].mxu1 }
 0x12c   : > { %v804_v33 = vmax.f32 %v788_v27, 0.0  ;;  %v732_v34 = vadd.f32 %v694_v28, %v298_v25  ;;  %v1106_v35 = vadd.f32 %v1105_v32, %v1104_v29 }
 0x12d   : > { %v766_v36 = vld [vmem:[#allocation2 + $0x40] sm:$0xff]  ;;  %v1027_v38 = vpop.f32.mrb[24].mxu0 }
 0x12e   : > { %820 = vst.msk [vmem:[%s1577_s18 + $0x38] sm:$0xff] %vm271_vm0, %v804_v33  ;;  %v789_v39 = vadd.f32 %v1569_v62, %v766_v36  ;;  %749 = vst.msk [vmem:[#allocation2 + $0x50] sm:$0xff] %vm271_vm0, %v732_v34  ;;  %v699_v40 = vadd.f32 %v1106_v35, %v1026_v31  ;;  %v1107_v41 = vpop.f32.mrb[24].mxu1  ;;  %v1028_v42 = vpop.f32.mrb[25].mxu0 }
 0x12f   : > { %v1029_v43 = vadd.f32 %v1028_v42, %v1027_v38  ;;  %v1108_v44 = vpop.f32.mrb[25].mxu1 }
 0x130   : > { %v805_v45 = vmax.f32 %v789_v39, 0.0  ;;  %v733_v46 = vadd.f32 %v699_v40, %v299_v37  ;;  %v1109_v47 = vadd.f32 %v1108_v44, %v1107_v41 }
 0x131   : > { %v767_v48 = vld [vmem:[#allocation2 + $0x48] sm:$0xff]  ;;  %v1030_v50 = vpop.f32.mrb[26].mxu0 }
 0x132   : > { %821 = vst.msk [vmem:[%s1577_s18 + $0x40] sm:$0xff] %vm271_vm0, %v805_v45  ;;  %v790_v51 = vadd.f32 %v1569_v62, %v767_v48  ;;  %750 = vst.msk [vmem:[#allocation2 + $0x58] sm:$0xff] %vm271_vm0, %v733_v46  ;;  %v704_v52 = vadd.f32 %v1109_v47, %v1029_v43  ;;  %v1110_v53 = vpop.f32.mrb[26].mxu1  ;;  %v1031_v54 = vpop.f32.mrb[27].mxu0 }
 0x133   : > { %v1032_v55 = vadd.f32 %v1031_v54, %v1030_v50  ;;  %v1111_v56 = vpop.f32.mrb[27].mxu1 }
 0x134   : > { %v806_v57 = vmax.f32 %v790_v51, 0.0  ;;  %v734_v58 = vadd.f32 %v704_v52, %v300_v49  ;;  %v1112_v59 = vadd.f32 %v1111_v56, %v1110_v53 }
 0x135   : > { %v768_v60 = vld [vmem:[#allocation2 + $0x50] sm:$0xff]  ;;  %v1033_v63 = vpop.f32.mrb[28].mxu0 }
 0x136   : > { %822 = vst.msk [vmem:[%s1577_s18 + $0x48] sm:$0xff] %vm271_vm0, %v806_v57  ;;  %v791_v0 = vadd.f32 %v1569_v62, %v768_v60  ;;  %751 = vst.msk [vmem:[#allocation2 + $0x60] sm:$0xff] %vm271_vm0, %v734_v58  ;;  %v709_v1 = vadd.f32 %v1112_v59, %v1032_v55  ;;  %v1113_v2 = vpop.f32.mrb[28].mxu1  ;;  %v1034_v3 = vpop.f32.mrb[29].mxu0 }
 0x137   : > { %v1035_v4 = vadd.f32 %v1034_v3, %v1033_v63  ;;  %v1114_v5 = vpop.f32.mrb[29].mxu1 }
 0x138   : > { %v807_v6 = vmax.f32 %v791_v0, 0.0  ;;  %v735_v7 = vadd.f32 %v709_v1, %v301_v61  ;;  %v1115_v8 = vadd.f32 %v1114_v5, %v1113_v2 }
 0x139   : > { %v769_v9 = vld [vmem:[#allocation2 + $0x58] sm:$0xff]  ;;  %v1036_v11 = vpop.f32.mrb[30].mxu0 }
 0x13a   : > { %823 = vst.msk [vmem:[%s1577_s18 + $0x50] sm:$0xff] %vm271_vm0, %v807_v6  ;;  %v792_v12 = vadd.f32 %v1569_v62, %v769_v9  ;;  %752 = vst.msk [vmem:[#allocation2 + $0x68] sm:$0xff] %vm271_vm0, %v735_v7  ;;  %v714_v13 = vadd.f32 %v1115_v8, %v1035_v4  ;;  %v1116_v14 = vpop.f32.mrb[30].mxu1  ;;  %v1037_v15 = vpop.f32.mrb[31].mxu0 }
 0x13b   : > { %v1038_v16 = vadd.f32 %v1037_v15, %v1036_v11  ;;  %v1117_v17 = vpop.f32.mrb[31].mxu1 }
 0x13c   : > { %v808_v18 = vmax.f32 %v792_v12, 0.0  ;;  %v736_v19 = vadd.f32 %v714_v13, %v302_v10  ;;  %v1118_v20 = vadd.f32 %v1117_v17, %v1116_v14 }
 0x13d   : > { %v770_v21 = vld [vmem:[#allocation2 + $0x60] sm:$0xff] }
 0x13e   : > { %824 = vst.msk [vmem:[%s1577_s18 + $0x58] sm:$0xff] %vm271_vm0, %v808_v18  ;;  %v793_v23 = vadd.f32 %v1569_v62, %v770_v21  ;;  %753 = vst.msk [vmem:[#allocation2 + $0x70] sm:$0xff] %vm271_vm0, %v736_v19  ;;  %v719_v24 = vadd.f32 %v1118_v20, %v1038_v16 }
 0x140   : > { %v809_v25 = vmax.f32 %v793_v23, 0.0  ;;  %v737_v26 = vadd.f32 %v719_v24, %v303_v22 }
 0x141   : > { %v771_v27 = vld [vmem:[#allocation2 + $0x68] sm:$0xff] }
 0x142   : > { %825 = vst.msk [vmem:[%s1577_s18 + $0x60] sm:$0xff] %vm271_vm0, %v809_v25  ;;  %v794_v28 = vadd.f32 %v1569_v62, %v771_v27  ;;  %754 = vst.msk [vmem:[#allocation2 + $0x78] sm:$0xff] %vm271_vm0, %v737_v26 }
 0x144   : > { %v810_v29 = vmax.f32 %v794_v28, 0.0 }
 0x145   : > { %v772_v30 = vld [vmem:[#allocation2 + $0x70] sm:$0xff] }
 0x146   : > { %826 = vst.msk [vmem:[%s1577_s18 + $0x68] sm:$0xff] %vm271_vm0, %v810_v29  ;;  %v795_v31 = vadd.f32 %v1569_v62, %v772_v30 }
 0x148   : > { %v811_v32 = vmax.f32 %v795_v31, 0.0 }
 0x149   : > { %v773_v33 = vld [vmem:[#allocation2 + $0x78] sm:$0xff] }
 0x14a   : > { %827 = vst.msk [vmem:[%s1577_s18 + $0x70] sm:$0xff] %vm271_vm0, %v811_v32  ;;  %v796_v34 = vadd.f32 %v1569_v62, %v773_v33 }
 0x14c   : > { %v812_v35 = vmax.f32 %v796_v34, 0.0 }
 0x14e   : > { %828 = vst.msk [vmem:[%s1577_s18 + $0x78] sm:$0xff] %vm271_vm0, %v812_v35 }
 0x14f PF: > { %s13_s14 = sadd.s32 1, %s1230_s14   ;;  %s1653_s12 = smov %s1226_s13 }
 0x150   : > { %p10_p5 = scmp.ge.s32.totalorder %s13_s14, 6   ;;  %s1654_s13 = smov %s1656_s15 }
 0x152   :  { %12 = sbr.rel (!%p10_p5) target bundleno = 2 (0x2), region = 76 }

// kernel: bleednet3_forward.5
= control target key start
LH: loop header
LB: loop body
LE: loop exit
PB: predicated region body
PF: predicated region fallthrough
CT: control target
= control target key end

     0   :  { %8 = vsyncpa [#allocation4], 0  ;;  %s7610_s0 = inlined_call_operand.vmem [shape: f32[8,160000], index: 0, kind: input, shape index: {}]   ;;  %s7611_s1 = inlined_call_operand.hbm [shape: f32[160000,1024], index: 1, kind: input, shape index: {}]   ;;  %s7612_s2 = inlined_call_operand.vmem [shape: f32[1,1024], index: 2, kind: input, shape index: {}]   ;;  %s7613_s3 = inlined_call_operand.vmem [shape: f32[8,1024], index: 3, kind: output, shape index: {}]  }
   0x1   :  { %10 = vsyncpa [#allocation4 + $0x1], 0  ;;  %s5811_s12 = smov 0   ;;  %s5813_s13 = smov 0  }
   0x2   :  { %s5815_s14 = smov 0   ;;  %s5817_s15 = smov 0  }
   0x3   :  { %s5819_s16 = smov 0   ;;  %s5821_s17 = smov 0  }
   0x4   :  { %s5823_s18 = smov 0   ;;  %s5825_s19 = smov 0  }
   0x5 LB: > { %s3944_s20 = sadd.s32 4294967295, %s5783_s19   ;;  %s28_s21 = sadd.s32 1, %s5775_s17  ;;  %s5783_s19 = sphi %s5825_s19, %s16_s19   ;;  %s5779_s18 = sphi %s5823_s18, %s7623_s18   ;;  %s5775_s17 = sphi %s5821_s17, %s7622_s17   ;;  %s5771_s16 = sphi %s5819_s16, %s7621_s16   ;;  %s5767_s15 = sphi %s5817_s15, %s7620_s15   ;;  %s5763_s14 = sphi %s5815_s14, %s7619_s14   ;;  %s5759_s13 = sphi %s5813_s13, %s7618_s13   ;;  %s5755_s12 = sphi %s5811_s12, %s7617_s12  }
   0x6   : > { %p29_p0 = scmp.ge.s32.totalorder %s28_s21, 50  ;;  %s31_s22 = sadd.s32 1, %s5779_s18 }
   0x7   : > { %s72_s23 = sadd.s32 1, %s5763_s14  ;;  %p79_p1 = scmp.ne.s32.totalorder %s5763_s14, %s5759_s13 }
   0x8   : > { %s7625_s21 = smov (%p29_p0, %s28_s21), 0  ;;  %s7627_s22 = smov (!%p29_p0, %s31_s22), %s5779_s18 }
   0x9   : > { %s67_s24 = ssub.s32 %s5775_s17, %s7625_s21  ;;  %p80_p2 = scmp.eq.s32.totalorder %s5783_s19, 0 }
   0xa   : > { %p33_p3 = scmp.ge.s32.totalorder %s7627_s22, 2  ;;  %p85_p4 = scmp.ne.s32.totalorder %s5759_s13, %s5755_s12 }
   0xb   : > { %p5862_p5 = por %p80_p2, %p79_p1  ;;  %p86_p6 = scmp.eq.s32.totalorder %s3944_s20, 0 }
   0xc   : > { %s7629_s22 = smov (%p33_p3, %s7627_s22), 0  ;;  %p5617_p8 = scmp.lt.s32.totalorder %s5783_s19, 100 }
   0xd   : > { %p5868_p7 = por %p86_p6, %p85_p4  ;;  %s68_s27 = ssub.s32 %s5779_s18, %s7629_s22 }
   0xe   : > { %s69_s28 = sor.u32 %s68_s27, %s67_s24  ;;  %s176_s29 = sand.u32 1, %s5763_s14  }
   0xf   : > { %p70_p9 = scmp.eq.s32.totalorder %s69_s28, 0  ;;  %s5609_s30 = smul.u32 12800, %s176_s29 }
  0x10   : > { %s3948_s4 = sshll.u32 %s5779_s18, 2  ;;  %s3960_s6 = smul.u32 3200, %s5775_s17 }
  0x11   : > { %s5878_s5 = scalar_select %p70_p9, %s5763_s14, %s72_s23  }
  0x12   : > { %s180_s7 = scalar_lea.vmem [#allocation3], %s5609_s30  ;;  %p5883_p10 = pnand %p5617_p8, %p5862_p5 }
  0x13   : > { %s190_s8 = sshll.u32 %s180_s7, 4  ;;  %s187_s10 = sadd.s32 %s3960_s6, %s3948_s4  ;;  %s5887_s8 = int_to_ptr.vmem [resolvable:$true] %s190_s8 }
  0x14   : > { %s3950_s11 = sshll.u32 %s187_s10, 7  ;;  %s5894_s23 = scalar_lea.sflag [#allocation4], %s176_s29 }
  0x15   : > { %s5892_s24 = scalar_lea.hbm %s7611_s1, %s3950_s11  ;;  %p5689_p12 = pneg %p5883_p10 }
  0x16   : > { %s5687_s25 = scalar_lea.hbm %s5892_s24, 204800  ;;  %s5692_s30 = scalar_lea.hbm %s7611_s1, 20480000 }
  0x17   : > { %p5688_p11 = scmp.ne.s32.totalorder %s5892_s24, %s5687_s25  ;;  %p5693_p1 = scmp.lt.u32.totalorder %s5892_s24, %s7611_s1 }
  0x18   : > { %p5694_p2 = scmp.lt.u32.totalorder %s5692_s30, %s5687_s25  ;;  %p5696_p4 = scmp.lt.u32.totalorder %s5687_s25, %s5892_s24 }
  0x19   : > { %p5690_p13 = pnand %p5689_p12, %p5688_p11 }
  0x1a   : > { %p5695_p3 = por %p5694_p2, %p5693_p1 }
  0x1b   : > { %p5691_p0 = pneg %p5690_p13 }
  0x1c   : > { %p5697_p5 = por %p5696_p4, %p5695_p3 }
  0x1e   : > { %p5698_p6 = pnand %p5697_p5, %p5691_p0 }
  0x20   : > { %5701 = shalt.err (!%p5698_p6)
}
  0x21   : > { %s5702_s29 = scalar_lea.vmem %s5887_s8, 204800  ;;  %s5785_s7 = smov [#allocation3]  }
  0x22   : > { %p5703_p8 = scmp.ne.s32.totalorder %s5887_s8, %s5702_s29  ;;  %s5707_s10 = sshll.u32 %s5785_s7, 4  ;;  %s5708_s10 = int_to_ptr.vmem [resolvable:$false] %s5707_s10 }
  0x23   : > { %s5709_s11 = scalar_lea.vmem %s5708_s10, 409600  ;;  %p5710_p13 = scmp.lt.s32.totalorder %s5887_s8, %s5708_s10 }
  0x24   : > { %p5705_p9 = pnand %p5703_p8, %p5689_p12  ;;  %p5711_p1 = scmp.lt.s32.totalorder %s5709_s11, %s5702_s29 }
  0x26   : > { %p5706_p11 = pneg %p5705_p9  ;;  %p5712_p2 = por %p5711_p1, %p5710_p13 }
  0x28   : > { %p5713_p3 = pnand %p5712_p2, %p5706_p11 }
  0x2a   : > { %5716 = shalt.err (!%p5713_p3)
}
  0x2b   : > { %s5786_s12 = smov 1024   ;;  %s5787_s20 = smov 512  }
  0x2c   : > { %s5788_s25 = smov 32   ;;  %p3951_p12 = scmp.ge.s32.totalorder %s5783_s19, 1 }
  0x2d   : > { %5616 = dma.hbm_to_vmem [thread:$0]  (!%p5883_p10), %s5892_s24, 204800, %s5887_s8, %s5894_s23, %s5786_s12, %s5787_s20, %s5788_s25  }
  0x2e   : > { %p206_p0 = scmp.lt.s32.totalorder %s5783_s19, 101 }
  0x30   : > { %p207_p4 = pnand %p3951_p12, %p206_p0 }
  0x31   : > { %s212_s27 = sand.u32 (!%p207_p4), 1, %s5759_s13  }
  0x32   : > { %210 = sbr.rel (%p207_p4) target bundleno = 1101 (0x44d), region = 32  ;;  %s213_s30 = scalar_lea.sflag (!%p207_p4), [#allocation4], %s212_s27 }
  0x33   : > { %s5610_s28 = smul.u32 (!%p207_p4), 12800, %s212_s27 }
  0x35   : > { %s5925_s4 = scalar_lea.vmem (!%p207_p4), [#allocation3], %s5610_s28 }
  0x39   : > { %5750 = dma.done.wait (%p5868_p7), %s213_s30, 204800  }
  0x3a   : > { %5752 = vsyncadd (%p5868_p7), %s213_s30, 4294762496  ;;  %s256_s9 = smul.u32 25, %s5767_s15  ;;  %s3953_s8 = sshll.u32 %s5771_s16, 2 }
  0x3b   : > { %p269_p10 = scmp.lt.s32.totalorder %s3953_s8, 7  ;;  %p3956_p7 = scmp.ne.s32.totalorder %s5767_s15, 0 }
  0x3c   : > { %p259_p5 = scmp.lt.s32.totalorder %s256_s9, 1249  ;;  %v5789_v0 = vmov (!%p3956_p7), 0.0  }
  0x3d   : > { %s7631_s8 = smov (!%p269_p10, %s3953_s8), 7  ;;  %286 = sbr.rel (%p3956_p7) target bundleno = 68 (0x44), region = 40 }
  0x3e   : > { %s7633_s9 = smov (!%p259_p5, %s256_s9), 1249  ;;  %s271_s6 = scalar_lea.vmem %s7612_s2, %s7631_s8  ;;  %287 = vst [vmem:[#allocation2] sm:$0xff] (!%p3956_p7), %v5789_v0  ;;  %288 = vst [vmem:[#allocation2 + $0x8] sm:$0xff] (!%p3956_p7), %v5789_v0 }
  0x3f   : > { %s3955_s29 = sshll.u32 %s7631_s8, 3  ;;  %s3952_s7 = sshll.u32 %s7633_s9, 3  ;;  %289 = vst [vmem:[#allocation2 + $0x10] sm:$0xff] (!%p3956_p7), %v5789_v0  ;;  %290 = vst [vmem:[#allocation2 + $0x18] sm:$0xff] (!%p3956_p7), %v5789_v0 }
  0x40   : > { %s5943_s11 = scalar_lea.vmem %s7613_s3, %s3955_s29  ;;  %s5948_s20 = scalar_lea.vmem %s7610_s0, %s3952_s7 }
  0x44 PF: > { %v321_v1 = vld [vmem:[%s5925_s4 + $0x8] sm:$0xff]  ;;  %v323_v3 = vld [vmem:[%s5925_s4 + $0x18] sm:$0xff]  ;;  %v320_v6 = vld [vmem:[%s5925_s4] sm:$0xff]  ;;  %p3957_p6 = scmp.ne.s32.totalorder %s5767_s15, 49 }
  0x45   : > { %v325_v2 = vld [vmem:[%s5925_s4 + $0x28] sm:$0xff]  ;;  %v327_v5 = vld [vmem:[%s5925_s4 + $0x38] sm:$0xff]  ;;  %v324_v7 = vld [vmem:[%s5925_s4 + $0x20] sm:$0xff] }
  0x46   : > { %v3961_v4 = vpack.c.bf16 %v325_v2, %v321_v1  ;;  %v4761_v8 = vpack.c.bf16 %v327_v5, %v323_v3  ;;  %v3963_v9 = vpack.c.bf16 %v324_v7, %v320_v6  ;;  %v322_v10 = vld [vmem:[%s5925_s4 + $0x10] sm:$0xff]  ;;  %v329_v12 = vld [vmem:[%s5925_s4 + $0x48] sm:$0xff]  ;;  %v331_v15 = vld [vmem:[%s5925_s4 + $0x58] sm:$0xff] }
  0x47   : > { %v326_v11 = vld [vmem:[%s5925_s4 + $0x30] sm:$0xff]  ;;  %v333_v14 = vld [vmem:[%s5925_s4 + $0x68] sm:$0xff]  ;;  %v335_v16 = vld [vmem:[%s5925_s4 + $0x78] sm:$0xff] }
  0x48   : > { %3962 = vmatprep.subr.bf16.mxu0 %v3961_v4  ;;  %v4763_v13 = vpack.c.bf16 %v326_v11, %v322_v10  ;;  %4762 = vmatprep.subr.bf16.mxu1 %v4761_v8  ;;  %v3965_v17 = vpack.c.bf16 %v333_v14, %v329_v12  ;;  %v4765_v18 = vpack.c.bf16 %v335_v16, %v331_v15  ;;  %v328_v19 = vld [vmem:[%s5925_s4 + $0x40] sm:$0xff]  ;;  %v330_v21 = vld [vmem:[%s5925_s4 + $0x50] sm:$0xff]  ;;  %v337_v24 = vld [vmem:[%s5925_s4 + $0x88] sm:$0xff] }
  0x49   : > { %3964 = vmatpush1.bf16.msra.mxu0 %v3963_v9  ;;  %v332_v20 = vld [vmem:[%s5925_s4 + $0x60] sm:$0xff]  ;;  %v334_v23 = vld [vmem:[%s5925_s4 + $0x70] sm:$0xff]  ;;  %v341_v25 = vld [vmem:[%s5925_s4 + $0xa8] sm:$0xff] }
  0x4a   : > { %4764 = vmatpush1.bf16.msra.mxu1 %v4763_v13  ;;  %v3967_v22 = vpack.c.bf16 %v332_v20, %v328_v19  ;;  %3966 = vmatprep.subr.bf16.mxu0 %v3965_v17  ;;  %v4767_v26 = vpack.c.bf16 %v334_v23, %v330_v21  ;;  %v3969_v27 = vpack.c.bf16 %v341_v25, %v337_v24  ;;  %v339_v28 = vld [vmem:[%s5925_s4 + $0x98] sm:$0xff]  ;;  %v336_v30 = vld [vmem:[%s5925_s4 + $0x80] sm:$0xff]  ;;  %v338_v33 = vld [vmem:[%s5925_s4 + $0x90] sm:$0xff] }
  0x4b   : > { %4766 = vmatprep.subr.bf16.mxu1 %v4765_v18  ;;  %v343_v29 = vld [vmem:[%s5925_s4 + $0xb8] sm:$0xff]  ;;  %v340_v32 = vld [vmem:[%s5925_s4 + $0xa0] sm:$0xff]  ;;  %v342_v34 = vld [vmem:[%s5925_s4 + $0xb0] sm:$0xff] }
  0x4c   : > { %v4769_v31 = vpack.c.bf16 %v343_v29, %v339_v28  ;;  %v3971_v35 = vpack.c.bf16 %v340_v32, %v336_v30  ;;  %v345_v36 = vld [vmem:[%s5925_s4 + $0xc8] sm:$0xff]  ;;  %v347_v38 = vld [vmem:[%s5925_s4 + $0xd8] sm:$0xff]  ;;  %v4771_v39 = vpack.c.bf16 %v342_v34, %v338_v33  ;;  %v344_v42 = vld [vmem:[%s5925_s4 + $0xc0] sm:$0xff] }
  0x4d   : > { %3968 = vmatpush1.bf16.msra.mxu0 %v3967_v22  ;;  %v349_v37 = vld [vmem:[%s5925_s4 + $0xe8] sm:$0xff]  ;;  %v351_v41 = vld [vmem:[%s5925_s4 + $0xf8] sm:$0xff]  ;;  %v348_v43 = vld [vmem:[%s5925_s4 + $0xe0] sm:$0xff] }
  0x4e   : > { %4768 = vmatpush1.bf16.msra.mxu1 %v4767_v26  ;;  %3970 = vmatprep.subr.bf16.mxu0 %v3969_v27  ;;  %v3973_v40 = vpack.c.bf16 %v349_v37, %v345_v36  ;;  %v4773_v44 = vpack.c.bf16 %v351_v41, %v347_v38  ;;  %v346_v45 = vld [vmem:[%s5925_s4 + $0xd0] sm:$0xff]  ;;  %v353_v47 = vld [vmem:[%s5925_s4 + $0x108] sm:$0xff]  ;;  %v355_v49 = vld [vmem:[%s5925_s4 + $0x118] sm:$0xff]  ;;  %v3975_v51 = vpack.c.bf16 %v348_v43, %v344_v42 }
  0x4f   : > { %4770 = vmatprep.subr.bf16.mxu1 %v4769_v31  ;;  %v350_v46 = vld [vmem:[%s5925_s4 + $0xf0] sm:$0xff]  ;;  %v357_v48 = vld [vmem:[%s5925_s4 + $0x128] sm:$0xff]  ;;  %v359_v50 = vld [vmem:[%s5925_s4 + $0x138] sm:$0xff] }
  0x50   : > { %v4775_v52 = vpack.c.bf16 %v350_v46, %v346_v45  ;;  %v3977_v53 = vpack.c.bf16 %v357_v48, %v353_v47  ;;  %v352_v54 = vld [vmem:[%s5925_s4 + $0x100] sm:$0xff]  ;;  %v354_v56 = vld [vmem:[%s5925_s4 + $0x110] sm:$0xff]  ;;  %v4777_v57 = vpack.c.bf16 %v359_v50, %v355_v49  ;;  %v361_v59 = vld [vmem:[%s5925_s4 + $0x148] sm:$0xff] }
  0x51   : > { %3972 = vmatpush1.bf16.msra.mxu0 %v3971_v35  ;;  %v356_v55 = vld [vmem:[%s5925_s4 + $0x120] sm:$0xff]  ;;  %v358_v58 = vld [vmem:[%s5925_s4 + $0x130] sm:$0xff]  ;;  %v365_v60 = vld [vmem:[%s5925_s4 + $0x168] sm:$0xff] }
  0x52   : > { %4772 = vmatpush1.bf16.msra.mxu1 %v4771_v39  ;;  %3974 = vmatprep.subr.bf16.mxu0 %v3973_v40  ;;  %v363_v61 = vld [vmem:[%s5925_s4 + $0x158] sm:$0xff]  ;;  %v3979_v63 = vpack.c.bf16 %v356_v55, %v352_v54  ;;  %v4779_v0 = vpack.c.bf16 %v358_v58, %v354_v56  ;;  %v3981_v1 = vpack.c.bf16 %v365_v60, %v361_v59  ;;  %v360_v2 = vld [vmem:[%s5925_s4 + $0x140] sm:$0xff]  ;;  %v362_v4 = vld [vmem:[%s5925_s4 + $0x150] sm:$0xff] }
  0x53   : > { %4774 = vmatprep.subr.bf16.mxu1 %v4773_v44  ;;  %v367_v62 = vld [vmem:[%s5925_s4 + $0x178] sm:$0xff]  ;;  %v364_v3 = vld [vmem:[%s5925_s4 + $0x160] sm:$0xff]  ;;  %v366_v6 = vld [vmem:[%s5925_s4 + $0x170] sm:$0xff] }
  0x54   : > { %v4781_v5 = vpack.c.bf16 %v367_v62, %v363_v61  ;;  %v369_v7 = vld [vmem:[%s5925_s4 + $0x188] sm:$0xff]  ;;  %v371_v9 = vld [vmem:[%s5925_s4 + $0x198] sm:$0xff]  ;;  %v3983_v11 = vpack.c.bf16 %v364_v3, %v360_v2  ;;  %v4783_v12 = vpack.c.bf16 %v366_v6, %v362_v4  ;;  %v368_v14 = vld [vmem:[%s5925_s4 + $0x180] sm:$0xff] }
  0x55   : > { %3976 = vmatpush1.bf16.msra.mxu0 %v3975_v51  ;;  %v373_v8 = vld [vmem:[%s5925_s4 + $0x1a8] sm:$0xff]  ;;  %v375_v10 = vld [vmem:[%s5925_s4 + $0x1b8] sm:$0xff]  ;;  %v372_v15 = vld [vmem:[%s5925_s4 + $0x1a0] sm:$0xff] }
  0x56   : > { %4776 = vmatpush1.bf16.msra.mxu1 %v4775_v52  ;;  %3978 = vmatprep.subr.bf16.mxu0 %v3977_v53  ;;  %v3985_v13 = vpack.c.bf16 %v373_v8, %v369_v7  ;;  %v370_v16 = vld [vmem:[%s5925_s4 + $0x190] sm:$0xff]  ;;  %v4785_v17 = vpack.c.bf16 %v375_v10, %v371_v9  ;;  %v377_v19 = vld [vmem:[%s5925_s4 + $0x1c8] sm:$0xff]  ;;  %v379_v21 = vld [vmem:[%s5925_s4 + $0x1d8] sm:$0xff]  ;;  %v3987_v23 = vpack.c.bf16 %v372_v15, %v368_v14 }
  0x57   : > { %4778 = vmatprep.subr.bf16.mxu1 %v4777_v57  ;;  %v374_v18 = vld [vmem:[%s5925_s4 + $0x1b0] sm:$0xff]  ;;  %v381_v20 = vld [vmem:[%s5925_s4 + $0x1e8] sm:$0xff]  ;;  %v383_v22 = vld [vmem:[%s5925_s4 + $0x1f8] sm:$0xff] }
  0x58   : > { %v4787_v24 = vpack.c.bf16 %v374_v18, %v370_v16  ;;  %v3989_v25 = vpack.c.bf16 %v381_v20, %v377_v19  ;;  %v376_v26 = vld [vmem:[%s5925_s4 + $0x1c0] sm:$0xff]  ;;  %v378_v28 = vld [vmem:[%s5925_s4 + $0x1d0] sm:$0xff]  ;;  %v4789_v29 = vpack.c.bf16 %v383_v22, %v379_v21  ;;  %v385_v31 = vld [vmem:[%s5925_s4 + $0x208] sm:$0xff] }
  0x59   : > { %3980 = vmatpush1.bf16.msra.mxu0 %v3979_v63  ;;  %v380_v27 = vld [vmem:[%s5925_s4 + $0x1e0] sm:$0xff]  ;;  %v382_v30 = vld [vmem:[%s5925_s4 + $0x1f0] sm:$0xff]  ;;  %v389_v32 = vld [vmem:[%s5925_s4 + $0x228] sm:$0xff] }
  0x5a   : > { %4780 = vmatpush1.bf16.msra.mxu1 %v4779_v0  ;;  %3982 = vmatprep.subr.bf16.mxu0 %v3981_v1  ;;  %v387_v33 = vld [vmem:[%s5925_s4 + $0x218] sm:$0xff]  ;;  %v3991_v35 = vpack.c.bf16 %v380_v27, %v376_v26  ;;  %v4791_v36 = vpack.c.bf16 %v382_v30, %v378_v28  ;;  %v3993_v37 = vpack.c.bf16 %v389_v32, %v385_v31  ;;  %v384_v38 = vld [vmem:[%s5925_s4 + $0x200] sm:$0xff]  ;;  %v386_v40 = vld [vmem:[%s5925_s4 + $0x210] sm:$0xff] }
  0x5b   : > { %4782 = vmatprep.subr.bf16.mxu1 %v4781_v5  ;;  %v391_v34 = vld [vmem:[%s5925_s4 + $0x238] sm:$0xff]  ;;  %v388_v39 = vld [vmem:[%s5925_s4 + $0x220] sm:$0xff]  ;;  %v390_v42 = vld [vmem:[%s5925_s4 + $0x230] sm:$0xff] }
  0x5c   : > { %v4793_v41 = vpack.c.bf16 %v391_v34, %v387_v33  ;;  %v393_v43 = vld [vmem:[%s5925_s4 + $0x248] sm:$0xff]  ;;  %v395_v45 = vld [vmem:[%s5925_s4 + $0x258] sm:$0xff]  ;;  %v3995_v47 = vpack.c.bf16 %v388_v39, %v384_v38  ;;  %v4795_v48 = vpack.c.bf16 %v390_v42, %v386_v40  ;;  %v392_v50 = vld [vmem:[%s5925_s4 + $0x240] sm:$0xff] }
  0x5d   : > { %3984 = vmatpush1.bf16.msra.mxu0 %v3983_v11  ;;  %v397_v44 = vld [vmem:[%s5925_s4 + $0x268] sm:$0xff]  ;;  %v399_v46 = vld [vmem:[%s5925_s4 + $0x278] sm:$0xff]  ;;  %v396_v51 = vld [vmem:[%s5925_s4 + $0x260] sm:$0xff] }
  0x5e   : > { %4784 = vmatpush1.bf16.msra.mxu1 %v4783_v12  ;;  %3986 = vmatprep.subr.bf16.mxu0 %v3985_v13  ;;  %v3997_v49 = vpack.c.bf16 %v397_v44, %v393_v43  ;;  %v394_v52 = vld [vmem:[%s5925_s4 + $0x250] sm:$0xff]  ;;  %v4797_v53 = vpack.c.bf16 %v399_v46, %v395_v45  ;;  %v401_v55 = vld [vmem:[%s5925_s4 + $0x288] sm:$0xff]  ;;  %v403_v57 = vld [vmem:[%s5925_s4 + $0x298] sm:$0xff]  ;;  %v3999_v59 = vpack.c.bf16 %v396_v51, %v392_v50 }
  0x5f   : > { %4786 = vmatprep.subr.bf16.mxu1 %v4785_v17  ;;  %v398_v54 = vld [vmem:[%s5925_s4 + $0x270] sm:$0xff]  ;;  %v405_v56 = vld [vmem:[%s5925_s4 + $0x2a8] sm:$0xff]  ;;  %v407_v58 = vld [vmem:[%s5925_s4 + $0x2b8] sm:$0xff] }
  0x60   : > { %v4799_v60 = vpack.c.bf16 %v398_v54, %v394_v52  ;;  %v4001_v61 = vpack.c.bf16 %v405_v56, %v401_v55  ;;  %v400_v62 = vld [vmem:[%s5925_s4 + $0x280] sm:$0xff]  ;;  %v402_v0 = vld [vmem:[%s5925_s4 + $0x290] sm:$0xff]  ;;  %v4801_v1 = vpack.c.bf16 %v407_v58, %v403_v57  ;;  %v409_v3 = vld [vmem:[%s5925_s4 + $0x2c8] sm:$0xff] }
  0x61   : > { %3988 = vmatpush1.bf16.msra.mxu0 %v3987_v23  ;;  %v404_v63 = vld [vmem:[%s5925_s4 + $0x2a0] sm:$0xff]  ;;  %v406_v2 = vld [vmem:[%s5925_s4 + $0x2b0] sm:$0xff]  ;;  %v413_v4 = vld [vmem:[%s5925_s4 + $0x2e8] sm:$0xff] }
  0x62   : > { %4788 = vmatpush1.bf16.msra.mxu1 %v4787_v24  ;;  %3990 = vmatprep.subr.bf16.mxu0 %v3989_v25  ;;  %v411_v5 = vld [vmem:[%s5925_s4 + $0x2d8] sm:$0xff]  ;;  %v4003_v7 = vpack.c.bf16 %v404_v63, %v400_v62  ;;  %v408_v8 = vld [vmem:[%s5925_s4 + $0x2c0] sm:$0xff]  ;;  %v4803_v9 = vpack.c.bf16 %v406_v2, %v402_v0  ;;  %v4005_v10 = vpack.c.bf16 %v413_v4, %v409_v3  ;;  %v410_v12 = vld [vmem:[%s5925_s4 + $0x2d0] sm:$0xff] }
  0x63   : > { %4790 = vmatprep.subr.bf16.mxu1 %v4789_v29  ;;  %v415_v6 = vld [vmem:[%s5925_s4 + $0x2f8] sm:$0xff]  ;;  %v412_v11 = vld [vmem:[%s5925_s4 + $0x2e0] sm:$0xff]  ;;  %v414_v13 = vld [vmem:[%s5925_s4 + $0x2f0] sm:$0xff] }
  0x64   : > { %v4805_v14 = vpack.c.bf16 %v415_v6, %v411_v5  ;;  %v417_v15 = vld [vmem:[%s5925_s4 + $0x308] sm:$0xff]  ;;  %v419_v18 = vld [vmem:[%s5925_s4 + $0x318] sm:$0xff]  ;;  %v4007_v20 = vpack.c.bf16 %v412_v11, %v408_v8  ;;  %v4807_v21 = vpack.c.bf16 %v414_v13, %v410_v12  ;;  %v416_v23 = vld [vmem:[%s5925_s4 + $0x300] sm:$0xff] }
  0x65   : > { %3992 = vmatpush1.bf16.msra.mxu0 %v3991_v35  ;;  %v421_v16 = vld [vmem:[%s5925_s4 + $0x328] sm:$0xff]  ;;  %v423_v19 = vld [vmem:[%s5925_s4 + $0x338] sm:$0xff]  ;;  %v420_v24 = vld [vmem:[%s5925_s4 + $0x320] sm:$0xff] }
  0x66   : > { %4792 = vmatpush1.bf16.msra.mxu1 %v4791_v36  ;;  %3994 = vmatprep.subr.bf16.mxu0 %v3993_v37  ;;  %v296_v17 = vld [vmem:[%s5948_s20 + $0x8] sm:$0xff]  ;;  %v4009_v22 = vpack.c.bf16 %v421_v16, %v417_v15  ;;  %v418_v25 = vld [vmem:[%s5925_s4 + $0x310] sm:$0xff]  ;;  %v4809_v26 = vpack.c.bf16 %v423_v19, %v419_v18  ;;  %v427_v30 = vld [vmem:[%s5925_s4 + $0x358] sm:$0xff]  ;;  %v4011_v32 = vpack.c.bf16 %v420_v24, %v416_v23 }
  0x67   : > { %4794 = vmatprep.subr.bf16.mxu1 %v4793_v41  ;;  %1984 = vmatprep.mubr.f32.mxu0 %v296_v17  ;;  %v422_v27 = vld [vmem:[%s5925_s4 + $0x330] sm:$0xff]  ;;  %v425_v28 = vld [vmem:[%s5925_s4 + $0x348] sm:$0xff]  ;;  %v431_v31 = vld [vmem:[%s5925_s4 + $0x378] sm:$0xff] }
  0x68   : > { %2907 = vmatprep.mubr.f32.mxu1 %v296_v17  ;;  %v429_v29 = vld [vmem:[%s5925_s4 + $0x368] sm:$0xff]  ;;  %v4811_v33 = vpack.c.bf16 %v422_v27, %v418_v25  ;;  %v424_v35 = vld [vmem:[%s5925_s4 + $0x340] sm:$0xff]  ;;  %v426_v37 = vld [vmem:[%s5925_s4 + $0x350] sm:$0xff]  ;;  %v4813_v38 = vpack.c.bf16 %v431_v31, %v427_v30 }
  0x69   : > { %3996 = vmatpush1.bf16.msra.mxu0 %v3995_v47  ;;  %v4013_v34 = vpack.c.bf16 %v429_v29, %v425_v28  ;;  %v428_v36 = vld [vmem:[%s5925_s4 + $0x360] sm:$0xff]  ;;  %v430_v39 = vld [vmem:[%s5925_s4 + $0x370] sm:$0xff]  ;;  %v433_v40 = vld [vmem:[%s5925_s4 + $0x388] sm:$0xff] }
  0x6a   : > { %4796 = vmatpush1.bf16.msra.mxu1 %v4795_v48  ;;  %3998 = vmatprep.subr.bf16.mxu0 %v3997_v49  ;;  %v437_v41 = vld [vmem:[%s5925_s4 + $0x3a8] sm:$0xff]  ;;  %v435_v42 = vld [vmem:[%s5925_s4 + $0x398] sm:$0xff]  ;;  %v4015_v44 = vpack.c.bf16 %v428_v36, %v424_v35  ;;  %v4815_v45 = vpack.c.bf16 %v430_v39, %v426_v37  ;;  %v432_v47 = vld [vmem:[%s5925_s4 + $0x380] sm:$0xff] }
  0x6b   : > { %4798 = vmatprep.subr.bf16.mxu1 %v4797_v53  ;;  %v439_v43 = vld [vmem:[%s5925_s4 + $0x3b8] sm:$0xff]  ;;  %v4017_v46 = vpack.c.bf16 %v437_v41, %v433_v40  ;;  %v436_v48 = vld [vmem:[%s5925_s4 + $0x3a0] sm:$0xff]  ;;  %v434_v49 = vld [vmem:[%s5925_s4 + $0x390] sm:$0xff] }
  0x6c   : > { %v4817_v50 = vpack.c.bf16 %v439_v43, %v435_v42  ;;  %v438_v51 = vld [vmem:[%s5925_s4 + $0x3b0] sm:$0xff]  ;;  %v441_v52 = vld [vmem:[%s5925_s4 + $0x3c8] sm:$0xff]  ;;  %v443_v54 = vld [vmem:[%s5925_s4 + $0x3d8] sm:$0xff]  ;;  %v4019_v56 = vpack.c.bf16 %v436_v48, %v432_v47 }
  0x6d   : > { %4000 = vmatpush1.bf16.msra.mxu0 %v3999_v59  ;;  %v445_v53 = vld [vmem:[%s5925_s4 + $0x3e8] sm:$0xff]  ;;  %v447_v55 = vld [vmem:[%s5925_s4 + $0x3f8] sm:$0xff]  ;;  %v4819_v57 = vpack.c.bf16 %v438_v51, %v434_v49  ;;  %v440_v59 = vld [vmem:[%s5925_s4 + $0x3c0] sm:$0xff] }
  0x6e   : > { %4800 = vmatpush1.bf16.msra.mxu1 %v4799_v60  ;;  %4002 = vmatprep.subr.bf16.mxu0 %v4001_v61  ;;  %v4021_v58 = vpack.c.bf16 %v445_v53, %v441_v52  ;;  %v444_v60 = vld [vmem:[%s5925_s4 + $0x3e0] sm:$0xff]  ;;  %v442_v61 = vld [vmem:[%s5925_s4 + $0x3d0] sm:$0xff]  ;;  %v4821_v62 = vpack.c.bf16 %v447_v55, %v443_v54  ;;  %v449_v0 = vld [vmem:[%s5925_s4 + $0x408] sm:$0xff] }
  0x6f   : > { %4802 = vmatprep.subr.bf16.mxu1 %v4801_v1  ;;  %v446_v63 = vld [vmem:[%s5925_s4 + $0x3f0] sm:$0xff]  ;;  %v453_v1 = vld [vmem:[%s5925_s4 + $0x428] sm:$0xff]  ;;  %v451_v2 = vld [vmem:[%s5925_s4 + $0x418] sm:$0xff]  ;;  %v4023_v4 = vpack.c.bf16 %v444_v60, %v440_v59 }
  0x70   : > { %v455_v3 = vld [vmem:[%s5925_s4 + $0x438] sm:$0xff]  ;;  %v4823_v5 = vpack.c.bf16 %v446_v63, %v442_v61  ;;  %v4025_v6 = vpack.c.bf16 %v453_v1, %v449_v0  ;;  %v452_v8 = vld [vmem:[%s5925_s4 + $0x420] sm:$0xff]  ;;  %v454_v11 = vld [vmem:[%s5925_s4 + $0x430] sm:$0xff] }
  0x71   : > { %4004 = vmatpush1.bf16.msra.mxu0 %v4003_v7  ;;  %v448_v7 = vld [vmem:[%s5925_s4 + $0x400] sm:$0xff]  ;;  %v457_v12 = vld [vmem:[%s5925_s4 + $0x448] sm:$0xff]  ;;  %v463_v15 = vld [vmem:[%s5925_s4 + $0x478] sm:$0xff] }
  0x72   : > { %4804 = vmatpush1.bf16.msra.mxu1 %v4803_v9  ;;  %4006 = vmatprep.subr.bf16.mxu0 %v4005_v10  ;;  %v450_v9 = vld [vmem:[%s5925_s4 + $0x410] sm:$0xff]  ;;  %v4825_v10 = vpack.c.bf16 %v455_v3, %v451_v2  ;;  %v461_v13 = vld [vmem:[%s5925_s4 + $0x468] sm:$0xff]  ;;  %v295_v16 = vld [vmem:[%s5948_s20] sm:$0xff]  ;;  %v4027_v17 = vpack.c.bf16 %v452_v8, %v448_v7 }
  0x73   : > { %4806 = vmatprep.subr.bf16.mxu1 %v4805_v14  ;;  %v459_v14 = vld [vmem:[%s5925_s4 + $0x458] sm:$0xff]  ;;  %v4827_v18 = vpack.c.bf16 %v454_v11, %v450_v9  ;;  %v4029_v19 = vpack.c.bf16 %v461_v13, %v457_v12  ;;  %v462_v24 = vld [vmem:[%s5925_s4 + $0x470] sm:$0xff]  ;;  %v465_v25 = vld [vmem:[%s5925_s4 + $0x488] sm:$0xff] }
  0x74   : > { %v4829_v23 = vpack.c.bf16 %v463_v15, %v459_v14  ;;  %v467_v27 = vld [vmem:[%s5925_s4 + $0x498] sm:$0xff]  ;;  %v470_v36 = vld [vmem:[%s5925_s4 + $0x4b0] sm:$0xff]  ;;  %v473_v37 = vld [vmem:[%s5925_s4 + $0x4c8] sm:$0xff] }
  0x75   : > { %4008 = vmatpush1.bf16.msra.mxu0 %v4007_v20  ;;  %v456_v20 = vld [vmem:[%s5925_s4 + $0x440] sm:$0xff]  ;;  %v471_v28 = vld [vmem:[%s5925_s4 + $0x4b8] sm:$0xff]  ;;  %v478_v48 = vld [vmem:[%s5925_s4 + $0x4f0] sm:$0xff] }
  0x76   : > { %4808 = vmatpush1.bf16.msra.mxu1 %v4807_v21  ;;  %4010 = vmatprep.subr.bf16.mxu0 %v4009_v22  ;;  %v460_v21 = vld [vmem:[%s5925_s4 + $0x460] sm:$0xff]  ;;  %v458_v22 = vld [vmem:[%s5925_s4 + $0x450] sm:$0xff]  ;;  %v4833_v35 = vpack.c.bf16 %v471_v28, %v467_v27  ;;  %v475_v39 = vld [vmem:[%s5925_s4 + $0x4d8] sm:$0xff] }
  0x77   : > { %4810 = vmatprep.subr.bf16.mxu1 %v4809_v26  ;;  %v469_v26 = vld [vmem:[%s5925_s4 + $0x4a8] sm:$0xff]  ;;  %v4031_v29 = vpack.c.bf16 %v460_v21, %v456_v20  ;;  %v4831_v30 = vpack.c.bf16 %v462_v24, %v458_v22  ;;  %v479_v40 = vld [vmem:[%s5925_s4 + $0x4f8] sm:$0xff]  ;;  %v486_v60 = vld [vmem:[%s5925_s4 + $0x530] sm:$0xff] }
  0x78   : > { %v4033_v31 = vpack.c.bf16 %v469_v26, %v465_v25  ;;  %v4837_v47 = vpack.c.bf16 %v479_v40, %v475_v39  ;;  %v481_v49 = vld [vmem:[%s5925_s4 + $0x508] sm:$0xff]  ;;  %v483_v51 = vld [vmem:[%s5925_s4 + $0x518] sm:$0xff]  ;;  %v494_v8 = vld [vmem:[%s5925_s4 + $0x570] sm:$0xff] }
  0x79   : > { %4012 = vmatpush1.bf16.msra.mxu0 %v4011_v32  ;;  %v464_v32 = vld [vmem:[%s5925_s4 + $0x480] sm:$0xff]  ;;  %v487_v52 = vld [vmem:[%s5925_s4 + $0x538] sm:$0xff]  ;;  %v489_v61 = vld [vmem:[%s5925_s4 + $0x548] sm:$0xff] }
  0x7a   : > { %4812 = vmatpush1.bf16.msra.mxu1 %v4811_v33  ;;  %4014 = vmatprep.subr.bf16.mxu0 %v4013_v34  ;;  %v468_v33 = vld [vmem:[%s5925_s4 + $0x4a0] sm:$0xff]  ;;  %v466_v34 = vld [vmem:[%s5925_s4 + $0x490] sm:$0xff]  ;;  %v4841_v59 = vpack.c.bf16 %v487_v52, %v483_v51  ;;  %v491_v63 = vld [vmem:[%s5925_s4 + $0x558] sm:$0xff] }
  0x7b   : > { %4814 = vmatprep.subr.bf16.mxu1 %v4813_v38  ;;  %v477_v38 = vld [vmem:[%s5925_s4 + $0x4e8] sm:$0xff]  ;;  %v4035_v41 = vpack.c.bf16 %v468_v33, %v464_v32  ;;  %v4835_v42 = vpack.c.bf16 %v470_v36, %v466_v34  ;;  %v495_v0 = vld [vmem:[%s5925_s4 + $0x578] sm:$0xff]  ;;  %v496_v14 = vld [vmem:[%s5925_s4 + $0x580] sm:$0xff] }
  0x7c   : > { %v4037_v43 = vpack.c.bf16 %v477_v38, %v473_v37  ;;  %v4845_v7 = vpack.c.bf16 %v495_v0, %v491_v63  ;;  %v497_v9 = vld [vmem:[%s5925_s4 + $0x588] sm:$0xff]  ;;  %v499_v11 = vld [vmem:[%s5925_s4 + $0x598] sm:$0xff]  ;;  %v510_v33 = vld [vmem:[%s5925_s4 + $0x5f0] sm:$0xff] }
  0x7d   : > { %4016 = vmatpush1.bf16.msra.mxu0 %v4015_v44  ;;  %v472_v44 = vld [vmem:[%s5925_s4 + $0x4c0] sm:$0xff]  ;;  %v503_v12 = vld [vmem:[%s5925_s4 + $0x5b8] sm:$0xff]  ;;  %v505_v21 = vld [vmem:[%s5925_s4 + $0x5c8] sm:$0xff] }
  0x7e   : > { %4816 = vmatpush1.bf16.msra.mxu1 %v4815_v45  ;;  %4018 = vmatprep.subr.bf16.mxu0 %v4017_v46  ;;  %v476_v45 = vld [vmem:[%s5925_s4 + $0x4e0] sm:$0xff]  ;;  %v474_v46 = vld [vmem:[%s5925_s4 + $0x4d0] sm:$0xff]  ;;  %v4849_v20 = vpack.c.bf16 %v503_v12, %v499_v11  ;;  %v509_v22 = vld [vmem:[%s5925_s4 + $0x5e8] sm:$0xff] }
  0x7f   : > { %4818 = vmatprep.subr.bf16.mxu1 %v4817_v50  ;;  %v485_v50 = vld [vmem:[%s5925_s4 + $0x528] sm:$0xff]  ;;  %v4039_v53 = vpack.c.bf16 %v476_v45, %v472_v44  ;;  %v4839_v54 = vpack.c.bf16 %v478_v48, %v474_v46  ;;  %v507_v24 = vld [vmem:[%s5925_s4 + $0x5d8] sm:$0xff]  ;;  %v4053_v28 = vpack.c.bf16 %v509_v22, %v505_v21  ;;  %v518_v45 = vld [vmem:[%s5925_s4 + $0x630] sm:$0xff] }
  0x80   : > { %v4041_v55 = vpack.c.bf16 %v485_v50, %v481_v49  ;;  %v511_v25 = vld [vmem:[%s5925_s4 + $0x5f8] sm:$0xff]  ;;  %v513_v34 = vld [vmem:[%s5925_s4 + $0x608] sm:$0xff] }
  0x81   : > { %4020 = vmatpush1.bf16.msra.mxu0 %v4019_v56  ;;  %v480_v56 = vld [vmem:[%s5925_s4 + $0x500] sm:$0xff]  ;;  %v4853_v32 = vpack.c.bf16 %v511_v25, %v507_v24  ;;  %v515_v36 = vld [vmem:[%s5925_s4 + $0x618] sm:$0xff]  ;;  %v521_v46 = vld [vmem:[%s5925_s4 + $0x648] sm:$0xff] }
  0x82   : > { %4820 = vmatpush1.bf16.msra.mxu1 %v4819_v57  ;;  %4022 = vmatprep.subr.bf16.mxu0 %v4021_v58  ;;  %v484_v57 = vld [vmem:[%s5925_s4 + $0x520] sm:$0xff]  ;;  %v482_v58 = vld [vmem:[%s5925_s4 + $0x510] sm:$0xff]  ;;  %v519_v37 = vld [vmem:[%s5925_s4 + $0x638] sm:$0xff] }
  0x83   : > { %4822 = vmatprep.subr.bf16.mxu1 %v4821_v62  ;;  %v493_v62 = vld [vmem:[%s5925_s4 + $0x568] sm:$0xff]  ;;  %v4043_v1 = vpack.c.bf16 %v484_v57, %v480_v56  ;;  %v4843_v2 = vpack.c.bf16 %v486_v60, %v482_v58  ;;  %v4857_v44 = vpack.c.bf16 %v519_v37, %v515_v36  ;;  %v523_v48 = vld [vmem:[%s5925_s4 + $0x658] sm:$0xff]  ;;  %v526_v57 = vld [vmem:[%s5925_s4 + $0x670] sm:$0xff] }
  0x84   : > { %v4045_v3 = vpack.c.bf16 %v493_v62, %v489_v61  ;;  %v527_v49 = vld [vmem:[%s5925_s4 + $0x678] sm:$0xff]  ;;  %v529_v58 = vld [vmem:[%s5925_s4 + $0x688] sm:$0xff]  ;;  %v544_v25 = vld [vmem:[%s5925_s4 + $0x700] sm:$0xff] }
  0x85   : > { %4024 = vmatpush1.bf16.msra.mxu0 %v4023_v4  ;;  %v488_v4 = vld [vmem:[%s5925_s4 + $0x540] sm:$0xff]  ;;  %v4861_v56 = vpack.c.bf16 %v527_v49, %v523_v48  ;;  %v531_v60 = vld [vmem:[%s5925_s4 + $0x698] sm:$0xff] }
  0x86   : > { %4824 = vmatpush1.bf16.msra.mxu1 %v4823_v5  ;;  %4026 = vmatprep.subr.bf16.mxu0 %v4025_v6  ;;  %v492_v5 = vld [vmem:[%s5925_s4 + $0x560] sm:$0xff]  ;;  %v490_v6 = vld [vmem:[%s5925_s4 + $0x550] sm:$0xff]  ;;  %v535_v61 = vld [vmem:[%s5925_s4 + $0x6b8] sm:$0xff] }
  0x87   : > { %4826 = vmatprep.subr.bf16.mxu1 %v4825_v10  ;;  %v501_v10 = vld [vmem:[%s5925_s4 + $0x5a8] sm:$0xff]  ;;  %v4047_v13 = vpack.c.bf16 %v492_v5, %v488_v4  ;;  %v4847_v15 = vpack.c.bf16 %v494_v8, %v490_v6  ;;  %v4865_v4 = vpack.c.bf16 %v535_v61, %v531_v60  ;;  %v534_v5 = vld [vmem:[%s5925_s4 + $0x6b0] sm:$0xff]  ;;  %v539_v8 = vld [vmem:[%s5925_s4 + $0x6d8] sm:$0xff] }
  0x88   : > { %1985 = vmatmul.mubr.f32.vlgmr.msra.gmra.mrb[0].mxu0 %v295_v16  ;;  %v537_v6 = vld [vmem:[%s5925_s4 + $0x6c8] sm:$0xff]  ;;  %v551_v21 = vld [vmem:[%s5925_s4 + $0x738] sm:$0xff]  ;;  %v552_v37 = vld [vmem:[%s5925_s4 + $0x740] sm:$0xff] }
  0x89   : > { %4028 = vmatpush1.bf16.msra.mxu0 %v4027_v17  ;;  %2908 = vmatmul.mubr.f32.vlgmr.msra.gmra.mrb[0].mxu1 %v295_v16  ;;  %v4049_v16 = vpack.c.bf16 %v501_v10, %v497_v9  ;;  %v500_v17 = vld [vmem:[%s5925_s4 + $0x5a0] sm:$0xff]  ;;  %v543_v9 = vld [vmem:[%s5925_s4 + $0x6f8] sm:$0xff] }
  0x8a   : > { %4828 = vmatpush1.bf16.msra.mxu1 %v4827_v18  ;;  %4030 = vmatprep.subr.bf16.mxu0 %v4029_v19  ;;  %v498_v18 = vld [vmem:[%s5925_s4 + $0x590] sm:$0xff]  ;;  %v4051_v26 = vpack.c.bf16 %v500_v17, %v496_v14  ;;  %v540_v14 = vld [vmem:[%s5925_s4 + $0x6e0] sm:$0xff] }
  0x8b   : > { %4830 = vmatprep.subr.bf16.mxu1 %v4829_v23  ;;  %v502_v19 = vld [vmem:[%s5925_s4 + $0x5b0] sm:$0xff]  ;;  %v298_v23 = vld [vmem:[%s5948_s20 + $0x18] sm:$0xff]  ;;  %v560_v49 = vld [vmem:[%s5925_s4 + $0x780] sm:$0xff] }
  0x8c   : > { %2055 = vmatprep.mubr.f32.mxu0 %v298_v23  ;;  %2978 = vmatprep.mubr.f32.mxu1 %v298_v23  ;;  %v4851_v27 = vpack.c.bf16 %v502_v19, %v498_v18  ;;  %v542_v17 = vld [vmem:[%s5925_s4 + $0x6f0] sm:$0xff]  ;;  %v545_v18 = vld [vmem:[%s5925_s4 + $0x708] sm:$0xff]  ;;  %v568_v61 = vld [vmem:[%s5925_s4 + $0x7c0] sm:$0xff] }
  0x8d   : > { %4032 = vmatpush1.bf16.msra.mxu0 %v4031_v29  ;;  %v504_v29 = vld [vmem:[%s5925_s4 + $0x5c0] sm:$0xff]  ;;  %v549_v19 = vld [vmem:[%s5925_s4 + $0x728] sm:$0xff] }
  0x8e   : > { %4832 = vmatpush1.bf16.msra.mxu1 %v4831_v30  ;;  %4034 = vmatprep.subr.bf16.mxu0 %v4033_v31  ;;  %v508_v30 = vld [vmem:[%s5925_s4 + $0x5e0] sm:$0xff]  ;;  %v506_v31 = vld [vmem:[%s5925_s4 + $0x5d0] sm:$0xff]  ;;  %v4073_v24 = vpack.c.bf16 %v549_v19, %v545_v18 }
  0x8f   : > { %4834 = vmatprep.subr.bf16.mxu1 %v4833_v35  ;;  %v517_v35 = vld [vmem:[%s5925_s4 + $0x628] sm:$0xff]  ;;  %v4055_v38 = vpack.c.bf16 %v508_v30, %v504_v29  ;;  %v4855_v39 = vpack.c.bf16 %v510_v33, %v506_v31  ;;  %v550_v29 = vld [vmem:[%s5925_s4 + $0x730] sm:$0xff]  ;;  %v559_v33 = vld [vmem:[%s5925_s4 + $0x778] sm:$0xff] }
  0x90   : > { %v4057_v40 = vpack.c.bf16 %v517_v35, %v513_v34  ;;  %v553_v30 = vld [vmem:[%s5925_s4 + $0x748] sm:$0xff]  ;;  %v297_v18 = vld [vmem:[%s5948_s20 + $0x10] sm:$0xff] }
  0x91   : > { %4036 = vmatpush1.bf16.msra.mxu0 %v4035_v41  ;;  %v512_v41 = vld [vmem:[%s5925_s4 + $0x600] sm:$0xff]  ;;  %v557_v31 = vld [vmem:[%s5925_s4 + $0x768] sm:$0xff] }
  0x92   : > { %4836 = vmatpush1.bf16.msra.mxu1 %v4835_v42  ;;  %4038 = vmatprep.subr.bf16.mxu0 %v4037_v43  ;;  %v516_v42 = vld [vmem:[%s5925_s4 + $0x620] sm:$0xff]  ;;  %v514_v43 = vld [vmem:[%s5925_s4 + $0x610] sm:$0xff]  ;;  %v4077_v36 = vpack.c.bf16 %v557_v31, %v553_v30  ;;  %v599_v30 = vld [vmem:[%s5925_s4 + $0x8b8] sm:$0xff] }
  0x93   : > { %4838 = vmatprep.subr.bf16.mxu1 %v4837_v47  ;;  %v525_v47 = vld [vmem:[%s5925_s4 + $0x668] sm:$0xff]  ;;  %v4059_v50 = vpack.c.bf16 %v516_v42, %v512_v41  ;;  %v4859_v51 = vpack.c.bf16 %v518_v45, %v514_v43  ;;  %v558_v41 = vld [vmem:[%s5925_s4 + $0x770] sm:$0xff]  ;;  %v567_v45 = vld [vmem:[%s5925_s4 + $0x7b8] sm:$0xff] }
  0x94   : > { %v4061_v52 = vpack.c.bf16 %v525_v47, %v521_v46  ;;  %v561_v42 = vld [vmem:[%s5925_s4 + $0x788] sm:$0xff] }
  0x95   : > { %4040 = vmatpush1.bf16.msra.mxu0 %v4039_v53  ;;  %v520_v53 = vld [vmem:[%s5925_s4 + $0x640] sm:$0xff]  ;;  %v565_v43 = vld [vmem:[%s5925_s4 + $0x7a8] sm:$0xff] }
  0x96   : > { %4840 = vmatpush1.bf16.msra.mxu1 %v4839_v54  ;;  %4042 = vmatprep.subr.bf16.mxu0 %v4041_v55  ;;  %v524_v54 = vld [vmem:[%s5925_s4 + $0x660] sm:$0xff]  ;;  %v522_v55 = vld [vmem:[%s5925_s4 + $0x650] sm:$0xff]  ;;  %v4081_v48 = vpack.c.bf16 %v565_v43, %v561_v42  ;;  %v300_v31 = vld [vmem:[%s5948_s20 + $0x28] sm:$0xff] }
  0x97   : > { %4842 = vmatprep.subr.bf16.mxu1 %v4841_v59  ;;  %v533_v59 = vld [vmem:[%s5925_s4 + $0x6a8] sm:$0xff]  ;;  %v4063_v62 = vpack.c.bf16 %v524_v54, %v520_v53  ;;  %v4863_v63 = vpack.c.bf16 %v526_v57, %v522_v55  ;;  %v566_v53 = vld [vmem:[%s5925_s4 + $0x7b0] sm:$0xff]  ;;  %v575_v57 = vld [vmem:[%s5925_s4 + $0x7f8] sm:$0xff] }
  0x98   : > { %v4065_v0 = vpack.c.bf16 %v533_v59, %v529_v58  ;;  %v569_v54 = vld [vmem:[%s5925_s4 + $0x7c8] sm:$0xff]  ;;  %v603_v42 = vld [vmem:[%s5925_s4 + $0x8d8] sm:$0xff] }
  0x99   : > { %4044 = vmatpush1.bf16.msra.mxu0 %v4043_v1  ;;  %v528_v1 = vld [vmem:[%s5925_s4 + $0x680] sm:$0xff]  ;;  %v573_v55 = vld [vmem:[%s5925_s4 + $0x7e8] sm:$0xff]  ;;  %v607_v43 = vld [vmem:[%s5925_s4 + $0x8f8] sm:$0xff] }
  0x9a   : > { %4844 = vmatpush1.bf16.msra.mxu1 %v4843_v2  ;;  %4046 = vmatprep.subr.bf16.mxu0 %v4045_v3  ;;  %v532_v2 = vld [vmem:[%s5925_s4 + $0x6a0] sm:$0xff]  ;;  %v530_v3 = vld [vmem:[%s5925_s4 + $0x690] sm:$0xff]  ;;  %v4085_v60 = vpack.c.bf16 %v573_v55, %v569_v54  ;;  %v611_v54 = vld [vmem:[%s5925_s4 + $0x918] sm:$0xff] }
  0x9b   : > { %4846 = vmatprep.subr.bf16.mxu1 %v4845_v7  ;;  %v541_v7 = vld [vmem:[%s5925_s4 + $0x6e8] sm:$0xff]  ;;  %v4067_v10 = vpack.c.bf16 %v532_v2, %v528_v1  ;;  %v4867_v11 = vpack.c.bf16 %v534_v5, %v530_v3  ;;  %v574_v1 = vld [vmem:[%s5925_s4 + $0x7f0] sm:$0xff]  ;;  %v583_v5 = vld [vmem:[%s5925_s4 + $0x838] sm:$0xff] }
  0x9c   : > { %v4069_v12 = vpack.c.bf16 %v541_v7, %v537_v6  ;;  %v577_v2 = vld [vmem:[%s5925_s4 + $0x808] sm:$0xff]  ;;  %v615_v55 = vld [vmem:[%s5925_s4 + $0x938] sm:$0xff] }
  0x9d   : > { %4048 = vmatpush1.bf16.msra.mxu0 %v4047_v13  ;;  %v536_v13 = vld [vmem:[%s5925_s4 + $0x6c0] sm:$0xff]  ;;  %v581_v3 = vld [vmem:[%s5925_s4 + $0x828] sm:$0xff] }
  0x9e   : > { %4848 = vmatpush1.bf16.msra.mxu1 %v4847_v15  ;;  %4050 = vmatprep.subr.bf16.mxu0 %v4049_v16  ;;  %v538_v15 = vld [vmem:[%s5925_s4 + $0x6d0] sm:$0xff]  ;;  %v4869_v16 = vpack.c.bf16 %v543_v9, %v539_v8  ;;  %v4071_v22 = vpack.c.bf16 %v540_v14, %v536_v13  ;;  %v4089_v8 = vpack.c.bf16 %v581_v3, %v577_v2  ;;  %v576_v9 = vld [vmem:[%s5925_s4 + $0x800] sm:$0xff]  ;;  %v585_v14 = vld [vmem:[%s5925_s4 + $0x848] sm:$0xff] }
  0x9f   : > { %4850 = vmatprep.subr.bf16.mxu1 %v4849_v20  ;;  %v547_v20 = vld [vmem:[%s5925_s4 + $0x718] sm:$0xff]  ;;  %v4871_v23 = vpack.c.bf16 %v542_v17, %v538_v15  ;;  %v582_v13 = vld [vmem:[%s5925_s4 + $0x830] sm:$0xff]  ;;  %v589_v15 = vld [vmem:[%s5925_s4 + $0x868] sm:$0xff] }
  0xa0   : > { %v591_v17 = vld [vmem:[%s5925_s4 + $0x878] sm:$0xff] }
  0xa1   : > { %4052 = vmatpush1.bf16.msra.mxu0 %v4051_v26  ;;  %v548_v26 = vld [vmem:[%s5925_s4 + $0x720] sm:$0xff]  ;;  %v619_v2 = vld [vmem:[%s5925_s4 + $0x958] sm:$0xff] }
  0xa2   : > { %4852 = vmatpush1.bf16.msra.mxu1 %v4851_v27  ;;  %4054 = vmatprep.subr.bf16.mxu0 %v4053_v28  ;;  %v546_v27 = vld [vmem:[%s5925_s4 + $0x710] sm:$0xff]  ;;  %v4873_v28 = vpack.c.bf16 %v551_v21, %v547_v20  ;;  %v4075_v34 = vpack.c.bf16 %v548_v26, %v544_v25  ;;  %v4093_v21 = vpack.c.bf16 %v589_v15, %v585_v14  ;;  %v623_v3 = vld [vmem:[%s5925_s4 + $0x978] sm:$0xff] }
  0xa3   : > { %4854 = vmatprep.subr.bf16.mxu1 %v4853_v32  ;;  %v555_v32 = vld [vmem:[%s5925_s4 + $0x758] sm:$0xff]  ;;  %v4875_v35 = vpack.c.bf16 %v550_v29, %v546_v27  ;;  %v590_v26 = vld [vmem:[%s5925_s4 + $0x870] sm:$0xff]  ;;  %v593_v27 = vld [vmem:[%s5925_s4 + $0x888] sm:$0xff] }
  0xa4   : > { %v595_v29 = vld [vmem:[%s5925_s4 + $0x898] sm:$0xff] }
  0xa5   : > { %4056 = vmatpush1.bf16.msra.mxu0 %v4055_v38  ;;  %v556_v38 = vld [vmem:[%s5925_s4 + $0x760] sm:$0xff]  ;;  %v627_v14 = vld [vmem:[%s5925_s4 + $0x998] sm:$0xff] }
  0xa6   : > { %4856 = vmatpush1.bf16.msra.mxu1 %v4855_v39  ;;  %4058 = vmatprep.subr.bf16.mxu0 %v4057_v40  ;;  %v554_v39 = vld [vmem:[%s5925_s4 + $0x750] sm:$0xff]  ;;  %v4877_v40 = vpack.c.bf16 %v559_v33, %v555_v32  ;;  %v4079_v46 = vpack.c.bf16 %v556_v38, %v552_v37  ;;  %v4897_v38 = vpack.c.bf16 %v599_v30, %v595_v29  ;;  %v631_v15 = vld [vmem:[%s5925_s4 + $0x9b8] sm:$0xff] }
  0xa7   : > { %4858 = vmatprep.subr.bf16.mxu1 %v4857_v44  ;;  %v563_v44 = vld [vmem:[%s5925_s4 + $0x798] sm:$0xff]  ;;  %v4879_v47 = vpack.c.bf16 %v558_v41, %v554_v39  ;;  %v594_v37 = vld [vmem:[%s5925_s4 + $0x890] sm:$0xff]  ;;  %v605_v41 = vld [vmem:[%s5925_s4 + $0x8e8] sm:$0xff] }
  0xa8   : > { %v598_v39 = vld [vmem:[%s5925_s4 + $0x8b0] sm:$0xff] }
  0xa9   : > { %4060 = vmatpush1.bf16.msra.mxu0 %v4059_v50  ;;  %v564_v50 = vld [vmem:[%s5925_s4 + $0x7a0] sm:$0xff] }
  0xaa   : > { %4860 = vmatpush1.bf16.msra.mxu1 %v4859_v51  ;;  %4062 = vmatprep.subr.bf16.mxu0 %v4061_v52  ;;  %v562_v51 = vld [vmem:[%s5925_s4 + $0x790] sm:$0xff]  ;;  %v4881_v52 = vpack.c.bf16 %v567_v45, %v563_v44  ;;  %v4083_v58 = vpack.c.bf16 %v564_v50, %v560_v49  ;;  %v4899_v45 = vpack.c.bf16 %v598_v39, %v594_v37  ;;  %v645_v37 = vld [vmem:[%s5925_s4 + $0xa28] sm:$0xff]  ;;  %v647_v39 = vld [vmem:[%s5925_s4 + $0xa38] sm:$0xff] }
  0xab   : > { %4862 = vmatprep.subr.bf16.mxu1 %v4861_v56  ;;  %v571_v56 = vld [vmem:[%s5925_s4 + $0x7d8] sm:$0xff]  ;;  %v4883_v59 = vpack.c.bf16 %v566_v53, %v562_v51  ;;  %v602_v49 = vld [vmem:[%s5925_s4 + $0x8d0] sm:$0xff]  ;;  %v4901_v50 = vpack.c.bf16 %v607_v43, %v603_v42  ;;  %v613_v53 = vld [vmem:[%s5925_s4 + $0x928] sm:$0xff] }
  0xac   : > { %v606_v51 = vld [vmem:[%s5925_s4 + $0x8f0] sm:$0xff]  ;;  %v640_v43 = vld [vmem:[%s5925_s4 + $0xa00] sm:$0xff] }
  0xad   : > { %4064 = vmatpush1.bf16.msra.mxu0 %v4063_v62  ;;  %v572_v62 = vld [vmem:[%s5925_s4 + $0x7e0] sm:$0xff] }
  0xae   : > { %4864 = vmatpush1.bf16.msra.mxu1 %v4863_v63  ;;  %4066 = vmatprep.subr.bf16.mxu0 %v4065_v0  ;;  %v570_v63 = vld [vmem:[%s5925_s4 + $0x7d0] sm:$0xff]  ;;  %v4885_v0 = vpack.c.bf16 %v575_v57, %v571_v56  ;;  %v4087_v6 = vpack.c.bf16 %v572_v62, %v568_v61  ;;  %v4903_v57 = vpack.c.bf16 %v606_v51, %v602_v49  ;;  %v653_v49 = vld [vmem:[%s5925_s4 + $0xa68] sm:$0xff]  ;;  %v655_v51 = vld [vmem:[%s5925_s4 + $0xa78] sm:$0xff] }
  0xaf   : > { %4866 = vmatprep.subr.bf16.mxu1 %v4865_v4  ;;  %v579_v4 = vld [vmem:[%s5925_s4 + $0x818] sm:$0xff]  ;;  %v4887_v7 = vpack.c.bf16 %v574_v1, %v570_v63  ;;  %v610_v61 = vld [vmem:[%s5925_s4 + $0x910] sm:$0xff]  ;;  %v4905_v62 = vpack.c.bf16 %v615_v55, %v611_v54  ;;  %v621_v1 = vld [vmem:[%s5925_s4 + $0x968] sm:$0xff] }
  0xb0   : > { %v614_v63 = vld [vmem:[%s5925_s4 + $0x930] sm:$0xff]  ;;  %v648_v55 = vld [vmem:[%s5925_s4 + $0xa40] sm:$0xff] }
  0xb1   : > { %4068 = vmatpush1.bf16.msra.mxu0 %v4067_v10  ;;  %v580_v10 = vld [vmem:[%s5925_s4 + $0x820] sm:$0xff] }
  0xb2   : > { %4868 = vmatpush1.bf16.msra.mxu1 %v4867_v11  ;;  %4070 = vmatprep.subr.bf16.mxu0 %v4069_v12  ;;  %v578_v11 = vld [vmem:[%s5925_s4 + $0x810] sm:$0xff]  ;;  %v4889_v12 = vpack.c.bf16 %v583_v5, %v579_v4  ;;  %v4091_v19 = vpack.c.bf16 %v580_v10, %v576_v9  ;;  %v4907_v5 = vpack.c.bf16 %v614_v63, %v610_v61  ;;  %v661_v61 = vld [vmem:[%s5925_s4 + $0xaa8] sm:$0xff]  ;;  %v663_v63 = vld [vmem:[%s5925_s4 + $0xab8] sm:$0xff] }
  0xb3   : > { %4870 = vmatprep.subr.bf16.mxu1 %v4869_v16  ;;  %v587_v16 = vld [vmem:[%s5925_s4 + $0x858] sm:$0xff]  ;;  %v4891_v20 = vpack.c.bf16 %v582_v13, %v578_v11  ;;  %v618_v9 = vld [vmem:[%s5925_s4 + $0x950] sm:$0xff]  ;;  %v4909_v10 = vpack.c.bf16 %v623_v3, %v619_v2  ;;  %v629_v13 = vld [vmem:[%s5925_s4 + $0x9a8] sm:$0xff] }
  0xb4   : > { %v4893_v25 = vpack.c.bf16 %v591_v17, %v587_v16  ;;  %v622_v11 = vld [vmem:[%s5925_s4 + $0x970] sm:$0xff]  ;;  %v656_v3 = vld [vmem:[%s5925_s4 + $0xa80] sm:$0xff] }
  0xb5   : > { %4072 = vmatpush1.bf16.msra.mxu0 %v4071_v22  ;;  %v584_v22 = vld [vmem:[%s5925_s4 + $0x840] sm:$0xff]  ;;  %v4911_v17 = vpack.c.bf16 %v622_v11, %v618_v9  ;;  %v669_v9 = vld [vmem:[%s5925_s4 + $0xae8] sm:$0xff]  ;;  %v671_v11 = vld [vmem:[%s5925_s4 + $0xaf8] sm:$0xff] }
  0xb6   : > { %4872 = vmatpush1.bf16.msra.mxu1 %v4871_v23  ;;  %4074 = vmatprep.subr.bf16.mxu0 %v4073_v24  ;;  %v588_v23 = vld [vmem:[%s5925_s4 + $0x860] sm:$0xff]  ;;  %v586_v24 = vld [vmem:[%s5925_s4 + $0x850] sm:$0xff] }
  0xb7   : > { %4874 = vmatprep.subr.bf16.mxu1 %v4873_v28  ;;  %v597_v28 = vld [vmem:[%s5925_s4 + $0x8a8] sm:$0xff]  ;;  %v4095_v32 = vpack.c.bf16 %v588_v23, %v584_v22  ;;  %v4895_v33 = vpack.c.bf16 %v590_v26, %v586_v24  ;;  %v4913_v22 = vpack.c.bf16 %v631_v15, %v627_v14  ;;  %v630_v23 = vld [vmem:[%s5925_s4 + $0x9b0] sm:$0xff]  ;;  %v635_v26 = vld [vmem:[%s5925_s4 + $0x9d8] sm:$0xff] }
  0xb8   : > { %v633_v24 = vld [vmem:[%s5925_s4 + $0x9c8] sm:$0xff]  ;;  %v664_v15 = vld [vmem:[%s5925_s4 + $0xac0] sm:$0xff] }
  0xb9   : > { %4076 = vmatpush1.bf16.msra.mxu0 %v4075_v34  ;;  %v4097_v34 = vpack.c.bf16 %v597_v28, %v593_v27  ;;  %v639_v27 = vld [vmem:[%s5925_s4 + $0x9f8] sm:$0xff] }
  0xba   : > { %4876 = vmatpush1.bf16.msra.mxu1 %v4875_v35  ;;  %4078 = vmatprep.subr.bf16.mxu0 %v4077_v36  ;;  %v592_v35 = vld [vmem:[%s5925_s4 + $0x880] sm:$0xff] }
  0xbb   : > { %4878 = vmatprep.subr.bf16.mxu1 %v4877_v40  ;;  %v596_v36 = vld [vmem:[%s5925_s4 + $0x8a0] sm:$0xff]  ;;  %v601_v40 = vld [vmem:[%s5925_s4 + $0x8c8] sm:$0xff] }
  0xbc   : > { %v4099_v44 = vpack.c.bf16 %v596_v36, %v592_v35  ;;  %v638_v35 = vld [vmem:[%s5925_s4 + $0x9f0] sm:$0xff]  ;;  %v641_v36 = vld [vmem:[%s5925_s4 + $0xa08] sm:$0xff] }
  0xbd   : > { %4080 = vmatpush1.bf16.msra.mxu0 %v4079_v46  ;;  %v4101_v46 = vpack.c.bf16 %v605_v41, %v601_v40  ;;  %v4121_v42 = vpack.c.bf16 %v645_v37, %v641_v36 }
  0xbe   : > { %4880 = vmatpush1.bf16.msra.mxu1 %v4879_v47  ;;  %4082 = vmatprep.subr.bf16.mxu0 %v4081_v48  ;;  %v600_v47 = vld [vmem:[%s5925_s4 + $0x8c0] sm:$0xff] }
  0xbf   : > { %4882 = vmatprep.subr.bf16.mxu1 %v4881_v52  ;;  %v604_v48 = vld [vmem:[%s5925_s4 + $0x8e0] sm:$0xff]  ;;  %v609_v52 = vld [vmem:[%s5925_s4 + $0x908] sm:$0xff] }
  0xc0   : > { %v4103_v56 = vpack.c.bf16 %v604_v48, %v600_v47  ;;  %v646_v47 = vld [vmem:[%s5925_s4 + $0xa30] sm:$0xff]  ;;  %v649_v48 = vld [vmem:[%s5925_s4 + $0xa48] sm:$0xff] }
  0xc1   : > { %4084 = vmatpush1.bf16.msra.mxu0 %v4083_v58  ;;  %v4105_v58 = vpack.c.bf16 %v613_v53, %v609_v52  ;;  %v4125_v54 = vpack.c.bf16 %v653_v49, %v649_v48 }
  0xc2   : > { %4884 = vmatpush1.bf16.msra.mxu1 %v4883_v59  ;;  %4086 = vmatprep.subr.bf16.mxu0 %v4085_v60  ;;  %v608_v59 = vld [vmem:[%s5925_s4 + $0x900] sm:$0xff] }
  0xc3   : > { %4886 = vmatprep.subr.bf16.mxu1 %v4885_v0  ;;  %v612_v60 = vld [vmem:[%s5925_s4 + $0x920] sm:$0xff]  ;;  %v617_v0 = vld [vmem:[%s5925_s4 + $0x948] sm:$0xff] }
  0xc4   : > { %v4107_v4 = vpack.c.bf16 %v612_v60, %v608_v59  ;;  %v654_v59 = vld [vmem:[%s5925_s4 + $0xa70] sm:$0xff]  ;;  %v657_v60 = vld [vmem:[%s5925_s4 + $0xa88] sm:$0xff] }
  0xc5   : > { %4088 = vmatpush1.bf16.msra.mxu0 %v4087_v6  ;;  %v4109_v6 = vpack.c.bf16 %v621_v1, %v617_v0  ;;  %v4129_v2 = vpack.c.bf16 %v661_v61, %v657_v60 }
  0xc6   : > { %4888 = vmatpush1.bf16.msra.mxu1 %v4887_v7  ;;  %4090 = vmatprep.subr.bf16.mxu0 %v4089_v8  ;;  %v616_v7 = vld [vmem:[%s5925_s4 + $0x940] sm:$0xff] }
  0xc7   : > { %4890 = vmatprep.subr.bf16.mxu1 %v4889_v12  ;;  %v620_v8 = vld [vmem:[%s5925_s4 + $0x960] sm:$0xff]  ;;  %v625_v12 = vld [vmem:[%s5925_s4 + $0x988] sm:$0xff] }
  0xc8   : > { %2056 = vmatmul.mubr.f32.vlgmr.msra.gmra.mrb[0].mxu0 %v297_v18  ;;  %v4111_v16 = vpack.c.bf16 %v620_v8, %v616_v7  ;;  %v662_v7 = vld [vmem:[%s5925_s4 + $0xab0] sm:$0xff]  ;;  %v665_v8 = vld [vmem:[%s5925_s4 + $0xac8] sm:$0xff] }
  0xc9   : > { %4092 = vmatpush1.bf16.msra.mxu0 %v4091_v19  ;;  %2979 = vmatmul.mubr.f32.vlgmr.msra.gmra.mrb[0].mxu1 %v297_v18  ;;  %v4113_v18 = vpack.c.bf16 %v629_v13, %v625_v12  ;;  %v624_v19 = vld [vmem:[%s5925_s4 + $0x980] sm:$0xff]  ;;  %v4133_v14 = vpack.c.bf16 %v669_v9, %v665_v8 }
  0xca   : > { %4892 = vmatpush1.bf16.msra.mxu1 %v4891_v20  ;;  %4094 = vmatprep.subr.bf16.mxu0 %v4093_v21  ;;  %v628_v20 = vld [vmem:[%s5925_s4 + $0x9a0] sm:$0xff]  ;;  %v626_v21 = vld [vmem:[%s5925_s4 + $0x990] sm:$0xff] }
  0xcb   : > { %4894 = vmatprep.subr.bf16.mxu1 %v4893_v25  ;;  %2126 = vmatprep.mubr.f32.mxu0 %v300_v31  ;;  %v637_v25 = vld [vmem:[%s5925_s4 + $0x9e8] sm:$0xff]  ;;  %v4115_v28 = vpack.c.bf16 %v628_v20, %v624_v19  ;;  %v4915_v29 = vpack.c.bf16 %v630_v23, %v626_v21  ;;  %v670_v19 = vld [vmem:[%s5925_s4 + $0xaf0] sm:$0xff]  ;;  %v679_v23 = vld [vmem:[%s5925_s4 + $0xb38] sm:$0xff] }
  0xcc   : > { %3049 = vmatprep.mubr.f32.mxu1 %v300_v31  ;;  %v4117_v30 = vpack.c.bf16 %v637_v25, %v633_v24  ;;  %v632_v31 = vld [vmem:[%s5925_s4 + $0x9c0] sm:$0xff]  ;;  %v673_v20 = vld [vmem:[%s5925_s4 + $0xb08] sm:$0xff] }
  0xcd   : > { %4096 = vmatpush1.bf16.msra.mxu0 %v4095_v32  ;;  %v636_v32 = vld [vmem:[%s5925_s4 + $0x9e0] sm:$0xff]  ;;  %v677_v21 = vld [vmem:[%s5925_s4 + $0xb28] sm:$0xff] }
  0xce   : > { %4896 = vmatpush1.bf16.msra.mxu1 %v4895_v33  ;;  %4098 = vmatprep.subr.bf16.mxu0 %v4097_v34  ;;  %v634_v33 = vld [vmem:[%s5925_s4 + $0x9d0] sm:$0xff]  ;;  %v4917_v34 = vpack.c.bf16 %v639_v27, %v635_v26  ;;  %v4119_v40 = vpack.c.bf16 %v636_v32, %v632_v31  ;;  %v4137_v26 = vpack.c.bf16 %v677_v21, %v673_v20  ;;  %v672_v27 = vld [vmem:[%s5925_s4 + $0xb00] sm:$0xff]  ;;  %v681_v32 = vld [vmem:[%s5925_s4 + $0xb48] sm:$0xff] }
  0xcf   : > { %4898 = vmatprep.subr.bf16.mxu1 %v4897_v38  ;;  %v643_v38 = vld [vmem:[%s5925_s4 + $0xa18] sm:$0xff]  ;;  %v4919_v41 = vpack.c.bf16 %v638_v35, %v634_v33  ;;  %v678_v31 = vld [vmem:[%s5925_s4 + $0xb30] sm:$0xff]  ;;  %v685_v33 = vld [vmem:[%s5925_s4 + $0xb68] sm:$0xff] }
  0xd0   : > { %v687_v35 = vld [vmem:[%s5925_s4 + $0xb78] sm:$0xff]  ;;  %v299_v20 = vld [vmem:[%s5948_s20 + $0x20] sm:$0xff] }
  0xd1   : > { %4100 = vmatpush1.bf16.msra.mxu0 %v4099_v44  ;;  %v644_v44 = vld [vmem:[%s5925_s4 + $0xa20] sm:$0xff] }
  0xd2   : > { %4900 = vmatpush1.bf16.msra.mxu1 %v4899_v45  ;;  %4102 = vmatprep.subr.bf16.mxu0 %v4101_v46  ;;  %v642_v45 = vld [vmem:[%s5925_s4 + $0xa10] sm:$0xff]  ;;  %v4921_v46 = vpack.c.bf16 %v647_v39, %v643_v38  ;;  %v4123_v52 = vpack.c.bf16 %v644_v44, %v640_v43  ;;  %v4141_v38 = vpack.c.bf16 %v685_v33, %v681_v32  ;;  %v680_v39 = vld [vmem:[%s5925_s4 + $0xb40] sm:$0xff]  ;;  %v689_v44 = vld [vmem:[%s5925_s4 + $0xb88] sm:$0xff] }
  0xd3   : > { %4902 = vmatprep.subr.bf16.mxu1 %v4901_v50  ;;  %v651_v50 = vld [vmem:[%s5925_s4 + $0xa58] sm:$0xff]  ;;  %v4923_v53 = vpack.c.bf16 %v646_v47, %v642_v45  ;;  %v686_v43 = vld [vmem:[%s5925_s4 + $0xb70] sm:$0xff]  ;;  %v693_v45 = vld [vmem:[%s5925_s4 + $0xba8] sm:$0xff] }
  0xd4   : > { %v695_v47 = vld [vmem:[%s5925_s4 + $0xbb8] sm:$0xff] }
  0xd5   : > { %4104 = vmatpush1.bf16.msra.mxu0 %v4103_v56  ;;  %v652_v56 = vld [vmem:[%s5925_s4 + $0xa60] sm:$0xff]  ;;  %v727_v32 = vld [vmem:[%s5925_s4 + $0xcb8] sm:$0xff] }
  0xd6   : > { %4904 = vmatpush1.bf16.msra.mxu1 %v4903_v57  ;;  %4106 = vmatprep.subr.bf16.mxu0 %v4105_v58  ;;  %v650_v57 = vld [vmem:[%s5925_s4 + $0xa50] sm:$0xff]  ;;  %v4925_v58 = vpack.c.bf16 %v655_v51, %v651_v50  ;;  %v4127_v0 = vpack.c.bf16 %v652_v56, %v648_v55  ;;  %v4145_v50 = vpack.c.bf16 %v693_v45, %v689_v44  ;;  %v688_v51 = vld [vmem:[%s5925_s4 + $0xb80] sm:$0xff]  ;;  %v697_v56 = vld [vmem:[%s5925_s4 + $0xbc8] sm:$0xff] }
  0xd7   : > { %4906 = vmatprep.subr.bf16.mxu1 %v4905_v62  ;;  %v659_v62 = vld [vmem:[%s5925_s4 + $0xa98] sm:$0xff]  ;;  %v4927_v1 = vpack.c.bf16 %v654_v59, %v650_v57  ;;  %v694_v55 = vld [vmem:[%s5925_s4 + $0xbb0] sm:$0xff]  ;;  %v701_v57 = vld [vmem:[%s5925_s4 + $0xbe8] sm:$0xff] }
  0xd8   : > { %v703_v59 = vld [vmem:[%s5925_s4 + $0xbf8] sm:$0xff] }
  0xd9   : > { %4108 = vmatpush1.bf16.msra.mxu0 %v4107_v4  ;;  %v660_v4 = vld [vmem:[%s5925_s4 + $0xaa0] sm:$0xff]  ;;  %v302_v33 = vld [vmem:[%s5948_s20 + $0x38] sm:$0xff] }
  0xda   : > { %4908 = vmatpush1.bf16.msra.mxu1 %v4907_v5  ;;  %4110 = vmatprep.subr.bf16.mxu0 %v4109_v6  ;;  %v658_v5 = vld [vmem:[%s5925_s4 + $0xa90] sm:$0xff]  ;;  %v4929_v6 = vpack.c.bf16 %v663_v63, %v659_v62  ;;  %v4131_v12 = vpack.c.bf16 %v660_v4, %v656_v3  ;;  %v4149_v62 = vpack.c.bf16 %v701_v57, %v697_v56  ;;  %v696_v63 = vld [vmem:[%s5925_s4 + $0xbc0] sm:$0xff]  ;;  %v705_v4 = vld [vmem:[%s5925_s4 + $0xc08] sm:$0xff] }
  0xdb   : > { %4910 = vmatprep.subr.bf16.mxu1 %v4909_v10  ;;  %v667_v10 = vld [vmem:[%s5925_s4 + $0xad8] sm:$0xff]  ;;  %v4931_v13 = vpack.c.bf16 %v662_v7, %v658_v5  ;;  %v702_v3 = vld [vmem:[%s5925_s4 + $0xbf0] sm:$0xff]  ;;  %v709_v5 = vld [vmem:[%s5925_s4 + $0xc28] sm:$0xff] }
  0xdc   : > { %v711_v7 = vld [vmem:[%s5925_s4 + $0xc38] sm:$0xff] }
  0xdd   : > { %4112 = vmatpush1.bf16.msra.mxu0 %v4111_v16  ;;  %v668_v16 = vld [vmem:[%s5925_s4 + $0xae0] sm:$0xff]  ;;  %v731_v44 = vld [vmem:[%s5925_s4 + $0xcd8] sm:$0xff] }
  0xde   : > { %4912 = vmatpush1.bf16.msra.mxu1 %v4911_v17  ;;  %4114 = vmatprep.subr.bf16.mxu0 %v4113_v18  ;;  %v666_v17 = vld [vmem:[%s5925_s4 + $0xad0] sm:$0xff]  ;;  %v4933_v18 = vpack.c.bf16 %v671_v11, %v667_v10  ;;  %v4135_v24 = vpack.c.bf16 %v668_v16, %v664_v15  ;;  %v4153_v10 = vpack.c.bf16 %v709_v5, %v705_v4  ;;  %v704_v11 = vld [vmem:[%s5925_s4 + $0xc00] sm:$0xff]  ;;  %v713_v16 = vld [vmem:[%s5925_s4 + $0xc48] sm:$0xff] }
  0xdf   : > { %4914 = vmatprep.subr.bf16.mxu1 %v4913_v22  ;;  %v675_v22 = vld [vmem:[%s5925_s4 + $0xb18] sm:$0xff]  ;;  %v4935_v25 = vpack.c.bf16 %v670_v19, %v666_v17  ;;  %v710_v15 = vld [vmem:[%s5925_s4 + $0xc30] sm:$0xff]  ;;  %v717_v17 = vld [vmem:[%s5925_s4 + $0xc68] sm:$0xff] }
  0xe0   : > { %v719_v19 = vld [vmem:[%s5925_s4 + $0xc78] sm:$0xff] }
  0xe1   : > { %4116 = vmatpush1.bf16.msra.mxu0 %v4115_v28  ;;  %v676_v28 = vld [vmem:[%s5925_s4 + $0xb20] sm:$0xff]  ;;  %v735_v45 = vld [vmem:[%s5925_s4 + $0xcf8] sm:$0xff] }
  0xe2   : > { %4916 = vmatpush1.bf16.msra.mxu1 %v4915_v29  ;;  %4118 = vmatprep.subr.bf16.mxu0 %v4117_v30  ;;  %v674_v29 = vld [vmem:[%s5925_s4 + $0xb10] sm:$0xff]  ;;  %v4937_v30 = vpack.c.bf16 %v679_v23, %v675_v22  ;;  %v4139_v36 = vpack.c.bf16 %v676_v28, %v672_v27  ;;  %v4157_v23 = vpack.c.bf16 %v717_v17, %v713_v16  ;;  %v739_v56 = vld [vmem:[%s5925_s4 + $0xd18] sm:$0xff] }
  0xe3   : > { %4918 = vmatprep.subr.bf16.mxu1 %v4917_v34  ;;  %v683_v34 = vld [vmem:[%s5925_s4 + $0xb58] sm:$0xff]  ;;  %v4939_v37 = vpack.c.bf16 %v678_v31, %v674_v29  ;;  %v718_v28 = vld [vmem:[%s5925_s4 + $0xc70] sm:$0xff]  ;;  %v721_v29 = vld [vmem:[%s5925_s4 + $0xc88] sm:$0xff] }
  0xe4   : > { %v723_v31 = vld [vmem:[%s5925_s4 + $0xc98] sm:$0xff] }
  0xe5   : > { %4120 = vmatpush1.bf16.msra.mxu0 %v4119_v40  ;;  %v684_v40 = vld [vmem:[%s5925_s4 + $0xb60] sm:$0xff]  ;;  %v743_v57 = vld [vmem:[%s5925_s4 + $0xd38] sm:$0xff] }
  0xe6   : > { %4920 = vmatpush1.bf16.msra.mxu1 %v4919_v41  ;;  %4122 = vmatprep.subr.bf16.mxu0 %v4121_v42  ;;  %v682_v41 = vld [vmem:[%s5925_s4 + $0xb50] sm:$0xff]  ;;  %v4941_v42 = vpack.c.bf16 %v687_v35, %v683_v34  ;;  %v4143_v48 = vpack.c.bf16 %v684_v40, %v680_v39  ;;  %v4961_v40 = vpack.c.bf16 %v727_v32, %v723_v31  ;;  %v747_v4 = vld [vmem:[%s5925_s4 + $0xd58] sm:$0xff] }
  0xe7   : > { %4922 = vmatprep.subr.bf16.mxu1 %v4921_v46  ;;  %v691_v46 = vld [vmem:[%s5925_s4 + $0xb98] sm:$0xff]  ;;  %v4943_v49 = vpack.c.bf16 %v686_v43, %v682_v41  ;;  %v722_v39 = vld [vmem:[%s5925_s4 + $0xc90] sm:$0xff]  ;;  %v733_v43 = vld [vmem:[%s5925_s4 + $0xce8] sm:$0xff] }
  0xe8   : > { %v726_v41 = vld [vmem:[%s5925_s4 + $0xcb0] sm:$0xff]  ;;  %v751_v5 = vld [vmem:[%s5925_s4 + $0xd78] sm:$0xff] }
  0xe9   : > { %4124 = vmatpush1.bf16.msra.mxu0 %v4123_v52  ;;  %v692_v52 = vld [vmem:[%s5925_s4 + $0xba0] sm:$0xff]  ;;  %v755_v16 = vld [vmem:[%s5925_s4 + $0xd98] sm:$0xff] }
  0xea   : > { %4924 = vmatpush1.bf16.msra.mxu1 %v4923_v53  ;;  %4126 = vmatprep.subr.bf16.mxu0 %v4125_v54  ;;  %v690_v53 = vld [vmem:[%s5925_s4 + $0xb90] sm:$0xff]  ;;  %v4945_v54 = vpack.c.bf16 %v695_v47, %v691_v46  ;;  %v4147_v60 = vpack.c.bf16 %v692_v52, %v688_v51  ;;  %v4963_v47 = vpack.c.bf16 %v726_v41, %v722_v39  ;;  %v759_v17 = vld [vmem:[%s5925_s4 + $0xdb8] sm:$0xff]  ;;  %v773_v39 = vld [vmem:[%s5925_s4 + $0xe28] sm:$0xff] }
  0xeb   : > { %4926 = vmatprep.subr.bf16.mxu1 %v4925_v58  ;;  %v699_v58 = vld [vmem:[%s5925_s4 + $0xbd8] sm:$0xff]  ;;  %v4947_v61 = vpack.c.bf16 %v694_v55, %v690_v53  ;;  %v730_v51 = vld [vmem:[%s5925_s4 + $0xcd0] sm:$0xff]  ;;  %v4965_v52 = vpack.c.bf16 %v735_v45, %v731_v44  ;;  %v741_v55 = vld [vmem:[%s5925_s4 + $0xd28] sm:$0xff] }
  0xec   : > { %v734_v53 = vld [vmem:[%s5925_s4 + $0xcf0] sm:$0xff]  ;;  %v775_v41 = vld [vmem:[%s5925_s4 + $0xe38] sm:$0xff]  ;;  %v768_v45 = vld [vmem:[%s5925_s4 + $0xe00] sm:$0xff] }
  0xed   : > { %4128 = vmatpush1.bf16.msra.mxu0 %v4127_v0  ;;  %v700_v0 = vld [vmem:[%s5925_s4 + $0xbe0] sm:$0xff] }
  0xee   : > { %4928 = vmatpush1.bf16.msra.mxu1 %v4927_v1  ;;  %4130 = vmatprep.subr.bf16.mxu0 %v4129_v2  ;;  %v698_v1 = vld [vmem:[%s5925_s4 + $0xbd0] sm:$0xff]  ;;  %v4949_v2 = vpack.c.bf16 %v703_v59, %v699_v58  ;;  %v4151_v8 = vpack.c.bf16 %v700_v0, %v696_v63  ;;  %v4967_v59 = vpack.c.bf16 %v734_v53, %v730_v51  ;;  %v781_v51 = vld [vmem:[%s5925_s4 + $0xe68] sm:$0xff]  ;;  %v783_v53 = vld [vmem:[%s5925_s4 + $0xe78] sm:$0xff] }
  0xef   : > { %4930 = vmatprep.subr.bf16.mxu1 %v4929_v6  ;;  %v707_v6 = vld [vmem:[%s5925_s4 + $0xc18] sm:$0xff]  ;;  %v4951_v9 = vpack.c.bf16 %v702_v3, %v698_v1  ;;  %v738_v63 = vld [vmem:[%s5925_s4 + $0xd10] sm:$0xff]  ;;  %v4969_v0 = vpack.c.bf16 %v743_v57, %v739_v56  ;;  %v749_v3 = vld [vmem:[%s5925_s4 + $0xd68] sm:$0xff] }
  0xf0   : > { %v742_v1 = vld [vmem:[%s5925_s4 + $0xd30] sm:$0xff]  ;;  %v776_v57 = vld [vmem:[%s5925_s4 + $0xe40] sm:$0xff] }
  0xf1   : > { %4132 = vmatpush1.bf16.msra.mxu0 %v4131_v12  ;;  %v708_v12 = vld [vmem:[%s5925_s4 + $0xc20] sm:$0xff] }
  0xf2   : > { %4932 = vmatpush1.bf16.msra.mxu1 %v4931_v13  ;;  %4134 = vmatprep.subr.bf16.mxu0 %v4133_v14  ;;  %v706_v13 = vld [vmem:[%s5925_s4 + $0xc10] sm:$0xff]  ;;  %v4953_v14 = vpack.c.bf16 %v711_v7, %v707_v6  ;;  %v4155_v21 = vpack.c.bf16 %v708_v12, %v704_v11  ;;  %v4971_v7 = vpack.c.bf16 %v742_v1, %v738_v63  ;;  %v789_v63 = vld [vmem:[%s5925_s4 + $0xea8] sm:$0xff]  ;;  %v791_v1 = vld [vmem:[%s5925_s4 + $0xeb8] sm:$0xff] }
  0xf3   : > { %4934 = vmatprep.subr.bf16.mxu1 %v4933_v18  ;;  %v715_v18 = vld [vmem:[%s5925_s4 + $0xc58] sm:$0xff]  ;;  %v4955_v22 = vpack.c.bf16 %v710_v15, %v706_v13  ;;  %v746_v11 = vld [vmem:[%s5925_s4 + $0xd50] sm:$0xff]  ;;  %v4973_v12 = vpack.c.bf16 %v751_v5, %v747_v4  ;;  %v757_v15 = vld [vmem:[%s5925_s4 + $0xda8] sm:$0xff] }
  0xf4   : > { %v4957_v27 = vpack.c.bf16 %v719_v19, %v715_v18  ;;  %v750_v13 = vld [vmem:[%s5925_s4 + $0xd70] sm:$0xff]  ;;  %v784_v5 = vld [vmem:[%s5925_s4 + $0xe80] sm:$0xff] }
  0xf5   : > { %4136 = vmatpush1.bf16.msra.mxu0 %v4135_v24  ;;  %v712_v24 = vld [vmem:[%s5925_s4 + $0xc40] sm:$0xff]  ;;  %v4975_v19 = vpack.c.bf16 %v750_v13, %v746_v11  ;;  %v797_v11 = vld [vmem:[%s5925_s4 + $0xee8] sm:$0xff]  ;;  %v799_v13 = vld [vmem:[%s5925_s4 + $0xef8] sm:$0xff] }
  0xf6   : > { %4936 = vmatpush1.bf16.msra.mxu1 %v4935_v25  ;;  %4138 = vmatprep.subr.bf16.mxu0 %v4137_v26  ;;  %v716_v25 = vld [vmem:[%s5925_s4 + $0xc60] sm:$0xff]  ;;  %v714_v26 = vld [vmem:[%s5925_s4 + $0xc50] sm:$0xff] }
  0xf7   : > { %4938 = vmatprep.subr.bf16.mxu1 %v4937_v30  ;;  %v725_v30 = vld [vmem:[%s5925_s4 + $0xca8] sm:$0xff]  ;;  %v4159_v34 = vpack.c.bf16 %v716_v25, %v712_v24  ;;  %v4959_v35 = vpack.c.bf16 %v718_v28, %v714_v26  ;;  %v4977_v24 = vpack.c.bf16 %v759_v17, %v755_v16  ;;  %v758_v25 = vld [vmem:[%s5925_s4 + $0xdb0] sm:$0xff]  ;;  %v763_v28 = vld [vmem:[%s5925_s4 + $0xdd8] sm:$0xff] }
  0xf8   : > { %v761_v26 = vld [vmem:[%s5925_s4 + $0xdc8] sm:$0xff]  ;;  %v792_v17 = vld [vmem:[%s5925_s4 + $0xec0] sm:$0xff] }
  0xf9   : > { %4140 = vmatpush1.bf16.msra.mxu0 %v4139_v36  ;;  %v4161_v36 = vpack.c.bf16 %v725_v30, %v721_v29  ;;  %v767_v29 = vld [vmem:[%s5925_s4 + $0xdf8] sm:$0xff] }
  0xfa   : > { %4940 = vmatpush1.bf16.msra.mxu1 %v4939_v37  ;;  %4142 = vmatprep.subr.bf16.mxu0 %v4141_v38  ;;  %v720_v37 = vld [vmem:[%s5925_s4 + $0xc80] sm:$0xff] }
  0xfb   : > { %4942 = vmatprep.subr.bf16.mxu1 %v4941_v42  ;;  %v724_v38 = vld [vmem:[%s5925_s4 + $0xca0] sm:$0xff]  ;;  %v729_v42 = vld [vmem:[%s5925_s4 + $0xcc8] sm:$0xff] }
  0xfc   : > { %v4163_v46 = vpack.c.bf16 %v724_v38, %v720_v37  ;;  %v766_v37 = vld [vmem:[%s5925_s4 + $0xdf0] sm:$0xff]  ;;  %v769_v38 = vld [vmem:[%s5925_s4 + $0xe08] sm:$0xff] }
  0xfd   : > { %4144 = vmatpush1.bf16.msra.mxu0 %v4143_v48  ;;  %v4165_v48 = vpack.c.bf16 %v733_v43, %v729_v42  ;;  %v4185_v44 = vpack.c.bf16 %v773_v39, %v769_v38 }
  0xfe   : > { %4944 = vmatpush1.bf16.msra.mxu1 %v4943_v49  ;;  %4146 = vmatprep.subr.bf16.mxu0 %v4145_v50  ;;  %v728_v49 = vld [vmem:[%s5925_s4 + $0xcc0] sm:$0xff] }
  0xff   : > { %4946 = vmatprep.subr.bf16.mxu1 %v4945_v54  ;;  %v732_v50 = vld [vmem:[%s5925_s4 + $0xce0] sm:$0xff]  ;;  %v737_v54 = vld [vmem:[%s5925_s4 + $0xd08] sm:$0xff] }
 0x100   : > { %v4167_v58 = vpack.c.bf16 %v732_v50, %v728_v49  ;;  %v774_v49 = vld [vmem:[%s5925_s4 + $0xe30] sm:$0xff]  ;;  %v777_v50 = vld [vmem:[%s5925_s4 + $0xe48] sm:$0xff] }
 0x101   : > { %4148 = vmatpush1.bf16.msra.mxu0 %v4147_v60  ;;  %v4169_v60 = vpack.c.bf16 %v741_v55, %v737_v54  ;;  %v4189_v56 = vpack.c.bf16 %v781_v51, %v777_v50 }
 0x102   : > { %4948 = vmatpush1.bf16.msra.mxu1 %v4947_v61  ;;  %4150 = vmatprep.subr.bf16.mxu0 %v4149_v62  ;;  %v736_v61 = vld [vmem:[%s5925_s4 + $0xd00] sm:$0xff] }
 0x103   : > { %4950 = vmatprep.subr.bf16.mxu1 %v4949_v2  ;;  %v740_v62 = vld [vmem:[%s5925_s4 + $0xd20] sm:$0xff]  ;;  %v745_v2 = vld [vmem:[%s5925_s4 + $0xd48] sm:$0xff] }
 0x104   : > { %v4171_v6 = vpack.c.bf16 %v740_v62, %v736_v61  ;;  %v782_v61 = vld [vmem:[%s5925_s4 + $0xe70] sm:$0xff]  ;;  %v785_v62 = vld [vmem:[%s5925_s4 + $0xe88] sm:$0xff] }
 0x105   : > { %4152 = vmatpush1.bf16.msra.mxu0 %v4151_v8  ;;  %v4173_v8 = vpack.c.bf16 %v749_v3, %v745_v2  ;;  %v4193_v4 = vpack.c.bf16 %v789_v63, %v785_v62 }
 0x106   : > { %4952 = vmatpush1.bf16.msra.mxu1 %v4951_v9  ;;  %4154 = vmatprep.subr.bf16.mxu0 %v4153_v10  ;;  %v744_v9 = vld [vmem:[%s5925_s4 + $0xd40] sm:$0xff] }
 0x107   : > { %4954 = vmatprep.subr.bf16.mxu1 %v4953_v14  ;;  %v748_v10 = vld [vmem:[%s5925_s4 + $0xd60] sm:$0xff]  ;;  %v753_v14 = vld [vmem:[%s5925_s4 + $0xd88] sm:$0xff] }
 0x108   : > { %2127 = vmatmul.mubr.f32.vlgmr.msra.gmra.mrb[0].mxu0 %v299_v20  ;;  %v4175_v18 = vpack.c.bf16 %v748_v10, %v744_v9  ;;  %v790_v9 = vld [vmem:[%s5925_s4 + $0xeb0] sm:$0xff]  ;;  %v793_v10 = vld [vmem:[%s5925_s4 + $0xec8] sm:$0xff] }
 0x109   : > { %4156 = vmatpush1.bf16.msra.mxu0 %v4155_v21  ;;  %3050 = vmatmul.mubr.f32.vlgmr.msra.gmra.mrb[0].mxu1 %v299_v20  ;;  %v4177_v20 = vpack.c.bf16 %v757_v15, %v753_v14  ;;  %v752_v21 = vld [vmem:[%s5925_s4 + $0xd80] sm:$0xff]  ;;  %v4197_v16 = vpack.c.bf16 %v797_v11, %v793_v10 }
 0x10a   : > { %4956 = vmatpush1.bf16.msra.mxu1 %v4955_v22  ;;  %4158 = vmatprep.subr.bf16.mxu0 %v4157_v23  ;;  %v756_v22 = vld [vmem:[%s5925_s4 + $0xda0] sm:$0xff]  ;;  %v754_v23 = vld [vmem:[%s5925_s4 + $0xd90] sm:$0xff] }
 0x10b   : > { %4958 = vmatprep.subr.bf16.mxu1 %v4957_v27  ;;  %2197 = vmatprep.mubr.f32.mxu0 %v302_v33  ;;  %v765_v27 = vld [vmem:[%s5925_s4 + $0xde8] sm:$0xff]  ;;  %v4179_v30 = vpack.c.bf16 %v756_v22, %v752_v21  ;;  %v4979_v31 = vpack.c.bf16 %v758_v25, %v754_v23  ;;  %v798_v21 = vld [vmem:[%s5925_s4 + $0xef0] sm:$0xff]  ;;  %v807_v25 = vld [vmem:[%s5925_s4 + $0xf38] sm:$0xff] }
 0x10c   : > { %3120 = vmatprep.mubr.f32.mxu1 %v302_v33  ;;  %v4181_v32 = vpack.c.bf16 %v765_v27, %v761_v26  ;;  %v760_v33 = vld [vmem:[%s5925_s4 + $0xdc0] sm:$0xff]  ;;  %v801_v22 = vld [vmem:[%s5925_s4 + $0xf08] sm:$0xff] }
 0x10d   : > { %4160 = vmatpush1.bf16.msra.mxu0 %v4159_v34  ;;  %v764_v34 = vld [vmem:[%s5925_s4 + $0xde0] sm:$0xff]  ;;  %v805_v23 = vld [vmem:[%s5925_s4 + $0xf28] sm:$0xff] }
 0x10e   : > { %4960 = vmatpush1.bf16.msra.mxu1 %v4959_v35  ;;  %4162 = vmatprep.subr.bf16.mxu0 %v4161_v36  ;;  %v762_v35 = vld [vmem:[%s5925_s4 + $0xdd0] sm:$0xff]  ;;  %v4981_v36 = vpack.c.bf16 %v767_v29, %v763_v28  ;;  %v4183_v42 = vpack.c.bf16 %v764_v34, %v760_v33  ;;  %v4201_v28 = vpack.c.bf16 %v805_v23, %v801_v22  ;;  %v800_v29 = vld [vmem:[%s5925_s4 + $0xf00] sm:$0xff]  ;;  %v809_v34 = vld [vmem:[%s5925_s4 + $0xf48] sm:$0xff] }
 0x10f   : > { %4962 = vmatprep.subr.bf16.mxu1 %v4961_v40  ;;  %v771_v40 = vld [vmem:[%s5925_s4 + $0xe18] sm:$0xff]  ;;  %v4983_v43 = vpack.c.bf16 %v766_v37, %v762_v35  ;;  %v806_v33 = vld [vmem:[%s5925_s4 + $0xf30] sm:$0xff]  ;;  %v813_v35 = vld [vmem:[%s5925_s4 + $0xf68] sm:$0xff] }
 0x110   : > { %v815_v37 = vld [vmem:[%s5925_s4 + $0xf78] sm:$0xff]  ;;  %v301_v22 = vld [vmem:[%s5948_s20 + $0x30] sm:$0xff] }
 0x111   : > { %4164 = vmatpush1.bf16.msra.mxu0 %v4163_v46  ;;  %v772_v46 = vld [vmem:[%s5925_s4 + $0xe20] sm:$0xff] }
 0x112   : > { %4964 = vmatpush1.bf16.msra.mxu1 %v4963_v47  ;;  %4166 = vmatprep.subr.bf16.mxu0 %v4165_v48  ;;  %v770_v47 = vld [vmem:[%s5925_s4 + $0xe10] sm:$0xff]  ;;  %v4985_v48 = vpack.c.bf16 %v775_v41, %v771_v40  ;;  %v4187_v54 = vpack.c.bf16 %v772_v46, %v768_v45  ;;  %v4205_v40 = vpack.c.bf16 %v813_v35, %v809_v34  ;;  %v808_v41 = vld [vmem:[%s5925_s4 + $0xf40] sm:$0xff]  ;;  %v817_v46 = vld [vmem:[%s5925_s4 + $0xf88] sm:$0xff] }
 0x113   : > { %4966 = vmatprep.subr.bf16.mxu1 %v4965_v52  ;;  %v779_v52 = vld [vmem:[%s5925_s4 + $0xe58] sm:$0xff]  ;;  %v4987_v55 = vpack.c.bf16 %v774_v49, %v770_v47  ;;  %v814_v45 = vld [vmem:[%s5925_s4 + $0xf70] sm:$0xff]  ;;  %v821_v47 = vld [vmem:[%s5925_s4 + $0xfa8] sm:$0xff] }
 0x114   : > { %v823_v49 = vld [vmem:[%s5925_s4 + $0xfb8] sm:$0xff]  ;;  %v304_v35 = vld [vmem:[%s5948_s20 + $0x48] sm:$0xff] }
 0x115   : > { %4168 = vmatpush1.bf16.msra.mxu0 %v4167_v58  ;;  %v780_v58 = vld [vmem:[%s5925_s4 + $0xe60] sm:$0xff]  ;;  %v855_v34 = vld [vmem:[%s5925_s4 + $0x10b8] sm:$0xff] }
 0x116   : > { %4968 = vmatpush1.bf16.msra.mxu1 %v4967_v59  ;;  %4170 = vmatprep.subr.bf16.mxu0 %v4169_v60  ;;  %v778_v59 = vld [vmem:[%s5925_s4 + $0xe50] sm:$0xff]  ;;  %v4989_v60 = vpack.c.bf16 %v783_v53, %v779_v52  ;;  %v4191_v2 = vpack.c.bf16 %v780_v58, %v776_v57  ;;  %v4209_v52 = vpack.c.bf16 %v821_v47, %v817_v46  ;;  %v816_v53 = vld [vmem:[%s5925_s4 + $0xf80] sm:$0xff]  ;;  %v825_v58 = vld [vmem:[%s5925_s4 + $0xfc8] sm:$0xff] }
 0x117   : > { %4970 = vmatprep.subr.bf16.mxu1 %v4969_v0  ;;  %v787_v0 = vld [vmem:[%s5925_s4 + $0xe98] sm:$0xff]  ;;  %v4991_v3 = vpack.c.bf16 %v782_v61, %v778_v59  ;;  %v822_v57 = vld [vmem:[%s5925_s4 + $0xfb0] sm:$0xff]  ;;  %v829_v59 = vld [vmem:[%s5925_s4 + $0xfe8] sm:$0xff] }
 0x118   : > { %v831_v61 = vld [vmem:[%s5925_s4 + $0xff8] sm:$0xff] }
 0x119   : > { %4172 = vmatpush1.bf16.msra.mxu0 %v4171_v6  ;;  %v788_v6 = vld [vmem:[%s5925_s4 + $0xea0] sm:$0xff]  ;;  %v859_v46 = vld [vmem:[%s5925_s4 + $0x10d8] sm:$0xff] }
 0x11a   : > { %4972 = vmatpush1.bf16.msra.mxu1 %v4971_v7  ;;  %4174 = vmatprep.subr.bf16.mxu0 %v4173_v8  ;;  %v786_v7 = vld [vmem:[%s5925_s4 + $0xe90] sm:$0xff]  ;;  %v4993_v8 = vpack.c.bf16 %v791_v1, %v787_v0  ;;  %v4195_v14 = vpack.c.bf16 %v788_v6, %v784_v5  ;;  %v4213_v0 = vpack.c.bf16 %v829_v59, %v825_v58  ;;  %v824_v1 = vld [vmem:[%s5925_s4 + $0xfc0] sm:$0xff]  ;;  %v833_v6 = vld [vmem:[%s5925_s4 + $0x1008] sm:$0xff] }
 0x11b   : > { %4974 = vmatprep.subr.bf16.mxu1 %v4973_v12  ;;  %v795_v12 = vld [vmem:[%s5925_s4 + $0xed8] sm:$0xff]  ;;  %v4995_v15 = vpack.c.bf16 %v790_v9, %v786_v7  ;;  %v830_v5 = vld [vmem:[%s5925_s4 + $0xff0] sm:$0xff]  ;;  %v837_v7 = vld [vmem:[%s5925_s4 + $0x1028] sm:$0xff] }
 0x11c   : > { %v839_v9 = vld [vmem:[%s5925_s4 + $0x1038] sm:$0xff] }
 0x11d   : > { %4176 = vmatpush1.bf16.msra.mxu0 %v4175_v18  ;;  %v796_v18 = vld [vmem:[%s5925_s4 + $0xee0] sm:$0xff]  ;;  %v863_v47 = vld [vmem:[%s5925_s4 + $0x10f8] sm:$0xff] }
 0x11e   : > { %4976 = vmatpush1.bf16.msra.mxu1 %v4975_v19  ;;  %4178 = vmatprep.subr.bf16.mxu0 %v4177_v20  ;;  %v794_v19 = vld [vmem:[%s5925_s4 + $0xed0] sm:$0xff]  ;;  %v4997_v20 = vpack.c.bf16 %v799_v13, %v795_v12  ;;  %v4199_v26 = vpack.c.bf16 %v796_v18, %v792_v17  ;;  %v4217_v12 = vpack.c.bf16 %v837_v7, %v833_v6  ;;  %v832_v13 = vld [vmem:[%s5925_s4 + $0x1000] sm:$0xff]  ;;  %v841_v18 = vld [vmem:[%s5925_s4 + $0x1048] sm:$0xff] }
 0x11f   : > { %4978 = vmatprep.subr.bf16.mxu1 %v4977_v24  ;;  %v803_v24 = vld [vmem:[%s5925_s4 + $0xf18] sm:$0xff]  ;;  %v4999_v27 = vpack.c.bf16 %v798_v21, %v794_v19  ;;  %v838_v17 = vld [vmem:[%s5925_s4 + $0x1030] sm:$0xff]  ;;  %v845_v19 = vld [vmem:[%s5925_s4 + $0x1068] sm:$0xff] }
 0x120   : > { %v847_v21 = vld [vmem:[%s5925_s4 + $0x1078] sm:$0xff] }
 0x121   : > { %4180 = vmatpush1.bf16.msra.mxu0 %v4179_v30  ;;  %v804_v30 = vld [vmem:[%s5925_s4 + $0xf20] sm:$0xff]  ;;  %v867_v58 = vld [vmem:[%s5925_s4 + $0x1118] sm:$0xff] }
 0x122   : > { %4980 = vmatpush1.bf16.msra.mxu1 %v4979_v31  ;;  %4182 = vmatprep.subr.bf16.mxu0 %v4181_v32  ;;  %v802_v31 = vld [vmem:[%s5925_s4 + $0xf10] sm:$0xff]  ;;  %v5001_v32 = vpack.c.bf16 %v807_v25, %v803_v24  ;;  %v4203_v38 = vpack.c.bf16 %v804_v30, %v800_v29  ;;  %v4221_v25 = vpack.c.bf16 %v845_v19, %v841_v18  ;;  %v871_v59 = vld [vmem:[%s5925_s4 + $0x1138] sm:$0xff] }
 0x123   : > { %4982 = vmatprep.subr.bf16.mxu1 %v4981_v36  ;;  %v811_v36 = vld [vmem:[%s5925_s4 + $0xf58] sm:$0xff]  ;;  %v5003_v39 = vpack.c.bf16 %v806_v33, %v802_v31  ;;  %v846_v30 = vld [vmem:[%s5925_s4 + $0x1070] sm:$0xff]  ;;  %v849_v31 = vld [vmem:[%s5925_s4 + $0x1088] sm:$0xff] }
 0x124   : > { %v851_v33 = vld [vmem:[%s5925_s4 + $0x1098] sm:$0xff] }
 0x125   : > { %4184 = vmatpush1.bf16.msra.mxu0 %v4183_v42  ;;  %v812_v42 = vld [vmem:[%s5925_s4 + $0xf60] sm:$0xff]  ;;  %v875_v6 = vld [vmem:[%s5925_s4 + $0x1158] sm:$0xff] }
 0x126   : > { %4984 = vmatpush1.bf16.msra.mxu1 %v4983_v43  ;;  %4186 = vmatprep.subr.bf16.mxu0 %v4185_v44  ;;  %v810_v43 = vld [vmem:[%s5925_s4 + $0xf50] sm:$0xff]  ;;  %v5005_v44 = vpack.c.bf16 %v815_v37, %v811_v36  ;;  %v4207_v50 = vpack.c.bf16 %v812_v42, %v808_v41  ;;  %v5025_v42 = vpack.c.bf16 %v855_v34, %v851_v33  ;;  %v879_v7 = vld [vmem:[%s5925_s4 + $0x1178] sm:$0xff] }
 0x127   : > { %4986 = vmatprep.subr.bf16.mxu1 %v4985_v48  ;;  %v819_v48 = vld [vmem:[%s5925_s4 + $0xf98] sm:$0xff]  ;;  %v5007_v51 = vpack.c.bf16 %v814_v45, %v810_v43  ;;  %v850_v41 = vld [vmem:[%s5925_s4 + $0x1090] sm:$0xff]  ;;  %v861_v45 = vld [vmem:[%s5925_s4 + $0x10e8] sm:$0xff] }
 0x128   : > { %v854_v43 = vld [vmem:[%s5925_s4 + $0x10b0] sm:$0xff]  ;;  %v883_v18 = vld [vmem:[%s5925_s4 + $0x1198] sm:$0xff] }
 0x129   : > { %4188 = vmatpush1.bf16.msra.mxu0 %v4187_v54  ;;  %v820_v54 = vld [vmem:[%s5925_s4 + $0xfa0] sm:$0xff]  ;;  %v887_v19 = vld [vmem:[%s5925_s4 + $0x11b8] sm:$0xff] }
 0x12a   : > { %4988 = vmatpush1.bf16.msra.mxu1 %v4987_v55  ;;  %4190 = vmatprep.subr.bf16.mxu0 %v4189_v56  ;;  %v818_v55 = vld [vmem:[%s5925_s4 + $0xf90] sm:$0xff]  ;;  %v5009_v56 = vpack.c.bf16 %v823_v49, %v819_v48  ;;  %v4211_v62 = vpack.c.bf16 %v820_v54, %v816_v53  ;;  %v5027_v49 = vpack.c.bf16 %v854_v43, %v850_v41  ;;  %v901_v41 = vld [vmem:[%s5925_s4 + $0x1228] sm:$0xff]  ;;  %v903_v43 = vld [vmem:[%s5925_s4 + $0x1238] sm:$0xff] }
 0x12b   : > { %4990 = vmatprep.subr.bf16.mxu1 %v4989_v60  ;;  %v827_v60 = vld [vmem:[%s5925_s4 + $0xfd8] sm:$0xff]  ;;  %v5011_v63 = vpack.c.bf16 %v822_v57, %v818_v55  ;;  %v858_v53 = vld [vmem:[%s5925_s4 + $0x10d0] sm:$0xff]  ;;  %v5029_v54 = vpack.c.bf16 %v863_v47, %v859_v46  ;;  %v869_v57 = vld [vmem:[%s5925_s4 + $0x1128] sm:$0xff] }
 0x12c   : > { %v862_v55 = vld [vmem:[%s5925_s4 + $0x10f0] sm:$0xff]  ;;  %v896_v47 = vld [vmem:[%s5925_s4 + $0x1200] sm:$0xff] }
 0x12d   : > { %4192 = vmatpush1.bf16.msra.mxu0 %v4191_v2  ;;  %v828_v2 = vld [vmem:[%s5925_s4 + $0xfe0] sm:$0xff] }
 0x12e   : > { %4992 = vmatpush1.bf16.msra.mxu1 %v4991_v3  ;;  %4194 = vmatprep.subr.bf16.mxu0 %v4193_v4  ;;  %v826_v3 = vld [vmem:[%s5925_s4 + $0xfd0] sm:$0xff]  ;;  %v5013_v4 = vpack.c.bf16 %v831_v61, %v827_v60  ;;  %v4215_v10 = vpack.c.bf16 %v828_v2, %v824_v1  ;;  %v5031_v61 = vpack.c.bf16 %v862_v55, %v858_v53  ;;  %v909_v53 = vld [vmem:[%s5925_s4 + $0x1268] sm:$0xff]  ;;  %v911_v55 = vld [vmem:[%s5925_s4 + $0x1278] sm:$0xff] }
 0x12f   : > { %4994 = vmatprep.subr.bf16.mxu1 %v4993_v8  ;;  %v835_v8 = vld [vmem:[%s5925_s4 + $0x1018] sm:$0xff]  ;;  %v5015_v11 = vpack.c.bf16 %v830_v5, %v826_v3  ;;  %v866_v1 = vld [vmem:[%s5925_s4 + $0x1110] sm:$0xff]  ;;  %v5033_v2 = vpack.c.bf16 %v871_v59, %v867_v58  ;;  %v877_v5 = vld [vmem:[%s5925_s4 + $0x1168] sm:$0xff] }
 0x130   : > { %v870_v3 = vld [vmem:[%s5925_s4 + $0x1130] sm:$0xff]  ;;  %v904_v59 = vld [vmem:[%s5925_s4 + $0x1240] sm:$0xff] }
 0x131   : > { %4196 = vmatpush1.bf16.msra.mxu0 %v4195_v14  ;;  %v836_v14 = vld [vmem:[%s5925_s4 + $0x1020] sm:$0xff] }
 0x132   : > { %4996 = vmatpush1.bf16.msra.mxu1 %v4995_v15  ;;  %4198 = vmatprep.subr.bf16.mxu0 %v4197_v16  ;;  %v834_v15 = vld [vmem:[%s5925_s4 + $0x1010] sm:$0xff]  ;;  %v5017_v16 = vpack.c.bf16 %v839_v9, %v835_v8  ;;  %v4219_v23 = vpack.c.bf16 %v836_v14, %v832_v13  ;;  %v5035_v9 = vpack.c.bf16 %v870_v3, %v866_v1  ;;  %v917_v1 = vld [vmem:[%s5925_s4 + $0x12a8] sm:$0xff]  ;;  %v919_v3 = vld [vmem:[%s5925_s4 + $0x12b8] sm:$0xff] }
 0x133   : > { %4998 = vmatprep.subr.bf16.mxu1 %v4997_v20  ;;  %v843_v20 = vld [vmem:[%s5925_s4 + $0x1058] sm:$0xff]  ;;  %v5019_v24 = vpack.c.bf16 %v838_v17, %v834_v15  ;;  %v874_v13 = vld [vmem:[%s5925_s4 + $0x1150] sm:$0xff]  ;;  %v5037_v14 = vpack.c.bf16 %v879_v7, %v875_v6  ;;  %v885_v17 = vld [vmem:[%s5925_s4 + $0x11a8] sm:$0xff] }
 0x134   : > { %v5021_v29 = vpack.c.bf16 %v847_v21, %v843_v20  ;;  %v878_v15 = vld [vmem:[%s5925_s4 + $0x1170] sm:$0xff]  ;;  %v912_v7 = vld [vmem:[%s5925_s4 + $0x1280] sm:$0xff] }
 0x135   : > { %4200 = vmatpush1.bf16.msra.mxu0 %v4199_v26  ;;  %v840_v26 = vld [vmem:[%s5925_s4 + $0x1040] sm:$0xff]  ;;  %v5039_v21 = vpack.c.bf16 %v878_v15, %v874_v13  ;;  %v925_v13 = vld [vmem:[%s5925_s4 + $0x12e8] sm:$0xff]  ;;  %v927_v15 = vld [vmem:[%s5925_s4 + $0x12f8] sm:$0xff] }
 0x136   : > { %5000 = vmatpush1.bf16.msra.mxu1 %v4999_v27  ;;  %4202 = vmatprep.subr.bf16.mxu0 %v4201_v28  ;;  %v844_v27 = vld [vmem:[%s5925_s4 + $0x1060] sm:$0xff]  ;;  %v842_v28 = vld [vmem:[%s5925_s4 + $0x1050] sm:$0xff] }
 0x137   : > { %5002 = vmatprep.subr.bf16.mxu1 %v5001_v32  ;;  %v853_v32 = vld [vmem:[%s5925_s4 + $0x10a8] sm:$0xff]  ;;  %v4223_v36 = vpack.c.bf16 %v844_v27, %v840_v26  ;;  %v5023_v37 = vpack.c.bf16 %v846_v30, %v842_v28  ;;  %v5041_v26 = vpack.c.bf16 %v887_v19, %v883_v18  ;;  %v886_v27 = vld [vmem:[%s5925_s4 + $0x11b0] sm:$0xff]  ;;  %v891_v30 = vld [vmem:[%s5925_s4 + $0x11d8] sm:$0xff] }
 0x138   : > { %v889_v28 = vld [vmem:[%s5925_s4 + $0x11c8] sm:$0xff]  ;;  %v920_v19 = vld [vmem:[%s5925_s4 + $0x12c0] sm:$0xff] }
 0x139   : > { %4204 = vmatpush1.bf16.msra.mxu0 %v4203_v38  ;;  %v4225_v38 = vpack.c.bf16 %v853_v32, %v849_v31  ;;  %v895_v31 = vld [vmem:[%s5925_s4 + $0x11f8] sm:$0xff] }
 0x13a   : > { %5004 = vmatpush1.bf16.msra.mxu1 %v5003_v39  ;;  %4206 = vmatprep.subr.bf16.mxu0 %v4205_v40  ;;  %v848_v39 = vld [vmem:[%s5925_s4 + $0x1080] sm:$0xff] }
 0x13b   : > { %5006 = vmatprep.subr.bf16.mxu1 %v5005_v44  ;;  %v852_v40 = vld [vmem:[%s5925_s4 + $0x10a0] sm:$0xff]  ;;  %v857_v44 = vld [vmem:[%s5925_s4 + $0x10c8] sm:$0xff] }
 0x13c   : > { %v4227_v48 = vpack.c.bf16 %v852_v40, %v848_v39  ;;  %v894_v39 = vld [vmem:[%s5925_s4 + $0x11f0] sm:$0xff]  ;;  %v897_v40 = vld [vmem:[%s5925_s4 + $0x1208] sm:$0xff] }
 0x13d   : > { %4208 = vmatpush1.bf16.msra.mxu0 %v4207_v50  ;;  %v4229_v50 = vpack.c.bf16 %v861_v45, %v857_v44  ;;  %v4249_v46 = vpack.c.bf16 %v901_v41, %v897_v40 }
 0x13e   : > { %5008 = vmatpush1.bf16.msra.mxu1 %v5007_v51  ;;  %4210 = vmatprep.subr.bf16.mxu0 %v4209_v52  ;;  %v856_v51 = vld [vmem:[%s5925_s4 + $0x10c0] sm:$0xff] }
 0x13f   : > { %5010 = vmatprep.subr.bf16.mxu1 %v5009_v56  ;;  %v860_v52 = vld [vmem:[%s5925_s4 + $0x10e0] sm:$0xff]  ;;  %v865_v56 = vld [vmem:[%s5925_s4 + $0x1108] sm:$0xff] }
 0x140   : > { %v4231_v60 = vpack.c.bf16 %v860_v52, %v856_v51  ;;  %v902_v51 = vld [vmem:[%s5925_s4 + $0x1230] sm:$0xff]  ;;  %v905_v52 = vld [vmem:[%s5925_s4 + $0x1248] sm:$0xff] }
 0x141   : > { %4212 = vmatpush1.bf16.msra.mxu0 %v4211_v62  ;;  %v4233_v62 = vpack.c.bf16 %v869_v57, %v865_v56  ;;  %v4253_v58 = vpack.c.bf16 %v909_v53, %v905_v52 }
 0x142   : > { %5012 = vmatpush1.bf16.msra.mxu1 %v5011_v63  ;;  %4214 = vmatprep.subr.bf16.mxu0 %v4213_v0  ;;  %v864_v63 = vld [vmem:[%s5925_s4 + $0x1100] sm:$0xff] }
 0x143   : > { %5014 = vmatprep.subr.bf16.mxu1 %v5013_v4  ;;  %v868_v0 = vld [vmem:[%s5925_s4 + $0x1120] sm:$0xff]  ;;  %v873_v4 = vld [vmem:[%s5925_s4 + $0x1148] sm:$0xff] }
 0x144   : > { %v4235_v8 = vpack.c.bf16 %v868_v0, %v864_v63  ;;  %v910_v63 = vld [vmem:[%s5925_s4 + $0x1270] sm:$0xff]  ;;  %v913_v0 = vld [vmem:[%s5925_s4 + $0x1288] sm:$0xff] }
 0x145   : > { %4216 = vmatpush1.bf16.msra.mxu0 %v4215_v10  ;;  %v4237_v10 = vpack.c.bf16 %v877_v5, %v873_v4  ;;  %v4257_v6 = vpack.c.bf16 %v917_v1, %v913_v0 }
 0x146   : > { %5016 = vmatpush1.bf16.msra.mxu1 %v5015_v11  ;;  %4218 = vmatprep.subr.bf16.mxu0 %v4217_v12  ;;  %v872_v11 = vld [vmem:[%s5925_s4 + $0x1140] sm:$0xff] }
 0x147   : > { %5018 = vmatprep.subr.bf16.mxu1 %v5017_v16  ;;  %v876_v12 = vld [vmem:[%s5925_s4 + $0x1160] sm:$0xff]  ;;  %v881_v16 = vld [vmem:[%s5925_s4 + $0x1188] sm:$0xff] }
 0x148   : > { %2198 = vmatmul.mubr.f32.vlgmr.msra.gmra.mrb[0].mxu0 %v301_v22  ;;  %v4239_v20 = vpack.c.bf16 %v876_v12, %v872_v11  ;;  %v918_v11 = vld [vmem:[%s5925_s4 + $0x12b0] sm:$0xff]  ;;  %v921_v12 = vld [vmem:[%s5925_s4 + $0x12c8] sm:$0xff] }
 0x149   : > { %4220 = vmatpush1.bf16.msra.mxu0 %v4219_v23  ;;  %3121 = vmatmul.mubr.f32.vlgmr.msra.gmra.mrb[0].mxu1 %v301_v22  ;;  %v4241_v22 = vpack.c.bf16 %v885_v17, %v881_v16  ;;  %v880_v23 = vld [vmem:[%s5925_s4 + $0x1180] sm:$0xff]  ;;  %v4261_v18 = vpack.c.bf16 %v925_v13, %v921_v12 }
 0x14a   : > { %5020 = vmatpush1.bf16.msra.mxu1 %v5019_v24  ;;  %4222 = vmatprep.subr.bf16.mxu0 %v4221_v25  ;;  %v884_v24 = vld [vmem:[%s5925_s4 + $0x11a0] sm:$0xff]  ;;  %v882_v25 = vld [vmem:[%s5925_s4 + $0x1190] sm:$0xff] }
 0x14b   : > { %5022 = vmatprep.subr.bf16.mxu1 %v5021_v29  ;;  %2268 = vmatprep.mubr.f32.mxu0 %v304_v35  ;;  %v893_v29 = vld [vmem:[%s5925_s4 + $0x11e8] sm:$0xff]  ;;  %v4243_v32 = vpack.c.bf16 %v884_v24, %v880_v23  ;;  %v5043_v33 = vpack.c.bf16 %v886_v27, %v882_v25  ;;  %v926_v23 = vld [vmem:[%s5925_s4 + $0x12f0] sm:$0xff]  ;;  %v935_v27 = vld [vmem:[%s5925_s4 + $0x1338] sm:$0xff] }
 0x14c   : > { %3191 = vmatprep.mubr.f32.mxu1 %v304_v35  ;;  %v4245_v34 = vpack.c.bf16 %v893_v29, %v889_v28  ;;  %v888_v35 = vld [vmem:[%s5925_s4 + $0x11c0] sm:$0xff]  ;;  %v929_v24 = vld [vmem:[%s5925_s4 + $0x1308] sm:$0xff] }
 0x14d   : > { %4224 = vmatpush1.bf16.msra.mxu0 %v4223_v36  ;;  %v892_v36 = vld [vmem:[%s5925_s4 + $0x11e0] sm:$0xff]  ;;  %v933_v25 = vld [vmem:[%s5925_s4 + $0x1328] sm:$0xff] }
 0x14e   : > { %5024 = vmatpush1.bf16.msra.mxu1 %v5023_v37  ;;  %4226 = vmatprep.subr.bf16.mxu0 %v4225_v38  ;;  %v890_v37 = vld [vmem:[%s5925_s4 + $0x11d0] sm:$0xff]  ;;  %v5045_v38 = vpack.c.bf16 %v895_v31, %v891_v30  ;;  %v4247_v44 = vpack.c.bf16 %v892_v36, %v888_v35  ;;  %v4265_v30 = vpack.c.bf16 %v933_v25, %v929_v24  ;;  %v928_v31 = vld [vmem:[%s5925_s4 + $0x1300] sm:$0xff]  ;;  %v937_v36 = vld [vmem:[%s5925_s4 + $0x1348] sm:$0xff] }
 0x14f   : > { %5026 = vmatprep.subr.bf16.mxu1 %v5025_v42  ;;  %v899_v42 = vld [vmem:[%s5925_s4 + $0x1218] sm:$0xff]  ;;  %v5047_v45 = vpack.c.bf16 %v894_v39, %v890_v37  ;;  %v934_v35 = vld [vmem:[%s5925_s4 + $0x1330] sm:$0xff]  ;;  %v941_v37 = vld [vmem:[%s5925_s4 + $0x1368] sm:$0xff] }
 0x150   : > { %v943_v39 = vld [vmem:[%s5925_s4 + $0x1378] sm:$0xff]  ;;  %v303_v24 = vld [vmem:[%s5948_s20 + $0x40] sm:$0xff] }
 0x151   : > { %4228 = vmatpush1.bf16.msra.mxu0 %v4227_v48  ;;  %v900_v48 = vld [vmem:[%s5925_s4 + $0x1220] sm:$0xff] }
 0x152   : > { %5028 = vmatpush1.bf16.msra.mxu1 %v5027_v49  ;;  %4230 = vmatprep.subr.bf16.mxu0 %v4229_v50  ;;  %v898_v49 = vld [vmem:[%s5925_s4 + $0x1210] sm:$0xff]  ;;  %v5049_v50 = vpack.c.bf16 %v903_v43, %v899_v42  ;;  %v4251_v56 = vpack.c.bf16 %v900_v48, %v896_v47  ;;  %v4269_v42 = vpack.c.bf16 %v941_v37, %v937_v36  ;;  %v936_v43 = vld [vmem:[%s5925_s4 + $0x1340] sm:$0xff]  ;;  %v945_v48 = vld [vmem:[%s5925_s4 + $0x1388] sm:$0xff] }
 0x153   : > { %5030 = vmatprep.subr.bf16.mxu1 %v5029_v54  ;;  %v907_v54 = vld [vmem:[%s5925_s4 + $0x1258] sm:$0xff]  ;;  %v5051_v57 = vpack.c.bf16 %v902_v51, %v898_v49  ;;  %v942_v47 = vld [vmem:[%s5925_s4 + $0x1370] sm:$0xff]  ;;  %v949_v49 = vld [vmem:[%s5925_s4 + $0x13a8] sm:$0xff] }
 0x154   : > { %v951_v51 = vld [vmem:[%s5925_s4 + $0x13b8] sm:$0xff] }
 0x155   : > { %4232 = vmatpush1.bf16.msra.mxu0 %v4231_v60  ;;  %v908_v60 = vld [vmem:[%s5925_s4 + $0x1260] sm:$0xff]  ;;  %v983_v36 = vld [vmem:[%s5925_s4 + $0x14b8] sm:$0xff] }
 0x156   : > { %5032 = vmatpush1.bf16.msra.mxu1 %v5031_v61  ;;  %4234 = vmatprep.subr.bf16.mxu0 %v4233_v62  ;;  %v906_v61 = vld [vmem:[%s5925_s4 + $0x1250] sm:$0xff]  ;;  %v5053_v62 = vpack.c.bf16 %v911_v55, %v907_v54  ;;  %v4255_v4 = vpack.c.bf16 %v908_v60, %v904_v59  ;;  %v4273_v54 = vpack.c.bf16 %v949_v49, %v945_v48  ;;  %v944_v55 = vld [vmem:[%s5925_s4 + $0x1380] sm:$0xff]  ;;  %v953_v60 = vld [vmem:[%s5925_s4 + $0x13c8] sm:$0xff] }
 0x157   : > { %5034 = vmatprep.subr.bf16.mxu1 %v5033_v2  ;;  %v915_v2 = vld [vmem:[%s5925_s4 + $0x1298] sm:$0xff]  ;;  %v5055_v5 = vpack.c.bf16 %v910_v63, %v906_v61  ;;  %v950_v59 = vld [vmem:[%s5925_s4 + $0x13b0] sm:$0xff]  ;;  %v957_v61 = vld [vmem:[%s5925_s4 + $0x13e8] sm:$0xff] }
 0x158   : > { %v959_v63 = vld [vmem:[%s5925_s4 + $0x13f8] sm:$0xff] }
 0x159   : > { %4236 = vmatpush1.bf16.msra.mxu0 %v4235_v8  ;;  %v916_v8 = vld [vmem:[%s5925_s4 + $0x12a0] sm:$0xff]  ;;  %v306_v37 = vld [vmem:[%s5948_s20 + $0x58] sm:$0xff] }
 0x15a   : > { %5036 = vmatpush1.bf16.msra.mxu1 %v5035_v9  ;;  %4238 = vmatprep.subr.bf16.mxu0 %v4237_v10  ;;  %v914_v9 = vld [vmem:[%s5925_s4 + $0x1290] sm:$0xff]  ;;  %v5057_v10 = vpack.c.bf16 %v919_v3, %v915_v2  ;;  %v4259_v16 = vpack.c.bf16 %v916_v8, %v912_v7  ;;  %v4277_v2 = vpack.c.bf16 %v957_v61, %v953_v60  ;;  %v952_v3 = vld [vmem:[%s5925_s4 + $0x13c0] sm:$0xff]  ;;  %v961_v8 = vld [vmem:[%s5925_s4 + $0x1408] sm:$0xff] }
 0x15b   : > { %5038 = vmatprep.subr.bf16.mxu1 %v5037_v14  ;;  %v923_v14 = vld [vmem:[%s5925_s4 + $0x12d8] sm:$0xff]  ;;  %v5059_v17 = vpack.c.bf16 %v918_v11, %v914_v9  ;;  %v958_v7 = vld [vmem:[%s5925_s4 + $0x13f0] sm:$0xff]  ;;  %v965_v9 = vld [vmem:[%s5925_s4 + $0x1428] sm:$0xff] }
 0x15c   : > { %v967_v11 = vld [vmem:[%s5925_s4 + $0x1438] sm:$0xff] }
 0x15d   : > { %4240 = vmatpush1.bf16.msra.mxu0 %v4239_v20  ;;  %v924_v20 = vld [vmem:[%s5925_s4 + $0x12e0] sm:$0xff]  ;;  %v987_v48 = vld [vmem:[%s5925_s4 + $0x14d8] sm:$0xff] }
 0x15e   : > { %5040 = vmatpush1.bf16.msra.mxu1 %v5039_v21  ;;  %4242 = vmatprep.subr.bf16.mxu0 %v4241_v22  ;;  %v922_v21 = vld [vmem:[%s5925_s4 + $0x12d0] sm:$0xff]  ;;  %v5061_v22 = vpack.c.bf16 %v927_v15, %v923_v14  ;;  %v4263_v28 = vpack.c.bf16 %v924_v20, %v920_v19  ;;  %v4281_v14 = vpack.c.bf16 %v965_v9, %v961_v8  ;;  %v960_v15 = vld [vmem:[%s5925_s4 + $0x1400] sm:$0xff]  ;;  %v969_v20 = vld [vmem:[%s5925_s4 + $0x1448] sm:$0xff] }
 0x15f   : > { %5042 = vmatprep.subr.bf16.mxu1 %v5041_v26  ;;  %v931_v26 = vld [vmem:[%s5925_s4 + $0x1318] sm:$0xff]  ;;  %v5063_v29 = vpack.c.bf16 %v926_v23, %v922_v21  ;;  %v966_v19 = vld [vmem:[%s5925_s4 + $0x1430] sm:$0xff]  ;;  %v973_v21 = vld [vmem:[%s5925_s4 + $0x1468] sm:$0xff] }
 0x160   : > { %v975_v23 = vld [vmem:[%s5925_s4 + $0x1478] sm:$0xff] }
 0x161   : > { %4244 = vmatpush1.bf16.msra.mxu0 %v4243_v32  ;;  %v932_v32 = vld [vmem:[%s5925_s4 + $0x1320] sm:$0xff]  ;;  %v991_v49 = vld [vmem:[%s5925_s4 + $0x14f8] sm:$0xff] }
 0x162   : > { %5044 = vmatpush1.bf16.msra.mxu1 %v5043_v33  ;;  %4246 = vmatprep.subr.bf16.mxu0 %v4245_v34  ;;  %v930_v33 = vld [vmem:[%s5925_s4 + $0x1310] sm:$0xff]  ;;  %v5065_v34 = vpack.c.bf16 %v935_v27, %v931_v26  ;;  %v4267_v40 = vpack.c.bf16 %v932_v32, %v928_v31  ;;  %v4285_v27 = vpack.c.bf16 %v973_v21, %v969_v20  ;;  %v995_v60 = vld [vmem:[%s5925_s4 + $0x1518] sm:$0xff] }
 0x163   : > { %5046 = vmatprep.subr.bf16.mxu1 %v5045_v38  ;;  %v939_v38 = vld [vmem:[%s5925_s4 + $0x1358] sm:$0xff]  ;;  %v5067_v41 = vpack.c.bf16 %v934_v35, %v930_v33  ;;  %v974_v32 = vld [vmem:[%s5925_s4 + $0x1470] sm:$0xff]  ;;  %v977_v33 = vld [vmem:[%s5925_s4 + $0x1488] sm:$0xff] }
 0x164   : > { %v979_v35 = vld [vmem:[%s5925_s4 + $0x1498] sm:$0xff] }
 0x165   : > { %4248 = vmatpush1.bf16.msra.mxu0 %v4247_v44  ;;  %v940_v44 = vld [vmem:[%s5925_s4 + $0x1360] sm:$0xff]  ;;  %v999_v61 = vld [vmem:[%s5925_s4 + $0x1538] sm:$0xff] }
 0x166   : > { %5048 = vmatpush1.bf16.msra.mxu1 %v5047_v45  ;;  %4250 = vmatprep.subr.bf16.mxu0 %v4249_v46  ;;  %v938_v45 = vld [vmem:[%s5925_s4 + $0x1350] sm:$0xff]  ;;  %v5069_v46 = vpack.c.bf16 %v943_v39, %v939_v38  ;;  %v4271_v52 = vpack.c.bf16 %v940_v44, %v936_v43  ;;  %v5089_v44 = vpack.c.bf16 %v983_v36, %v979_v35  ;;  %v1003_v8 = vld [vmem:[%s5925_s4 + $0x1558] sm:$0xff] }
 0x167   : > { %5050 = vmatprep.subr.bf16.mxu1 %v5049_v50  ;;  %v947_v50 = vld [vmem:[%s5925_s4 + $0x1398] sm:$0xff]  ;;  %v5071_v53 = vpack.c.bf16 %v942_v47, %v938_v45  ;;  %v978_v43 = vld [vmem:[%s5925_s4 + $0x1490] sm:$0xff]  ;;  %v989_v47 = vld [vmem:[%s5925_s4 + $0x14e8] sm:$0xff] }
 0x168   : > { %v982_v45 = vld [vmem:[%s5925_s4 + $0x14b0] sm:$0xff]  ;;  %v1007_v9 = vld [vmem:[%s5925_s4 + $0x1578] sm:$0xff] }
 0x169   : > { %4252 = vmatpush1.bf16.msra.mxu0 %v4251_v56  ;;  %v948_v56 = vld [vmem:[%s5925_s4 + $0x13a0] sm:$0xff]  ;;  %v1011_v20 = vld [vmem:[%s5925_s4 + $0x1598] sm:$0xff] }
 0x16a   : > { %5052 = vmatpush1.bf16.msra.mxu1 %v5051_v57  ;;  %4254 = vmatprep.subr.bf16.mxu0 %v4253_v58  ;;  %v946_v57 = vld [vmem:[%s5925_s4 + $0x1390] sm:$0xff]  ;;  %v5073_v58 = vpack.c.bf16 %v951_v51, %v947_v50  ;;  %v4275_v0 = vpack.c.bf16 %v948_v56, %v944_v55  ;;  %v5091_v51 = vpack.c.bf16 %v982_v45, %v978_v43  ;;  %v1015_v21 = vld [vmem:[%s5925_s4 + $0x15b8] sm:$0xff]  ;;  %v1029_v43 = vld [vmem:[%s5925_s4 + $0x1628] sm:$0xff] }
 0x16b   : > { %5054 = vmatprep.subr.bf16.mxu1 %v5053_v62  ;;  %v955_v62 = vld [vmem:[%s5925_s4 + $0x13d8] sm:$0xff]  ;;  %v5075_v1 = vpack.c.bf16 %v950_v59, %v946_v57  ;;  %v986_v55 = vld [vmem:[%s5925_s4 + $0x14d0] sm:$0xff]  ;;  %v5093_v56 = vpack.c.bf16 %v991_v49, %v987_v48  ;;  %v997_v59 = vld [vmem:[%s5925_s4 + $0x1528] sm:$0xff] }
 0x16c   : > { %v990_v57 = vld [vmem:[%s5925_s4 + $0x14f0] sm:$0xff]  ;;  %v1031_v45 = vld [vmem:[%s5925_s4 + $0x1638] sm:$0xff]  ;;  %v1024_v49 = vld [vmem:[%s5925_s4 + $0x1600] sm:$0xff] }
 0x16d   : > { %4256 = vmatpush1.bf16.msra.mxu0 %v4255_v4  ;;  %v956_v4 = vld [vmem:[%s5925_s4 + $0x13e0] sm:$0xff] }
 0x16e   : > { %5056 = vmatpush1.bf16.msra.mxu1 %v5055_v5  ;;  %4258 = vmatprep.subr.bf16.mxu0 %v4257_v6  ;;  %v954_v5 = vld [vmem:[%s5925_s4 + $0x13d0] sm:$0xff]  ;;  %v5077_v6 = vpack.c.bf16 %v959_v63, %v955_v62  ;;  %v4279_v12 = vpack.c.bf16 %v956_v4, %v952_v3  ;;  %v5095_v63 = vpack.c.bf16 %v990_v57, %v986_v55  ;;  %v1037_v55 = vld [vmem:[%s5925_s4 + $0x1668] sm:$0xff]  ;;  %v1039_v57 = vld [vmem:[%s5925_s4 + $0x1678] sm:$0xff] }
 0x16f   : > { %5058 = vmatprep.subr.bf16.mxu1 %v5057_v10  ;;  %v963_v10 = vld [vmem:[%s5925_s4 + $0x1418] sm:$0xff]  ;;  %v5079_v13 = vpack.c.bf16 %v958_v7, %v954_v5  ;;  %v994_v3 = vld [vmem:[%s5925_s4 + $0x1510] sm:$0xff]  ;;  %v5097_v4 = vpack.c.bf16 %v999_v61, %v995_v60  ;;  %v1005_v7 = vld [vmem:[%s5925_s4 + $0x1568] sm:$0xff] }
 0x170   : > { %v998_v5 = vld [vmem:[%s5925_s4 + $0x1530] sm:$0xff]  ;;  %v1032_v61 = vld [vmem:[%s5925_s4 + $0x1640] sm:$0xff] }
 0x171   : > { %4260 = vmatpush1.bf16.msra.mxu0 %v4259_v16  ;;  %v964_v16 = vld [vmem:[%s5925_s4 + $0x1420] sm:$0xff] }
 0x172   : > { %5060 = vmatpush1.bf16.msra.mxu1 %v5059_v17  ;;  %4262 = vmatprep.subr.bf16.mxu0 %v4261_v18  ;;  %v962_v17 = vld [vmem:[%s5925_s4 + $0x1410] sm:$0xff]  ;;  %v5081_v18 = vpack.c.bf16 %v967_v11, %v963_v10  ;;  %v4283_v25 = vpack.c.bf16 %v964_v16, %v960_v15  ;;  %v5099_v11 = vpack.c.bf16 %v998_v5, %v994_v3  ;;  %v1045_v3 = vld [vmem:[%s5925_s4 + $0x16a8] sm:$0xff]  ;;  %v1047_v5 = vld [vmem:[%s5925_s4 + $0x16b8] sm:$0xff] }
 0x173   : > { %5062 = vmatprep.subr.bf16.mxu1 %v5061_v22  ;;  %v971_v22 = vld [vmem:[%s5925_s4 + $0x1458] sm:$0xff]  ;;  %v5083_v26 = vpack.c.bf16 %v966_v19, %v962_v17  ;;  %v1002_v15 = vld [vmem:[%s5925_s4 + $0x1550] sm:$0xff]  ;;  %v5101_v16 = vpack.c.bf16 %v1007_v9, %v1003_v8  ;;  %v1013_v19 = vld [vmem:[%s5925_s4 + $0x15a8] sm:$0xff] }
 0x174   : > { %v5085_v31 = vpack.c.bf16 %v975_v23, %v971_v22  ;;  %v1006_v17 = vld [vmem:[%s5925_s4 + $0x1570] sm:$0xff]  ;;  %v1040_v9 = vld [vmem:[%s5925_s4 + $0x1680] sm:$0xff] }
 0x175   : > { %4264 = vmatpush1.bf16.msra.mxu0 %v4263_v28  ;;  %v968_v28 = vld [vmem:[%s5925_s4 + $0x1440] sm:$0xff]  ;;  %v5103_v23 = vpack.c.bf16 %v1006_v17, %v1002_v15  ;;  %v1053_v15 = vld [vmem:[%s5925_s4 + $0x16e8] sm:$0xff]  ;;  %v1055_v17 = vld [vmem:[%s5925_s4 + $0x16f8] sm:$0xff] }
 0x176   : > { %5064 = vmatpush1.bf16.msra.mxu1 %v5063_v29  ;;  %4266 = vmatprep.subr.bf16.mxu0 %v4265_v30  ;;  %v972_v29 = vld [vmem:[%s5925_s4 + $0x1460] sm:$0xff]  ;;  %v970_v30 = vld [vmem:[%s5925_s4 + $0x1450] sm:$0xff] }
 0x177   : > { %5066 = vmatprep.subr.bf16.mxu1 %v5065_v34  ;;  %v981_v34 = vld [vmem:[%s5925_s4 + $0x14a8] sm:$0xff]  ;;  %v4287_v38 = vpack.c.bf16 %v972_v29, %v968_v28  ;;  %v5087_v39 = vpack.c.bf16 %v974_v32, %v970_v30  ;;  %v5105_v28 = vpack.c.bf16 %v1015_v21, %v1011_v20  ;;  %v1014_v29 = vld [vmem:[%s5925_s4 + $0x15b0] sm:$0xff]  ;;  %v1019_v32 = vld [vmem:[%s5925_s4 + $0x15d8] sm:$0xff] }
 0x178   : > { %v1017_v30 = vld [vmem:[%s5925_s4 + $0x15c8] sm:$0xff]  ;;  %v1048_v21 = vld [vmem:[%s5925_s4 + $0x16c0] sm:$0xff] }
 0x179   : > { %4268 = vmatpush1.bf16.msra.mxu0 %v4267_v40  ;;  %v4289_v40 = vpack.c.bf16 %v981_v34, %v977_v33  ;;  %v1023_v33 = vld [vmem:[%s5925_s4 + $0x15f8] sm:$0xff] }
 0x17a   : > { %5068 = vmatpush1.bf16.msra.mxu1 %v5067_v41  ;;  %4270 = vmatprep.subr.bf16.mxu0 %v4269_v42  ;;  %v976_v41 = vld [vmem:[%s5925_s4 + $0x1480] sm:$0xff] }
 0x17b   : > { %5070 = vmatprep.subr.bf16.mxu1 %v5069_v46  ;;  %v980_v42 = vld [vmem:[%s5925_s4 + $0x14a0] sm:$0xff]  ;;  %v985_v46 = vld [vmem:[%s5925_s4 + $0x14c8] sm:$0xff] }
 0x17c   : > { %v4291_v50 = vpack.c.bf16 %v980_v42, %v976_v41  ;;  %v1022_v41 = vld [vmem:[%s5925_s4 + $0x15f0] sm:$0xff]  ;;  %v1025_v42 = vld [vmem:[%s5925_s4 + $0x1608] sm:$0xff] }
 0x17d   : > { %4272 = vmatpush1.bf16.msra.mxu0 %v4271_v52  ;;  %v4293_v52 = vpack.c.bf16 %v989_v47, %v985_v46  ;;  %v4313_v48 = vpack.c.bf16 %v1029_v43, %v1025_v42 }
 0x17e   : > { %5072 = vmatpush1.bf16.msra.mxu1 %v5071_v53  ;;  %4274 = vmatprep.subr.bf16.mxu0 %v4273_v54  ;;  %v984_v53 = vld [vmem:[%s5925_s4 + $0x14c0] sm:$0xff] }
 0x17f   : > { %5074 = vmatprep.subr.bf16.mxu1 %v5073_v58  ;;  %v988_v54 = vld [vmem:[%s5925_s4 + $0x14e0] sm:$0xff]  ;;  %v993_v58 = vld [vmem:[%s5925_s4 + $0x1508] sm:$0xff] }
 0x180   : > { %v4295_v62 = vpack.c.bf16 %v988_v54, %v984_v53  ;;  %v1030_v53 = vld [vmem:[%s5925_s4 + $0x1630] sm:$0xff]  ;;  %v1033_v54 = vld [vmem:[%s5925_s4 + $0x1648] sm:$0xff] }
 0x181   : > { %4276 = vmatpush1.bf16.msra.mxu0 %v4275_v0  ;;  %v4297_v0 = vpack.c.bf16 %v997_v59, %v993_v58  ;;  %v4317_v60 = vpack.c.bf16 %v1037_v55, %v1033_v54 }
 0x182   : > { %5076 = vmatpush1.bf16.msra.mxu1 %v5075_v1  ;;  %4278 = vmatprep.subr.bf16.mxu0 %v4277_v2  ;;  %v992_v1 = vld [vmem:[%s5925_s4 + $0x1500] sm:$0xff] }
 0x183   : > { %5078 = vmatprep.subr.bf16.mxu1 %v5077_v6  ;;  %v996_v2 = vld [vmem:[%s5925_s4 + $0x1520] sm:$0xff]  ;;  %v1001_v6 = vld [vmem:[%s5925_s4 + $0x1548] sm:$0xff] }
 0x184   : > { %v4299_v10 = vpack.c.bf16 %v996_v2, %v992_v1  ;;  %v1038_v1 = vld [vmem:[%s5925_s4 + $0x1670] sm:$0xff]  ;;  %v1041_v2 = vld [vmem:[%s5925_s4 + $0x1688] sm:$0xff] }
 0x185   : > { %4280 = vmatpush1.bf16.msra.mxu0 %v4279_v12  ;;  %v4301_v12 = vpack.c.bf16 %v1005_v7, %v1001_v6  ;;  %v4321_v8 = vpack.c.bf16 %v1045_v3, %v1041_v2 }
 0x186   : > { %5080 = vmatpush1.bf16.msra.mxu1 %v5079_v13  ;;  %4282 = vmatprep.subr.bf16.mxu0 %v4281_v14  ;;  %v1000_v13 = vld [vmem:[%s5925_s4 + $0x1540] sm:$0xff] }
 0x187   : > { %5082 = vmatprep.subr.bf16.mxu1 %v5081_v18  ;;  %v1004_v14 = vld [vmem:[%s5925_s4 + $0x1560] sm:$0xff]  ;;  %v1009_v18 = vld [vmem:[%s5925_s4 + $0x1588] sm:$0xff] }
 0x188   : > { %2269 = vmatmul.mubr.f32.vlgmr.msra.gmra.mrb[0].mxu0 %v303_v24  ;;  %v4303_v22 = vpack.c.bf16 %v1004_v14, %v1000_v13  ;;  %v1046_v13 = vld [vmem:[%s5925_s4 + $0x16b0] sm:$0xff]  ;;  %v1049_v14 = vld [vmem:[%s5925_s4 + $0x16c8] sm:$0xff] }
 0x189   : > { %4284 = vmatpush1.bf16.msra.mxu0 %v4283_v25  ;;  %3192 = vmatmul.mubr.f32.vlgmr.msra.gmra.mrb[0].mxu1 %v303_v24  ;;  %v4305_v24 = vpack.c.bf16 %v1013_v19, %v1009_v18  ;;  %v1008_v25 = vld [vmem:[%s5925_s4 + $0x1580] sm:$0xff]  ;;  %v4325_v20 = vpack.c.bf16 %v1053_v15, %v1049_v14 }
 0x18a   : > { %5084 = vmatpush1.bf16.msra.mxu1 %v5083_v26  ;;  %4286 = vmatprep.subr.bf16.mxu0 %v4285_v27  ;;  %v1012_v26 = vld [vmem:[%s5925_s4 + $0x15a0] sm:$0xff]  ;;  %v1010_v27 = vld [vmem:[%s5925_s4 + $0x1590] sm:$0xff] }
 0x18b   : > { %5086 = vmatprep.subr.bf16.mxu1 %v5085_v31  ;;  %2339 = vmatprep.mubr.f32.mxu0 %v306_v37  ;;  %v1021_v31 = vld [vmem:[%s5925_s4 + $0x15e8] sm:$0xff]  ;;  %v4307_v34 = vpack.c.bf16 %v1012_v26, %v1008_v25  ;;  %v5107_v35 = vpack.c.bf16 %v1014_v29, %v1010_v27  ;;  %v1054_v25 = vld [vmem:[%s5925_s4 + $0x16f0] sm:$0xff]  ;;  %v1063_v29 = vld [vmem:[%s5925_s4 + $0x1738] sm:$0xff] }
 0x18c   : > { %3262 = vmatprep.mubr.f32.mxu1 %v306_v37  ;;  %v4309_v36 = vpack.c.bf16 %v1021_v31, %v1017_v30  ;;  %v1016_v37 = vld [vmem:[%s5925_s4 + $0x15c0] sm:$0xff]  ;;  %v1057_v26 = vld [vmem:[%s5925_s4 + $0x1708] sm:$0xff] }
 0x18d   : > { %4288 = vmatpush1.bf16.msra.mxu0 %v4287_v38  ;;  %v1020_v38 = vld [vmem:[%s5925_s4 + $0x15e0] sm:$0xff]  ;;  %v1061_v27 = vld [vmem:[%s5925_s4 + $0x1728] sm:$0xff] }
 0x18e   : > { %5088 = vmatpush1.bf16.msra.mxu1 %v5087_v39  ;;  %4290 = vmatprep.subr.bf16.mxu0 %v4289_v40  ;;  %v1018_v39 = vld [vmem:[%s5925_s4 + $0x15d0] sm:$0xff]  ;;  %v5109_v40 = vpack.c.bf16 %v1023_v33, %v1019_v32  ;;  %v4311_v46 = vpack.c.bf16 %v1020_v38, %v1016_v37  ;;  %v4329_v32 = vpack.c.bf16 %v1061_v27, %v1057_v26  ;;  %v1056_v33 = vld [vmem:[%s5925_s4 + $0x1700] sm:$0xff]  ;;  %v1065_v38 = vld [vmem:[%s5925_s4 + $0x1748] sm:$0xff] }
 0x18f   : > { %5090 = vmatprep.subr.bf16.mxu1 %v5089_v44  ;;  %v1027_v44 = vld [vmem:[%s5925_s4 + $0x1618] sm:$0xff]  ;;  %v5111_v47 = vpack.c.bf16 %v1022_v41, %v1018_v39  ;;  %v1062_v37 = vld [vmem:[%s5925_s4 + $0x1730] sm:$0xff]  ;;  %v1069_v39 = vld [vmem:[%s5925_s4 + $0x1768] sm:$0xff] }
 0x190   : > { %v1071_v41 = vld [vmem:[%s5925_s4 + $0x1778] sm:$0xff]  ;;  %v305_v26 = vld [vmem:[%s5948_s20 + $0x50] sm:$0xff] }
 0x191   : > { %4292 = vmatpush1.bf16.msra.mxu0 %v4291_v50  ;;  %v1028_v50 = vld [vmem:[%s5925_s4 + $0x1620] sm:$0xff] }
 0x192   : > { %5092 = vmatpush1.bf16.msra.mxu1 %v5091_v51  ;;  %4294 = vmatprep.subr.bf16.mxu0 %v4293_v52  ;;  %v1026_v51 = vld [vmem:[%s5925_s4 + $0x1610] sm:$0xff]  ;;  %v5113_v52 = vpack.c.bf16 %v1031_v45, %v1027_v44  ;;  %v4315_v58 = vpack.c.bf16 %v1028_v50, %v1024_v49  ;;  %v4333_v44 = vpack.c.bf16 %v1069_v39, %v1065_v38  ;;  %v1064_v45 = vld [vmem:[%s5925_s4 + $0x1740] sm:$0xff]  ;;  %v1073_v50 = vld [vmem:[%s5925_s4 + $0x1788] sm:$0xff] }
 0x193   : > { %5094 = vmatprep.subr.bf16.mxu1 %v5093_v56  ;;  %v1035_v56 = vld [vmem:[%s5925_s4 + $0x1658] sm:$0xff]  ;;  %v5115_v59 = vpack.c.bf16 %v1030_v53, %v1026_v51  ;;  %v1070_v49 = vld [vmem:[%s5925_s4 + $0x1770] sm:$0xff]  ;;  %v1077_v51 = vld [vmem:[%s5925_s4 + $0x17a8] sm:$0xff] }
 0x194   : > { %v1079_v53 = vld [vmem:[%s5925_s4 + $0x17b8] sm:$0xff]  ;;  %v308_v39 = vld [vmem:[%s5948_s20 + $0x68] sm:$0xff] }
 0x195   : > { %4296 = vmatpush1.bf16.msra.mxu0 %v4295_v62  ;;  %v1036_v62 = vld [vmem:[%s5925_s4 + $0x1660] sm:$0xff]  ;;  %v1111_v38 = vld [vmem:[%s5925_s4 + $0x18b8] sm:$0xff] }
 0x196   : > { %5096 = vmatpush1.bf16.msra.mxu1 %v5095_v63  ;;  %4298 = vmatprep.subr.bf16.mxu0 %v4297_v0  ;;  %v1034_v63 = vld [vmem:[%s5925_s4 + $0x1650] sm:$0xff]  ;;  %v5117_v0 = vpack.c.bf16 %v1039_v57, %v1035_v56  ;;  %v4319_v6 = vpack.c.bf16 %v1036_v62, %v1032_v61  ;;  %v4337_v56 = vpack.c.bf16 %v1077_v51, %v1073_v50  ;;  %v1072_v57 = vld [vmem:[%s5925_s4 + $0x1780] sm:$0xff]  ;;  %v1081_v62 = vld [vmem:[%s5925_s4 + $0x17c8] sm:$0xff] }
 0x197   : > { %5098 = vmatprep.subr.bf16.mxu1 %v5097_v4  ;;  %v1043_v4 = vld [vmem:[%s5925_s4 + $0x1698] sm:$0xff]  ;;  %v5119_v7 = vpack.c.bf16 %v1038_v1, %v1034_v63  ;;  %v1078_v61 = vld [vmem:[%s5925_s4 + $0x17b0] sm:$0xff]  ;;  %v1085_v63 = vld [vmem:[%s5925_s4 + $0x17e8] sm:$0xff] }
 0x198   : > { %v1087_v1 = vld [vmem:[%s5925_s4 + $0x17f8] sm:$0xff] }
 0x199   : > { %4300 = vmatpush1.bf16.msra.mxu0 %v4299_v10  ;;  %v1044_v10 = vld [vmem:[%s5925_s4 + $0x16a0] sm:$0xff]  ;;  %v1115_v50 = vld [vmem:[%s5925_s4 + $0x18d8] sm:$0xff] }
 0x19a   : > { %5100 = vmatpush1.bf16.msra.mxu1 %v5099_v11  ;;  %4302 = vmatprep.subr.bf16.mxu0 %v4301_v12  ;;  %v1042_v11 = vld [vmem:[%s5925_s4 + $0x1690] sm:$0xff]  ;;  %v5121_v12 = vpack.c.bf16 %v1047_v5, %v1043_v4  ;;  %v4323_v18 = vpack.c.bf16 %v1044_v10, %v1040_v9  ;;  %v4341_v4 = vpack.c.bf16 %v1085_v63, %v1081_v62  ;;  %v1080_v5 = vld [vmem:[%s5925_s4 + $0x17c0] sm:$0xff]  ;;  %v1089_v10 = vld [vmem:[%s5925_s4 + $0x1808] sm:$0xff] }
 0x19b   : > { %5102 = vmatprep.subr.bf16.mxu1 %v5101_v16  ;;  %v1051_v16 = vld [vmem:[%s5925_s4 + $0x16d8] sm:$0xff]  ;;  %v5123_v19 = vpack.c.bf16 %v1046_v13, %v1042_v11  ;;  %v1086_v9 = vld [vmem:[%s5925_s4 + $0x17f0] sm:$0xff]  ;;  %v1093_v11 = vld [vmem:[%s5925_s4 + $0x1828] sm:$0xff] }
 0x19c   : > { %v1095_v13 = vld [vmem:[%s5925_s4 + $0x1838] sm:$0xff] }
 0x19d   : > { %4304 = vmatpush1.bf16.msra.mxu0 %v4303_v22  ;;  %v1052_v22 = vld [vmem:[%s5925_s4 + $0x16e0] sm:$0xff]  ;;  %v1119_v51 = vld [vmem:[%s5925_s4 + $0x18f8] sm:$0xff] }
 0x19e   : > { %5104 = vmatpush1.bf16.msra.mxu1 %v5103_v23  ;;  %4306 = vmatprep.subr.bf16.mxu0 %v4305_v24  ;;  %v1050_v23 = vld [vmem:[%s5925_s4 + $0x16d0] sm:$0xff]  ;;  %v5125_v24 = vpack.c.bf16 %v1055_v17, %v1051_v16  ;;  %v4327_v30 = vpack.c.bf16 %v1052_v22, %v1048_v21  ;;  %v4345_v16 = vpack.c.bf16 %v1093_v11, %v1089_v10  ;;  %v1088_v17 = vld [vmem:[%s5925_s4 + $0x1800] sm:$0xff]  ;;  %v1097_v22 = vld [vmem:[%s5925_s4 + $0x1848] sm:$0xff] }
 0x19f   : > { %5106 = vmatprep.subr.bf16.mxu1 %v5105_v28  ;;  %v1059_v28 = vld [vmem:[%s5925_s4 + $0x1718] sm:$0xff]  ;;  %v5127_v31 = vpack.c.bf16 %v1054_v25, %v1050_v23  ;;  %v1094_v21 = vld [vmem:[%s5925_s4 + $0x1830] sm:$0xff]  ;;  %v1101_v23 = vld [vmem:[%s5925_s4 + $0x1868] sm:$0xff] }
 0x1a0   : > { %v1103_v25 = vld [vmem:[%s5925_s4 + $0x1878] sm:$0xff] }
 0x1a1   : > { %4308 = vmatpush1.bf16.msra.mxu0 %v4307_v34  ;;  %v1060_v34 = vld [vmem:[%s5925_s4 + $0x1720] sm:$0xff]  ;;  %v1123_v62 = vld [vmem:[%s5925_s4 + $0x1918] sm:$0xff] }
 0x1a2   : > { %5108 = vmatpush1.bf16.msra.mxu1 %v5107_v35  ;;  %4310 = vmatprep.subr.bf16.mxu0 %v4309_v36  ;;  %v1058_v35 = vld [vmem:[%s5925_s4 + $0x1710] sm:$0xff]  ;;  %v5129_v36 = vpack.c.bf16 %v1063_v29, %v1059_v28  ;;  %v4331_v42 = vpack.c.bf16 %v1060_v34, %v1056_v33  ;;  %v4349_v29 = vpack.c.bf16 %v1101_v23, %v1097_v22  ;;  %v1127_v63 = vld [vmem:[%s5925_s4 + $0x1938] sm:$0xff] }
 0x1a3   : > { %5110 = vmatprep.subr.bf16.mxu1 %v5109_v40  ;;  %v1067_v40 = vld [vmem:[%s5925_s4 + $0x1758] sm:$0xff]  ;;  %v5131_v43 = vpack.c.bf16 %v1062_v37, %v1058_v35  ;;  %v1102_v34 = vld [vmem:[%s5925_s4 + $0x1870] sm:$0xff]  ;;  %v1105_v35 = vld [vmem:[%s5925_s4 + $0x1888] sm:$0xff] }
 0x1a4   : > { %v1107_v37 = vld [vmem:[%s5925_s4 + $0x1898] sm:$0xff] }
 0x1a5   : > { %4312 = vmatpush1.bf16.msra.mxu0 %v4311_v46  ;;  %v1068_v46 = vld [vmem:[%s5925_s4 + $0x1760] sm:$0xff]  ;;  %v1131_v10 = vld [vmem:[%s5925_s4 + $0x1958] sm:$0xff] }
 0x1a6   : > { %5112 = vmatpush1.bf16.msra.mxu1 %v5111_v47  ;;  %4314 = vmatprep.subr.bf16.mxu0 %v4313_v48  ;;  %v1066_v47 = vld [vmem:[%s5925_s4 + $0x1750] sm:$0xff]  ;;  %v5133_v48 = vpack.c.bf16 %v1071_v41, %v1067_v40  ;;  %v4335_v54 = vpack.c.bf16 %v1068_v46, %v1064_v45  ;;  %v5153_v46 = vpack.c.bf16 %v1111_v38, %v1107_v37  ;;  %v1135_v11 = vld [vmem:[%s5925_s4 + $0x1978] sm:$0xff] }
 0x1a7   : > { %5114 = vmatprep.subr.bf16.mxu1 %v5113_v52  ;;  %v1075_v52 = vld [vmem:[%s5925_s4 + $0x1798] sm:$0xff]  ;;  %v5135_v55 = vpack.c.bf16 %v1070_v49, %v1066_v47  ;;  %v1106_v45 = vld [vmem:[%s5925_s4 + $0x1890] sm:$0xff]  ;;  %v1117_v49 = vld [vmem:[%s5925_s4 + $0x18e8] sm:$0xff] }
 0x1a8   : > { %v1110_v47 = vld [vmem:[%s5925_s4 + $0x18b0] sm:$0xff]  ;;  %v1139_v22 = vld [vmem:[%s5925_s4 + $0x1998] sm:$0xff] }
 0x1a9   : > { %4316 = vmatpush1.bf16.msra.mxu0 %v4315_v58  ;;  %v1076_v58 = vld [vmem:[%s5925_s4 + $0x17a0] sm:$0xff]  ;;  %v1143_v23 = vld [vmem:[%s5925_s4 + $0x19b8] sm:$0xff] }
 0x1aa   : > { %5116 = vmatpush1.bf16.msra.mxu1 %v5115_v59  ;;  %4318 = vmatprep.subr.bf16.mxu0 %v4317_v60  ;;  %v1074_v59 = vld [vmem:[%s5925_s4 + $0x1790] sm:$0xff]  ;;  %v5137_v60 = vpack.c.bf16 %v1079_v53, %v1075_v52  ;;  %v4339_v2 = vpack.c.bf16 %v1076_v58, %v1072_v57  ;;  %v5155_v53 = vpack.c.bf16 %v1110_v47, %v1106_v45  ;;  %v1157_v45 = vld [vmem:[%s5925_s4 + $0x1a28] sm:$0xff]  ;;  %v1159_v47 = vld [vmem:[%s5925_s4 + $0x1a38] sm:$0xff] }
 0x1ab   : > { %5118 = vmatprep.subr.bf16.mxu1 %v5117_v0  ;;  %v1083_v0 = vld [vmem:[%s5925_s4 + $0x17d8] sm:$0xff]  ;;  %v5139_v3 = vpack.c.bf16 %v1078_v61, %v1074_v59  ;;  %v1114_v57 = vld [vmem:[%s5925_s4 + $0x18d0] sm:$0xff]  ;;  %v5157_v58 = vpack.c.bf16 %v1119_v51, %v1115_v50  ;;  %v1125_v61 = vld [vmem:[%s5925_s4 + $0x1928] sm:$0xff] }
 0x1ac   : > { %v1118_v59 = vld [vmem:[%s5925_s4 + $0x18f0] sm:$0xff]  ;;  %v1152_v51 = vld [vmem:[%s5925_s4 + $0x1a00] sm:$0xff] }
 0x1ad   : > { %4320 = vmatpush1.bf16.msra.mxu0 %v4319_v6  ;;  %v1084_v6 = vld [vmem:[%s5925_s4 + $0x17e0] sm:$0xff] }
 0x1ae   : > { %5120 = vmatpush1.bf16.msra.mxu1 %v5119_v7  ;;  %4322 = vmatprep.subr.bf16.mxu0 %v4321_v8  ;;  %v1082_v7 = vld [vmem:[%s5925_s4 + $0x17d0] sm:$0xff]  ;;  %v5141_v8 = vpack.c.bf16 %v1087_v1, %v1083_v0  ;;  %v4343_v14 = vpack.c.bf16 %v1084_v6, %v1080_v5  ;;  %v5159_v1 = vpack.c.bf16 %v1118_v59, %v1114_v57  ;;  %v1165_v57 = vld [vmem:[%s5925_s4 + $0x1a68] sm:$0xff]  ;;  %v1167_v59 = vld [vmem:[%s5925_s4 + $0x1a78] sm:$0xff] }
 0x1af   : > { %5122 = vmatprep.subr.bf16.mxu1 %v5121_v12  ;;  %v1091_v12 = vld [vmem:[%s5925_s4 + $0x1818] sm:$0xff]  ;;  %v5143_v15 = vpack.c.bf16 %v1086_v9, %v1082_v7  ;;  %v1122_v5 = vld [vmem:[%s5925_s4 + $0x1910] sm:$0xff]  ;;  %v5161_v6 = vpack.c.bf16 %v1127_v63, %v1123_v62  ;;  %v1133_v9 = vld [vmem:[%s5925_s4 + $0x1968] sm:$0xff] }
 0x1b0   : > { %v1126_v7 = vld [vmem:[%s5925_s4 + $0x1930] sm:$0xff]  ;;  %v1160_v63 = vld [vmem:[%s5925_s4 + $0x1a40] sm:$0xff] }
 0x1b1   : > { %4324 = vmatpush1.bf16.msra.mxu0 %v4323_v18  ;;  %v1092_v18 = vld [vmem:[%s5925_s4 + $0x1820] sm:$0xff] }
 0x1b2   : > { %5124 = vmatpush1.bf16.msra.mxu1 %v5123_v19  ;;  %4326 = vmatprep.subr.bf16.mxu0 %v4325_v20  ;;  %v1090_v19 = vld [vmem:[%s5925_s4 + $0x1810] sm:$0xff]  ;;  %v5145_v20 = vpack.c.bf16 %v1095_v13, %v1091_v12  ;;  %v4347_v27 = vpack.c.bf16 %v1092_v18, %v1088_v17  ;;  %v5163_v13 = vpack.c.bf16 %v1126_v7, %v1122_v5  ;;  %v1173_v5 = vld [vmem:[%s5925_s4 + $0x1aa8] sm:$0xff]  ;;  %v1175_v7 = vld [vmem:[%s5925_s4 + $0x1ab8] sm:$0xff] }
 0x1b3   : > { %5126 = vmatprep.subr.bf16.mxu1 %v5125_v24  ;;  %v1099_v24 = vld [vmem:[%s5925_s4 + $0x1858] sm:$0xff]  ;;  %v5147_v28 = vpack.c.bf16 %v1094_v21, %v1090_v19  ;;  %v1130_v17 = vld [vmem:[%s5925_s4 + $0x1950] sm:$0xff]  ;;  %v5165_v18 = vpack.c.bf16 %v1135_v11, %v1131_v10  ;;  %v1141_v21 = vld [vmem:[%s5925_s4 + $0x19a8] sm:$0xff] }
 0x1b4   : > { %v5149_v33 = vpack.c.bf16 %v1103_v25, %v1099_v24  ;;  %v1134_v19 = vld [vmem:[%s5925_s4 + $0x1970] sm:$0xff]  ;;  %v1168_v11 = vld [vmem:[%s5925_s4 + $0x1a80] sm:$0xff] }
 0x1b5   : > { %4328 = vmatpush1.bf16.msra.mxu0 %v4327_v30  ;;  %v1096_v30 = vld [vmem:[%s5925_s4 + $0x1840] sm:$0xff]  ;;  %v5167_v25 = vpack.c.bf16 %v1134_v19, %v1130_v17  ;;  %v1181_v17 = vld [vmem:[%s5925_s4 + $0x1ae8] sm:$0xff]  ;;  %v1183_v19 = vld [vmem:[%s5925_s4 + $0x1af8] sm:$0xff] }
 0x1b6   : > { %5128 = vmatpush1.bf16.msra.mxu1 %v5127_v31  ;;  %4330 = vmatprep.subr.bf16.mxu0 %v4329_v32  ;;  %v1100_v31 = vld [vmem:[%s5925_s4 + $0x1860] sm:$0xff]  ;;  %v1098_v32 = vld [vmem:[%s5925_s4 + $0x1850] sm:$0xff] }
 0x1b7   : > { %5130 = vmatprep.subr.bf16.mxu1 %v5129_v36  ;;  %v1109_v36 = vld [vmem:[%s5925_s4 + $0x18a8] sm:$0xff]  ;;  %v4351_v40 = vpack.c.bf16 %v1100_v31, %v1096_v30  ;;  %v5151_v41 = vpack.c.bf16 %v1102_v34, %v1098_v32  ;;  %v5169_v30 = vpack.c.bf16 %v1143_v23, %v1139_v22  ;;  %v1142_v31 = vld [vmem:[%s5925_s4 + $0x19b0] sm:$0xff]  ;;  %v1147_v34 = vld [vmem:[%s5925_s4 + $0x19d8] sm:$0xff] }
 0x1b8   : > { %v1145_v32 = vld [vmem:[%s5925_s4 + $0x19c8] sm:$0xff]  ;;  %v1176_v23 = vld [vmem:[%s5925_s4 + $0x1ac0] sm:$0xff] }
 0x1b9   : > { %4332 = vmatpush1.bf16.msra.mxu0 %v4331_v42  ;;  %v4353_v42 = vpack.c.bf16 %v1109_v36, %v1105_v35  ;;  %v1151_v35 = vld [vmem:[%s5925_s4 + $0x19f8] sm:$0xff] }
 0x1ba   : > { %5132 = vmatpush1.bf16.msra.mxu1 %v5131_v43  ;;  %4334 = vmatprep.subr.bf16.mxu0 %v4333_v44  ;;  %v1104_v43 = vld [vmem:[%s5925_s4 + $0x1880] sm:$0xff] }
 0x1bb   : > { %5134 = vmatprep.subr.bf16.mxu1 %v5133_v48  ;;  %v1108_v44 = vld [vmem:[%s5925_s4 + $0x18a0] sm:$0xff]  ;;  %v1113_v48 = vld [vmem:[%s5925_s4 + $0x18c8] sm:$0xff] }
 0x1bc   : > { %v4355_v52 = vpack.c.bf16 %v1108_v44, %v1104_v43  ;;  %v1150_v43 = vld [vmem:[%s5925_s4 + $0x19f0] sm:$0xff]  ;;  %v1153_v44 = vld [vmem:[%s5925_s4 + $0x1a08] sm:$0xff] }
 0x1bd   : > { %4336 = vmatpush1.bf16.msra.mxu0 %v4335_v54  ;;  %v4357_v54 = vpack.c.bf16 %v1117_v49, %v1113_v48  ;;  %v4377_v50 = vpack.c.bf16 %v1157_v45, %v1153_v44 }
 0x1be   : > { %5136 = vmatpush1.bf16.msra.mxu1 %v5135_v55  ;;  %4338 = vmatprep.subr.bf16.mxu0 %v4337_v56  ;;  %v1112_v55 = vld [vmem:[%s5925_s4 + $0x18c0] sm:$0xff] }
 0x1bf   : > { %5138 = vmatprep.subr.bf16.mxu1 %v5137_v60  ;;  %v1116_v56 = vld [vmem:[%s5925_s4 + $0x18e0] sm:$0xff]  ;;  %v1121_v60 = vld [vmem:[%s5925_s4 + $0x1908] sm:$0xff] }
 0x1c0   : > { %v4359_v0 = vpack.c.bf16 %v1116_v56, %v1112_v55  ;;  %v1158_v55 = vld [vmem:[%s5925_s4 + $0x1a30] sm:$0xff]  ;;  %v1161_v56 = vld [vmem:[%s5925_s4 + $0x1a48] sm:$0xff] }
 0x1c1   : > { %4340 = vmatpush1.bf16.msra.mxu0 %v4339_v2  ;;  %v4361_v2 = vpack.c.bf16 %v1125_v61, %v1121_v60  ;;  %v4381_v62 = vpack.c.bf16 %v1165_v57, %v1161_v56 }
 0x1c2   : > { %5140 = vmatpush1.bf16.msra.mxu1 %v5139_v3  ;;  %4342 = vmatprep.subr.bf16.mxu0 %v4341_v4  ;;  %v1120_v3 = vld [vmem:[%s5925_s4 + $0x1900] sm:$0xff] }
 0x1c3   : > { %5142 = vmatprep.subr.bf16.mxu1 %v5141_v8  ;;  %v1124_v4 = vld [vmem:[%s5925_s4 + $0x1920] sm:$0xff]  ;;  %v1129_v8 = vld [vmem:[%s5925_s4 + $0x1948] sm:$0xff] }
 0x1c4   : > { %v4363_v12 = vpack.c.bf16 %v1124_v4, %v1120_v3  ;;  %v1166_v3 = vld [vmem:[%s5925_s4 + $0x1a70] sm:$0xff]  ;;  %v1169_v4 = vld [vmem:[%s5925_s4 + $0x1a88] sm:$0xff] }
 0x1c5   : > { %4344 = vmatpush1.bf16.msra.mxu0 %v4343_v14  ;;  %v4365_v14 = vpack.c.bf16 %v1133_v9, %v1129_v8  ;;  %v4385_v10 = vpack.c.bf16 %v1173_v5, %v1169_v4 }
 0x1c6   : > { %5144 = vmatpush1.bf16.msra.mxu1 %v5143_v15  ;;  %4346 = vmatprep.subr.bf16.mxu0 %v4345_v16  ;;  %v1128_v15 = vld [vmem:[%s5925_s4 + $0x1940] sm:$0xff] }
 0x1c7   : > { %5146 = vmatprep.subr.bf16.mxu1 %v5145_v20  ;;  %v1132_v16 = vld [vmem:[%s5925_s4 + $0x1960] sm:$0xff]  ;;  %v1137_v20 = vld [vmem:[%s5925_s4 + $0x1988] sm:$0xff] }
 0x1c8   : > { %2340 = vmatmul.mubr.f32.vlgmr.msra.gmra.mrb[0].mxu0 %v305_v26  ;;  %v4367_v24 = vpack.c.bf16 %v1132_v16, %v1128_v15  ;;  %v1174_v15 = vld [vmem:[%s5925_s4 + $0x1ab0] sm:$0xff]  ;;  %v1177_v16 = vld [vmem:[%s5925_s4 + $0x1ac8] sm:$0xff] }
 0x1c9   : > { %4348 = vmatpush1.bf16.msra.mxu0 %v4347_v27  ;;  %3263 = vmatmul.mubr.f32.vlgmr.msra.gmra.mrb[0].mxu1 %v305_v26  ;;  %v4369_v26 = vpack.c.bf16 %v1141_v21, %v1137_v20  ;;  %v1136_v27 = vld [vmem:[%s5925_s4 + $0x1980] sm:$0xff]  ;;  %v4389_v22 = vpack.c.bf16 %v1181_v17, %v1177_v16 }
 0x1ca   : > { %5148 = vmatpush1.bf16.msra.mxu1 %v5147_v28  ;;  %4350 = vmatprep.subr.bf16.mxu0 %v4349_v29  ;;  %v1140_v28 = vld [vmem:[%s5925_s4 + $0x19a0] sm:$0xff]  ;;  %v1138_v29 = vld [vmem:[%s5925_s4 + $0x1990] sm:$0xff] }
 0x1cb   : > { %5150 = vmatprep.subr.bf16.mxu1 %v5149_v33  ;;  %2410 = vmatprep.mubr.f32.mxu0 %v308_v39  ;;  %v1149_v33 = vld [vmem:[%s5925_s4 + $0x19e8] sm:$0xff]  ;;  %v4371_v36 = vpack.c.bf16 %v1140_v28, %v1136_v27  ;;  %v5171_v37 = vpack.c.bf16 %v1142_v31, %v1138_v29  ;;  %v1182_v27 = vld [vmem:[%s5925_s4 + $0x1af0] sm:$0xff]  ;;  %v1191_v31 = vld [vmem:[%s5925_s4 + $0x1b38] sm:$0xff] }
 0x1cc   : > { %3333 = vmatprep.mubr.f32.mxu1 %v308_v39  ;;  %v4373_v38 = vpack.c.bf16 %v1149_v33, %v1145_v32  ;;  %v1144_v39 = vld [vmem:[%s5925_s4 + $0x19c0] sm:$0xff]  ;;  %v1185_v28 = vld [vmem:[%s5925_s4 + $0x1b08] sm:$0xff] }
 0x1cd   : > { %4352 = vmatpush1.bf16.msra.mxu0 %v4351_v40  ;;  %v1148_v40 = vld [vmem:[%s5925_s4 + $0x19e0] sm:$0xff]  ;;  %v1189_v29 = vld [vmem:[%s5925_s4 + $0x1b28] sm:$0xff] }
 0x1ce   : > { %5152 = vmatpush1.bf16.msra.mxu1 %v5151_v41  ;;  %4354 = vmatprep.subr.bf16.mxu0 %v4353_v42  ;;  %v1146_v41 = vld [vmem:[%s5925_s4 + $0x19d0] sm:$0xff]  ;;  %v5173_v42 = vpack.c.bf16 %v1151_v35, %v1147_v34  ;;  %v4375_v48 = vpack.c.bf16 %v1148_v40, %v1144_v39  ;;  %v4393_v34 = vpack.c.bf16 %v1189_v29, %v1185_v28  ;;  %v1184_v35 = vld [vmem:[%s5925_s4 + $0x1b00] sm:$0xff]  ;;  %v1193_v40 = vld [vmem:[%s5925_s4 + $0x1b48] sm:$0xff] }
 0x1cf   : > { %5154 = vmatprep.subr.bf16.mxu1 %v5153_v46  ;;  %v1155_v46 = vld [vmem:[%s5925_s4 + $0x1a18] sm:$0xff]  ;;  %v5175_v49 = vpack.c.bf16 %v1150_v43, %v1146_v41  ;;  %v1190_v39 = vld [vmem:[%s5925_s4 + $0x1b30] sm:$0xff]  ;;  %v1197_v41 = vld [vmem:[%s5925_s4 + $0x1b68] sm:$0xff] }
 0x1d0   : > { %v1199_v43 = vld [vmem:[%s5925_s4 + $0x1b78] sm:$0xff]  ;;  %v307_v28 = vld [vmem:[%s5948_s20 + $0x60] sm:$0xff] }
 0x1d1   : > { %4356 = vmatpush1.bf16.msra.mxu0 %v4355_v52  ;;  %v1156_v52 = vld [vmem:[%s5925_s4 + $0x1a20] sm:$0xff] }
 0x1d2   : > { %5156 = vmatpush1.bf16.msra.mxu1 %v5155_v53  ;;  %4358 = vmatprep.subr.bf16.mxu0 %v4357_v54  ;;  %v1154_v53 = vld [vmem:[%s5925_s4 + $0x1a10] sm:$0xff]  ;;  %v5177_v54 = vpack.c.bf16 %v1159_v47, %v1155_v46  ;;  %v4379_v60 = vpack.c.bf16 %v1156_v52, %v1152_v51  ;;  %v4397_v46 = vpack.c.bf16 %v1197_v41, %v1193_v40  ;;  %v1192_v47 = vld [vmem:[%s5925_s4 + $0x1b40] sm:$0xff]  ;;  %v1201_v52 = vld [vmem:[%s5925_s4 + $0x1b88] sm:$0xff] }
 0x1d3   : > { %5158 = vmatprep.subr.bf16.mxu1 %v5157_v58  ;;  %v1163_v58 = vld [vmem:[%s5925_s4 + $0x1a58] sm:$0xff]  ;;  %v5179_v61 = vpack.c.bf16 %v1158_v55, %v1154_v53  ;;  %v1198_v51 = vld [vmem:[%s5925_s4 + $0x1b70] sm:$0xff]  ;;  %v1205_v53 = vld [vmem:[%s5925_s4 + $0x1ba8] sm:$0xff] }
 0x1d4   : > { %v1207_v55 = vld [vmem:[%s5925_s4 + $0x1bb8] sm:$0xff] }
 0x1d5   : > { %4360 = vmatpush1.bf16.msra.mxu0 %v4359_v0  ;;  %v1164_v0 = vld [vmem:[%s5925_s4 + $0x1a60] sm:$0xff]  ;;  %v1239_v40 = vld [vmem:[%s5925_s4 + $0x1cb8] sm:$0xff] }
 0x1d6   : > { %5160 = vmatpush1.bf16.msra.mxu1 %v5159_v1  ;;  %4362 = vmatprep.subr.bf16.mxu0 %v4361_v2  ;;  %v1162_v1 = vld [vmem:[%s5925_s4 + $0x1a50] sm:$0xff]  ;;  %v5181_v2 = vpack.c.bf16 %v1167_v59, %v1163_v58  ;;  %v4383_v8 = vpack.c.bf16 %v1164_v0, %v1160_v63  ;;  %v4401_v58 = vpack.c.bf16 %v1205_v53, %v1201_v52  ;;  %v1200_v59 = vld [vmem:[%s5925_s4 + $0x1b80] sm:$0xff]  ;;  %v1209_v0 = vld [vmem:[%s5925_s4 + $0x1bc8] sm:$0xff] }
 0x1d7   : > { %5162 = vmatprep.subr.bf16.mxu1 %v5161_v6  ;;  %v1171_v6 = vld [vmem:[%s5925_s4 + $0x1a98] sm:$0xff]  ;;  %v5183_v9 = vpack.c.bf16 %v1166_v3, %v1162_v1  ;;  %v1206_v63 = vld [vmem:[%s5925_s4 + $0x1bb0] sm:$0xff]  ;;  %v1213_v1 = vld [vmem:[%s5925_s4 + $0x1be8] sm:$0xff] }
 0x1d8   : > { %v1215_v3 = vld [vmem:[%s5925_s4 + $0x1bf8] sm:$0xff] }
 0x1d9   : > { %4364 = vmatpush1.bf16.msra.mxu0 %v4363_v12  ;;  %v1172_v12 = vld [vmem:[%s5925_s4 + $0x1aa0] sm:$0xff]  ;;  %v310_v41 = vld [vmem:[%s5948_s20 + $0x78] sm:$0xff] }
 0x1da   : > { %5164 = vmatpush1.bf16.msra.mxu1 %v5163_v13  ;;  %4366 = vmatprep.subr.bf16.mxu0 %v4365_v14  ;;  %v1170_v13 = vld [vmem:[%s5925_s4 + $0x1a90] sm:$0xff]  ;;  %v5185_v14 = vpack.c.bf16 %v1175_v7, %v1171_v6  ;;  %v4387_v20 = vpack.c.bf16 %v1172_v12, %v1168_v11  ;;  %v4405_v6 = vpack.c.bf16 %v1213_v1, %v1209_v0  ;;  %v1208_v7 = vld [vmem:[%s5925_s4 + $0x1bc0] sm:$0xff]  ;;  %v1217_v12 = vld [vmem:[%s5925_s4 + $0x1c08] sm:$0xff] }
 0x1db   : > { %5166 = vmatprep.subr.bf16.mxu1 %v5165_v18  ;;  %v1179_v18 = vld [vmem:[%s5925_s4 + $0x1ad8] sm:$0xff]  ;;  %v5187_v21 = vpack.c.bf16 %v1174_v15, %v1170_v13  ;;  %v1214_v11 = vld [vmem:[%s5925_s4 + $0x1bf0] sm:$0xff]  ;;  %v1221_v13 = vld [vmem:[%s5925_s4 + $0x1c28] sm:$0xff] }
 0x1dc   : > { %v1223_v15 = vld [vmem:[%s5925_s4 + $0x1c38] sm:$0xff] }
 0x1dd   : > { %4368 = vmatpush1.bf16.msra.mxu0 %v4367_v24  ;;  %v1180_v24 = vld [vmem:[%s5925_s4 + $0x1ae0] sm:$0xff]  ;;  %v1243_v52 = vld [vmem:[%s5925_s4 + $0x1cd8] sm:$0xff] }
 0x1de   : > { %5168 = vmatpush1.bf16.msra.mxu1 %v5167_v25  ;;  %4370 = vmatprep.subr.bf16.mxu0 %v4369_v26  ;;  %v1178_v25 = vld [vmem:[%s5925_s4 + $0x1ad0] sm:$0xff]  ;;  %v5189_v26 = vpack.c.bf16 %v1183_v19, %v1179_v18  ;;  %v4391_v32 = vpack.c.bf16 %v1180_v24, %v1176_v23  ;;  %v4409_v18 = vpack.c.bf16 %v1221_v13, %v1217_v12  ;;  %v1216_v19 = vld [vmem:[%s5925_s4 + $0x1c00] sm:$0xff]  ;;  %v1225_v24 = vld [vmem:[%s5925_s4 + $0x1c48] sm:$0xff] }
 0x1df   : > { %5170 = vmatprep.subr.bf16.mxu1 %v5169_v30  ;;  %v1187_v30 = vld [vmem:[%s5925_s4 + $0x1b18] sm:$0xff]  ;;  %v5191_v33 = vpack.c.bf16 %v1182_v27, %v1178_v25  ;;  %v1222_v23 = vld [vmem:[%s5925_s4 + $0x1c30] sm:$0xff]  ;;  %v1229_v25 = vld [vmem:[%s5925_s4 + $0x1c68] sm:$0xff] }
 0x1e0   : > { %v1231_v27 = vld [vmem:[%s5925_s4 + $0x1c78] sm:$0xff] }
 0x1e1   : > { %4372 = vmatpush1.bf16.msra.mxu0 %v4371_v36  ;;  %v1188_v36 = vld [vmem:[%s5925_s4 + $0x1b20] sm:$0xff]  ;;  %v1247_v53 = vld [vmem:[%s5925_s4 + $0x1cf8] sm:$0xff] }
 0x1e2   : > { %5172 = vmatpush1.bf16.msra.mxu1 %v5171_v37  ;;  %4374 = vmatprep.subr.bf16.mxu0 %v4373_v38  ;;  %v1186_v37 = vld [vmem:[%s5925_s4 + $0x1b10] sm:$0xff]  ;;  %v5193_v38 = vpack.c.bf16 %v1191_v31, %v1187_v30  ;;  %v4395_v44 = vpack.c.bf16 %v1188_v36, %v1184_v35  ;;  %v4413_v31 = vpack.c.bf16 %v1229_v25, %v1225_v24  ;;  %v1251_v0 = vld [vmem:[%s5925_s4 + $0x1d18] sm:$0xff] }
 0x1e3   : > { %5174 = vmatprep.subr.bf16.mxu1 %v5173_v42  ;;  %v1195_v42 = vld [vmem:[%s5925_s4 + $0x1b58] sm:$0xff]  ;;  %v5195_v45 = vpack.c.bf16 %v1190_v39, %v1186_v37  ;;  %v1230_v36 = vld [vmem:[%s5925_s4 + $0x1c70] sm:$0xff]  ;;  %v1233_v37 = vld [vmem:[%s5925_s4 + $0x1c88] sm:$0xff] }
 0x1e4   : > { %v1235_v39 = vld [vmem:[%s5925_s4 + $0x1c98] sm:$0xff] }
 0x1e5   : > { %4376 = vmatpush1.bf16.msra.mxu0 %v4375_v48  ;;  %v1196_v48 = vld [vmem:[%s5925_s4 + $0x1b60] sm:$0xff]  ;;  %v1255_v1 = vld [vmem:[%s5925_s4 + $0x1d38] sm:$0xff] }
 0x1e6   : > { %5176 = vmatpush1.bf16.msra.mxu1 %v5175_v49  ;;  %4378 = vmatprep.subr.bf16.mxu0 %v4377_v50  ;;  %v1194_v49 = vld [vmem:[%s5925_s4 + $0x1b50] sm:$0xff]  ;;  %v5197_v50 = vpack.c.bf16 %v1199_v43, %v1195_v42  ;;  %v4399_v56 = vpack.c.bf16 %v1196_v48, %v1192_v47  ;;  %v5217_v48 = vpack.c.bf16 %v1239_v40, %v1235_v39  ;;  %v1259_v12 = vld [vmem:[%s5925_s4 + $0x1d58] sm:$0xff] }
 0x1e7   : > { %5178 = vmatprep.subr.bf16.mxu1 %v5177_v54  ;;  %v1203_v54 = vld [vmem:[%s5925_s4 + $0x1b98] sm:$0xff]  ;;  %v5199_v57 = vpack.c.bf16 %v1198_v51, %v1194_v49  ;;  %v1234_v47 = vld [vmem:[%s5925_s4 + $0x1c90] sm:$0xff]  ;;  %v1245_v51 = vld [vmem:[%s5925_s4 + $0x1ce8] sm:$0xff] }
 0x1e8   : > { %v1238_v49 = vld [vmem:[%s5925_s4 + $0x1cb0] sm:$0xff]  ;;  %v1263_v13 = vld [vmem:[%s5925_s4 + $0x1d78] sm:$0xff] }
 0x1e9   : > { %4380 = vmatpush1.bf16.msra.mxu0 %v4379_v60  ;;  %v1204_v60 = vld [vmem:[%s5925_s4 + $0x1ba0] sm:$0xff]  ;;  %v1267_v24 = vld [vmem:[%s5925_s4 + $0x1d98] sm:$0xff] }
 0x1ea   : > { %5180 = vmatpush1.bf16.msra.mxu1 %v5179_v61  ;;  %4382 = vmatprep.subr.bf16.mxu0 %v4381_v62  ;;  %v1202_v61 = vld [vmem:[%s5925_s4 + $0x1b90] sm:$0xff]  ;;  %v5201_v62 = vpack.c.bf16 %v1207_v55, %v1203_v54  ;;  %v4403_v4 = vpack.c.bf16 %v1204_v60, %v1200_v59  ;;  %v5219_v55 = vpack.c.bf16 %v1238_v49, %v1234_v47  ;;  %v1271_v25 = vld [vmem:[%s5925_s4 + $0x1db8] sm:$0xff]  ;;  %v1285_v47 = vld [vmem:[%s5925_s4 + $0x1e28] sm:$0xff] }
 0x1eb   : > { %5182 = vmatprep.subr.bf16.mxu1 %v5181_v2  ;;  %v1211_v2 = vld [vmem:[%s5925_s4 + $0x1bd8] sm:$0xff]  ;;  %v5203_v5 = vpack.c.bf16 %v1206_v63, %v1202_v61  ;;  %v1242_v59 = vld [vmem:[%s5925_s4 + $0x1cd0] sm:$0xff]  ;;  %v5221_v60 = vpack.c.bf16 %v1247_v53, %v1243_v52  ;;  %v1253_v63 = vld [vmem:[%s5925_s4 + $0x1d28] sm:$0xff] }
 0x1ec   : > { %v1246_v61 = vld [vmem:[%s5925_s4 + $0x1cf0] sm:$0xff]  ;;  %v1287_v49 = vld [vmem:[%s5925_s4 + $0x1e38] sm:$0xff]  ;;  %v1280_v53 = vld [vmem:[%s5925_s4 + $0x1e00] sm:$0xff] }
 0x1ed   : > { %4384 = vmatpush1.bf16.msra.mxu0 %v4383_v8  ;;  %v1212_v8 = vld [vmem:[%s5925_s4 + $0x1be0] sm:$0xff] }
 0x1ee   : > { %5184 = vmatpush1.bf16.msra.mxu1 %v5183_v9  ;;  %4386 = vmatprep.subr.bf16.mxu0 %v4385_v10  ;;  %v1210_v9 = vld [vmem:[%s5925_s4 + $0x1bd0] sm:$0xff]  ;;  %v5205_v10 = vpack.c.bf16 %v1215_v3, %v1211_v2  ;;  %v4407_v16 = vpack.c.bf16 %v1212_v8, %v1208_v7  ;;  %v5223_v3 = vpack.c.bf16 %v1246_v61, %v1242_v59  ;;  %v1293_v59 = vld [vmem:[%s5925_s4 + $0x1e68] sm:$0xff]  ;;  %v1295_v61 = vld [vmem:[%s5925_s4 + $0x1e78] sm:$0xff] }
 0x1ef   : > { %5186 = vmatprep.subr.bf16.mxu1 %v5185_v14  ;;  %v1219_v14 = vld [vmem:[%s5925_s4 + $0x1c18] sm:$0xff]  ;;  %v5207_v17 = vpack.c.bf16 %v1214_v11, %v1210_v9  ;;  %v1250_v7 = vld [vmem:[%s5925_s4 + $0x1d10] sm:$0xff]  ;;  %v5225_v8 = vpack.c.bf16 %v1255_v1, %v1251_v0  ;;  %v1261_v11 = vld [vmem:[%s5925_s4 + $0x1d68] sm:$0xff] }
 0x1f0   : > { %v1254_v9 = vld [vmem:[%s5925_s4 + $0x1d30] sm:$0xff]  ;;  %v1288_v1 = vld [vmem:[%s5925_s4 + $0x1e40] sm:$0xff] }
 0x1f1   : > { %4388 = vmatpush1.bf16.msra.mxu0 %v4387_v20  ;;  %v1220_v20 = vld [vmem:[%s5925_s4 + $0x1c20] sm:$0xff] }
 0x1f2   : > { %5188 = vmatpush1.bf16.msra.mxu1 %v5187_v21  ;;  %4390 = vmatprep.subr.bf16.mxu0 %v4389_v22  ;;  %v1218_v21 = vld [vmem:[%s5925_s4 + $0x1c10] sm:$0xff]  ;;  %v5209_v22 = vpack.c.bf16 %v1223_v15, %v1219_v14  ;;  %v4411_v29 = vpack.c.bf16 %v1220_v20, %v1216_v19  ;;  %v5227_v15 = vpack.c.bf16 %v1254_v9, %v1250_v7  ;;  %v1301_v7 = vld [vmem:[%s5925_s4 + $0x1ea8] sm:$0xff]  ;;  %v1303_v9 = vld [vmem:[%s5925_s4 + $0x1eb8] sm:$0xff] }
 0x1f3   : > { %5190 = vmatprep.subr.bf16.mxu1 %v5189_v26  ;;  %v1227_v26 = vld [vmem:[%s5925_s4 + $0x1c58] sm:$0xff]  ;;  %v5211_v30 = vpack.c.bf16 %v1222_v23, %v1218_v21  ;;  %v1258_v19 = vld [vmem:[%s5925_s4 + $0x1d50] sm:$0xff]  ;;  %v5229_v20 = vpack.c.bf16 %v1263_v13, %v1259_v12  ;;  %v1269_v23 = vld [vmem:[%s5925_s4 + $0x1da8] sm:$0xff] }
 0x1f4   : > { %v5213_v35 = vpack.c.bf16 %v1231_v27, %v1227_v26  ;;  %v1262_v21 = vld [vmem:[%s5925_s4 + $0x1d70] sm:$0xff]  ;;  %v1296_v13 = vld [vmem:[%s5925_s4 + $0x1e80] sm:$0xff] }
 0x1f5   : > { %4392 = vmatpush1.bf16.msra.mxu0 %v4391_v32  ;;  %v1224_v32 = vld [vmem:[%s5925_s4 + $0x1c40] sm:$0xff]  ;;  %v5231_v27 = vpack.c.bf16 %v1262_v21, %v1258_v19  ;;  %v1309_v19 = vld [vmem:[%s5925_s4 + $0x1ee8] sm:$0xff]  ;;  %v1311_v21 = vld [vmem:[%s5925_s4 + $0x1ef8] sm:$0xff] }
 0x1f6   : > { %5192 = vmatpush1.bf16.msra.mxu1 %v5191_v33  ;;  %4394 = vmatprep.subr.bf16.mxu0 %v4393_v34  ;;  %v1228_v33 = vld [vmem:[%s5925_s4 + $0x1c60] sm:$0xff]  ;;  %v1226_v34 = vld [vmem:[%s5925_s4 + $0x1c50] sm:$0xff] }
 0x1f7   : > { %5194 = vmatprep.subr.bf16.mxu1 %v5193_v38  ;;  %v1237_v38 = vld [vmem:[%s5925_s4 + $0x1ca8] sm:$0xff]  ;;  %v4415_v42 = vpack.c.bf16 %v1228_v33, %v1224_v32  ;;  %v5215_v43 = vpack.c.bf16 %v1230_v36, %v1226_v34  ;;  %v5233_v32 = vpack.c.bf16 %v1271_v25, %v1267_v24  ;;  %v1270_v33 = vld [vmem:[%s5925_s4 + $0x1db0] sm:$0xff]  ;;  %v1275_v36 = vld [vmem:[%s5925_s4 + $0x1dd8] sm:$0xff] }
 0x1f8   : > { %v1273_v34 = vld [vmem:[%s5925_s4 + $0x1dc8] sm:$0xff]  ;;  %v1304_v25 = vld [vmem:[%s5925_s4 + $0x1ec0] sm:$0xff] }
 0x1f9   : > { %4396 = vmatpush1.bf16.msra.mxu0 %v4395_v44  ;;  %v4417_v44 = vpack.c.bf16 %v1237_v38, %v1233_v37  ;;  %v1279_v37 = vld [vmem:[%s5925_s4 + $0x1df8] sm:$0xff] }
 0x1fa   : > { %5196 = vmatpush1.bf16.msra.mxu1 %v5195_v45  ;;  %4398 = vmatprep.subr.bf16.mxu0 %v4397_v46  ;;  %v1232_v45 = vld [vmem:[%s5925_s4 + $0x1c80] sm:$0xff] }
 0x1fb   : > { %5198 = vmatprep.subr.bf16.mxu1 %v5197_v50  ;;  %v1236_v46 = vld [vmem:[%s5925_s4 + $0x1ca0] sm:$0xff]  ;;  %v1241_v50 = vld [vmem:[%s5925_s4 + $0x1cc8] sm:$0xff] }
 0x1fc   : > { %v4419_v54 = vpack.c.bf16 %v1236_v46, %v1232_v45  ;;  %v1278_v45 = vld [vmem:[%s5925_s4 + $0x1df0] sm:$0xff]  ;;  %v1281_v46 = vld [vmem:[%s5925_s4 + $0x1e08] sm:$0xff] }
 0x1fd   : > { %4400 = vmatpush1.bf16.msra.mxu0 %v4399_v56  ;;  %v4421_v56 = vpack.c.bf16 %v1245_v51, %v1241_v50  ;;  %v4441_v52 = vpack.c.bf16 %v1285_v47, %v1281_v46 }
 0x1fe   : > { %5200 = vmatpush1.bf16.msra.mxu1 %v5199_v57  ;;  %4402 = vmatprep.subr.bf16.mxu0 %v4401_v58  ;;  %v1240_v57 = vld [vmem:[%s5925_s4 + $0x1cc0] sm:$0xff] }
 0x1ff   : > { %5202 = vmatprep.subr.bf16.mxu1 %v5201_v62  ;;  %v1244_v58 = vld [vmem:[%s5925_s4 + $0x1ce0] sm:$0xff]  ;;  %v1249_v62 = vld [vmem:[%s5925_s4 + $0x1d08] sm:$0xff] }
 0x200   : > { %v4423_v2 = vpack.c.bf16 %v1244_v58, %v1240_v57  ;;  %v1286_v57 = vld [vmem:[%s5925_s4 + $0x1e30] sm:$0xff]  ;;  %v1289_v58 = vld [vmem:[%s5925_s4 + $0x1e48] sm:$0xff] }
 0x201   : > { %4404 = vmatpush1.bf16.msra.mxu0 %v4403_v4  ;;  %v4425_v4 = vpack.c.bf16 %v1253_v63, %v1249_v62  ;;  %v4445_v0 = vpack.c.bf16 %v1293_v59, %v1289_v58 }
 0x202   : > { %5204 = vmatpush1.bf16.msra.mxu1 %v5203_v5  ;;  %4406 = vmatprep.subr.bf16.mxu0 %v4405_v6  ;;  %v1248_v5 = vld [vmem:[%s5925_s4 + $0x1d00] sm:$0xff] }
 0x203   : > { %5206 = vmatprep.subr.bf16.mxu1 %v5205_v10  ;;  %v1252_v6 = vld [vmem:[%s5925_s4 + $0x1d20] sm:$0xff]  ;;  %v1257_v10 = vld [vmem:[%s5925_s4 + $0x1d48] sm:$0xff] }
 0x204   : > { %v4427_v14 = vpack.c.bf16 %v1252_v6, %v1248_v5  ;;  %v1294_v5 = vld [vmem:[%s5925_s4 + $0x1e70] sm:$0xff]  ;;  %v1297_v6 = vld [vmem:[%s5925_s4 + $0x1e88] sm:$0xff] }
 0x205   : > { %4408 = vmatpush1.bf16.msra.mxu0 %v4407_v16  ;;  %v4429_v16 = vpack.c.bf16 %v1261_v11, %v1257_v10  ;;  %v4449_v12 = vpack.c.bf16 %v1301_v7, %v1297_v6 }
 0x206   : > { %5208 = vmatpush1.bf16.msra.mxu1 %v5207_v17  ;;  %4410 = vmatprep.subr.bf16.mxu0 %v4409_v18  ;;  %v1256_v17 = vld [vmem:[%s5925_s4 + $0x1d40] sm:$0xff] }
 0x207   : > { %5210 = vmatprep.subr.bf16.mxu1 %v5209_v22  ;;  %v1260_v18 = vld [vmem:[%s5925_s4 + $0x1d60] sm:$0xff]  ;;  %v1265_v22 = vld [vmem:[%s5925_s4 + $0x1d88] sm:$0xff] }
 0x208   : > { %2411 = vmatmul.mubr.f32.vlgmr.msra.gmra.mrb[0].mxu0 %v307_v28  ;;  %v4431_v26 = vpack.c.bf16 %v1260_v18, %v1256_v17  ;;  %v1302_v17 = vld [vmem:[%s5925_s4 + $0x1eb0] sm:$0xff]  ;;  %v1305_v18 = vld [vmem:[%s5925_s4 + $0x1ec8] sm:$0xff] }
 0x209   : > { %4412 = vmatpush1.bf16.msra.mxu0 %v4411_v29  ;;  %3334 = vmatmul.mubr.f32.vlgmr.msra.gmra.mrb[0].mxu1 %v307_v28  ;;  %v4433_v28 = vpack.c.bf16 %v1269_v23, %v1265_v22  ;;  %v1264_v29 = vld [vmem:[%s5925_s4 + $0x1d80] sm:$0xff]  ;;  %v4453_v24 = vpack.c.bf16 %v1309_v19, %v1305_v18 }
 0x20a   : > { %5212 = vmatpush1.bf16.msra.mxu1 %v5211_v30  ;;  %4414 = vmatprep.subr.bf16.mxu0 %v4413_v31  ;;  %v1268_v30 = vld [vmem:[%s5925_s4 + $0x1da0] sm:$0xff]  ;;  %v1266_v31 = vld [vmem:[%s5925_s4 + $0x1d90] sm:$0xff] }
 0x20b   : > { %5214 = vmatprep.subr.bf16.mxu1 %v5213_v35  ;;  %2481 = vmatprep.mubr.f32.mxu0 %v310_v41  ;;  %v1277_v35 = vld [vmem:[%s5925_s4 + $0x1de8] sm:$0xff]  ;;  %v4435_v38 = vpack.c.bf16 %v1268_v30, %v1264_v29  ;;  %v5235_v39 = vpack.c.bf16 %v1270_v33, %v1266_v31  ;;  %v1310_v29 = vld [vmem:[%s5925_s4 + $0x1ef0] sm:$0xff]  ;;  %v1319_v33 = vld [vmem:[%s5925_s4 + $0x1f38] sm:$0xff] }
 0x20c   : > { %3404 = vmatprep.mubr.f32.mxu1 %v310_v41  ;;  %v4437_v40 = vpack.c.bf16 %v1277_v35, %v1273_v34  ;;  %v1272_v41 = vld [vmem:[%s5925_s4 + $0x1dc0] sm:$0xff]  ;;  %v1313_v30 = vld [vmem:[%s5925_s4 + $0x1f08] sm:$0xff] }
 0x20d   : > { %4416 = vmatpush1.bf16.msra.mxu0 %v4415_v42  ;;  %v1276_v42 = vld [vmem:[%s5925_s4 + $0x1de0] sm:$0xff]  ;;  %v1317_v31 = vld [vmem:[%s5925_s4 + $0x1f28] sm:$0xff] }
 0x20e   : > { %5216 = vmatpush1.bf16.msra.mxu1 %v5215_v43  ;;  %4418 = vmatprep.subr.bf16.mxu0 %v4417_v44  ;;  %v1274_v43 = vld [vmem:[%s5925_s4 + $0x1dd0] sm:$0xff]  ;;  %v5237_v44 = vpack.c.bf16 %v1279_v37, %v1275_v36  ;;  %v4439_v50 = vpack.c.bf16 %v1276_v42, %v1272_v41  ;;  %v4457_v36 = vpack.c.bf16 %v1317_v31, %v1313_v30  ;;  %v1312_v37 = vld [vmem:[%s5925_s4 + $0x1f00] sm:$0xff]  ;;  %v1321_v42 = vld [vmem:[%s5925_s4 + $0x1f48] sm:$0xff] }
 0x20f   : > { %5218 = vmatprep.subr.bf16.mxu1 %v5217_v48  ;;  %v1283_v48 = vld [vmem:[%s5925_s4 + $0x1e18] sm:$0xff]  ;;  %v5239_v51 = vpack.c.bf16 %v1278_v45, %v1274_v43  ;;  %v1318_v41 = vld [vmem:[%s5925_s4 + $0x1f30] sm:$0xff]  ;;  %v1325_v43 = vld [vmem:[%s5925_s4 + $0x1f68] sm:$0xff] }
 0x210   : > { %v1327_v45 = vld [vmem:[%s5925_s4 + $0x1f78] sm:$0xff]  ;;  %v309_v30 = vld [vmem:[%s5948_s20 + $0x70] sm:$0xff] }
 0x211   : > { %4420 = vmatpush1.bf16.msra.mxu0 %v4419_v54  ;;  %v1284_v54 = vld [vmem:[%s5925_s4 + $0x1e20] sm:$0xff] }
 0x212   : > { %5220 = vmatpush1.bf16.msra.mxu1 %v5219_v55  ;;  %4422 = vmatprep.subr.bf16.mxu0 %v4421_v56  ;;  %v1282_v55 = vld [vmem:[%s5925_s4 + $0x1e10] sm:$0xff]  ;;  %v5241_v56 = vpack.c.bf16 %v1287_v49, %v1283_v48  ;;  %v4443_v62 = vpack.c.bf16 %v1284_v54, %v1280_v53  ;;  %v4461_v48 = vpack.c.bf16 %v1325_v43, %v1321_v42  ;;  %v1320_v49 = vld [vmem:[%s5925_s4 + $0x1f40] sm:$0xff]  ;;  %v1329_v54 = vld [vmem:[%s5925_s4 + $0x1f88] sm:$0xff] }
 0x213   : > { %5222 = vmatprep.subr.bf16.mxu1 %v5221_v60  ;;  %v1291_v60 = vld [vmem:[%s5925_s4 + $0x1e58] sm:$0xff]  ;;  %v5243_v63 = vpack.c.bf16 %v1286_v57, %v1282_v55  ;;  %v1326_v53 = vld [vmem:[%s5925_s4 + $0x1f70] sm:$0xff]  ;;  %v1333_v55 = vld [vmem:[%s5925_s4 + $0x1fa8] sm:$0xff] }
 0x214   : > { %v1335_v57 = vld [vmem:[%s5925_s4 + $0x1fb8] sm:$0xff]  ;;  %v312_v43 = vld [vmem:[%s5948_s20 + $0x88] sm:$0xff] }
 0x215   : > { %4424 = vmatpush1.bf16.msra.mxu0 %v4423_v2  ;;  %v1292_v2 = vld [vmem:[%s5925_s4 + $0x1e60] sm:$0xff]  ;;  %v1367_v42 = vld [vmem:[%s5925_s4 + $0x20b8] sm:$0xff] }
 0x216   : > { %5224 = vmatpush1.bf16.msra.mxu1 %v5223_v3  ;;  %4426 = vmatprep.subr.bf16.mxu0 %v4425_v4  ;;  %v1290_v3 = vld [vmem:[%s5925_s4 + $0x1e50] sm:$0xff]  ;;  %v5245_v4 = vpack.c.bf16 %v1295_v61, %v1291_v60  ;;  %v4447_v10 = vpack.c.bf16 %v1292_v2, %v1288_v1  ;;  %v4465_v60 = vpack.c.bf16 %v1333_v55, %v1329_v54  ;;  %v1328_v61 = vld [vmem:[%s5925_s4 + $0x1f80] sm:$0xff]  ;;  %v1337_v2 = vld [vmem:[%s5925_s4 + $0x1fc8] sm:$0xff] }
 0x217   : > { %5226 = vmatprep.subr.bf16.mxu1 %v5225_v8  ;;  %v1299_v8 = vld [vmem:[%s5925_s4 + $0x1e98] sm:$0xff]  ;;  %v5247_v11 = vpack.c.bf16 %v1294_v5, %v1290_v3  ;;  %v1334_v1 = vld [vmem:[%s5925_s4 + $0x1fb0] sm:$0xff]  ;;  %v1341_v3 = vld [vmem:[%s5925_s4 + $0x1fe8] sm:$0xff] }
 0x218   : > { %v1343_v5 = vld [vmem:[%s5925_s4 + $0x1ff8] sm:$0xff] }
 0x219   : > { %4428 = vmatpush1.bf16.msra.mxu0 %v4427_v14  ;;  %v1300_v14 = vld [vmem:[%s5925_s4 + $0x1ea0] sm:$0xff]  ;;  %v1371_v54 = vld [vmem:[%s5925_s4 + $0x20d8] sm:$0xff] }
 0x21a   : > { %5228 = vmatpush1.bf16.msra.mxu1 %v5227_v15  ;;  %4430 = vmatprep.subr.bf16.mxu0 %v4429_v16  ;;  %v1298_v15 = vld [vmem:[%s5925_s4 + $0x1e90] sm:$0xff]  ;;  %v5249_v16 = vpack.c.bf16 %v1303_v9, %v1299_v8  ;;  %v4451_v22 = vpack.c.bf16 %v1300_v14, %v1296_v13  ;;  %v4469_v8 = vpack.c.bf16 %v1341_v3, %v1337_v2  ;;  %v1336_v9 = vld [vmem:[%s5925_s4 + $0x1fc0] sm:$0xff]  ;;  %v1345_v14 = vld [vmem:[%s5925_s4 + $0x2008] sm:$0xff] }
 0x21b   : > { %5230 = vmatprep.subr.bf16.mxu1 %v5229_v20  ;;  %v1307_v20 = vld [vmem:[%s5925_s4 + $0x1ed8] sm:$0xff]  ;;  %v5251_v23 = vpack.c.bf16 %v1302_v17, %v1298_v15  ;;  %v1342_v13 = vld [vmem:[%s5925_s4 + $0x1ff0] sm:$0xff]  ;;  %v1349_v15 = vld [vmem:[%s5925_s4 + $0x2028] sm:$0xff] }
 0x21c   : > { %v1351_v17 = vld [vmem:[%s5925_s4 + $0x2038] sm:$0xff] }
 0x21d   : > { %4432 = vmatpush1.bf16.msra.mxu0 %v4431_v26  ;;  %v1308_v26 = vld [vmem:[%s5925_s4 + $0x1ee0] sm:$0xff]  ;;  %v1375_v55 = vld [vmem:[%s5925_s4 + $0x20f8] sm:$0xff] }
 0x21e   : > { %5232 = vmatpush1.bf16.msra.mxu1 %v5231_v27  ;;  %4434 = vmatprep.subr.bf16.mxu0 %v4433_v28  ;;  %v1306_v27 = vld [vmem:[%s5925_s4 + $0x1ed0] sm:$0xff]  ;;  %v5253_v28 = vpack.c.bf16 %v1311_v21, %v1307_v20  ;;  %v4455_v34 = vpack.c.bf16 %v1308_v26, %v1304_v25  ;;  %v4473_v20 = vpack.c.bf16 %v1349_v15, %v1345_v14  ;;  %v1344_v21 = vld [vmem:[%s5925_s4 + $0x2000] sm:$0xff]  ;;  %v1353_v26 = vld [vmem:[%s5925_s4 + $0x2048] sm:$0xff] }
 0x21f   : > { %5234 = vmatprep.subr.bf16.mxu1 %v5233_v32  ;;  %v1315_v32 = vld [vmem:[%s5925_s4 + $0x1f18] sm:$0xff]  ;;  %v5255_v35 = vpack.c.bf16 %v1310_v29, %v1306_v27  ;;  %v1350_v25 = vld [vmem:[%s5925_s4 + $0x2030] sm:$0xff]  ;;  %v1357_v27 = vld [vmem:[%s5925_s4 + $0x2068] sm:$0xff] }
 0x220   : > { %v1359_v29 = vld [vmem:[%s5925_s4 + $0x2078] sm:$0xff] }
 0x221   : > { %4436 = vmatpush1.bf16.msra.mxu0 %v4435_v38  ;;  %v1316_v38 = vld [vmem:[%s5925_s4 + $0x1f20] sm:$0xff]  ;;  %v1379_v2 = vld [vmem:[%s5925_s4 + $0x2118] sm:$0xff] }
 0x222   : > { %5236 = vmatpush1.bf16.msra.mxu1 %v5235_v39  ;;  %4438 = vmatprep.subr.bf16.mxu0 %v4437_v40  ;;  %v1314_v39 = vld [vmem:[%s5925_s4 + $0x1f10] sm:$0xff]  ;;  %v5257_v40 = vpack.c.bf16 %v1319_v33, %v1315_v32  ;;  %v4459_v46 = vpack.c.bf16 %v1316_v38, %v1312_v37  ;;  %v4477_v33 = vpack.c.bf16 %v1357_v27, %v1353_v26  ;;  %v1383_v3 = vld [vmem:[%s5925_s4 + $0x2138] sm:$0xff] }
 0x223   : > { %5238 = vmatprep.subr.bf16.mxu1 %v5237_v44  ;;  %v1323_v44 = vld [vmem:[%s5925_s4 + $0x1f58] sm:$0xff]  ;;  %v5259_v47 = vpack.c.bf16 %v1318_v41, %v1314_v39  ;;  %v1358_v38 = vld [vmem:[%s5925_s4 + $0x2070] sm:$0xff]  ;;  %v1361_v39 = vld [vmem:[%s5925_s4 + $0x2088] sm:$0xff] }
 0x224   : > { %v1363_v41 = vld [vmem:[%s5925_s4 + $0x2098] sm:$0xff] }
 0x225   : > { %4440 = vmatpush1.bf16.msra.mxu0 %v4439_v50  ;;  %v1324_v50 = vld [vmem:[%s5925_s4 + $0x1f60] sm:$0xff]  ;;  %v1387_v14 = vld [vmem:[%s5925_s4 + $0x2158] sm:$0xff] }
 0x226   : > { %5240 = vmatpush1.bf16.msra.mxu1 %v5239_v51  ;;  %4442 = vmatprep.subr.bf16.mxu0 %v4441_v52  ;;  %v1322_v51 = vld [vmem:[%s5925_s4 + $0x1f50] sm:$0xff]  ;;  %v5261_v52 = vpack.c.bf16 %v1327_v45, %v1323_v44  ;;  %v4463_v58 = vpack.c.bf16 %v1324_v50, %v1320_v49  ;;  %v5281_v50 = vpack.c.bf16 %v1367_v42, %v1363_v41  ;;  %v1391_v15 = vld [vmem:[%s5925_s4 + $0x2178] sm:$0xff] }
 0x227   : > { %5242 = vmatprep.subr.bf16.mxu1 %v5241_v56  ;;  %v1331_v56 = vld [vmem:[%s5925_s4 + $0x1f98] sm:$0xff]  ;;  %v5263_v59 = vpack.c.bf16 %v1326_v53, %v1322_v51  ;;  %v1362_v49 = vld [vmem:[%s5925_s4 + $0x2090] sm:$0xff]  ;;  %v1373_v53 = vld [vmem:[%s5925_s4 + $0x20e8] sm:$0xff] }
 0x228   : > { %v1366_v51 = vld [vmem:[%s5925_s4 + $0x20b0] sm:$0xff]  ;;  %v1395_v26 = vld [vmem:[%s5925_s4 + $0x2198] sm:$0xff] }
 0x229   : > { %4444 = vmatpush1.bf16.msra.mxu0 %v4443_v62  ;;  %v1332_v62 = vld [vmem:[%s5925_s4 + $0x1fa0] sm:$0xff]  ;;  %v1399_v27 = vld [vmem:[%s5925_s4 + $0x21b8] sm:$0xff] }
 0x22a   : > { %5244 = vmatpush1.bf16.msra.mxu1 %v5243_v63  ;;  %4446 = vmatprep.subr.bf16.mxu0 %v4445_v0  ;;  %v1330_v63 = vld [vmem:[%s5925_s4 + $0x1f90] sm:$0xff]  ;;  %v5265_v0 = vpack.c.bf16 %v1335_v57, %v1331_v56  ;;  %v4467_v6 = vpack.c.bf16 %v1332_v62, %v1328_v61  ;;  %v5283_v57 = vpack.c.bf16 %v1366_v51, %v1362_v49  ;;  %v1413_v49 = vld [vmem:[%s5925_s4 + $0x2228] sm:$0xff]  ;;  %v1415_v51 = vld [vmem:[%s5925_s4 + $0x2238] sm:$0xff] }
 0x22b   : > { %5246 = vmatprep.subr.bf16.mxu1 %v5245_v4  ;;  %v1339_v4 = vld [vmem:[%s5925_s4 + $0x1fd8] sm:$0xff]  ;;  %v5267_v7 = vpack.c.bf16 %v1334_v1, %v1330_v63  ;;  %v1370_v61 = vld [vmem:[%s5925_s4 + $0x20d0] sm:$0xff]  ;;  %v5285_v62 = vpack.c.bf16 %v1375_v55, %v1371_v54  ;;  %v1381_v1 = vld [vmem:[%s5925_s4 + $0x2128] sm:$0xff] }
 0x22c   : > { %v1374_v63 = vld [vmem:[%s5925_s4 + $0x20f0] sm:$0xff]  ;;  %v1408_v55 = vld [vmem:[%s5925_s4 + $0x2200] sm:$0xff] }
 0x22d   : > { %4448 = vmatpush1.bf16.msra.mxu0 %v4447_v10  ;;  %v1340_v10 = vld [vmem:[%s5925_s4 + $0x1fe0] sm:$0xff] }
 0x22e   : > { %5248 = vmatpush1.bf16.msra.mxu1 %v5247_v11  ;;  %4450 = vmatprep.subr.bf16.mxu0 %v4449_v12  ;;  %v1338_v11 = vld [vmem:[%s5925_s4 + $0x1fd0] sm:$0xff]  ;;  %v5269_v12 = vpack.c.bf16 %v1343_v5, %v1339_v4  ;;  %v4471_v18 = vpack.c.bf16 %v1340_v10, %v1336_v9  ;;  %v5287_v5 = vpack.c.bf16 %v1374_v63, %v1370_v61  ;;  %v1421_v61 = vld [vmem:[%s5925_s4 + $0x2268] sm:$0xff]  ;;  %v1423_v63 = vld [vmem:[%s5925_s4 + $0x2278] sm:$0xff] }
 0x22f   : > { %5250 = vmatprep.subr.bf16.mxu1 %v5249_v16  ;;  %v1347_v16 = vld [vmem:[%s5925_s4 + $0x2018] sm:$0xff]  ;;  %v5271_v19 = vpack.c.bf16 %v1342_v13, %v1338_v11  ;;  %v1378_v9 = vld [vmem:[%s5925_s4 + $0x2110] sm:$0xff]  ;;  %v5289_v10 = vpack.c.bf16 %v1383_v3, %v1379_v2  ;;  %v1389_v13 = vld [vmem:[%s5925_s4 + $0x2168] sm:$0xff] }
 0x230   : > { %v1382_v11 = vld [vmem:[%s5925_s4 + $0x2130] sm:$0xff]  ;;  %v1416_v3 = vld [vmem:[%s5925_s4 + $0x2240] sm:$0xff] }
 0x231   : > { %4452 = vmatpush1.bf16.msra.mxu0 %v4451_v22  ;;  %v1348_v22 = vld [vmem:[%s5925_s4 + $0x2020] sm:$0xff] }
 0x232   : > { %5252 = vmatpush1.bf16.msra.mxu1 %v5251_v23  ;;  %4454 = vmatprep.subr.bf16.mxu0 %v4453_v24  ;;  %v1346_v23 = vld [vmem:[%s5925_s4 + $0x2010] sm:$0xff]  ;;  %v5273_v24 = vpack.c.bf16 %v1351_v17, %v1347_v16  ;;  %v4475_v31 = vpack.c.bf16 %v1348_v22, %v1344_v21  ;;  %v5291_v17 = vpack.c.bf16 %v1382_v11, %v1378_v9  ;;  %v1429_v9 = vld [vmem:[%s5925_s4 + $0x22a8] sm:$0xff]  ;;  %v1431_v11 = vld [vmem:[%s5925_s4 + $0x22b8] sm:$0xff] }
 0x233   : > { %5254 = vmatprep.subr.bf16.mxu1 %v5253_v28  ;;  %v1355_v28 = vld [vmem:[%s5925_s4 + $0x2058] sm:$0xff]  ;;  %v5275_v32 = vpack.c.bf16 %v1350_v25, %v1346_v23  ;;  %v1386_v21 = vld [vmem:[%s5925_s4 + $0x2150] sm:$0xff]  ;;  %v5293_v22 = vpack.c.bf16 %v1391_v15, %v1387_v14  ;;  %v1397_v25 = vld [vmem:[%s5925_s4 + $0x21a8] sm:$0xff] }
 0x234   : > { %v5277_v37 = vpack.c.bf16 %v1359_v29, %v1355_v28  ;;  %v1390_v23 = vld [vmem:[%s5925_s4 + $0x2170] sm:$0xff]  ;;  %v1424_v15 = vld [vmem:[%s5925_s4 + $0x2280] sm:$0xff] }
 0x235   : > { %4456 = vmatpush1.bf16.msra.mxu0 %v4455_v34  ;;  %v1352_v34 = vld [vmem:[%s5925_s4 + $0x2040] sm:$0xff]  ;;  %v5295_v29 = vpack.c.bf16 %v1390_v23, %v1386_v21  ;;  %v1437_v21 = vld [vmem:[%s5925_s4 + $0x22e8] sm:$0xff]  ;;  %v1439_v23 = vld [vmem:[%s5925_s4 + $0x22f8] sm:$0xff] }
 0x236   : > { %5256 = vmatpush1.bf16.msra.mxu1 %v5255_v35  ;;  %4458 = vmatprep.subr.bf16.mxu0 %v4457_v36  ;;  %v1356_v35 = vld [vmem:[%s5925_s4 + $0x2060] sm:$0xff]  ;;  %v1354_v36 = vld [vmem:[%s5925_s4 + $0x2050] sm:$0xff] }
 0x237   : > { %5258 = vmatprep.subr.bf16.mxu1 %v5257_v40  ;;  %v1365_v40 = vld [vmem:[%s5925_s4 + $0x20a8] sm:$0xff]  ;;  %v4479_v44 = vpack.c.bf16 %v1356_v35, %v1352_v34  ;;  %v5279_v45 = vpack.c.bf16 %v1358_v38, %v1354_v36  ;;  %v5297_v34 = vpack.c.bf16 %v1399_v27, %v1395_v26  ;;  %v1398_v35 = vld [vmem:[%s5925_s4 + $0x21b0] sm:$0xff]  ;;  %v1403_v38 = vld [vmem:[%s5925_s4 + $0x21d8] sm:$0xff] }
 0x238   : > { %v1401_v36 = vld [vmem:[%s5925_s4 + $0x21c8] sm:$0xff]  ;;  %v1432_v27 = vld [vmem:[%s5925_s4 + $0x22c0] sm:$0xff] }
 0x239   : > { %4460 = vmatpush1.bf16.msra.mxu0 %v4459_v46  ;;  %v4481_v46 = vpack.c.bf16 %v1365_v40, %v1361_v39  ;;  %v1407_v39 = vld [vmem:[%s5925_s4 + $0x21f8] sm:$0xff] }
 0x23a   : > { %5260 = vmatpush1.bf16.msra.mxu1 %v5259_v47  ;;  %4462 = vmatprep.subr.bf16.mxu0 %v4461_v48  ;;  %v1360_v47 = vld [vmem:[%s5925_s4 + $0x2080] sm:$0xff] }
 0x23b   : > { %5262 = vmatprep.subr.bf16.mxu1 %v5261_v52  ;;  %v1364_v48 = vld [vmem:[%s5925_s4 + $0x20a0] sm:$0xff]  ;;  %v1369_v52 = vld [vmem:[%s5925_s4 + $0x20c8] sm:$0xff] }
 0x23c   : > { %v4483_v56 = vpack.c.bf16 %v1364_v48, %v1360_v47  ;;  %v1406_v47 = vld [vmem:[%s5925_s4 + $0x21f0] sm:$0xff]  ;;  %v1409_v48 = vld [vmem:[%s5925_s4 + $0x2208] sm:$0xff] }
 0x23d   : > { %4464 = vmatpush1.bf16.msra.mxu0 %v4463_v58  ;;  %v4485_v58 = vpack.c.bf16 %v1373_v53, %v1369_v52  ;;  %v4505_v54 = vpack.c.bf16 %v1413_v49, %v1409_v48 }
 0x23e   : > { %5264 = vmatpush1.bf16.msra.mxu1 %v5263_v59  ;;  %4466 = vmatprep.subr.bf16.mxu0 %v4465_v60  ;;  %v1368_v59 = vld [vmem:[%s5925_s4 + $0x20c0] sm:$0xff] }
 0x23f   : > { %5266 = vmatprep.subr.bf16.mxu1 %v5265_v0  ;;  %v1372_v60 = vld [vmem:[%s5925_s4 + $0x20e0] sm:$0xff]  ;;  %v1377_v0 = vld [vmem:[%s5925_s4 + $0x2108] sm:$0xff] }
 0x240   : > { %v4487_v4 = vpack.c.bf16 %v1372_v60, %v1368_v59  ;;  %v1414_v59 = vld [vmem:[%s5925_s4 + $0x2230] sm:$0xff]  ;;  %v1417_v60 = vld [vmem:[%s5925_s4 + $0x2248] sm:$0xff] }
 0x241   : > { %4468 = vmatpush1.bf16.msra.mxu0 %v4467_v6  ;;  %v4489_v6 = vpack.c.bf16 %v1381_v1, %v1377_v0  ;;  %v4509_v2 = vpack.c.bf16 %v1421_v61, %v1417_v60 }
 0x242   : > { %5268 = vmatpush1.bf16.msra.mxu1 %v5267_v7  ;;  %4470 = vmatprep.subr.bf16.mxu0 %v4469_v8  ;;  %v1376_v7 = vld [vmem:[%s5925_s4 + $0x2100] sm:$0xff] }
 0x243   : > { %5270 = vmatprep.subr.bf16.mxu1 %v5269_v12  ;;  %v1380_v8 = vld [vmem:[%s5925_s4 + $0x2120] sm:$0xff]  ;;  %v1385_v12 = vld [vmem:[%s5925_s4 + $0x2148] sm:$0xff] }
 0x244   : > { %v4491_v16 = vpack.c.bf16 %v1380_v8, %v1376_v7  ;;  %v1422_v7 = vld [vmem:[%s5925_s4 + $0x2270] sm:$0xff]  ;;  %v1425_v8 = vld [vmem:[%s5925_s4 + $0x2288] sm:$0xff] }
 0x245   : > { %4472 = vmatpush1.bf16.msra.mxu0 %v4471_v18  ;;  %v4493_v18 = vpack.c.bf16 %v1389_v13, %v1385_v12  ;;  %v4513_v14 = vpack.c.bf16 %v1429_v9, %v1425_v8 }
 0x246   : > { %5272 = vmatpush1.bf16.msra.mxu1 %v5271_v19  ;;  %4474 = vmatprep.subr.bf16.mxu0 %v4473_v20  ;;  %v1384_v19 = vld [vmem:[%s5925_s4 + $0x2140] sm:$0xff] }
 0x247   : > { %5274 = vmatprep.subr.bf16.mxu1 %v5273_v24  ;;  %v1388_v20 = vld [vmem:[%s5925_s4 + $0x2160] sm:$0xff]  ;;  %v1393_v24 = vld [vmem:[%s5925_s4 + $0x2188] sm:$0xff] }
 0x248   : > { %2482 = vmatmul.mubr.f32.vlgmr.msra.gmra.mrb[0].mxu0 %v309_v30  ;;  %v4495_v28 = vpack.c.bf16 %v1388_v20, %v1384_v19  ;;  %v1430_v19 = vld [vmem:[%s5925_s4 + $0x22b0] sm:$0xff]  ;;  %v1433_v20 = vld [vmem:[%s5925_s4 + $0x22c8] sm:$0xff] }
 0x249   : > { %4476 = vmatpush1.bf16.msra.mxu0 %v4475_v31  ;;  %3405 = vmatmul.mubr.f32.vlgmr.msra.gmra.mrb[0].mxu1 %v309_v30  ;;  %v4497_v30 = vpack.c.bf16 %v1397_v25, %v1393_v24  ;;  %v1392_v31 = vld [vmem:[%s5925_s4 + $0x2180] sm:$0xff]  ;;  %v4517_v26 = vpack.c.bf16 %v1437_v21, %v1433_v20 }
 0x24a   : > { %5276 = vmatpush1.bf16.msra.mxu1 %v5275_v32  ;;  %4478 = vmatprep.subr.bf16.mxu0 %v4477_v33  ;;  %v1396_v32 = vld [vmem:[%s5925_s4 + $0x21a0] sm:$0xff]  ;;  %v1394_v33 = vld [vmem:[%s5925_s4 + $0x2190] sm:$0xff] }
 0x24b   : > { %5278 = vmatprep.subr.bf16.mxu1 %v5277_v37  ;;  %2552 = vmatprep.mubr.f32.mxu0 %v312_v43  ;;  %v1405_v37 = vld [vmem:[%s5925_s4 + $0x21e8] sm:$0xff]  ;;  %v4499_v40 = vpack.c.bf16 %v1396_v32, %v1392_v31  ;;  %v5299_v41 = vpack.c.bf16 %v1398_v35, %v1394_v33  ;;  %v1438_v31 = vld [vmem:[%s5925_s4 + $0x22f0] sm:$0xff]  ;;  %v1447_v35 = vld [vmem:[%s5925_s4 + $0x2338] sm:$0xff] }
 0x24c   : > { %3475 = vmatprep.mubr.f32.mxu1 %v312_v43  ;;  %v4501_v42 = vpack.c.bf16 %v1405_v37, %v1401_v36  ;;  %v1400_v43 = vld [vmem:[%s5925_s4 + $0x21c0] sm:$0xff]  ;;  %v1441_v32 = vld [vmem:[%s5925_s4 + $0x2308] sm:$0xff] }
 0x24d   : > { %4480 = vmatpush1.bf16.msra.mxu0 %v4479_v44  ;;  %v1404_v44 = vld [vmem:[%s5925_s4 + $0x21e0] sm:$0xff]  ;;  %v1445_v33 = vld [vmem:[%s5925_s4 + $0x2328] sm:$0xff] }
 0x24e   : > { %5280 = vmatpush1.bf16.msra.mxu1 %v5279_v45  ;;  %4482 = vmatprep.subr.bf16.mxu0 %v4481_v46  ;;  %v1402_v45 = vld [vmem:[%s5925_s4 + $0x21d0] sm:$0xff]  ;;  %v5301_v46 = vpack.c.bf16 %v1407_v39, %v1403_v38  ;;  %v4503_v52 = vpack.c.bf16 %v1404_v44, %v1400_v43  ;;  %v4521_v38 = vpack.c.bf16 %v1445_v33, %v1441_v32  ;;  %v1440_v39 = vld [vmem:[%s5925_s4 + $0x2300] sm:$0xff]  ;;  %v1449_v44 = vld [vmem:[%s5925_s4 + $0x2348] sm:$0xff] }
 0x24f   : > { %5282 = vmatprep.subr.bf16.mxu1 %v5281_v50  ;;  %v1411_v50 = vld [vmem:[%s5925_s4 + $0x2218] sm:$0xff]  ;;  %v5303_v53 = vpack.c.bf16 %v1406_v47, %v1402_v45  ;;  %v1446_v43 = vld [vmem:[%s5925_s4 + $0x2330] sm:$0xff]  ;;  %v1453_v45 = vld [vmem:[%s5925_s4 + $0x2368] sm:$0xff] }
 0x250   : > { %v1455_v47 = vld [vmem:[%s5925_s4 + $0x2378] sm:$0xff]  ;;  %v311_v32 = vld [vmem:[%s5948_s20 + $0x80] sm:$0xff] }
 0x251   : > { %4484 = vmatpush1.bf16.msra.mxu0 %v4483_v56  ;;  %v1412_v56 = vld [vmem:[%s5925_s4 + $0x2220] sm:$0xff] }
 0x252   : > { %5284 = vmatpush1.bf16.msra.mxu1 %v5283_v57  ;;  %4486 = vmatprep.subr.bf16.mxu0 %v4485_v58  ;;  %v1410_v57 = vld [vmem:[%s5925_s4 + $0x2210] sm:$0xff]  ;;  %v5305_v58 = vpack.c.bf16 %v1415_v51, %v1411_v50  ;;  %v4507_v0 = vpack.c.bf16 %v1412_v56, %v1408_v55  ;;  %v4525_v50 = vpack.c.bf16 %v1453_v45, %v1449_v44  ;;  %v1448_v51 = vld [vmem:[%s5925_s4 + $0x2340] sm:$0xff]  ;;  %v1457_v56 = vld [vmem:[%s5925_s4 + $0x2388] sm:$0xff] }
 0x253   : > { %5286 = vmatprep.subr.bf16.mxu1 %v5285_v62  ;;  %v1419_v62 = vld [vmem:[%s5925_s4 + $0x2258] sm:$0xff]  ;;  %v5307_v1 = vpack.c.bf16 %v1414_v59, %v1410_v57  ;;  %v1454_v55 = vld [vmem:[%s5925_s4 + $0x2370] sm:$0xff]  ;;  %v1461_v57 = vld [vmem:[%s5925_s4 + $0x23a8] sm:$0xff] }
 0x254   : > { %v1463_v59 = vld [vmem:[%s5925_s4 + $0x23b8] sm:$0xff] }
 0x255   : > { %4488 = vmatpush1.bf16.msra.mxu0 %v4487_v4  ;;  %v1420_v4 = vld [vmem:[%s5925_s4 + $0x2260] sm:$0xff]  ;;  %v1495_v44 = vld [vmem:[%s5925_s4 + $0x24b8] sm:$0xff] }
 0x256   : > { %5288 = vmatpush1.bf16.msra.mxu1 %v5287_v5  ;;  %4490 = vmatprep.subr.bf16.mxu0 %v4489_v6  ;;  %v1418_v5 = vld [vmem:[%s5925_s4 + $0x2250] sm:$0xff]  ;;  %v5309_v6 = vpack.c.bf16 %v1423_v63, %v1419_v62  ;;  %v4511_v12 = vpack.c.bf16 %v1420_v4, %v1416_v3  ;;  %v4529_v62 = vpack.c.bf16 %v1461_v57, %v1457_v56  ;;  %v1456_v63 = vld [vmem:[%s5925_s4 + $0x2380] sm:$0xff]  ;;  %v1465_v4 = vld [vmem:[%s5925_s4 + $0x23c8] sm:$0xff] }
 0x257   : > { %5290 = vmatprep.subr.bf16.mxu1 %v5289_v10  ;;  %v1427_v10 = vld [vmem:[%s5925_s4 + $0x2298] sm:$0xff]  ;;  %v5311_v13 = vpack.c.bf16 %v1422_v7, %v1418_v5  ;;  %v1462_v3 = vld [vmem:[%s5925_s4 + $0x23b0] sm:$0xff]  ;;  %v1469_v5 = vld [vmem:[%s5925_s4 + $0x23e8] sm:$0xff] }
 0x258   : > { %v1471_v7 = vld [vmem:[%s5925_s4 + $0x23f8] sm:$0xff] }
 0x259   : > { %4492 = vmatpush1.bf16.msra.mxu0 %v4491_v16  ;;  %v1428_v16 = vld [vmem:[%s5925_s4 + $0x22a0] sm:$0xff]  ;;  %v314_v45 = vld [vmem:[%s5948_s20 + $0x98] sm:$0xff] }
 0x25a   : > { %5292 = vmatpush1.bf16.msra.mxu1 %v5291_v17  ;;  %4494 = vmatprep.subr.bf16.mxu0 %v4493_v18  ;;  %v1426_v17 = vld [vmem:[%s5925_s4 + $0x2290] sm:$0xff]  ;;  %v5313_v18 = vpack.c.bf16 %v1431_v11, %v1427_v10  ;;  %v4515_v24 = vpack.c.bf16 %v1428_v16, %v1424_v15  ;;  %v4533_v10 = vpack.c.bf16 %v1469_v5, %v1465_v4  ;;  %v1464_v11 = vld [vmem:[%s5925_s4 + $0x23c0] sm:$0xff]  ;;  %v1473_v16 = vld [vmem:[%s5925_s4 + $0x2408] sm:$0xff] }
 0x25b   : > { %5294 = vmatprep.subr.bf16.mxu1 %v5293_v22  ;;  %v1435_v22 = vld [vmem:[%s5925_s4 + $0x22d8] sm:$0xff]  ;;  %v5315_v25 = vpack.c.bf16 %v1430_v19, %v1426_v17  ;;  %v1470_v15 = vld [vmem:[%s5925_s4 + $0x23f0] sm:$0xff]  ;;  %v1477_v17 = vld [vmem:[%s5925_s4 + $0x2428] sm:$0xff] }
 0x25c   : > { %v1479_v19 = vld [vmem:[%s5925_s4 + $0x2438] sm:$0xff] }
 0x25d   : > { %4496 = vmatpush1.bf16.msra.mxu0 %v4495_v28  ;;  %v1436_v28 = vld [vmem:[%s5925_s4 + $0x22e0] sm:$0xff]  ;;  %v1499_v56 = vld [vmem:[%s5925_s4 + $0x24d8] sm:$0xff] }
 0x25e   : > { %5296 = vmatpush1.bf16.msra.mxu1 %v5295_v29  ;;  %4498 = vmatprep.subr.bf16.mxu0 %v4497_v30  ;;  %v1434_v29 = vld [vmem:[%s5925_s4 + $0x22d0] sm:$0xff]  ;;  %v5317_v30 = vpack.c.bf16 %v1439_v23, %v1435_v22  ;;  %v4519_v36 = vpack.c.bf16 %v1436_v28, %v1432_v27  ;;  %v4537_v22 = vpack.c.bf16 %v1477_v17, %v1473_v16  ;;  %v1472_v23 = vld [vmem:[%s5925_s4 + $0x2400] sm:$0xff]  ;;  %v1481_v28 = vld [vmem:[%s5925_s4 + $0x2448] sm:$0xff] }
 0x25f   : > { %5298 = vmatprep.subr.bf16.mxu1 %v5297_v34  ;;  %v1443_v34 = vld [vmem:[%s5925_s4 + $0x2318] sm:$0xff]  ;;  %v5319_v37 = vpack.c.bf16 %v1438_v31, %v1434_v29  ;;  %v1478_v27 = vld [vmem:[%s5925_s4 + $0x2430] sm:$0xff]  ;;  %v1485_v29 = vld [vmem:[%s5925_s4 + $0x2468] sm:$0xff] }
 0x260   : > { %v1487_v31 = vld [vmem:[%s5925_s4 + $0x2478] sm:$0xff] }
 0x261   : > { %4500 = vmatpush1.bf16.msra.mxu0 %v4499_v40  ;;  %v1444_v40 = vld [vmem:[%s5925_s4 + $0x2320] sm:$0xff]  ;;  %v1503_v57 = vld [vmem:[%s5925_s4 + $0x24f8] sm:$0xff] }
 0x262   : > { %5300 = vmatpush1.bf16.msra.mxu1 %v5299_v41  ;;  %4502 = vmatprep.subr.bf16.mxu0 %v4501_v42  ;;  %v1442_v41 = vld [vmem:[%s5925_s4 + $0x2310] sm:$0xff]  ;;  %v5321_v42 = vpack.c.bf16 %v1447_v35, %v1443_v34  ;;  %v4523_v48 = vpack.c.bf16 %v1444_v40, %v1440_v39  ;;  %v4541_v35 = vpack.c.bf16 %v1485_v29, %v1481_v28  ;;  %v1507_v4 = vld [vmem:[%s5925_s4 + $0x2518] sm:$0xff] }
 0x263   : > { %5302 = vmatprep.subr.bf16.mxu1 %v5301_v46  ;;  %v1451_v46 = vld [vmem:[%s5925_s4 + $0x2358] sm:$0xff]  ;;  %v5323_v49 = vpack.c.bf16 %v1446_v43, %v1442_v41  ;;  %v1486_v40 = vld [vmem:[%s5925_s4 + $0x2470] sm:$0xff]  ;;  %v1489_v41 = vld [vmem:[%s5925_s4 + $0x2488] sm:$0xff] }
 0x264   : > { %v1491_v43 = vld [vmem:[%s5925_s4 + $0x2498] sm:$0xff] }
 0x265   : > { %4504 = vmatpush1.bf16.msra.mxu0 %v4503_v52  ;;  %v1452_v52 = vld [vmem:[%s5925_s4 + $0x2360] sm:$0xff]  ;;  %v1511_v5 = vld [vmem:[%s5925_s4 + $0x2538] sm:$0xff] }
 0x266   : > { %5304 = vmatpush1.bf16.msra.mxu1 %v5303_v53  ;;  %4506 = vmatprep.subr.bf16.mxu0 %v4505_v54  ;;  %v1450_v53 = vld [vmem:[%s5925_s4 + $0x2350] sm:$0xff]  ;;  %v5325_v54 = vpack.c.bf16 %v1455_v47, %v1451_v46  ;;  %v4527_v60 = vpack.c.bf16 %v1452_v52, %v1448_v51  ;;  %v5345_v52 = vpack.c.bf16 %v1495_v44, %v1491_v43  ;;  %v1515_v16 = vld [vmem:[%s5925_s4 + $0x2558] sm:$0xff] }
 0x267   : > { %5306 = vmatprep.subr.bf16.mxu1 %v5305_v58  ;;  %v1459_v58 = vld [vmem:[%s5925_s4 + $0x2398] sm:$0xff]  ;;  %v5327_v61 = vpack.c.bf16 %v1454_v55, %v1450_v53  ;;  %v1490_v51 = vld [vmem:[%s5925_s4 + $0x2490] sm:$0xff]  ;;  %v1501_v55 = vld [vmem:[%s5925_s4 + $0x24e8] sm:$0xff] }
 0x268   : > { %v1494_v53 = vld [vmem:[%s5925_s4 + $0x24b0] sm:$0xff]  ;;  %v1519_v17 = vld [vmem:[%s5925_s4 + $0x2578] sm:$0xff] }
 0x269   : > { %4508 = vmatpush1.bf16.msra.mxu0 %v4507_v0  ;;  %v1460_v0 = vld [vmem:[%s5925_s4 + $0x23a0] sm:$0xff]  ;;  %v1523_v28 = vld [vmem:[%s5925_s4 + $0x2598] sm:$0xff] }
 0x26a   : > { %5308 = vmatpush1.bf16.msra.mxu1 %v5307_v1  ;;  %4510 = vmatprep.subr.bf16.mxu0 %v4509_v2  ;;  %v1458_v1 = vld [vmem:[%s5925_s4 + $0x2390] sm:$0xff]  ;;  %v5329_v2 = vpack.c.bf16 %v1463_v59, %v1459_v58  ;;  %v4531_v8 = vpack.c.bf16 %v1460_v0, %v1456_v63  ;;  %v5347_v59 = vpack.c.bf16 %v1494_v53, %v1490_v51  ;;  %v1527_v29 = vld [vmem:[%s5925_s4 + $0x25b8] sm:$0xff]  ;;  %v1541_v51 = vld [vmem:[%s5925_s4 + $0x2628] sm:$0xff] }
 0x26b   : > { %5310 = vmatprep.subr.bf16.mxu1 %v5309_v6  ;;  %v1467_v6 = vld [vmem:[%s5925_s4 + $0x23d8] sm:$0xff]  ;;  %v5331_v9 = vpack.c.bf16 %v1462_v3, %v1458_v1  ;;  %v1498_v63 = vld [vmem:[%s5925_s4 + $0x24d0] sm:$0xff]  ;;  %v5349_v0 = vpack.c.bf16 %v1503_v57, %v1499_v56  ;;  %v1509_v3 = vld [vmem:[%s5925_s4 + $0x2528] sm:$0xff] }
 0x26c   : > { %v1502_v1 = vld [vmem:[%s5925_s4 + $0x24f0] sm:$0xff]  ;;  %v1543_v53 = vld [vmem:[%s5925_s4 + $0x2638] sm:$0xff]  ;;  %v1536_v57 = vld [vmem:[%s5925_s4 + $0x2600] sm:$0xff] }
 0x26d   : > { %4512 = vmatpush1.bf16.msra.mxu0 %v4511_v12  ;;  %v1468_v12 = vld [vmem:[%s5925_s4 + $0x23e0] sm:$0xff] }
 0x26e   : > { %5312 = vmatpush1.bf16.msra.mxu1 %v5311_v13  ;;  %4514 = vmatprep.subr.bf16.mxu0 %v4513_v14  ;;  %v1466_v13 = vld [vmem:[%s5925_s4 + $0x23d0] sm:$0xff]  ;;  %v5333_v14 = vpack.c.bf16 %v1471_v7, %v1467_v6  ;;  %v4535_v20 = vpack.c.bf16 %v1468_v12, %v1464_v11  ;;  %v5351_v7 = vpack.c.bf16 %v1502_v1, %v1498_v63  ;;  %v1549_v63 = vld [vmem:[%s5925_s4 + $0x2668] sm:$0xff]  ;;  %v1551_v1 = vld [vmem:[%s5925_s4 + $0x2678] sm:$0xff] }
 0x26f   : > { %5314 = vmatprep.subr.bf16.mxu1 %v5313_v18  ;;  %v1475_v18 = vld [vmem:[%s5925_s4 + $0x2418] sm:$0xff]  ;;  %v5335_v21 = vpack.c.bf16 %v1470_v15, %v1466_v13  ;;  %v1506_v11 = vld [vmem:[%s5925_s4 + $0x2510] sm:$0xff]  ;;  %v5353_v12 = vpack.c.bf16 %v1511_v5, %v1507_v4  ;;  %v1517_v15 = vld [vmem:[%s5925_s4 + $0x2568] sm:$0xff] }
 0x270   : > { %v1510_v13 = vld [vmem:[%s5925_s4 + $0x2530] sm:$0xff]  ;;  %v1544_v5 = vld [vmem:[%s5925_s4 + $0x2640] sm:$0xff] }
 0x271   : > { %4516 = vmatpush1.bf16.msra.mxu0 %v4515_v24  ;;  %v1476_v24 = vld [vmem:[%s5925_s4 + $0x2420] sm:$0xff] }
 0x272   : > { %5316 = vmatpush1.bf16.msra.mxu1 %v5315_v25  ;;  %4518 = vmatprep.subr.bf16.mxu0 %v4517_v26  ;;  %v1474_v25 = vld [vmem:[%s5925_s4 + $0x2410] sm:$0xff]  ;;  %v5337_v26 = vpack.c.bf16 %v1479_v19, %v1475_v18  ;;  %v4539_v33 = vpack.c.bf16 %v1476_v24, %v1472_v23  ;;  %v5355_v19 = vpack.c.bf16 %v1510_v13, %v1506_v11  ;;  %v1557_v11 = vld [vmem:[%s5925_s4 + $0x26a8] sm:$0xff]  ;;  %v1559_v13 = vld [vmem:[%s5925_s4 + $0x26b8] sm:$0xff] }
 0x273   : > { %5318 = vmatprep.subr.bf16.mxu1 %v5317_v30  ;;  %v1483_v30 = vld [vmem:[%s5925_s4 + $0x2458] sm:$0xff]  ;;  %v5339_v34 = vpack.c.bf16 %v1478_v27, %v1474_v25  ;;  %v1514_v23 = vld [vmem:[%s5925_s4 + $0x2550] sm:$0xff]  ;;  %v5357_v24 = vpack.c.bf16 %v1519_v17, %v1515_v16  ;;  %v1525_v27 = vld [vmem:[%s5925_s4 + $0x25a8] sm:$0xff] }
 0x274   : > { %v5341_v39 = vpack.c.bf16 %v1487_v31, %v1483_v30  ;;  %v1518_v25 = vld [vmem:[%s5925_s4 + $0x2570] sm:$0xff]  ;;  %v1552_v17 = vld [vmem:[%s5925_s4 + $0x2680] sm:$0xff] }
 0x275   : > { %4520 = vmatpush1.bf16.msra.mxu0 %v4519_v36  ;;  %v1480_v36 = vld [vmem:[%s5925_s4 + $0x2440] sm:$0xff]  ;;  %v5359_v31 = vpack.c.bf16 %v1518_v25, %v1514_v23  ;;  %v1565_v23 = vld [vmem:[%s5925_s4 + $0x26e8] sm:$0xff]  ;;  %v1567_v25 = vld [vmem:[%s5925_s4 + $0x26f8] sm:$0xff] }
 0x276   : > { %5320 = vmatpush1.bf16.msra.mxu1 %v5319_v37  ;;  %4522 = vmatprep.subr.bf16.mxu0 %v4521_v38  ;;  %v1484_v37 = vld [vmem:[%s5925_s4 + $0x2460] sm:$0xff]  ;;  %v1482_v38 = vld [vmem:[%s5925_s4 + $0x2450] sm:$0xff] }
 0x277   : > { %5322 = vmatprep.subr.bf16.mxu1 %v5321_v42  ;;  %v1493_v42 = vld [vmem:[%s5925_s4 + $0x24a8] sm:$0xff]  ;;  %v4543_v46 = vpack.c.bf16 %v1484_v37, %v1480_v36  ;;  %v5343_v47 = vpack.c.bf16 %v1486_v40, %v1482_v38  ;;  %v5361_v36 = vpack.c.bf16 %v1527_v29, %v1523_v28  ;;  %v1526_v37 = vld [vmem:[%s5925_s4 + $0x25b0] sm:$0xff]  ;;  %v1531_v40 = vld [vmem:[%s5925_s4 + $0x25d8] sm:$0xff] }
 0x278   : > { %v1529_v38 = vld [vmem:[%s5925_s4 + $0x25c8] sm:$0xff]  ;;  %v1560_v29 = vld [vmem:[%s5925_s4 + $0x26c0] sm:$0xff] }
 0x279   : > { %4524 = vmatpush1.bf16.msra.mxu0 %v4523_v48  ;;  %v4545_v48 = vpack.c.bf16 %v1493_v42, %v1489_v41  ;;  %v1535_v41 = vld [vmem:[%s5925_s4 + $0x25f8] sm:$0xff] }
 0x27a   : > { %5324 = vmatpush1.bf16.msra.mxu1 %v5323_v49  ;;  %4526 = vmatprep.subr.bf16.mxu0 %v4525_v50  ;;  %v1488_v49 = vld [vmem:[%s5925_s4 + $0x2480] sm:$0xff] }
 0x27b   : > { %5326 = vmatprep.subr.bf16.mxu1 %v5325_v54  ;;  %v1492_v50 = vld [vmem:[%s5925_s4 + $0x24a0] sm:$0xff]  ;;  %v1497_v54 = vld [vmem:[%s5925_s4 + $0x24c8] sm:$0xff] }
 0x27c   : > { %v4547_v58 = vpack.c.bf16 %v1492_v50, %v1488_v49  ;;  %v1534_v49 = vld [vmem:[%s5925_s4 + $0x25f0] sm:$0xff]  ;;  %v1537_v50 = vld [vmem:[%s5925_s4 + $0x2608] sm:$0xff] }
 0x27d   : > { %4528 = vmatpush1.bf16.msra.mxu0 %v4527_v60  ;;  %v4549_v60 = vpack.c.bf16 %v1501_v55, %v1497_v54  ;;  %v4569_v56 = vpack.c.bf16 %v1541_v51, %v1537_v50 }
 0x27e   : > { %5328 = vmatpush1.bf16.msra.mxu1 %v5327_v61  ;;  %4530 = vmatprep.subr.bf16.mxu0 %v4529_v62  ;;  %v1496_v61 = vld [vmem:[%s5925_s4 + $0x24c0] sm:$0xff] }
 0x27f   : > { %5330 = vmatprep.subr.bf16.mxu1 %v5329_v2  ;;  %v1500_v62 = vld [vmem:[%s5925_s4 + $0x24e0] sm:$0xff]  ;;  %v1505_v2 = vld [vmem:[%s5925_s4 + $0x2508] sm:$0xff] }
 0x280   : > { %v4551_v6 = vpack.c.bf16 %v1500_v62, %v1496_v61  ;;  %v1542_v61 = vld [vmem:[%s5925_s4 + $0x2630] sm:$0xff]  ;;  %v1545_v62 = vld [vmem:[%s5925_s4 + $0x2648] sm:$0xff] }
 0x281   : > { %4532 = vmatpush1.bf16.msra.mxu0 %v4531_v8  ;;  %v4553_v8 = vpack.c.bf16 %v1509_v3, %v1505_v2  ;;  %v4573_v4 = vpack.c.bf16 %v1549_v63, %v1545_v62 }
 0x282   : > { %5332 = vmatpush1.bf16.msra.mxu1 %v5331_v9  ;;  %4534 = vmatprep.subr.bf16.mxu0 %v4533_v10  ;;  %v1504_v9 = vld [vmem:[%s5925_s4 + $0x2500] sm:$0xff] }
 0x283   : > { %5334 = vmatprep.subr.bf16.mxu1 %v5333_v14  ;;  %v1508_v10 = vld [vmem:[%s5925_s4 + $0x2520] sm:$0xff]  ;;  %v1513_v14 = vld [vmem:[%s5925_s4 + $0x2548] sm:$0xff] }
 0x284   : > { %v4555_v18 = vpack.c.bf16 %v1508_v10, %v1504_v9  ;;  %v1550_v9 = vld [vmem:[%s5925_s4 + $0x2670] sm:$0xff]  ;;  %v1553_v10 = vld [vmem:[%s5925_s4 + $0x2688] sm:$0xff] }
 0x285   : > { %4536 = vmatpush1.bf16.msra.mxu0 %v4535_v20  ;;  %v4557_v20 = vpack.c.bf16 %v1517_v15, %v1513_v14  ;;  %v4577_v16 = vpack.c.bf16 %v1557_v11, %v1553_v10 }
 0x286   : > { %5336 = vmatpush1.bf16.msra.mxu1 %v5335_v21  ;;  %4538 = vmatprep.subr.bf16.mxu0 %v4537_v22  ;;  %v1512_v21 = vld [vmem:[%s5925_s4 + $0x2540] sm:$0xff] }
 0x287   : > { %5338 = vmatprep.subr.bf16.mxu1 %v5337_v26  ;;  %v1516_v22 = vld [vmem:[%s5925_s4 + $0x2560] sm:$0xff]  ;;  %v1521_v26 = vld [vmem:[%s5925_s4 + $0x2588] sm:$0xff] }
 0x288   : > { %2553 = vmatmul.mubr.f32.vlgmr.msra.gmra.mrb[0].mxu0 %v311_v32  ;;  %v4559_v30 = vpack.c.bf16 %v1516_v22, %v1512_v21  ;;  %v1558_v21 = vld [vmem:[%s5925_s4 + $0x26b0] sm:$0xff]  ;;  %v1561_v22 = vld [vmem:[%s5925_s4 + $0x26c8] sm:$0xff] }
 0x289   : > { %4540 = vmatpush1.bf16.msra.mxu0 %v4539_v33  ;;  %3476 = vmatmul.mubr.f32.vlgmr.msra.gmra.mrb[0].mxu1 %v311_v32  ;;  %v4561_v32 = vpack.c.bf16 %v1525_v27, %v1521_v26  ;;  %v1520_v33 = vld [vmem:[%s5925_s4 + $0x2580] sm:$0xff]  ;;  %v4581_v28 = vpack.c.bf16 %v1565_v23, %v1561_v22 }
 0x28a   : > { %5340 = vmatpush1.bf16.msra.mxu1 %v5339_v34  ;;  %4542 = vmatprep.subr.bf16.mxu0 %v4541_v35  ;;  %v1524_v34 = vld [vmem:[%s5925_s4 + $0x25a0] sm:$0xff]  ;;  %v1522_v35 = vld [vmem:[%s5925_s4 + $0x2590] sm:$0xff] }
 0x28b   : > { %5342 = vmatprep.subr.bf16.mxu1 %v5341_v39  ;;  %2623 = vmatprep.mubr.f32.mxu0 %v314_v45  ;;  %v1533_v39 = vld [vmem:[%s5925_s4 + $0x25e8] sm:$0xff]  ;;  %v4563_v42 = vpack.c.bf16 %v1524_v34, %v1520_v33  ;;  %v5363_v43 = vpack.c.bf16 %v1526_v37, %v1522_v35  ;;  %v1566_v33 = vld [vmem:[%s5925_s4 + $0x26f0] sm:$0xff]  ;;  %v1575_v37 = vld [vmem:[%s5925_s4 + $0x2738] sm:$0xff] }
 0x28c   : > { %3546 = vmatprep.mubr.f32.mxu1 %v314_v45  ;;  %v4565_v44 = vpack.c.bf16 %v1533_v39, %v1529_v38  ;;  %v1528_v45 = vld [vmem:[%s5925_s4 + $0x25c0] sm:$0xff]  ;;  %v1569_v34 = vld [vmem:[%s5925_s4 + $0x2708] sm:$0xff] }
 0x28d   : > { %4544 = vmatpush1.bf16.msra.mxu0 %v4543_v46  ;;  %v1532_v46 = vld [vmem:[%s5925_s4 + $0x25e0] sm:$0xff]  ;;  %v1573_v35 = vld [vmem:[%s5925_s4 + $0x2728] sm:$0xff] }
 0x28e   : > { %5344 = vmatpush1.bf16.msra.mxu1 %v5343_v47  ;;  %4546 = vmatprep.subr.bf16.mxu0 %v4545_v48  ;;  %v1530_v47 = vld [vmem:[%s5925_s4 + $0x25d0] sm:$0xff]  ;;  %v5365_v48 = vpack.c.bf16 %v1535_v41, %v1531_v40  ;;  %v4567_v54 = vpack.c.bf16 %v1532_v46, %v1528_v45  ;;  %v4585_v40 = vpack.c.bf16 %v1573_v35, %v1569_v34  ;;  %v1568_v41 = vld [vmem:[%s5925_s4 + $0x2700] sm:$0xff]  ;;  %v1577_v46 = vld [vmem:[%s5925_s4 + $0x2748] sm:$0xff] }
 0x28f   : > { %5346 = vmatprep.subr.bf16.mxu1 %v5345_v52  ;;  %v1539_v52 = vld [vmem:[%s5925_s4 + $0x2618] sm:$0xff]  ;;  %v5367_v55 = vpack.c.bf16 %v1534_v49, %v1530_v47  ;;  %v1574_v45 = vld [vmem:[%s5925_s4 + $0x2730] sm:$0xff]  ;;  %v1581_v47 = vld [vmem:[%s5925_s4 + $0x2768] sm:$0xff] }
 0x290   : > { %v1583_v49 = vld [vmem:[%s5925_s4 + $0x2778] sm:$0xff]  ;;  %v313_v34 = vld [vmem:[%s5948_s20 + $0x90] sm:$0xff] }
 0x291   : > { %4548 = vmatpush1.bf16.msra.mxu0 %v4547_v58  ;;  %v1540_v58 = vld [vmem:[%s5925_s4 + $0x2620] sm:$0xff] }
 0x292   : > { %5348 = vmatpush1.bf16.msra.mxu1 %v5347_v59  ;;  %4550 = vmatprep.subr.bf16.mxu0 %v4549_v60  ;;  %v1538_v59 = vld [vmem:[%s5925_s4 + $0x2610] sm:$0xff]  ;;  %v5369_v60 = vpack.c.bf16 %v1543_v53, %v1539_v52  ;;  %v4571_v2 = vpack.c.bf16 %v1540_v58, %v1536_v57  ;;  %v4589_v52 = vpack.c.bf16 %v1581_v47, %v1577_v46  ;;  %v1576_v53 = vld [vmem:[%s5925_s4 + $0x2740] sm:$0xff]  ;;  %v1585_v58 = vld [vmem:[%s5925_s4 + $0x2788] sm:$0xff] }
 0x293   : > { %5350 = vmatprep.subr.bf16.mxu1 %v5349_v0  ;;  %v1547_v0 = vld [vmem:[%s5925_s4 + $0x2658] sm:$0xff]  ;;  %v5371_v3 = vpack.c.bf16 %v1542_v61, %v1538_v59  ;;  %v1582_v57 = vld [vmem:[%s5925_s4 + $0x2770] sm:$0xff]  ;;  %v1589_v59 = vld [vmem:[%s5925_s4 + $0x27a8] sm:$0xff] }
 0x294   : > { %v1591_v61 = vld [vmem:[%s5925_s4 + $0x27b8] sm:$0xff]  ;;  %v316_v47 = vld [vmem:[%s5948_s20 + $0xa8] sm:$0xff] }
 0x295   : > { %4552 = vmatpush1.bf16.msra.mxu0 %v4551_v6  ;;  %v1548_v6 = vld [vmem:[%s5925_s4 + $0x2660] sm:$0xff]  ;;  %v1623_v46 = vld [vmem:[%s5925_s4 + $0x28b8] sm:$0xff] }
 0x296   : > { %5352 = vmatpush1.bf16.msra.mxu1 %v5351_v7  ;;  %4554 = vmatprep.subr.bf16.mxu0 %v4553_v8  ;;  %v1546_v7 = vld [vmem:[%s5925_s4 + $0x2650] sm:$0xff]  ;;  %v5373_v8 = vpack.c.bf16 %v1551_v1, %v1547_v0  ;;  %v4575_v14 = vpack.c.bf16 %v1548_v6, %v1544_v5  ;;  %v4593_v0 = vpack.c.bf16 %v1589_v59, %v1585_v58  ;;  %v1584_v1 = vld [vmem:[%s5925_s4 + $0x2780] sm:$0xff]  ;;  %v1593_v6 = vld [vmem:[%s5925_s4 + $0x27c8] sm:$0xff] }
 0x297   : > { %5354 = vmatprep.subr.bf16.mxu1 %v5353_v12  ;;  %v1555_v12 = vld [vmem:[%s5925_s4 + $0x2698] sm:$0xff]  ;;  %v5375_v15 = vpack.c.bf16 %v1550_v9, %v1546_v7  ;;  %v1590_v5 = vld [vmem:[%s5925_s4 + $0x27b0] sm:$0xff]  ;;  %v1597_v7 = vld [vmem:[%s5925_s4 + $0x27e8] sm:$0xff] }
 0x298   : > { %v1599_v9 = vld [vmem:[%s5925_s4 + $0x27f8] sm:$0xff] }
 0x299   : > { %4556 = vmatpush1.bf16.msra.mxu0 %v4555_v18  ;;  %v1556_v18 = vld [vmem:[%s5925_s4 + $0x26a0] sm:$0xff]  ;;  %v1627_v58 = vld [vmem:[%s5925_s4 + $0x28d8] sm:$0xff] }
 0x29a   : > { %5356 = vmatpush1.bf16.msra.mxu1 %v5355_v19  ;;  %4558 = vmatprep.subr.bf16.mxu0 %v4557_v20  ;;  %v1554_v19 = vld [vmem:[%s5925_s4 + $0x2690] sm:$0xff]  ;;  %v5377_v20 = vpack.c.bf16 %v1559_v13, %v1555_v12  ;;  %v4579_v26 = vpack.c.bf16 %v1556_v18, %v1552_v17  ;;  %v4597_v12 = vpack.c.bf16 %v1597_v7, %v1593_v6  ;;  %v1592_v13 = vld [vmem:[%s5925_s4 + $0x27c0] sm:$0xff]  ;;  %v1601_v18 = vld [vmem:[%s5925_s4 + $0x2808] sm:$0xff] }
 0x29b   : > { %5358 = vmatprep.subr.bf16.mxu1 %v5357_v24  ;;  %v1563_v24 = vld [vmem:[%s5925_s4 + $0x26d8] sm:$0xff]  ;;  %v5379_v27 = vpack.c.bf16 %v1558_v21, %v1554_v19  ;;  %v1598_v17 = vld [vmem:[%s5925_s4 + $0x27f0] sm:$0xff]  ;;  %v1605_v19 = vld [vmem:[%s5925_s4 + $0x2828] sm:$0xff] }
 0x29c   : > { %v1607_v21 = vld [vmem:[%s5925_s4 + $0x2838] sm:$0xff] }
 0x29d   : > { %4560 = vmatpush1.bf16.msra.mxu0 %v4559_v30  ;;  %v1564_v30 = vld [vmem:[%s5925_s4 + $0x26e0] sm:$0xff]  ;;  %v1631_v59 = vld [vmem:[%s5925_s4 + $0x28f8] sm:$0xff] }
 0x29e   : > { %5360 = vmatpush1.bf16.msra.mxu1 %v5359_v31  ;;  %4562 = vmatprep.subr.bf16.mxu0 %v4561_v32  ;;  %v1562_v31 = vld [vmem:[%s5925_s4 + $0x26d0] sm:$0xff]  ;;  %v5381_v32 = vpack.c.bf16 %v1567_v25, %v1563_v24  ;;  %v4583_v38 = vpack.c.bf16 %v1564_v30, %v1560_v29  ;;  %v4601_v24 = vpack.c.bf16 %v1605_v19, %v1601_v18  ;;  %v1600_v25 = vld [vmem:[%s5925_s4 + $0x2800] sm:$0xff]  ;;  %v1609_v30 = vld [vmem:[%s5925_s4 + $0x2848] sm:$0xff] }
 0x29f   : > { %5362 = vmatprep.subr.bf16.mxu1 %v5361_v36  ;;  %v1571_v36 = vld [vmem:[%s5925_s4 + $0x2718] sm:$0xff]  ;;  %v5383_v39 = vpack.c.bf16 %v1566_v33, %v1562_v31  ;;  %v1606_v29 = vld [vmem:[%s5925_s4 + $0x2830] sm:$0xff]  ;;  %v1613_v31 = vld [vmem:[%s5925_s4 + $0x2868] sm:$0xff] }
 0x2a0   : > { %v1615_v33 = vld [vmem:[%s5925_s4 + $0x2878] sm:$0xff] }
 0x2a1   : > { %4564 = vmatpush1.bf16.msra.mxu0 %v4563_v42  ;;  %v1572_v42 = vld [vmem:[%s5925_s4 + $0x2720] sm:$0xff]  ;;  %v1635_v6 = vld [vmem:[%s5925_s4 + $0x2918] sm:$0xff] }
 0x2a2   : > { %5364 = vmatpush1.bf16.msra.mxu1 %v5363_v43  ;;  %4566 = vmatprep.subr.bf16.mxu0 %v4565_v44  ;;  %v1570_v43 = vld [vmem:[%s5925_s4 + $0x2710] sm:$0xff]  ;;  %v5385_v44 = vpack.c.bf16 %v1575_v37, %v1571_v36  ;;  %v4587_v50 = vpack.c.bf16 %v1572_v42, %v1568_v41  ;;  %v4605_v37 = vpack.c.bf16 %v1613_v31, %v1609_v30  ;;  %v1639_v7 = vld [vmem:[%s5925_s4 + $0x2938] sm:$0xff] }
 0x2a3   : > { %5366 = vmatprep.subr.bf16.mxu1 %v5365_v48  ;;  %v1579_v48 = vld [vmem:[%s5925_s4 + $0x2758] sm:$0xff]  ;;  %v5387_v51 = vpack.c.bf16 %v1574_v45, %v1570_v43  ;;  %v1614_v42 = vld [vmem:[%s5925_s4 + $0x2870] sm:$0xff]  ;;  %v1617_v43 = vld [vmem:[%s5925_s4 + $0x2888] sm:$0xff] }
 0x2a4   : > { %v1619_v45 = vld [vmem:[%s5925_s4 + $0x2898] sm:$0xff] }
 0x2a5   : > { %4568 = vmatpush1.bf16.msra.mxu0 %v4567_v54  ;;  %v1580_v54 = vld [vmem:[%s5925_s4 + $0x2760] sm:$0xff]  ;;  %v1643_v18 = vld [vmem:[%s5925_s4 + $0x2958] sm:$0xff] }
 0x2a6   : > { %5368 = vmatpush1.bf16.msra.mxu1 %v5367_v55  ;;  %4570 = vmatprep.subr.bf16.mxu0 %v4569_v56  ;;  %v1578_v55 = vld [vmem:[%s5925_s4 + $0x2750] sm:$0xff]  ;;  %v5389_v56 = vpack.c.bf16 %v1583_v49, %v1579_v48  ;;  %v4591_v62 = vpack.c.bf16 %v1580_v54, %v1576_v53  ;;  %v5409_v54 = vpack.c.bf16 %v1623_v46, %v1619_v45  ;;  %v1647_v19 = vld [vmem:[%s5925_s4 + $0x2978] sm:$0xff] }
 0x2a7   : > { %5370 = vmatprep.subr.bf16.mxu1 %v5369_v60  ;;  %v1587_v60 = vld [vmem:[%s5925_s4 + $0x2798] sm:$0xff]  ;;  %v5391_v63 = vpack.c.bf16 %v1582_v57, %v1578_v55  ;;  %v1618_v53 = vld [vmem:[%s5925_s4 + $0x2890] sm:$0xff]  ;;  %v1629_v57 = vld [vmem:[%s5925_s4 + $0x28e8] sm:$0xff] }
 0x2a8   : > { %v1622_v55 = vld [vmem:[%s5925_s4 + $0x28b0] sm:$0xff]  ;;  %v1651_v30 = vld [vmem:[%s5925_s4 + $0x2998] sm:$0xff] }
 0x2a9   : > { %4572 = vmatpush1.bf16.msra.mxu0 %v4571_v2  ;;  %v1588_v2 = vld [vmem:[%s5925_s4 + $0x27a0] sm:$0xff]  ;;  %v1655_v31 = vld [vmem:[%s5925_s4 + $0x29b8] sm:$0xff] }
 0x2aa   : > { %5372 = vmatpush1.bf16.msra.mxu1 %v5371_v3  ;;  %4574 = vmatprep.subr.bf16.mxu0 %v4573_v4  ;;  %v1586_v3 = vld [vmem:[%s5925_s4 + $0x2790] sm:$0xff]  ;;  %v5393_v4 = vpack.c.bf16 %v1591_v61, %v1587_v60  ;;  %v4595_v10 = vpack.c.bf16 %v1588_v2, %v1584_v1  ;;  %v5411_v61 = vpack.c.bf16 %v1622_v55, %v1618_v53  ;;  %v1669_v53 = vld [vmem:[%s5925_s4 + $0x2a28] sm:$0xff]  ;;  %v1671_v55 = vld [vmem:[%s5925_s4 + $0x2a38] sm:$0xff] }
 0x2ab   : > { %5374 = vmatprep.subr.bf16.mxu1 %v5373_v8  ;;  %v1595_v8 = vld [vmem:[%s5925_s4 + $0x27d8] sm:$0xff]  ;;  %v5395_v11 = vpack.c.bf16 %v1590_v5, %v1586_v3  ;;  %v1626_v1 = vld [vmem:[%s5925_s4 + $0x28d0] sm:$0xff]  ;;  %v5413_v2 = vpack.c.bf16 %v1631_v59, %v1627_v58  ;;  %v1637_v5 = vld [vmem:[%s5925_s4 + $0x2928] sm:$0xff] }
 0x2ac   : > { %v1630_v3 = vld [vmem:[%s5925_s4 + $0x28f0] sm:$0xff]  ;;  %v1664_v59 = vld [vmem:[%s5925_s4 + $0x2a00] sm:$0xff] }
 0x2ad   : > { %4576 = vmatpush1.bf16.msra.mxu0 %v4575_v14  ;;  %v1596_v14 = vld [vmem:[%s5925_s4 + $0x27e0] sm:$0xff] }
 0x2ae   : > { %5376 = vmatpush1.bf16.msra.mxu1 %v5375_v15  ;;  %4578 = vmatprep.subr.bf16.mxu0 %v4577_v16  ;;  %v1594_v15 = vld [vmem:[%s5925_s4 + $0x27d0] sm:$0xff]  ;;  %v5397_v16 = vpack.c.bf16 %v1599_v9, %v1595_v8  ;;  %v4599_v22 = vpack.c.bf16 %v1596_v14, %v1592_v13  ;;  %v5415_v9 = vpack.c.bf16 %v1630_v3, %v1626_v1  ;;  %v1677_v1 = vld [vmem:[%s5925_s4 + $0x2a68] sm:$0xff]  ;;  %v1679_v3 = vld [vmem:[%s5925_s4 + $0x2a78] sm:$0xff] }
 0x2af   : > { %5378 = vmatprep.subr.bf16.mxu1 %v5377_v20  ;;  %v1603_v20 = vld [vmem:[%s5925_s4 + $0x2818] sm:$0xff]  ;;  %v5399_v23 = vpack.c.bf16 %v1598_v17, %v1594_v15  ;;  %v1634_v13 = vld [vmem:[%s5925_s4 + $0x2910] sm:$0xff]  ;;  %v5417_v14 = vpack.c.bf16 %v1639_v7, %v1635_v6  ;;  %v1645_v17 = vld [vmem:[%s5925_s4 + $0x2968] sm:$0xff] }
 0x2b0   : > { %v1638_v15 = vld [vmem:[%s5925_s4 + $0x2930] sm:$0xff]  ;;  %v1672_v7 = vld [vmem:[%s5925_s4 + $0x2a40] sm:$0xff] }
 0x2b1   : > { %4580 = vmatpush1.bf16.msra.mxu0 %v4579_v26  ;;  %v1604_v26 = vld [vmem:[%s5925_s4 + $0x2820] sm:$0xff] }
 0x2b2   : > { %5380 = vmatpush1.bf16.msra.mxu1 %v5379_v27  ;;  %4582 = vmatprep.subr.bf16.mxu0 %v4581_v28  ;;  %v1602_v27 = vld [vmem:[%s5925_s4 + $0x2810] sm:$0xff]  ;;  %v5401_v28 = vpack.c.bf16 %v1607_v21, %v1603_v20  ;;  %v4603_v35 = vpack.c.bf16 %v1604_v26, %v1600_v25  ;;  %v5419_v21 = vpack.c.bf16 %v1638_v15, %v1634_v13  ;;  %v1685_v13 = vld [vmem:[%s5925_s4 + $0x2aa8] sm:$0xff]  ;;  %v1687_v15 = vld [vmem:[%s5925_s4 + $0x2ab8] sm:$0xff] }
 0x2b3   : > { %5382 = vmatprep.subr.bf16.mxu1 %v5381_v32  ;;  %v1611_v32 = vld [vmem:[%s5925_s4 + $0x2858] sm:$0xff]  ;;  %v5403_v36 = vpack.c.bf16 %v1606_v29, %v1602_v27  ;;  %v1642_v25 = vld [vmem:[%s5925_s4 + $0x2950] sm:$0xff]  ;;  %v5421_v26 = vpack.c.bf16 %v1647_v19, %v1643_v18  ;;  %v1653_v29 = vld [vmem:[%s5925_s4 + $0x29a8] sm:$0xff] }
 0x2b4   : > { %v5405_v41 = vpack.c.bf16 %v1615_v33, %v1611_v32  ;;  %v1646_v27 = vld [vmem:[%s5925_s4 + $0x2970] sm:$0xff]  ;;  %v1680_v19 = vld [vmem:[%s5925_s4 + $0x2a80] sm:$0xff] }
 0x2b5   : > { %4584 = vmatpush1.bf16.msra.mxu0 %v4583_v38  ;;  %v1608_v38 = vld [vmem:[%s5925_s4 + $0x2840] sm:$0xff]  ;;  %v5423_v33 = vpack.c.bf16 %v1646_v27, %v1642_v25  ;;  %v1693_v25 = vld [vmem:[%s5925_s4 + $0x2ae8] sm:$0xff]  ;;  %v1695_v27 = vld [vmem:[%s5925_s4 + $0x2af8] sm:$0xff] }
 0x2b6   : > { %5384 = vmatpush1.bf16.msra.mxu1 %v5383_v39  ;;  %4586 = vmatprep.subr.bf16.mxu0 %v4585_v40  ;;  %v1612_v39 = vld [vmem:[%s5925_s4 + $0x2860] sm:$0xff]  ;;  %v1610_v40 = vld [vmem:[%s5925_s4 + $0x2850] sm:$0xff] }
 0x2b7   : > { %5386 = vmatprep.subr.bf16.mxu1 %v5385_v44  ;;  %v1621_v44 = vld [vmem:[%s5925_s4 + $0x28a8] sm:$0xff]  ;;  %v4607_v48 = vpack.c.bf16 %v1612_v39, %v1608_v38  ;;  %v5407_v49 = vpack.c.bf16 %v1614_v42, %v1610_v40  ;;  %v5425_v38 = vpack.c.bf16 %v1655_v31, %v1651_v30  ;;  %v1654_v39 = vld [vmem:[%s5925_s4 + $0x29b0] sm:$0xff]  ;;  %v1659_v42 = vld [vmem:[%s5925_s4 + $0x29d8] sm:$0xff] }
 0x2b8   : > { %v1657_v40 = vld [vmem:[%s5925_s4 + $0x29c8] sm:$0xff]  ;;  %v1688_v31 = vld [vmem:[%s5925_s4 + $0x2ac0] sm:$0xff] }
 0x2b9   : > { %4588 = vmatpush1.bf16.msra.mxu0 %v4587_v50  ;;  %v4609_v50 = vpack.c.bf16 %v1621_v44, %v1617_v43  ;;  %v1663_v43 = vld [vmem:[%s5925_s4 + $0x29f8] sm:$0xff] }
 0x2ba   : > { %5388 = vmatpush1.bf16.msra.mxu1 %v5387_v51  ;;  %4590 = vmatprep.subr.bf16.mxu0 %v4589_v52  ;;  %v1616_v51 = vld [vmem:[%s5925_s4 + $0x2880] sm:$0xff] }
 0x2bb   : > { %5390 = vmatprep.subr.bf16.mxu1 %v5389_v56  ;;  %v1620_v52 = vld [vmem:[%s5925_s4 + $0x28a0] sm:$0xff]  ;;  %v1625_v56 = vld [vmem:[%s5925_s4 + $0x28c8] sm:$0xff] }
 0x2bc   : > { %v4611_v60 = vpack.c.bf16 %v1620_v52, %v1616_v51  ;;  %v1662_v51 = vld [vmem:[%s5925_s4 + $0x29f0] sm:$0xff]  ;;  %v1665_v52 = vld [vmem:[%s5925_s4 + $0x2a08] sm:$0xff] }
 0x2bd   : > { %4592 = vmatpush1.bf16.msra.mxu0 %v4591_v62  ;;  %v4613_v62 = vpack.c.bf16 %v1629_v57, %v1625_v56  ;;  %v4633_v58 = vpack.c.bf16 %v1669_v53, %v1665_v52 }
 0x2be   : > { %5392 = vmatpush1.bf16.msra.mxu1 %v5391_v63  ;;  %4594 = vmatprep.subr.bf16.mxu0 %v4593_v0  ;;  %v1624_v63 = vld [vmem:[%s5925_s4 + $0x28c0] sm:$0xff] }
 0x2bf   : > { %5394 = vmatprep.subr.bf16.mxu1 %v5393_v4  ;;  %v1628_v0 = vld [vmem:[%s5925_s4 + $0x28e0] sm:$0xff]  ;;  %v1633_v4 = vld [vmem:[%s5925_s4 + $0x2908] sm:$0xff] }
 0x2c0   : > { %v4615_v8 = vpack.c.bf16 %v1628_v0, %v1624_v63  ;;  %v1670_v63 = vld [vmem:[%s5925_s4 + $0x2a30] sm:$0xff]  ;;  %v1673_v0 = vld [vmem:[%s5925_s4 + $0x2a48] sm:$0xff] }
 0x2c1   : > { %4596 = vmatpush1.bf16.msra.mxu0 %v4595_v10  ;;  %v4617_v10 = vpack.c.bf16 %v1637_v5, %v1633_v4  ;;  %v4637_v6 = vpack.c.bf16 %v1677_v1, %v1673_v0 }
 0x2c2   : > { %5396 = vmatpush1.bf16.msra.mxu1 %v5395_v11  ;;  %4598 = vmatprep.subr.bf16.mxu0 %v4597_v12  ;;  %v1632_v11 = vld [vmem:[%s5925_s4 + $0x2900] sm:$0xff] }
 0x2c3   : > { %5398 = vmatprep.subr.bf16.mxu1 %v5397_v16  ;;  %v1636_v12 = vld [vmem:[%s5925_s4 + $0x2920] sm:$0xff]  ;;  %v1641_v16 = vld [vmem:[%s5925_s4 + $0x2948] sm:$0xff] }
 0x2c4   : > { %v4619_v20 = vpack.c.bf16 %v1636_v12, %v1632_v11  ;;  %v1678_v11 = vld [vmem:[%s5925_s4 + $0x2a70] sm:$0xff]  ;;  %v1681_v12 = vld [vmem:[%s5925_s4 + $0x2a88] sm:$0xff] }
 0x2c5   : > { %4600 = vmatpush1.bf16.msra.mxu0 %v4599_v22  ;;  %v4621_v22 = vpack.c.bf16 %v1645_v17, %v1641_v16  ;;  %v4641_v18 = vpack.c.bf16 %v1685_v13, %v1681_v12 }
 0x2c6   : > { %5400 = vmatpush1.bf16.msra.mxu1 %v5399_v23  ;;  %4602 = vmatprep.subr.bf16.mxu0 %v4601_v24  ;;  %v1640_v23 = vld [vmem:[%s5925_s4 + $0x2940] sm:$0xff] }
 0x2c7   : > { %5402 = vmatprep.subr.bf16.mxu1 %v5401_v28  ;;  %v1644_v24 = vld [vmem:[%s5925_s4 + $0x2960] sm:$0xff]  ;;  %v1649_v28 = vld [vmem:[%s5925_s4 + $0x2988] sm:$0xff] }
 0x2c8   : > { %2624 = vmatmul.mubr.f32.vlgmr.msra.gmra.mrb[0].mxu0 %v313_v34  ;;  %v4623_v32 = vpack.c.bf16 %v1644_v24, %v1640_v23  ;;  %v1686_v23 = vld [vmem:[%s5925_s4 + $0x2ab0] sm:$0xff]  ;;  %v1689_v24 = vld [vmem:[%s5925_s4 + $0x2ac8] sm:$0xff] }
 0x2c9   : > { %4604 = vmatpush1.bf16.msra.mxu0 %v4603_v35  ;;  %3547 = vmatmul.mubr.f32.vlgmr.msra.gmra.mrb[0].mxu1 %v313_v34  ;;  %v4625_v34 = vpack.c.bf16 %v1653_v29, %v1649_v28  ;;  %v1648_v35 = vld [vmem:[%s5925_s4 + $0x2980] sm:$0xff]  ;;  %v4645_v30 = vpack.c.bf16 %v1693_v25, %v1689_v24 }
 0x2ca   : > { %5404 = vmatpush1.bf16.msra.mxu1 %v5403_v36  ;;  %4606 = vmatprep.subr.bf16.mxu0 %v4605_v37  ;;  %v1652_v36 = vld [vmem:[%s5925_s4 + $0x29a0] sm:$0xff]  ;;  %v1650_v37 = vld [vmem:[%s5925_s4 + $0x2990] sm:$0xff] }
 0x2cb   : > { %5406 = vmatprep.subr.bf16.mxu1 %v5405_v41  ;;  %2694 = vmatprep.mubr.f32.mxu0 %v316_v47  ;;  %v1661_v41 = vld [vmem:[%s5925_s4 + $0x29e8] sm:$0xff]  ;;  %v4627_v44 = vpack.c.bf16 %v1652_v36, %v1648_v35  ;;  %v5427_v45 = vpack.c.bf16 %v1654_v39, %v1650_v37  ;;  %v1694_v35 = vld [vmem:[%s5925_s4 + $0x2af0] sm:$0xff]  ;;  %v1703_v39 = vld [vmem:[%s5925_s4 + $0x2b38] sm:$0xff] }
 0x2cc   : > { %3617 = vmatprep.mubr.f32.mxu1 %v316_v47  ;;  %v4629_v46 = vpack.c.bf16 %v1661_v41, %v1657_v40  ;;  %v1656_v47 = vld [vmem:[%s5925_s4 + $0x29c0] sm:$0xff]  ;;  %v1697_v36 = vld [vmem:[%s5925_s4 + $0x2b08] sm:$0xff] }
 0x2cd   : > { %4608 = vmatpush1.bf16.msra.mxu0 %v4607_v48  ;;  %v1660_v48 = vld [vmem:[%s5925_s4 + $0x29e0] sm:$0xff]  ;;  %v1701_v37 = vld [vmem:[%s5925_s4 + $0x2b28] sm:$0xff] }
 0x2ce   : > { %5408 = vmatpush1.bf16.msra.mxu1 %v5407_v49  ;;  %4610 = vmatprep.subr.bf16.mxu0 %v4609_v50  ;;  %v1658_v49 = vld [vmem:[%s5925_s4 + $0x29d0] sm:$0xff]  ;;  %v5429_v50 = vpack.c.bf16 %v1663_v43, %v1659_v42  ;;  %v4631_v56 = vpack.c.bf16 %v1660_v48, %v1656_v47  ;;  %v4649_v42 = vpack.c.bf16 %v1701_v37, %v1697_v36  ;;  %v1696_v43 = vld [vmem:[%s5925_s4 + $0x2b00] sm:$0xff]  ;;  %v1705_v48 = vld [vmem:[%s5925_s4 + $0x2b48] sm:$0xff] }
 0x2cf   : > { %5410 = vmatprep.subr.bf16.mxu1 %v5409_v54  ;;  %v1667_v54 = vld [vmem:[%s5925_s4 + $0x2a18] sm:$0xff]  ;;  %v5431_v57 = vpack.c.bf16 %v1662_v51, %v1658_v49  ;;  %v1702_v47 = vld [vmem:[%s5925_s4 + $0x2b30] sm:$0xff]  ;;  %v1709_v49 = vld [vmem:[%s5925_s4 + $0x2b68] sm:$0xff] }
 0x2d0   : > { %v1711_v51 = vld [vmem:[%s5925_s4 + $0x2b78] sm:$0xff]  ;;  %v315_v36 = vld [vmem:[%s5948_s20 + $0xa0] sm:$0xff] }
 0x2d1   : > { %4612 = vmatpush1.bf16.msra.mxu0 %v4611_v60  ;;  %v1668_v60 = vld [vmem:[%s5925_s4 + $0x2a20] sm:$0xff] }
 0x2d2   : > { %5412 = vmatpush1.bf16.msra.mxu1 %v5411_v61  ;;  %4614 = vmatprep.subr.bf16.mxu0 %v4613_v62  ;;  %v1666_v61 = vld [vmem:[%s5925_s4 + $0x2a10] sm:$0xff]  ;;  %v5433_v62 = vpack.c.bf16 %v1671_v55, %v1667_v54  ;;  %v4635_v4 = vpack.c.bf16 %v1668_v60, %v1664_v59  ;;  %v4653_v54 = vpack.c.bf16 %v1709_v49, %v1705_v48  ;;  %v1704_v55 = vld [vmem:[%s5925_s4 + $0x2b40] sm:$0xff]  ;;  %v1713_v60 = vld [vmem:[%s5925_s4 + $0x2b88] sm:$0xff] }
 0x2d3   : > { %5414 = vmatprep.subr.bf16.mxu1 %v5413_v2  ;;  %v1675_v2 = vld [vmem:[%s5925_s4 + $0x2a58] sm:$0xff]  ;;  %v5435_v5 = vpack.c.bf16 %v1670_v63, %v1666_v61  ;;  %v1710_v59 = vld [vmem:[%s5925_s4 + $0x2b70] sm:$0xff]  ;;  %v1717_v61 = vld [vmem:[%s5925_s4 + $0x2ba8] sm:$0xff] }
 0x2d4   : > { %v1719_v63 = vld [vmem:[%s5925_s4 + $0x2bb8] sm:$0xff] }
 0x2d5   : > { %4616 = vmatpush1.bf16.msra.mxu0 %v4615_v8  ;;  %v1676_v8 = vld [vmem:[%s5925_s4 + $0x2a60] sm:$0xff]  ;;  %v1751_v48 = vld [vmem:[%s5925_s4 + $0x2cb8] sm:$0xff] }
 0x2d6   : > { %5416 = vmatpush1.bf16.msra.mxu1 %v5415_v9  ;;  %4618 = vmatprep.subr.bf16.mxu0 %v4617_v10  ;;  %v1674_v9 = vld [vmem:[%s5925_s4 + $0x2a50] sm:$0xff]  ;;  %v5437_v10 = vpack.c.bf16 %v1679_v3, %v1675_v2  ;;  %v4639_v16 = vpack.c.bf16 %v1676_v8, %v1672_v7  ;;  %v4657_v2 = vpack.c.bf16 %v1717_v61, %v1713_v60  ;;  %v1712_v3 = vld [vmem:[%s5925_s4 + $0x2b80] sm:$0xff]  ;;  %v1721_v8 = vld [vmem:[%s5925_s4 + $0x2bc8] sm:$0xff] }
 0x2d7   : > { %5418 = vmatprep.subr.bf16.mxu1 %v5417_v14  ;;  %v1683_v14 = vld [vmem:[%s5925_s4 + $0x2a98] sm:$0xff]  ;;  %v5439_v17 = vpack.c.bf16 %v1678_v11, %v1674_v9  ;;  %v1718_v7 = vld [vmem:[%s5925_s4 + $0x2bb0] sm:$0xff]  ;;  %v1725_v9 = vld [vmem:[%s5925_s4 + $0x2be8] sm:$0xff] }
 0x2d8   : > { %v1727_v11 = vld [vmem:[%s5925_s4 + $0x2bf8] sm:$0xff] }
 0x2d9   : > { %4620 = vmatpush1.bf16.msra.mxu0 %v4619_v20  ;;  %v1684_v20 = vld [vmem:[%s5925_s4 + $0x2aa0] sm:$0xff]  ;;  %v318_v49 = vld [vmem:[%s5948_s20 + $0xb8] sm:$0xff] }
 0x2da   : > { %5420 = vmatpush1.bf16.msra.mxu1 %v5419_v21  ;;  %4622 = vmatprep.subr.bf16.mxu0 %v4621_v22  ;;  %v1682_v21 = vld [vmem:[%s5925_s4 + $0x2a90] sm:$0xff]  ;;  %v5441_v22 = vpack.c.bf16 %v1687_v15, %v1683_v14  ;;  %v4643_v28 = vpack.c.bf16 %v1684_v20, %v1680_v19  ;;  %v4661_v14 = vpack.c.bf16 %v1725_v9, %v1721_v8  ;;  %v1720_v15 = vld [vmem:[%s5925_s4 + $0x2bc0] sm:$0xff]  ;;  %v1729_v20 = vld [vmem:[%s5925_s4 + $0x2c08] sm:$0xff] }
 0x2db   : > { %5422 = vmatprep.subr.bf16.mxu1 %v5421_v26  ;;  %v1691_v26 = vld [vmem:[%s5925_s4 + $0x2ad8] sm:$0xff]  ;;  %v5443_v29 = vpack.c.bf16 %v1686_v23, %v1682_v21  ;;  %v1726_v19 = vld [vmem:[%s5925_s4 + $0x2bf0] sm:$0xff]  ;;  %v1733_v21 = vld [vmem:[%s5925_s4 + $0x2c28] sm:$0xff] }
 0x2dc   : > { %v1735_v23 = vld [vmem:[%s5925_s4 + $0x2c38] sm:$0xff] }
 0x2dd   : > { %4624 = vmatpush1.bf16.msra.mxu0 %v4623_v32  ;;  %v1692_v32 = vld [vmem:[%s5925_s4 + $0x2ae0] sm:$0xff]  ;;  %v1755_v60 = vld [vmem:[%s5925_s4 + $0x2cd8] sm:$0xff] }
 0x2de   : > { %5424 = vmatpush1.bf16.msra.mxu1 %v5423_v33  ;;  %4626 = vmatprep.subr.bf16.mxu0 %v4625_v34  ;;  %v1690_v33 = vld [vmem:[%s5925_s4 + $0x2ad0] sm:$0xff]  ;;  %v5445_v34 = vpack.c.bf16 %v1695_v27, %v1691_v26  ;;  %v4647_v40 = vpack.c.bf16 %v1692_v32, %v1688_v31  ;;  %v4665_v26 = vpack.c.bf16 %v1733_v21, %v1729_v20  ;;  %v1728_v27 = vld [vmem:[%s5925_s4 + $0x2c00] sm:$0xff]  ;;  %v1737_v32 = vld [vmem:[%s5925_s4 + $0x2c48] sm:$0xff] }
 0x2df   : > { %5426 = vmatprep.subr.bf16.mxu1 %v5425_v38  ;;  %v1699_v38 = vld [vmem:[%s5925_s4 + $0x2b18] sm:$0xff]  ;;  %v5447_v41 = vpack.c.bf16 %v1694_v35, %v1690_v33  ;;  %v1734_v31 = vld [vmem:[%s5925_s4 + $0x2c30] sm:$0xff]  ;;  %v1741_v33 = vld [vmem:[%s5925_s4 + $0x2c68] sm:$0xff] }
 0x2e0   : > { %v1743_v35 = vld [vmem:[%s5925_s4 + $0x2c78] sm:$0xff] }
 0x2e1   : > { %4628 = vmatpush1.bf16.msra.mxu0 %v4627_v44  ;;  %v1700_v44 = vld [vmem:[%s5925_s4 + $0x2b20] sm:$0xff]  ;;  %v1759_v61 = vld [vmem:[%s5925_s4 + $0x2cf8] sm:$0xff] }
 0x2e2   : > { %5428 = vmatpush1.bf16.msra.mxu1 %v5427_v45  ;;  %4630 = vmatprep.subr.bf16.mxu0 %v4629_v46  ;;  %v1698_v45 = vld [vmem:[%s5925_s4 + $0x2b10] sm:$0xff]  ;;  %v5449_v46 = vpack.c.bf16 %v1703_v39, %v1699_v38  ;;  %v4651_v52 = vpack.c.bf16 %v1700_v44, %v1696_v43  ;;  %v4669_v39 = vpack.c.bf16 %v1741_v33, %v1737_v32  ;;  %v1763_v8 = vld [vmem:[%s5925_s4 + $0x2d18] sm:$0xff] }
 0x2e3   : > { %5430 = vmatprep.subr.bf16.mxu1 %v5429_v50  ;;  %v1707_v50 = vld [vmem:[%s5925_s4 + $0x2b58] sm:$0xff]  ;;  %v5451_v53 = vpack.c.bf16 %v1702_v47, %v1698_v45  ;;  %v1742_v44 = vld [vmem:[%s5925_s4 + $0x2c70] sm:$0xff]  ;;  %v1745_v45 = vld [vmem:[%s5925_s4 + $0x2c88] sm:$0xff] }
 0x2e4   : > { %v1747_v47 = vld [vmem:[%s5925_s4 + $0x2c98] sm:$0xff] }
 0x2e5   : > { %4632 = vmatpush1.bf16.msra.mxu0 %v4631_v56  ;;  %v1708_v56 = vld [vmem:[%s5925_s4 + $0x2b60] sm:$0xff]  ;;  %v1767_v9 = vld [vmem:[%s5925_s4 + $0x2d38] sm:$0xff] }
 0x2e6   : > { %5432 = vmatpush1.bf16.msra.mxu1 %v5431_v57  ;;  %4634 = vmatprep.subr.bf16.mxu0 %v4633_v58  ;;  %v1706_v57 = vld [vmem:[%s5925_s4 + $0x2b50] sm:$0xff]  ;;  %v5453_v58 = vpack.c.bf16 %v1711_v51, %v1707_v50  ;;  %v4655_v0 = vpack.c.bf16 %v1708_v56, %v1704_v55  ;;  %v5473_v56 = vpack.c.bf16 %v1751_v48, %v1747_v47  ;;  %v1771_v20 = vld [vmem:[%s5925_s4 + $0x2d58] sm:$0xff] }
 0x2e7   : > { %5434 = vmatprep.subr.bf16.mxu1 %v5433_v62  ;;  %v1715_v62 = vld [vmem:[%s5925_s4 + $0x2b98] sm:$0xff]  ;;  %v5455_v1 = vpack.c.bf16 %v1710_v59, %v1706_v57  ;;  %v1746_v55 = vld [vmem:[%s5925_s4 + $0x2c90] sm:$0xff]  ;;  %v1757_v59 = vld [vmem:[%s5925_s4 + $0x2ce8] sm:$0xff] }
 0x2e8   : > { %v1750_v57 = vld [vmem:[%s5925_s4 + $0x2cb0] sm:$0xff]  ;;  %v1775_v21 = vld [vmem:[%s5925_s4 + $0x2d78] sm:$0xff] }
 0x2e9   : > { %4636 = vmatpush1.bf16.msra.mxu0 %v4635_v4  ;;  %v1716_v4 = vld [vmem:[%s5925_s4 + $0x2ba0] sm:$0xff]  ;;  %v1779_v32 = vld [vmem:[%s5925_s4 + $0x2d98] sm:$0xff] }
 0x2ea   : > { %5436 = vmatpush1.bf16.msra.mxu1 %v5435_v5  ;;  %4638 = vmatprep.subr.bf16.mxu0 %v4637_v6  ;;  %v1714_v5 = vld [vmem:[%s5925_s4 + $0x2b90] sm:$0xff]  ;;  %v5457_v6 = vpack.c.bf16 %v1719_v63, %v1715_v62  ;;  %v4659_v12 = vpack.c.bf16 %v1716_v4, %v1712_v3  ;;  %v5475_v63 = vpack.c.bf16 %v1750_v57, %v1746_v55  ;;  %v1783_v33 = vld [vmem:[%s5925_s4 + $0x2db8] sm:$0xff]  ;;  %v1797_v55 = vld [vmem:[%s5925_s4 + $0x2e28] sm:$0xff] }
 0x2eb   : > { %5438 = vmatprep.subr.bf16.mxu1 %v5437_v10  ;;  %v1723_v10 = vld [vmem:[%s5925_s4 + $0x2bd8] sm:$0xff]  ;;  %v5459_v13 = vpack.c.bf16 %v1718_v7, %v1714_v5  ;;  %v1754_v3 = vld [vmem:[%s5925_s4 + $0x2cd0] sm:$0xff]  ;;  %v5477_v4 = vpack.c.bf16 %v1759_v61, %v1755_v60  ;;  %v1765_v7 = vld [vmem:[%s5925_s4 + $0x2d28] sm:$0xff] }
 0x2ec   : > { %v1758_v5 = vld [vmem:[%s5925_s4 + $0x2cf0] sm:$0xff]  ;;  %v1799_v57 = vld [vmem:[%s5925_s4 + $0x2e38] sm:$0xff]  ;;  %v1792_v61 = vld [vmem:[%s5925_s4 + $0x2e00] sm:$0xff] }
 0x2ed   : > { %4640 = vmatpush1.bf16.msra.mxu0 %v4639_v16  ;;  %v1724_v16 = vld [vmem:[%s5925_s4 + $0x2be0] sm:$0xff] }
 0x2ee   : > { %5440 = vmatpush1.bf16.msra.mxu1 %v5439_v17  ;;  %4642 = vmatprep.subr.bf16.mxu0 %v4641_v18  ;;  %v1722_v17 = vld [vmem:[%s5925_s4 + $0x2bd0] sm:$0xff]  ;;  %v5461_v18 = vpack.c.bf16 %v1727_v11, %v1723_v10  ;;  %v4663_v24 = vpack.c.bf16 %v1724_v16, %v1720_v15  ;;  %v5479_v11 = vpack.c.bf16 %v1758_v5, %v1754_v3  ;;  %v1805_v3 = vld [vmem:[%s5925_s4 + $0x2e68] sm:$0xff]  ;;  %v1807_v5 = vld [vmem:[%s5925_s4 + $0x2e78] sm:$0xff] }
 0x2ef   : > { %5442 = vmatprep.subr.bf16.mxu1 %v5441_v22  ;;  %v1731_v22 = vld [vmem:[%s5925_s4 + $0x2c18] sm:$0xff]  ;;  %v5463_v25 = vpack.c.bf16 %v1726_v19, %v1722_v17  ;;  %v1762_v15 = vld [vmem:[%s5925_s4 + $0x2d10] sm:$0xff]  ;;  %v5481_v16 = vpack.c.bf16 %v1767_v9, %v1763_v8  ;;  %v1773_v19 = vld [vmem:[%s5925_s4 + $0x2d68] sm:$0xff] }
 0x2f0   : > { %v1766_v17 = vld [vmem:[%s5925_s4 + $0x2d30] sm:$0xff]  ;;  %v1800_v9 = vld [vmem:[%s5925_s4 + $0x2e40] sm:$0xff] }
 0x2f1   : > { %4644 = vmatpush1.bf16.msra.mxu0 %v4643_v28  ;;  %v1732_v28 = vld [vmem:[%s5925_s4 + $0x2c20] sm:$0xff] }
 0x2f2   : > { %5444 = vmatpush1.bf16.msra.mxu1 %v5443_v29  ;;  %4646 = vmatprep.subr.bf16.mxu0 %v4645_v30  ;;  %v1730_v29 = vld [vmem:[%s5925_s4 + $0x2c10] sm:$0xff]  ;;  %v5465_v30 = vpack.c.bf16 %v1735_v23, %v1731_v22  ;;  %v4667_v37 = vpack.c.bf16 %v1732_v28, %v1728_v27  ;;  %v5483_v23 = vpack.c.bf16 %v1766_v17, %v1762_v15  ;;  %v1813_v15 = vld [vmem:[%s5925_s4 + $0x2ea8] sm:$0xff]  ;;  %v1815_v17 = vld [vmem:[%s5925_s4 + $0x2eb8] sm:$0xff] }
 0x2f3   : > { %5446 = vmatprep.subr.bf16.mxu1 %v5445_v34  ;;  %v1739_v34 = vld [vmem:[%s5925_s4 + $0x2c58] sm:$0xff]  ;;  %v5467_v38 = vpack.c.bf16 %v1734_v31, %v1730_v29  ;;  %v1770_v27 = vld [vmem:[%s5925_s4 + $0x2d50] sm:$0xff]  ;;  %v5485_v28 = vpack.c.bf16 %v1775_v21, %v1771_v20  ;;  %v1781_v31 = vld [vmem:[%s5925_s4 + $0x2da8] sm:$0xff] }
 0x2f4   : > { %v5469_v43 = vpack.c.bf16 %v1743_v35, %v1739_v34  ;;  %v1774_v29 = vld [vmem:[%s5925_s4 + $0x2d70] sm:$0xff]  ;;  %v1808_v21 = vld [vmem:[%s5925_s4 + $0x2e80] sm:$0xff] }
 0x2f5   : > { %4648 = vmatpush1.bf16.msra.mxu0 %v4647_v40  ;;  %v1736_v40 = vld [vmem:[%s5925_s4 + $0x2c40] sm:$0xff]  ;;  %v5487_v35 = vpack.c.bf16 %v1774_v29, %v1770_v27  ;;  %v1821_v27 = vld [vmem:[%s5925_s4 + $0x2ee8] sm:$0xff]  ;;  %v1823_v29 = vld [vmem:[%s5925_s4 + $0x2ef8] sm:$0xff] }
 0x2f6   : > { %5448 = vmatpush1.bf16.msra.mxu1 %v5447_v41  ;;  %4650 = vmatprep.subr.bf16.mxu0 %v4649_v42  ;;  %v1740_v41 = vld [vmem:[%s5925_s4 + $0x2c60] sm:$0xff]  ;;  %v1738_v42 = vld [vmem:[%s5925_s4 + $0x2c50] sm:$0xff] }
 0x2f7   : > { %5450 = vmatprep.subr.bf16.mxu1 %v5449_v46  ;;  %v1749_v46 = vld [vmem:[%s5925_s4 + $0x2ca8] sm:$0xff]  ;;  %v4671_v50 = vpack.c.bf16 %v1740_v41, %v1736_v40  ;;  %v5471_v51 = vpack.c.bf16 %v1742_v44, %v1738_v42  ;;  %v5489_v40 = vpack.c.bf16 %v1783_v33, %v1779_v32  ;;  %v1782_v41 = vld [vmem:[%s5925_s4 + $0x2db0] sm:$0xff]  ;;  %v1787_v44 = vld [vmem:[%s5925_s4 + $0x2dd8] sm:$0xff] }
 0x2f8   : > { %v1785_v42 = vld [vmem:[%s5925_s4 + $0x2dc8] sm:$0xff]  ;;  %v1816_v33 = vld [vmem:[%s5925_s4 + $0x2ec0] sm:$0xff] }
 0x2f9   : > { %4652 = vmatpush1.bf16.msra.mxu0 %v4651_v52  ;;  %v4673_v52 = vpack.c.bf16 %v1749_v46, %v1745_v45  ;;  %v1791_v45 = vld [vmem:[%s5925_s4 + $0x2df8] sm:$0xff] }
 0x2fa   : > { %5452 = vmatpush1.bf16.msra.mxu1 %v5451_v53  ;;  %4654 = vmatprep.subr.bf16.mxu0 %v4653_v54  ;;  %v1744_v53 = vld [vmem:[%s5925_s4 + $0x2c80] sm:$0xff] }
 0x2fb   : > { %5454 = vmatprep.subr.bf16.mxu1 %v5453_v58  ;;  %v1748_v54 = vld [vmem:[%s5925_s4 + $0x2ca0] sm:$0xff]  ;;  %v1753_v58 = vld [vmem:[%s5925_s4 + $0x2cc8] sm:$0xff] }
 0x2fc   : > { %v4675_v62 = vpack.c.bf16 %v1748_v54, %v1744_v53  ;;  %v1790_v53 = vld [vmem:[%s5925_s4 + $0x2df0] sm:$0xff]  ;;  %v1793_v54 = vld [vmem:[%s5925_s4 + $0x2e08] sm:$0xff] }
 0x2fd   : > { %4656 = vmatpush1.bf16.msra.mxu0 %v4655_v0  ;;  %v4677_v0 = vpack.c.bf16 %v1757_v59, %v1753_v58  ;;  %v4697_v60 = vpack.c.bf16 %v1797_v55, %v1793_v54 }
 0x2fe   : > { %5456 = vmatpush1.bf16.msra.mxu1 %v5455_v1  ;;  %4658 = vmatprep.subr.bf16.mxu0 %v4657_v2  ;;  %v1752_v1 = vld [vmem:[%s5925_s4 + $0x2cc0] sm:$0xff] }
 0x2ff   : > { %5458 = vmatprep.subr.bf16.mxu1 %v5457_v6  ;;  %v1756_v2 = vld [vmem:[%s5925_s4 + $0x2ce0] sm:$0xff]  ;;  %v1761_v6 = vld [vmem:[%s5925_s4 + $0x2d08] sm:$0xff] }
 0x300   : > { %v4679_v10 = vpack.c.bf16 %v1756_v2, %v1752_v1  ;;  %v1798_v1 = vld [vmem:[%s5925_s4 + $0x2e30] sm:$0xff]  ;;  %v1801_v2 = vld [vmem:[%s5925_s4 + $0x2e48] sm:$0xff] }
 0x301   : > { %4660 = vmatpush1.bf16.msra.mxu0 %v4659_v12  ;;  %v4681_v12 = vpack.c.bf16 %v1765_v7, %v1761_v6  ;;  %v4701_v8 = vpack.c.bf16 %v1805_v3, %v1801_v2 }
 0x302   : > { %5460 = vmatpush1.bf16.msra.mxu1 %v5459_v13  ;;  %4662 = vmatprep.subr.bf16.mxu0 %v4661_v14  ;;  %v1760_v13 = vld [vmem:[%s5925_s4 + $0x2d00] sm:$0xff] }
 0x303   : > { %5462 = vmatprep.subr.bf16.mxu1 %v5461_v18  ;;  %v1764_v14 = vld [vmem:[%s5925_s4 + $0x2d20] sm:$0xff]  ;;  %v1769_v18 = vld [vmem:[%s5925_s4 + $0x2d48] sm:$0xff] }
 0x304   : > { %v4683_v22 = vpack.c.bf16 %v1764_v14, %v1760_v13  ;;  %v1806_v13 = vld [vmem:[%s5925_s4 + $0x2e70] sm:$0xff]  ;;  %v1809_v14 = vld [vmem:[%s5925_s4 + $0x2e88] sm:$0xff] }
 0x305   : > { %4664 = vmatpush1.bf16.msra.mxu0 %v4663_v24  ;;  %v4685_v24 = vpack.c.bf16 %v1773_v19, %v1769_v18  ;;  %v4705_v20 = vpack.c.bf16 %v1813_v15, %v1809_v14 }
 0x306   : > { %5464 = vmatpush1.bf16.msra.mxu1 %v5463_v25  ;;  %4666 = vmatprep.subr.bf16.mxu0 %v4665_v26  ;;  %v1768_v25 = vld [vmem:[%s5925_s4 + $0x2d40] sm:$0xff] }
 0x307   : > { %5466 = vmatprep.subr.bf16.mxu1 %v5465_v30  ;;  %v1772_v26 = vld [vmem:[%s5925_s4 + $0x2d60] sm:$0xff]  ;;  %v1777_v30 = vld [vmem:[%s5925_s4 + $0x2d88] sm:$0xff] }
 0x308   : > { %2695 = vmatmul.mubr.f32.vlgmr.msra.gmra.mrb[0].mxu0 %v315_v36  ;;  %v4687_v34 = vpack.c.bf16 %v1772_v26, %v1768_v25  ;;  %v1814_v25 = vld [vmem:[%s5925_s4 + $0x2eb0] sm:$0xff]  ;;  %v1817_v26 = vld [vmem:[%s5925_s4 + $0x2ec8] sm:$0xff] }
 0x309   : > { %4668 = vmatpush1.bf16.msra.mxu0 %v4667_v37  ;;  %3618 = vmatmul.mubr.f32.vlgmr.msra.gmra.mrb[0].mxu1 %v315_v36  ;;  %v4689_v36 = vpack.c.bf16 %v1781_v31, %v1777_v30  ;;  %v1776_v37 = vld [vmem:[%s5925_s4 + $0x2d80] sm:$0xff]  ;;  %v4709_v32 = vpack.c.bf16 %v1821_v27, %v1817_v26 }
 0x30a   : > { %5468 = vmatpush1.bf16.msra.mxu1 %v5467_v38  ;;  %4670 = vmatprep.subr.bf16.mxu0 %v4669_v39  ;;  %v1780_v38 = vld [vmem:[%s5925_s4 + $0x2da0] sm:$0xff]  ;;  %v1778_v39 = vld [vmem:[%s5925_s4 + $0x2d90] sm:$0xff] }
 0x30b   : > { %5470 = vmatprep.subr.bf16.mxu1 %v5469_v43  ;;  %2765 = vmatprep.mubr.f32.mxu0 %v318_v49  ;;  %v1789_v43 = vld [vmem:[%s5925_s4 + $0x2de8] sm:$0xff]  ;;  %v4691_v46 = vpack.c.bf16 %v1780_v38, %v1776_v37  ;;  %v5491_v47 = vpack.c.bf16 %v1782_v41, %v1778_v39  ;;  %v1822_v37 = vld [vmem:[%s5925_s4 + $0x2ef0] sm:$0xff]  ;;  %v1831_v41 = vld [vmem:[%s5925_s4 + $0x2f38] sm:$0xff] }
 0x30c   : > { %3688 = vmatprep.mubr.f32.mxu1 %v318_v49  ;;  %v4693_v48 = vpack.c.bf16 %v1789_v43, %v1785_v42  ;;  %v1784_v49 = vld [vmem:[%s5925_s4 + $0x2dc0] sm:$0xff]  ;;  %v1825_v38 = vld [vmem:[%s5925_s4 + $0x2f08] sm:$0xff] }
 0x30d   : > { %4672 = vmatpush1.bf16.msra.mxu0 %v4671_v50  ;;  %v1788_v50 = vld [vmem:[%s5925_s4 + $0x2de0] sm:$0xff]  ;;  %v1829_v39 = vld [vmem:[%s5925_s4 + $0x2f28] sm:$0xff] }
 0x30e   : > { %5472 = vmatpush1.bf16.msra.mxu1 %v5471_v51  ;;  %4674 = vmatprep.subr.bf16.mxu0 %v4673_v52  ;;  %v1786_v51 = vld [vmem:[%s5925_s4 + $0x2dd0] sm:$0xff]  ;;  %v5493_v52 = vpack.c.bf16 %v1791_v45, %v1787_v44  ;;  %v4695_v58 = vpack.c.bf16 %v1788_v50, %v1784_v49  ;;  %v4713_v44 = vpack.c.bf16 %v1829_v39, %v1825_v38  ;;  %v1824_v45 = vld [vmem:[%s5925_s4 + $0x2f00] sm:$0xff]  ;;  %v1833_v50 = vld [vmem:[%s5925_s4 + $0x2f48] sm:$0xff] }
 0x30f   : > { %5474 = vmatprep.subr.bf16.mxu1 %v5473_v56  ;;  %v1795_v56 = vld [vmem:[%s5925_s4 + $0x2e18] sm:$0xff]  ;;  %v5495_v59 = vpack.c.bf16 %v1790_v53, %v1786_v51  ;;  %v1830_v49 = vld [vmem:[%s5925_s4 + $0x2f30] sm:$0xff]  ;;  %v1837_v51 = vld [vmem:[%s5925_s4 + $0x2f68] sm:$0xff] }
 0x310   : > { %v1839_v53 = vld [vmem:[%s5925_s4 + $0x2f78] sm:$0xff]  ;;  %v317_v38 = vld [vmem:[%s5948_s20 + $0xb0] sm:$0xff] }
 0x311   : > { %4676 = vmatpush1.bf16.msra.mxu0 %v4675_v62  ;;  %v1796_v62 = vld [vmem:[%s5925_s4 + $0x2e20] sm:$0xff] }
 0x312   : > { %5476 = vmatpush1.bf16.msra.mxu1 %v5475_v63  ;;  %4678 = vmatprep.subr.bf16.mxu0 %v4677_v0  ;;  %v1794_v63 = vld [vmem:[%s5925_s4 + $0x2e10] sm:$0xff]  ;;  %v5497_v0 = vpack.c.bf16 %v1799_v57, %v1795_v56  ;;  %v4699_v6 = vpack.c.bf16 %v1796_v62, %v1792_v61  ;;  %v4717_v56 = vpack.c.bf16 %v1837_v51, %v1833_v50  ;;  %v1832_v57 = vld [vmem:[%s5925_s4 + $0x2f40] sm:$0xff]  ;;  %v1841_v62 = vld [vmem:[%s5925_s4 + $0x2f88] sm:$0xff] }
 0x313   : > { %5478 = vmatprep.subr.bf16.mxu1 %v5477_v4  ;;  %v1803_v4 = vld [vmem:[%s5925_s4 + $0x2e58] sm:$0xff]  ;;  %v5499_v7 = vpack.c.bf16 %v1798_v1, %v1794_v63  ;;  %v1838_v61 = vld [vmem:[%s5925_s4 + $0x2f70] sm:$0xff]  ;;  %v1845_v63 = vld [vmem:[%s5925_s4 + $0x2fa8] sm:$0xff] }
 0x314   : > { %v1847_v1 = vld [vmem:[%s5925_s4 + $0x2fb8] sm:$0xff] }
 0x315   : > { %4680 = vmatpush1.bf16.msra.mxu0 %v4679_v10  ;;  %v1804_v10 = vld [vmem:[%s5925_s4 + $0x2e60] sm:$0xff]  ;;  %v1879_v50 = vld [vmem:[%s5925_s4 + $0x30b8] sm:$0xff] }
 0x316   : > { %5480 = vmatpush1.bf16.msra.mxu1 %v5479_v11  ;;  %4682 = vmatprep.subr.bf16.mxu0 %v4681_v12  ;;  %v1802_v11 = vld [vmem:[%s5925_s4 + $0x2e50] sm:$0xff]  ;;  %v5501_v12 = vpack.c.bf16 %v1807_v5, %v1803_v4  ;;  %v4703_v18 = vpack.c.bf16 %v1804_v10, %v1800_v9  ;;  %v4721_v4 = vpack.c.bf16 %v1845_v63, %v1841_v62  ;;  %v1840_v5 = vld [vmem:[%s5925_s4 + $0x2f80] sm:$0xff]  ;;  %v1849_v10 = vld [vmem:[%s5925_s4 + $0x2fc8] sm:$0xff] }
 0x317   : > { %5482 = vmatprep.subr.bf16.mxu1 %v5481_v16  ;;  %v1811_v16 = vld [vmem:[%s5925_s4 + $0x2e98] sm:$0xff]  ;;  %v5503_v19 = vpack.c.bf16 %v1806_v13, %v1802_v11  ;;  %v1846_v9 = vld [vmem:[%s5925_s4 + $0x2fb0] sm:$0xff]  ;;  %v1853_v11 = vld [vmem:[%s5925_s4 + $0x2fe8] sm:$0xff] }
 0x318   : > { %v1855_v13 = vld [vmem:[%s5925_s4 + $0x2ff8] sm:$0xff] }
 0x319   : > { %4684 = vmatpush1.bf16.msra.mxu0 %v4683_v22  ;;  %v1812_v22 = vld [vmem:[%s5925_s4 + $0x2ea0] sm:$0xff]  ;;  %v1883_v62 = vld [vmem:[%s5925_s4 + $0x30d8] sm:$0xff] }
 0x31a   : > { %5484 = vmatpush1.bf16.msra.mxu1 %v5483_v23  ;;  %4686 = vmatprep.subr.bf16.mxu0 %v4685_v24  ;;  %v1810_v23 = vld [vmem:[%s5925_s4 + $0x2e90] sm:$0xff]  ;;  %v5505_v24 = vpack.c.bf16 %v1815_v17, %v1811_v16  ;;  %v4707_v30 = vpack.c.bf16 %v1812_v22, %v1808_v21  ;;  %v4725_v16 = vpack.c.bf16 %v1853_v11, %v1849_v10  ;;  %v1848_v17 = vld [vmem:[%s5925_s4 + $0x2fc0] sm:$0xff]  ;;  %v1857_v22 = vld [vmem:[%s5925_s4 + $0x3008] sm:$0xff] }
 0x31b   : > { %5486 = vmatprep.subr.bf16.mxu1 %v5485_v28  ;;  %v1819_v28 = vld [vmem:[%s5925_s4 + $0x2ed8] sm:$0xff]  ;;  %v5507_v31 = vpack.c.bf16 %v1814_v25, %v1810_v23  ;;  %v1854_v21 = vld [vmem:[%s5925_s4 + $0x2ff0] sm:$0xff]  ;;  %v1861_v23 = vld [vmem:[%s5925_s4 + $0x3028] sm:$0xff] }
 0x31c   : > { %v1863_v25 = vld [vmem:[%s5925_s4 + $0x3038] sm:$0xff] }
 0x31d   : > { %4688 = vmatpush1.bf16.msra.mxu0 %v4687_v34  ;;  %v1820_v34 = vld [vmem:[%s5925_s4 + $0x2ee0] sm:$0xff]  ;;  %v1887_v63 = vld [vmem:[%s5925_s4 + $0x30f8] sm:$0xff] }
 0x31e   : > { %5488 = vmatpush1.bf16.msra.mxu1 %v5487_v35  ;;  %4690 = vmatprep.subr.bf16.mxu0 %v4689_v36  ;;  %v1818_v35 = vld [vmem:[%s5925_s4 + $0x2ed0] sm:$0xff]  ;;  %v5509_v36 = vpack.c.bf16 %v1823_v29, %v1819_v28  ;;  %v4711_v42 = vpack.c.bf16 %v1820_v34, %v1816_v33  ;;  %v4729_v28 = vpack.c.bf16 %v1861_v23, %v1857_v22  ;;  %v1856_v29 = vld [vmem:[%s5925_s4 + $0x3000] sm:$0xff]  ;;  %v1865_v34 = vld [vmem:[%s5925_s4 + $0x3048] sm:$0xff] }
 0x31f   : > { %5490 = vmatprep.subr.bf16.mxu1 %v5489_v40  ;;  %v1827_v40 = vld [vmem:[%s5925_s4 + $0x2f18] sm:$0xff]  ;;  %v5511_v43 = vpack.c.bf16 %v1822_v37, %v1818_v35  ;;  %v1862_v33 = vld [vmem:[%s5925_s4 + $0x3030] sm:$0xff]  ;;  %v1869_v35 = vld [vmem:[%s5925_s4 + $0x3068] sm:$0xff] }
 0x320   : > { %v1871_v37 = vld [vmem:[%s5925_s4 + $0x3078] sm:$0xff] }
 0x321   : > { %4692 = vmatpush1.bf16.msra.mxu0 %v4691_v46  ;;  %v1828_v46 = vld [vmem:[%s5925_s4 + $0x2f20] sm:$0xff]  ;;  %v1891_v10 = vld [vmem:[%s5925_s4 + $0x3118] sm:$0xff] }
 0x322   : > { %5492 = vmatpush1.bf16.msra.mxu1 %v5491_v47  ;;  %4694 = vmatprep.subr.bf16.mxu0 %v4693_v48  ;;  %v1826_v47 = vld [vmem:[%s5925_s4 + $0x2f10] sm:$0xff]  ;;  %v5513_v48 = vpack.c.bf16 %v1831_v41, %v1827_v40  ;;  %v4715_v54 = vpack.c.bf16 %v1828_v46, %v1824_v45  ;;  %v4733_v41 = vpack.c.bf16 %v1869_v35, %v1865_v34  ;;  %v1895_v11 = vld [vmem:[%s5925_s4 + $0x3138] sm:$0xff] }
 0x323   : > { %5494 = vmatprep.subr.bf16.mxu1 %v5493_v52  ;;  %v1835_v52 = vld [vmem:[%s5925_s4 + $0x2f58] sm:$0xff]  ;;  %v5515_v55 = vpack.c.bf16 %v1830_v49, %v1826_v47  ;;  %v1870_v46 = vld [vmem:[%s5925_s4 + $0x3070] sm:$0xff]  ;;  %v1873_v47 = vld [vmem:[%s5925_s4 + $0x3088] sm:$0xff] }
 0x324   : > { %v1875_v49 = vld [vmem:[%s5925_s4 + $0x3098] sm:$0xff] }
 0x325   : > { %4696 = vmatpush1.bf16.msra.mxu0 %v4695_v58  ;;  %v1836_v58 = vld [vmem:[%s5925_s4 + $0x2f60] sm:$0xff]  ;;  %v1899_v22 = vld [vmem:[%s5925_s4 + $0x3158] sm:$0xff] }
 0x326   : > { %5496 = vmatpush1.bf16.msra.mxu1 %v5495_v59  ;;  %4698 = vmatprep.subr.bf16.mxu0 %v4697_v60  ;;  %v1834_v59 = vld [vmem:[%s5925_s4 + $0x2f50] sm:$0xff]  ;;  %v5517_v60 = vpack.c.bf16 %v1839_v53, %v1835_v52  ;;  %v4719_v2 = vpack.c.bf16 %v1836_v58, %v1832_v57  ;;  %v5537_v57 = vpack.c.bf16 %v1879_v50, %v1875_v49  ;;  %v1903_v23 = vld [vmem:[%s5925_s4 + $0x3178] sm:$0xff] }
 0x327   : > { %5498 = vmatprep.subr.bf16.mxu1 %v5497_v0  ;;  %v1843_v0 = vld [vmem:[%s5925_s4 + $0x2f98] sm:$0xff]  ;;  %v5519_v3 = vpack.c.bf16 %v1838_v61, %v1834_v59  ;;  %v1878_v58 = vld [vmem:[%s5925_s4 + $0x30b0] sm:$0xff]  ;;  %v1881_v59 = vld [vmem:[%s5925_s4 + $0x30c8] sm:$0xff]  ;;  %v5790_v61 = vmov 0.0  }
 0x328   : > { %v1907_v34 = vld [vmem:[%s5925_s4 + $0x3198] sm:$0xff] }
 0x329   : > { %4700 = vmatpush1.bf16.msra.mxu0 %v4699_v6  ;;  %v1844_v6 = vld [vmem:[%s5925_s4 + $0x2fa0] sm:$0xff]  ;;  %v1911_v35 = vld [vmem:[%s5925_s4 + $0x31b8] sm:$0xff] }
 0x32a   : > { %5500 = vmatpush1.bf16.msra.mxu1 %v5499_v7  ;;  %4702 = vmatprep.subr.bf16.mxu0 %v4701_v8  ;;  %v1842_v7 = vld [vmem:[%s5925_s4 + $0x2f90] sm:$0xff]  ;;  %v5521_v8 = vpack.c.bf16 %v1847_v1, %v1843_v0  ;;  %v4723_v14 = vpack.c.bf16 %v1844_v6, %v1840_v5  ;;  %v5541_v6 = vpack.c.bf16 %v1887_v63, %v1883_v62  ;;  %v294_v63 = vld [vmem:[#allocation2 + $0x18] sm:$0xff] }
 0x32b   : > { %5502 = vmatprep.subr.bf16.mxu1 %v5501_v12  ;;  %v1851_v12 = vld [vmem:[%s5925_s4 + $0x2fd8] sm:$0xff]  ;;  %v5523_v15 = vpack.c.bf16 %v1846_v9, %v1842_v7  ;;  %v1882_v5 = vld [vmem:[%s5925_s4 + $0x30d0] sm:$0xff]  ;;  %v1893_v9 = vld [vmem:[%s5925_s4 + $0x3128] sm:$0xff] }
 0x32c   : > { %v1886_v7 = vld [vmem:[%s5925_s4 + $0x30f0] sm:$0xff] }
 0x32d   : > { %4704 = vmatpush1.bf16.msra.mxu0 %v4703_v18  ;;  %v1852_v18 = vld [vmem:[%s5925_s4 + $0x2fe0] sm:$0xff] }
 0x32e   : > { %5504 = vmatpush1.bf16.msra.mxu1 %v5503_v19  ;;  %4706 = vmatprep.subr.bf16.mxu0 %v4705_v20  ;;  %v1850_v19 = vld [vmem:[%s5925_s4 + $0x2fd0] sm:$0xff]  ;;  %v5525_v20 = vpack.c.bf16 %v1855_v13, %v1851_v12  ;;  %v4727_v26 = vpack.c.bf16 %v1852_v18, %v1848_v17  ;;  %v5543_v13 = vpack.c.bf16 %v1886_v7, %v1882_v5  ;;  %v3784_v7 = vlaneseq (!%p3957_p6) }
 0x32f   : > { %5506 = vmatprep.subr.bf16.mxu1 %v5505_v24  ;;  %v1859_v24 = vld [vmem:[%s5925_s4 + $0x3018] sm:$0xff]  ;;  %v5527_v27 = vpack.c.bf16 %v1854_v21, %v1850_v19  ;;  %v1890_v17 = vld [vmem:[%s5925_s4 + $0x3110] sm:$0xff]  ;;  %v5545_v18 = vpack.c.bf16 %v1895_v11, %v1891_v10  ;;  %v1901_v21 = vld [vmem:[%s5925_s4 + $0x3168] sm:$0xff] }
 0x330   : > { %v1894_v19 = vld [vmem:[%s5925_s4 + $0x3130] sm:$0xff] }
 0x331   : > { %4708 = vmatpush1.bf16.msra.mxu0 %v4707_v30  ;;  %v1860_v30 = vld [vmem:[%s5925_s4 + $0x3020] sm:$0xff] }
 0x332   : > { %5508 = vmatpush1.bf16.msra.mxu1 %v5507_v31  ;;  %4710 = vmatprep.subr.bf16.mxu0 %v4709_v32  ;;  %v1858_v31 = vld [vmem:[%s5925_s4 + $0x3010] sm:$0xff]  ;;  %v5529_v32 = vpack.c.bf16 %v1863_v25, %v1859_v24  ;;  %v4731_v39 = vpack.c.bf16 %v1860_v30, %v1856_v29  ;;  %v5547_v25 = vpack.c.bf16 %v1894_v19, %v1890_v17 }
 0x333   : > { %5510 = vmatprep.subr.bf16.mxu1 %v5509_v36  ;;  %v1867_v36 = vld [vmem:[%s5925_s4 + $0x3058] sm:$0xff]  ;;  %v5531_v40 = vpack.c.bf16 %v1862_v33, %v1858_v31  ;;  %v1898_v29 = vld [vmem:[%s5925_s4 + $0x3150] sm:$0xff]  ;;  %v5549_v30 = vpack.c.bf16 %v1903_v23, %v1899_v22  ;;  %v1909_v33 = vld [vmem:[%s5925_s4 + $0x31a8] sm:$0xff] }
 0x334   : > { %v5533_v45 = vpack.c.bf16 %v1871_v37, %v1867_v36  ;;  %v1902_v31 = vld [vmem:[%s5925_s4 + $0x3170] sm:$0xff] }
 0x335   : > { %4712 = vmatpush1.bf16.msra.mxu0 %v4711_v42  ;;  %v1864_v42 = vld [vmem:[%s5925_s4 + $0x3040] sm:$0xff]  ;;  %v5551_v37 = vpack.c.bf16 %v1902_v31, %v1898_v29 }
 0x336   : > { %5512 = vmatpush1.bf16.msra.mxu1 %v5511_v43  ;;  %4714 = vmatprep.subr.bf16.mxu0 %v4713_v44  ;;  %v1868_v43 = vld [vmem:[%s5925_s4 + $0x3060] sm:$0xff]  ;;  %v1866_v44 = vld [vmem:[%s5925_s4 + $0x3050] sm:$0xff] }
 0x337   : > { %5514 = vmatprep.subr.bf16.mxu1 %v5513_v48  ;;  %v1877_v48 = vld [vmem:[%s5925_s4 + $0x30a8] sm:$0xff]  ;;  %v4735_v51 = vpack.c.bf16 %v1868_v43, %v1864_v42  ;;  %v5535_v52 = vpack.c.bf16 %v1870_v46, %v1866_v44  ;;  %v5553_v42 = vpack.c.bf16 %v1911_v35, %v1907_v34  ;;  %v1910_v43 = vld [vmem:[%s5925_s4 + $0x31b0] sm:$0xff]  ;;  %v1915_v46 = vld [vmem:[%s5925_s4 + $0x31d8] sm:$0xff] }
 0x338   : > { %v4737_v53 = vpack.c.bf16 %v1877_v48, %v1873_v47  ;;  %v1913_v44 = vld [vmem:[%s5925_s4 + $0x31c8] sm:$0xff]  ;;  %v1919_v47 = vld [vmem:[%s5925_s4 + $0x31f8] sm:$0xff] }
 0x339   : > { %4716 = vmatpush1.bf16.msra.mxu0 %v4715_v54  ;;  %v1872_v54 = vld [vmem:[%s5925_s4 + $0x3080] sm:$0xff] }
 0x33a   : > { %5516 = vmatpush1.bf16.msra.mxu1 %v5515_v55  ;;  %4718 = vmatprep.subr.bf16.mxu0 %v4717_v56  ;;  %v1876_v55 = vld [vmem:[%s5925_s4 + $0x30a0] sm:$0xff]  ;;  %v1874_v56 = vld [vmem:[%s5925_s4 + $0x3090] sm:$0xff] }
 0x33b   : > { %5518 = vmatprep.subr.bf16.mxu1 %v5517_v60  ;;  %v1885_v60 = vld [vmem:[%s5925_s4 + $0x30e8] sm:$0xff]  ;;  %v4739_v0 = vpack.c.bf16 %v1876_v55, %v1872_v54  ;;  %v5539_v1 = vpack.c.bf16 %v1878_v58, %v1874_v56  ;;  %v1914_v54 = vld [vmem:[%s5925_s4 + $0x31d0] sm:$0xff]  ;;  %v319_v58 = vld [vmem:[%s5948_s20 + $0xc0] sm:$0xff] }
 0x33c   : > { %v1918_v55 = vld [vmem:[%s5925_s4 + $0x31f0] sm:$0xff] }
 0x33d   : > { %4720 = vmatpush1.bf16.msra.mxu0 %v4719_v2  ;;  %v4741_v2 = vpack.c.bf16 %v1885_v60, %v1881_v59  ;;  %v291_v59 = vld [vmem:[#allocation2] sm:$0xff]  ;;  %v293_v60 = vld [vmem:[#allocation2 + $0x10] sm:$0xff] }
 0x33e   : > { %5520 = vmatpush1.bf16.msra.mxu1 %v5519_v3  ;;  %4722 = vmatprep.subr.bf16.mxu0 %v4721_v4  ;;  %v1880_v3 = vld [vmem:[%s5925_s4 + $0x30c0] sm:$0xff] }
 0x33f   : > { %5522 = vmatprep.subr.bf16.mxu1 %v5521_v8  ;;  %v1884_v4 = vld [vmem:[%s5925_s4 + $0x30e0] sm:$0xff]  ;;  %v1889_v8 = vld [vmem:[%s5925_s4 + $0x3108] sm:$0xff] }
 0x340   : > { %v4743_v12 = vpack.c.bf16 %v1884_v4, %v1880_v3 }
 0x341   : > { %4724 = vmatpush1.bf16.msra.mxu0 %v4723_v14  ;;  %v4745_v14 = vpack.c.bf16 %v1893_v9, %v1889_v8  ;;  %v3785_v8 = vshrl.u32 (!%p3957_p6), %v3784_v7, 7  ;;  %v3782_v9 = vld [vmem:[%s271_s6] sm:$0xf] (!%p3957_p6) }
 0x342   : > { %5524 = vmatpush1.bf16.msra.mxu1 %v5523_v15  ;;  %4726 = vmatprep.subr.bf16.mxu0 %v4725_v16  ;;  %v1888_v15 = vld [vmem:[%s5925_s4 + $0x3100] sm:$0xff] }
 0x343   : > { %5526 = vmatprep.subr.bf16.mxu1 %v5525_v20  ;;  %v1892_v16 = vld [vmem:[%s5925_s4 + $0x3120] sm:$0xff]  ;;  %v1897_v20 = vld [vmem:[%s5925_s4 + $0x3148] sm:$0xff]  ;;  %v3786_v11 = vsub.s32 (!%p3957_p6), 0, %v3785_v8 }
 0x344   : > { %v4747_v24 = vpack.c.bf16 %v1892_v16, %v1888_v15 }
 0x345   : > { %4728 = vmatpush1.bf16.msra.mxu0 %v4727_v26  ;;  %v4749_v26 = vpack.c.bf16 %v1901_v21, %v1897_v20 }
 0x346   : > { %5528 = vmatpush1.bf16.msra.mxu1 %v5527_v27  ;;  %4730 = vmatprep.subr.bf16.mxu0 %v4729_v28  ;;  %v1896_v27 = vld [vmem:[%s5925_s4 + $0x3140] sm:$0xff] }
 0x347   : > { %5530 = vmatprep.subr.bf16.mxu1 %v5529_v32  ;;  %v1900_v28 = vld [vmem:[%s5925_s4 + $0x3160] sm:$0xff]  ;;  %v1905_v32 = vld [vmem:[%s5925_s4 + $0x3188] sm:$0xff] }
 0x348   : > { %2766 = vmatmul.mubr.f32.vlgmr.msra.gmra.mrb[0].mxu0 %v317_v38  ;;  %v4751_v36 = vpack.c.bf16 %v1900_v28, %v1896_v27 }
 0x349   : > { %4732 = vmatpush1.bf16.msra.mxu0 %v4731_v39  ;;  %3689 = vmatmul.mubr.f32.vlgmr.msra.gmra.mrb[0].mxu1 %v317_v38  ;;  %v4753_v38 = vpack.c.bf16 %v1909_v33, %v1905_v32  ;;  %v1904_v39 = vld [vmem:[%s5925_s4 + $0x3180] sm:$0xff] }
 0x34a   : > { %5532 = vmatpush1.bf16.msra.mxu1 %v5531_v40  ;;  %4734 = vmatprep.subr.bf16.mxu0 %v4733_v41  ;;  %v1908_v40 = vld [vmem:[%s5925_s4 + $0x31a0] sm:$0xff]  ;;  %v1906_v41 = vld [vmem:[%s5925_s4 + $0x3190] sm:$0xff] }
 0x34b   : > { %5534 = vmatprep.subr.bf16.mxu1 %v5533_v45  ;;  %2836 = vmatprep.mubr.f32.mxu0 %v5790_v61  ;;  %v1917_v45 = vld [vmem:[%s5925_s4 + $0x31e8] sm:$0xff]  ;;  %v4755_v48 = vpack.c.bf16 %v1908_v40, %v1904_v39  ;;  %v5555_v49 = vpack.c.bf16 %v1910_v43, %v1906_v41 }
 0x34c   : > { %3759 = vmatprep.mubr.f32.mxu1 %v5790_v61  ;;  %v4757_v50 = vpack.c.bf16 %v1917_v45, %v1913_v44  ;;  %v292_v61 = vld [vmem:[#allocation2 + $0x8] sm:$0xff] }
 0x34d   : > { %4736 = vmatpush1.bf16.msra.mxu0 %v4735_v51  ;;  %v1912_v51 = vld [vmem:[%s5925_s4 + $0x31c0] sm:$0xff] }
 0x34e   : > { %5536 = vmatpush1.bf16.msra.mxu1 %v5535_v52  ;;  %4738 = vmatprep.subr.bf16.mxu0 %v4737_v53  ;;  %v1916_v52 = vld [vmem:[%s5925_s4 + $0x31e0] sm:$0xff]  ;;  %v5557_v53 = vpack.c.bf16 %v1919_v47, %v1915_v46 }
 0x34f   : > { %5538 = vmatprep.subr.bf16.mxu1 %v5537_v57  ;;  %v4759_v56 = vpack.c.bf16 %v1916_v52, %v1912_v51  ;;  %v5559_v57 = vpack.c.bf16 %v1918_v55, %v1914_v54 }
 0x351   : > { %4740 = vmatpush1.bf16.msra.mxu0 %v4739_v0 }
 0x352   : > { %5540 = vmatpush1.bf16.msra.mxu1 %v5539_v1  ;;  %4742 = vmatprep.subr.bf16.mxu0 %v4741_v2 }
 0x353   : > { %5542 = vmatprep.subr.bf16.mxu1 %v5541_v6 }
 0x355   : > { %4744 = vmatpush1.bf16.msra.mxu0 %v4743_v12  ;;  %v3790_v12 = vsub.s32 (!%p3957_p6), 1, %v3785_v8 }
 0x356   : > { %5544 = vmatpush1.bf16.msra.mxu1 %v5543_v13  ;;  %4746 = vmatprep.subr.bf16.mxu0 %v4745_v14  ;;  %v3794_v13 = vsub.s32 (!%p3957_p6), 2, %v3785_v8  ;;  %v3798_v14 = vsub.s32 (!%p3957_p6), 3, %v3785_v8 }
 0x357   : > { %5546 = vmatprep.subr.bf16.mxu1 %v5545_v18  ;;  %v3787_v18 = vrot.slane (!%p3957_p6), %v3782_v9, %v3786_v11  ;;  %v3791_v19 = vrot.slane (!%p3957_p6), %v3782_v9, %v3790_v12 }
 0x358   : > { %v3795_v20 = vrot.slane (!%p3957_p6), %v3782_v9, %v3794_v13  ;;  %v3799_v21 = vrot.slane (!%p3957_p6), %v3782_v9, %v3798_v14 }
 0x359   : > { %4748 = vmatpush1.bf16.msra.mxu0 %v4747_v24 }
 0x35a   : > { %5548 = vmatpush1.bf16.msra.mxu1 %v5547_v25  ;;  %4750 = vmatprep.subr.bf16.mxu0 %v4749_v26 }
 0x35b   : > { %5550 = vmatprep.subr.bf16.mxu1 %v5549_v30 }
 0x35d   : > { %4752 = vmatpush1.bf16.msra.mxu0 %v4751_v36 }
 0x35e   : > { %5552 = vmatpush1.bf16.msra.mxu1 %v5551_v37  ;;  %4754 = vmatprep.subr.bf16.mxu0 %v4753_v38 }
 0x35f   : > { %5554 = vmatprep.subr.bf16.mxu1 %v5553_v42 }
 0x361   : > { %4756 = vmatpush1.bf16.msra.mxu0 %v4755_v48 }
 0x362   : > { %5556 = vmatpush1.bf16.msra.mxu1 %v5555_v49  ;;  %4758 = vmatprep.subr.bf16.mxu0 %v4757_v50 }
 0x363   : > { %5558 = vmatprep.subr.bf16.mxu1 %v5557_v53 }
 0x365   : > { %4760 = vmatpush1.bf16.msra.mxu0 %v4759_v56 }
 0x366   : > { %5560 = vmatpush1.bf16.msra.mxu1 %v5559_v57 }
 0x368   : > { %2837 = vmatmul.mubr.f32.vlgmr.msra.gmra.mrb[0].mxu0 %v319_v58 }
 0x369   : > { %3760 = vmatmul.mubr.f32.vlgmr.msra.gmra.mrb[0].mxu1 %v319_v58 }
 0x43a   : > { %3777 = sbr.rel (%p3957_p6) target bundleno = 1101 (0x44d), region = 44 }
 0x43b   : > { %v2838_v62 = vpop.f32.mrb[0].mxu0 }
 0x43c   : > { %v3766_v0 = vadd.f32 %v2838_v62, %v291_v59  ;;  %v3761_v1 = vpop.f32.mrb[0].mxu1  ;;  %v2840_v2 = vpop.f32.mrb[1].mxu0 }
 0x43d   : > { %v3768_v3 = vadd.f32 %v3761_v1, %v293_v60  ;;  %v3767_v4 = vadd.f32 %v2840_v2, %v292_v61  ;;  %v3763_v5 = vpop.f32.mrb[1].mxu1 }
 0x43e   : > { %3770 = vst [vmem:[#allocation2] sm:$0xff] %v3766_v0  ;;  %v3769_v6 = vadd.f32 %v3763_v5, %v294_v63 }
 0x43f   : > { %3772 = vst [vmem:[#allocation2 + $0x10] sm:$0xff] %v3768_v3  ;;  %3771 = vst [vmem:[#allocation2 + $0x8] sm:$0xff] %v3767_v4 }
 0x440   : > { %3773 = vst [vmem:[#allocation2 + $0x18] sm:$0xff] %v3769_v6 }
 0x445   : > { %v3778_v10 = vld [vmem:[#allocation2] sm:$0xff] }
 0x446   : > { %v3779_v15 = vld [vmem:[#allocation2 + $0x8] sm:$0xff]  ;;  %v3780_v16 = vld [vmem:[#allocation2 + $0x10] sm:$0xff]  ;;  %v3804_v22 = vadd.f32 %v3787_v18, %v3778_v10 }
 0x447   : > { %v3781_v17 = vld [vmem:[#allocation2 + $0x18] sm:$0xff]  ;;  %v3805_v23 = vadd.f32 %v3791_v19, %v3779_v15  ;;  %v3806_v24 = vadd.f32 %v3795_v20, %v3780_v16 }
 0x448   : > { %v3807_v25 = vadd.f32 %v3799_v21, %v3781_v17  ;;  %v3808_v26 = vmax.f32 %v3804_v22, 0.0 }
 0x449   : > { %v3809_v27 = vmax.f32 %v3805_v23, 0.0  ;;  %v3810_v28 = vmax.f32 %v3806_v24, 0.0 }
 0x44a   : > { %v3811_v29 = vmax.f32 %v3807_v25, 0.0  ;;  %3812 = vst [vmem:[%s5943_s11] sm:$0xff] %v3808_v26 }
 0x44b   : > { %3813 = vst [vmem:[%s5943_s11 + $0x8] sm:$0xff] %v3809_v27  ;;  %3814 = vst [vmem:[%s5943_s11 + $0x10] sm:$0xff] %v3810_v28 }
 0x44c   : > { %3815 = vst [vmem:[%s5943_s11 + $0x18] sm:$0xff] %v3811_v29 }
 0x44d PF: > { %s16_s19 = sadd.s32 1, %s5783_s19   ;;  %s7617_s12 = smov %s5759_s13 }
 0x44e   : > { %p13_p8 = scmp.ge.s32.totalorder %s16_s19, 102   ;;  %s7618_s13 = smov %s5763_s14 }
 0x44f   : > { %s7619_s14 = smov %s5878_s5  ;;  %s7620_s15 = smov %s5775_s17 }
 0x450   : > { %s7621_s16 = smov %s5779_s18  ;;  %s7622_s17 = smov %s7625_s21 }
 0x451   : > { %s7623_s18 = smov %s7629_s22  ;;  %15 = sbr.rel (!%p13_p8) target bundleno = 5 (0x5), region = 86 }
 0x458   :  { %3846 = vsyncpa [#allocation4], 1 }
 0x459   :  { %3848 = vsyncpa [#allocation4 + $0x1], 1 }

</bundles_post_ra>
